<compile_context>
chip_gen: v5e
topology: v5e:2x2
jax: 0.10.0
libtpu: 0.0.40
codegen_flags: <defaults>
</compile_context>

<pallas_src>
import functools

import jax
import jax.numpy as jnp
from jax.experimental import pallas as pl
from jax.experimental.pallas import tpu as pltpu


def _window_attn_kernel(x_ref, wqkv_ref, bqkv_ref, wp_ref, bp_ref, o_ref, *, num_heads):
    """One grid step == a block of BW windows.

    x_ref    : (BW, N, C)   tokens of BW independent windows
    wqkv_ref : (C, 3C)      fused QKV weight, in x out, Q columns pre-scaled
    bqkv_ref : (1, 3C)      fused QKV bias (Q part pre-scaled)
    wp_ref   : (C, C)       output projection weight, in x out
    bp_ref   : (1, C)       output projection bias
    o_ref    : (BW, N, C)
    """
    BW, N, C = x_ref.shape
    hd = C // num_heads

    x2 = x_ref[...].reshape(BW * N, C)

    # One big lane-dense QKV projection for all BW windows and all heads at once.
    qkv = jnp.dot(x2, wqkv_ref[...], preferred_element_type=jnp.float32) + bqkv_ref[...]

    acc = jnp.zeros((BW * N, C), dtype=jnp.float32)
    for h in range(num_heads):  # static unroll; num_heads is tiny
        q = qkv[:, h * hd:(h + 1) * hd].reshape(BW, N, hd)
        k = qkv[:, C + h * hd:C + (h + 1) * hd].reshape(BW, N, hd)
        v = qkv[:, 2 * C + h * hd:2 * C + (h + 1) * hd].reshape(BW, N, hd)

        # Per-window attention logits; contraction on the last dims (no explicit k.T).
        s = jnp.einsum('bnd,bmd->bnm', q, k, preferred_element_type=jnp.float32)

        # Numerically stable softmax over keys; reciprocal goes to the EUP slot.
        m = jnp.max(s, axis=-1, keepdims=True)
        p = jnp.exp(s - m)
        l = jnp.sum(p, axis=-1, keepdims=True)
        p = p * pl.reciprocal(l, approx=True)

        ctx = jnp.einsum('bnm,bmd->bnd', p, v, preferred_element_type=jnp.float32)

        # Accumulate this head's contribution to the output projection (no concat).
        acc = acc + jnp.dot(ctx.reshape(BW * N, hd),
                            wp_ref[h * hd:(h + 1) * hd, :],
                            preferred_element_type=jnp.float32)

    out = acc + bp_ref[...]
    o_ref[...] = out.reshape(BW, N, C).astype(o_ref.dtype)


def window_attention(x, wqkv, bqkv, wproj, bproj, *, num_heads, block_windows=16):
    """x: (B_, N, C).  wqkv: (3C, C), bqkv: (3C,), wproj: (C, C), bproj: (C,).

    Weights use the PyTorch nn.Linear convention (out_features, in_features);
    they are transposed to in x out form and the qk scale is folded into the
    Q weight/bias here (plain-JAX glue outside the kernel).
    """
    B_, N, C = x.shape
    assert C % num_heads == 0
    hd = C // num_heads
    scale = hd ** -0.5

    # Fused (in x out) QKV weight/bias; column order = [q | k | v] with heads
    # laid out exactly as the PyTorch reshape (which*C + head*hd + d).
    col_scale = jnp.concatenate([
        jnp.full((C,), scale, dtype=x.dtype),
        jnp.ones((2 * C,), dtype=x.dtype),
    ])
    w_qkv = wqkv.T * col_scale[None, :]          # (C, 3C)
    b_qkv = (bqkv * col_scale).reshape(1, 3 * C)  # (1, 3C)
    wp = wproj.T                                  # (C, C)
    bp = bproj.reshape(1, C)                      # (1, C)

    # Batch windows per grid step; pad B_ up to a multiple of BW if needed
    # (windows are independent, so zero-padded windows are simply dropped).
    BW = min(block_windows, B_)
    n_blocks = pl.cdiv(B_, BW)
    B_pad = n_blocks * BW
    if B_pad != B_:
        x = jnp.pad(x, ((0, B_pad - B_), (0, 0), (0, 0)))

    flops = (2 * B_pad * N * C * 3 * C      # fused QKV projection
             + 4 * B_pad * N * N * C        # q@k^T and p@v (all heads)
             + 2 * B_pad * N * C * C)       # output projection
    transcendentals = B_pad * num_heads * N * N          # exp (softmax)
    bytes_accessed = 4 * (2 * B_pad * N * C + 3 * C * C + 3 * C + C * C + C)
    cost = pl.CostEstimate(flops=flops, transcendentals=transcendentals,
                           bytes_accessed=bytes_accessed)

    kernel = functools.partial(_window_attn_kernel, num_heads=num_heads)

    out = pl.pallas_call(
        kernel,
        out_shape=jax.ShapeDtypeStruct((B_pad, N, C), x.dtype),
        grid=(n_blocks,),
        in_specs=[
            pl.BlockSpec((BW, N, C), lambda b: (b, 0, 0)),
            pl.BlockSpec((C, 3 * C), lambda b: (0, 0)),
            pl.BlockSpec((1, 3 * C), lambda b: (0, 0)),
            pl.BlockSpec((C, C), lambda b: (0, 0)),
            pl.BlockSpec((1, C), lambda b: (0, 0)),
        ],
        out_specs=pl.BlockSpec((BW, N, C), lambda b: (b, 0, 0)),
        compiler_params=pltpu.CompilerParams(dimension_semantics=("parallel",)),
        cost_estimate=cost,
    )(x, w_qkv, b_qkv, wp, bp)

    return out[:B_] if B_pad != B_ else out


def ref_forward(x, wqkv, bqkv, wproj, bproj, *, num_heads):
    """Pure-JAX mirror of the PyTorch forward (mask=None, dropout=0)."""
    B_, N, C = x.shape
    hd = C // num_heads
    scale = hd ** -0.5
    qkv = x @ wqkv.T + bqkv                              # (B_, N, 3C)
    qkv = qkv.reshape(B_, N, 3, num_heads, hd).transpose(2, 0, 3, 1, 4)
    q, k, v = qkv[0] * scale, qkv[1], qkv[2]             # (B_, H, N, hd)
    attn = jnp.einsum('bhnd,bhmd->bhnm', q, k)
    attn = jax.nn.softmax(attn, axis=-1)
    out = jnp.einsum('bhnm,bhmd->bhnd', attn, v)
    out = out.transpose(0, 2, 1, 3).reshape(B_, N, C)
    return out @ wproj.T + bproj


if __name__ == "__main__":
    # Shapes per the module spec: dim=320, num_heads=1, window 4x4 -> N=16 tokens.
    dim = 320
    num_heads = 1
    window_size = (4, 4)
    N = window_size[0] * window_size[1]
    B_ = 64  # number of windows; 64/BW(=16) = 4 grid steps (even -> v7x TC balance)

    key = jax.random.PRNGKey(0)
    kx, kqkv, kbq, kp, kbp, ktab = jax.random.split(key, 6)

    x = jax.random.normal(kx, (B_, N, dim), dtype=jnp.float32)

    # Deterministic parameter init (shapes per nn.Linear in __init__).
    wqkv = 0.02 * jax.random.normal(kqkv, (3 * dim, dim), dtype=jnp.float32)
    bqkv = 0.02 * jax.random.normal(kbq, (3 * dim,), dtype=jnp.float32)
    wproj = 0.02 * jax.random.normal(kp, (dim, dim), dtype=jnp.float32)
    bproj = 0.02 * jax.random.normal(kbp, (dim,), dtype=jnp.float32)
    # relative_position_bias_table exists in __init__ but is unused by forward().
    rel_pos_bias_table = 0.02 * jax.random.normal(
        ktab, ((2 * window_size[0] - 1) * (2 * window_size[1] - 1), num_heads),
        dtype=jnp.float32)
    del rel_pos_bias_table  # not consumed by the reference forward

    out = window_attention(x, wqkv, bqkv, wproj, bproj, num_heads=num_heads)
    out = jax.block_until_ready(out)

    ref = ref_forward(x, wqkv, bqkv, wproj, bproj, num_heads=num_heads)
    assert out.shape == (B_, N, dim)
    # Tolerance relaxed slightly vs. f32 exact because the softmax denominator
    # uses the EUP approximate reciprocal (per the performance review).
    assert jnp.allclose(out, ref, atol=2e-3, rtol=2e-3), (
        f"max abs err = {jnp.max(jnp.abs(out - ref))}")

    print("KERNEL_OK")
</pallas_src>

<mosaic_0001>
module attributes {stable_mosaic.version = 11 : i64} {
  func.func @_window_attn_kernel(%arg0: i32, %arg1: memref<16x16x320xf32, #tpu.memory_space<vmem>>, %arg2: memref<320x960xf32, #tpu.memory_space<vmem>>, %arg3: memref<1x960xf32, #tpu.memory_space<vmem>>, %arg4: memref<320x320xf32, #tpu.memory_space<vmem>>, %arg5: memref<1x320xf32, #tpu.memory_space<vmem>>, %arg6: memref<16x16x320xf32, #tpu.memory_space<vmem>>) attributes {dimension_semantics = [#tpu.dimension_semantics<parallel>], iteration_bounds = array<i64: 4>, scalar_prefetch = 0 : i64, scratch_operands = 0 : i64, tpu.core_type = #tpu.core_type<tc>, window_params = [{transform_indices = @transform_0, window_bounds = array<i64: 16, 16, 320>}, {pipeline_mode = #tpu.pipeline_mode<synchronous>, transform_indices = @transform_1, window_bounds = array<i64: 320, 960>}, {pipeline_mode = #tpu.pipeline_mode<synchronous>, transform_indices = @transform_2, window_bounds = array<i64: 1, 960>}, {pipeline_mode = #tpu.pipeline_mode<synchronous>, transform_indices = @transform_3, window_bounds = array<i64: 320, 320>}, {pipeline_mode = #tpu.pipeline_mode<synchronous>, transform_indices = @transform_4, window_bounds = array<i64: 1, 320>}, {transform_indices = @transform_5, window_bounds = array<i64: 16, 16, 320>}]} {
    %c0 = arith.constant 0 : index
    %c0_0 = arith.constant 0 : index
    %c0_1 = arith.constant 0 : index
    %0 = vector.load %arg1[%c0, %c0_0, %c0_1] : memref<16x16x320xf32, #tpu.memory_space<vmem>>, vector<16x16x320xf32>
    %1 = vector.shape_cast %0 : vector<16x16x320xf32> to vector<256x320xf32>
    %c0_2 = arith.constant 0 : index
    %c0_3 = arith.constant 0 : index
    %2 = vector.load %arg2[%c0_2, %c0_3] : memref<320x960xf32, #tpu.memory_space<vmem>>, vector<320x960xf32>
    %cst = arith.constant dense<0.000000e+00> : vector<256x960xf32>
    %3 = tpu.matmul %1, %2, %cst {dimension_numbers = #tpu.dot_dimension_numbers<[1], [0], [0], [1], [0, 0, 1, 1], [], []>} : vector<256x320xf32>, vector<320x960xf32>, vector<256x960xf32> -> vector<256x960xf32>
    %c0_4 = arith.constant 0 : index
    %c0_5 = arith.constant 0 : index
    %4 = vector.load %arg3[%c0_4, %c0_5] : memref<1x960xf32, #tpu.memory_space<vmem>>, vector<1x960xf32>
    %5 = vector.broadcast %4 : vector<1x960xf32> to vector<256x960xf32>
    %6 = arith.addf %3, %5 : vector<256x960xf32>
    %cst_6 = arith.constant 0.000000e+00 : f32
    %7 = vector.broadcast %cst_6 : f32 to vector<256x320xf32>
    %8 = vector.extract_strided_slice %6 {offsets = [0, 0], sizes = [256, 320], strides = [1, 1]} : vector<256x960xf32> to vector<256x320xf32>
    %9 = vector.shape_cast %8 : vector<256x320xf32> to vector<16x16x320xf32>
    %10 = vector.extract_strided_slice %6 {offsets = [0, 320], sizes = [256, 320], strides = [1, 1]} : vector<256x960xf32> to vector<256x320xf32>
    %11 = vector.shape_cast %10 : vector<256x320xf32> to vector<16x16x320xf32>
    %12 = vector.extract_strided_slice %6 {offsets = [0, 640], sizes = [256, 320], strides = [1, 1]} : vector<256x960xf32> to vector<256x320xf32>
    %13 = vector.shape_cast %12 : vector<256x320xf32> to vector<16x16x320xf32>
    "tpu.trace_start"() <{level = 10 : i32, message = "bnd,bmd->bnm"}> : () -> ()
    %cst_7 = arith.constant dense<0.000000e+00> : vector<16x16x16xf32>
    %14 = tpu.matmul %9, %11, %cst_7 {dimension_numbers = #tpu.dot_dimension_numbers<[2], [2], [1], [1], [0, 0, 0, 1, 1, 1], [0], [0]>} : vector<16x16x320xf32>, vector<16x16x320xf32>, vector<16x16x16xf32> -> vector<16x16x16xf32>
    "tpu.trace_stop"() : () -> ()
    %cst_8 = arith.constant dense<0xFF800000> : vector<16x16xf32>
    %15 = vector.multi_reduction <maximumf>, %14, %cst_8 [2] : vector<16x16x16xf32> to vector<16x16xf32>
    %16 = vector.shape_cast %15 : vector<16x16xf32> to vector<16x16x1xf32>
    %17 = vector.broadcast %16 : vector<16x16x1xf32> to vector<16x16x16xf32>
    %18 = arith.subf %14, %17 : vector<16x16x16xf32>
    %19 = math.exp %18 : vector<16x16x16xf32>
    %cst_9 = arith.constant dense<0.000000e+00> : vector<16x16xf32>
    %20 = vector.multi_reduction <add>, %19, %cst_9 [2] : vector<16x16x16xf32> to vector<16x16xf32>
    %21 = vector.shape_cast %20 : vector<16x16xf32> to vector<16x16x1xf32>
    %22 = tpu.reciprocal %21 {approx = true} : vector<16x16x1xf32> -> vector<16x16x1xf32>
    %23 = vector.broadcast %22 : vector<16x16x1xf32> to vector<16x16x16xf32>
    %24 = arith.mulf %19, %23 : vector<16x16x16xf32>
    "tpu.trace_start"() <{level = 10 : i32, message = "bnm,bmd->bnd"}> : () -> ()
    %cst_10 = arith.constant dense<0.000000e+00> : vector<16x16x320xf32>
    %25 = tpu.matmul %24, %13, %cst_10 {dimension_numbers = #tpu.dot_dimension_numbers<[2], [1], [1], [2], [0, 0, 0, 1, 1, 2], [0], [0]>} : vector<16x16x16xf32>, vector<16x16x320xf32>, vector<16x16x320xf32> -> vector<16x16x320xf32>
    "tpu.trace_stop"() : () -> ()
    %26 = vector.shape_cast %25 : vector<16x16x320xf32> to vector<256x320xf32>
    %c0_11 = arith.constant 0 : index
    %c0_12 = arith.constant 0 : index
    %27 = vector.load %arg4[%c0_11, %c0_12] : memref<320x320xf32, #tpu.memory_space<vmem>>, vector<320x320xf32>
    %cst_13 = arith.constant dense<0.000000e+00> : vector<256x320xf32>
    %28 = tpu.matmul %26, %27, %cst_13 {dimension_numbers = #tpu.dot_dimension_numbers<[1], [0], [0], [1], [0, 0, 1, 1], [], []>} : vector<256x320xf32>, vector<320x320xf32>, vector<256x320xf32> -> vector<256x320xf32>
    %29 = arith.addf %7, %28 : vector<256x320xf32>
    %c0_14 = arith.constant 0 : index
    %c0_15 = arith.constant 0 : index
    %30 = vector.load %arg5[%c0_14, %c0_15] : memref<1x320xf32, #tpu.memory_space<vmem>>, vector<1x320xf32>
    %31 = vector.broadcast %30 : vector<1x320xf32> to vector<256x320xf32>
    %32 = arith.addf %29, %31 : vector<256x320xf32>
    %33 = vector.shape_cast %32 : vector<256x320xf32> to vector<16x16x320xf32>
    %c0_16 = arith.constant 0 : index
    %c0_17 = arith.constant 0 : index
    %c0_18 = arith.constant 0 : index
    %34 = vector.load %arg6[%c0_16, %c0_17, %c0_18] : memref<16x16x320xf32, #tpu.memory_space<vmem>>, vector<16x16x320xf32>
    tpu.vector_store %arg6[%c0_16, %c0_17, %c0_18], %33 {strides = array<i32>} : memref<16x16x320xf32, #tpu.memory_space<vmem>>, vector<16x16x320xf32>,
    return
  }
  func.func @transform_0(%arg0: i32) -> (i32, i32, i32) {
    %c0_i32 = arith.constant 0 : i32
    %c0_i32_0 = arith.constant 0 : i32
    %c0_i32_1 = arith.constant 0 : i32
    return %arg0, %c0_i32, %c0_i32_0 : i32, i32, i32
  }
  func.func @transform_1(%arg0: i32) -> (i32, i32) {
    %c0_i32 = arith.constant 0 : i32
    %c0_i32_0 = arith.constant 0 : i32
    %c0_i32_1 = arith.constant 0 : i32
    return %c0_i32, %c0_i32_0 : i32, i32
  }
  func.func @transform_2(%arg0: i32) -> (i32, i32) {
    %c0_i32 = arith.constant 0 : i32
    %c0_i32_0 = arith.constant 0 : i32
    %c0_i32_1 = arith.constant 0 : i32
    return %c0_i32, %c0_i32_0 : i32, i32
  }
  func.func @transform_3(%arg0: i32) -> (i32, i32) {
    %c0_i32 = arith.constant 0 : i32
    %c0_i32_0 = arith.constant 0 : i32
    %c0_i32_1 = arith.constant 0 : i32
    return %c0_i32, %c0_i32_0 : i32, i32
  }
  func.func @transform_4(%arg0: i32) -> (i32, i32) {
    %c0_i32 = arith.constant 0 : i32
    %c0_i32_0 = arith.constant 0 : i32
    %c0_i32_1 = arith.constant 0 : i32
    return %c0_i32, %c0_i32_0 : i32, i32
  }
  func.func @transform_5(%arg0: i32) -> (i32, i32, i32) {
    %c0_i32 = arith.constant 0 : i32
    %c0_i32_0 = arith.constant 0 : i32
    %c0_i32_1 = arith.constant 0 : i32
    return %arg0, %c0_i32, %c0_i32_0 : i32, i32, i32
  }
}

</mosaic_0001>

<bundles_post_ra>
// kernel: tpu_custom_call.1
= control target key start
LH: loop header
LB: loop body
LE: loop exit
PB: predicated region body
PF: predicated region fallthrough
CT: control target
= control target key end

     0   :  { %s16044_s0 = inlined_call_operand.hbm [shape: f32[64,16,320], index: 0, kind: input, shape index: {}]   ;;  %s16045_s1 = inlined_call_operand.hbm [shape: f32[320,960], index: 1, kind: input, shape index: {}]   ;;  %s16046_s2 = inlined_call_operand.hbm [shape: f32[1,960], index: 2, kind: input, shape index: {}]   ;;  %s16047_s3 = inlined_call_operand.hbm [shape: f32[320,320], index: 3, kind: input, shape index: {}]   ;;  %s16048_s4 = inlined_call_operand.hbm [shape: f32[1,320], index: 4, kind: input, shape index: {}]   ;;  %s16049_s5 = inlined_call_operand.hbm [shape: f32[64,16,320], index: 5, kind: output, shape index: {}]  }
   0x1   :  { %16318 = sst [smem:[#allocation334_spill]] %s16045_s1 }
   0x2   :  { %10 = vsyncpa [#allocation3], 0 }
   0x3   :  { %12 = vsyncpa [#allocation3 + $0x1], 0 }
   0x4   :  { %13 = vsyncpa [#allocation6], 0 }
   0x5   :  { %14 = vsyncpa [#allocation9], 0 }
   0x6   :  { %15 = vsyncpa [#allocation4], 0 }
   0x7   :  { %17 = vsyncpa [#allocation4 + $0x1], 0  ;;  %s9710_s18 = smov 0   ;;  %s9712_s19 = smov 0  }
   0x8   :  { %s9714_s20 = smov 0   ;;  %s9716_s21 = smov 0  }
   0x9 LB: > { %s9731_s22 = sadd.s32 4294967295, %s9667_s21   ;;  %s8219_s23 = sadd.s32 4294967294, %s9667_s21   ;;  %s9667_s21 = sphi %s9716_s21, %s17658_s21   ;;  %s9663_s20 = sphi %s9714_s20, %s17657_s20   ;;  %s9659_s19 = sphi %s9712_s19, %s17656_s19   ;;  %s9655_s18 = sphi %s9710_s18, %s17655_s18  }
   0xa   : > { %p43_p0 = scmp.ne.s32.totalorder %s9659_s19, %s9655_s18  ;;  %p44_p1 = scmp.eq.s32.totalorder %s9731_s22, 0 }
   0xb   : > { %p151_p2 = scmp.eq.s32.totalorder %s9731_s22, 3  ;;  %p157_p3 = scmp.eq.s32.totalorder %s8219_s23, 3 }
   0xc   : > { %p9740_p4 = por %p44_p1, %p43_p0  ;;  %p8220_p5 = scmp.ge.s32.totalorder %s9667_s21, 1 }
   0xd   : > { %p9745_p6 = por %p157_p3, %p43_p0  ;;  %p164_p7 = scmp.lt.s32.totalorder %s9667_s21, 5 }
   0xe   : > { %s16321_s1 = sld [smem:[#allocation334_spill]]  ;;  %s9669_s30 = smov [#allocation5]  }
   0xf   : > { %p9753_p8 = pnand %p8220_p5, %p164_p7  ;;  %s177_s6 = sshll.u32 %s9669_s30, 4  ;;  %s178_s6 = int_to_ptr.vmem [resolvable:$true] %s177_s6 }
  0x10   : > { %s201_s10 = sshll.u32 %s16047_s3, 4  ;;  %s9670_s11 = smov 1024   ;;  %s202_s10 = int_to_ptr.hbm [resolvable:$true] %s201_s10 }
  0x11   : > { %p8815_p9 = pneg %p9753_p8  ;;  %s9671_s12 = smov 64  }
  0x12   : > { %s9672_s13 = smov [#allocation8]   ;;  %s16050_s15 = smov 384  }
  0x13   : > { %p9761_p10 = pnand %p8815_p9, %p44_p1  ;;  %s203_s14 = sshll.u32 %s9672_s13, 4  ;;  %s204_s14 = int_to_ptr.vmem [resolvable:$true] %s203_s14 }
  0x14   : > { %s175_s28 = sshll.u32 %s16321_s1, 4  ;;  %s16051_s16 = smov 24   ;;  %s176_s28 = int_to_ptr.hbm [resolvable:$true] %s175_s28 }
  0x15   : > { %8818 = dma.hbm_to_vmem [thread:$0]  (!%p9761_p10), %s176_s28, 40960, %s178_s6, [#allocation6], %s9670_s11, %s9670_s11, %s9671_s12  }
  0x16   : > { %8824 = dma.hbm_to_vmem [thread:$0]  (!%p9761_p10), %s202_s10, 15360, %s204_s14, [#allocation9], %s16050_s15, %s16050_s15, %s16051_s16  }
  0x17   : > { %s190_s26 = sshll.u32 %s16046_s2, 4  ;;  %s9675_s27 = smov [#allocation7]   ;;  %s191_s26 = int_to_ptr.hbm [resolvable:$true] %s190_s26 }
  0x18   : > { %s192_s28 = sshll.u32 %s9675_s27, 4  ;;  %s216_s8 = sshll.u32 %s16048_s4, 4  ;;  %s193_s28 = int_to_ptr.vmem [resolvable:$true] %s192_s28  ;;  %s217_s8 = int_to_ptr.hbm [resolvable:$true] %s216_s8 }
  0x19   : > { %8821 = dma.hbm_to_vmem [thread:$0]  (!%p9761_p10), %s191_s26, 128, %s193_s28, [#allocation6]  }
  0x1a   : > { %s9676_s9 = smov [#allocation10]   ;;  %s9786_s11 = sadd.s32 1, %s9667_s21  }
  0x1b   : > { %s218_s10 = sshll.u32 %s9676_s9, 4  ;;  %s30_s12 = sadd.s32 1, %s9663_s20  ;;  %s219_s10 = int_to_ptr.vmem [resolvable:$true] %s218_s10 }
  0x1c   : > { %8827 = dma.hbm_to_vmem [thread:$0]  (!%p9761_p10), %s217_s8, 48, %s219_s10, [#allocation9]  }
  0x1d   : > { %s27_s13 = ssub.s32 %s9667_s21, %s9786_s11  ;;  %p37_p11 = scmp.ne.s32.totalorder %s9663_s20, %s9659_s19 }
  0x1e   : > { %p28_p12 = scmp.eq.s32.totalorder %s27_s13, 0  ;;  %p38_p13 = scmp.eq.s32.totalorder %s9667_s21, 0 }
  0x1f   : > { %p9796_p0 = por %p151_p2, %p37_p11  ;;  %p8840_p3 = scmp.lt.s32.totalorder %s9667_s21, 4 }
  0x20   : > { %s9802_s17 = scalar_select %p28_p12, %s9663_s20, %s30_s12  }
  0x21   : > { %p39_p5 = por %p38_p13, %p37_p11  ;;  %s229_s23 = sand.u32 1, %s9663_s20  }
  0x22   : > { %s8791_s7 = smul.u32 768, %s229_s23  ;;  %s230_s12 = scalar_lea.sflag [#allocation3], %s229_s23 }
  0x23   : > { %s8792_s26 = smul.u32 768, %s9667_s21  ;;  %p9806_p7 = pnand %p8840_p3, %p39_p5 }
  0x24   : > { %s233_s8 = scalar_lea.vmem [#allocation2], %s8791_s7  ;;  %s9570_s28 = scalar_lea.hbm %s16044_s0, 3072 }
  0x25   : > { %s239_s6 = scalar_lea.hbm %s16044_s0, %s8792_s26  ;;  %s242_s9 = sshll.u32 %s233_s8, 4  ;;  %s243_s9 = int_to_ptr.vmem [resolvable:$true] %s242_s9 }
  0x26   : > { %s240_s10 = sshll.u32 %s239_s6, 4  ;;  %p9567_p9 = pneg %p9806_p7  ;;  %s241_s10 = int_to_ptr.hbm [resolvable:$true] %s240_s10 }
  0x27   : > { %s9563_s13 = sshra.s32 %s241_s10, 4  ;;  %s9564_s13 = int_to_ptr.hbm [resolvable:$true] %s9563_s13 }
  0x28   : > { %s9565_s15 = scalar_lea.hbm %s9564_s13, 768  ;;  %p9571_p12 = scmp.lt.s32.totalorder %s9564_s13, %s16044_s0 }
  0x29   : > { %p9566_p2 = scmp.ne.s32.totalorder %s9564_s13, %s9565_s15  ;;  %p9572_p13 = scmp.lt.s32.totalorder %s9570_s28, %s9565_s15 }
  0x2b   : > { %p9568_p10 = pnand %p9567_p9, %p9566_p2  ;;  %p9573_p3 = por %p9572_p13, %p9571_p12 }
  0x2d   : > { %p9569_p11 = pneg %p9568_p10 }
  0x2f   : > { %p9574_p5 = pnand %p9573_p3, %p9569_p11 }
  0x31   : > { %9577 = shalt.err (!%p9574_p5)
}
  0x32   : > { %s16326_s23 = smov 24   ;;  %s16327_s7 = smov 384  }
  0x33   : > { %8831 = dma.hbm_to_vmem [thread:$0]  (!%p9806_p7), %s241_s10, 12288, %s243_s9, %s230_s12, %s16327_s7, %s16327_s7, %s16326_s23  }
  0x34   : > { %254 = sbr.rel (%p9753_p8) target bundleno = 3454 (0xd7e), region = 40 }
  0x39   : > { %s9829_s1 = sand.u32 1, %s9659_s19  }
  0x3a   : > { %s8793_s15 = smul.u32 768, %s9829_s1  ;;  %s257_s16 = scalar_lea.sflag [#allocation3], %s9829_s1 }
  0x3c   : > { %s9835_s6 = scalar_lea.vmem [#allocation2], %s8793_s15 }
  0x3d   : > { %9638 = dma.done.wait (%p9740_p4), %s257_s16, 12288  }
  0x3e   : > { %9640 = vsyncadd (%p9740_p4), %s257_s16, 4294955008 }
  0x3f   : > { %9642 = dma.done.wait (%p44_p1), [#allocation6], 41088  }
  0x40   : > { %9644 = vsyncadd (%p44_p1), [#allocation6], 4294926208 }
  0x41   : > { %9646 = dma.done.wait (%p44_p1), [#allocation9], 15408  }
  0x42   : > { %9648 = vsyncadd (%p44_p1), [#allocation9], 4294951888  ;;  %v526_v0 = vld [vmem:[#allocation5 + $0x3c0] sm:$0xff]  ;;  %v312_v24 = vld [vmem:[%s9835_s6 + $0x10] sm:$0xff]  ;;  %vm744_vm0 = vcmask 523264   ;;  %s9677_s24 = smov 64  }
  0x43   : > { %v9849_v1 = vld [vmem:[#allocation5 + $0x7c0] sm:$0xff]  ;;  %841 = vmatpush.msra.mxu0 %v526_v0  ;;  %v655_v28 = vld [vmem:[#allocation5 + $0x7c8] sm:$0xff]  ;;  %v353_v46 = vld [vmem:[%s9835_s6 + $0x158] sm:$0xff]  ;;  %vm5201_vm1 = vcmask 130048   ;;  %s15178_s29 = scalar_lea.vmem [#allocation11], %s8793_s15  ;;  %s8794_s27 = smul.u32 768, %s9731_s22 }
  0x44   : > { %v718_v2 = vld [vmem:[#allocation5 + $0x9c0] sm:$0xff]  ;;  %8751 = vmatpush.msra.mxu1 %v9849_v1  ;;  %8752 = vmatpush.msra.mxu3 %v9849_v1  ;;  %v647_v31 = vld [vmem:[#allocation5 + $0x788] sm:$0xff]  ;;  %v380_v47 = vld [vmem:[%s9835_s6 + $0x230] sm:$0xff]  ;;  %s8105_s12 = sshll.u32 %s15178_s29, 4  ;;  %s8092_s22 = scalar_lea.sflag [#allocation4], %s9829_s1  ;;  %s8106_s12 = int_to_ptr.vmem [resolvable:$true] %s8105_s12 }
  0x45   : > { %v518_v3 = vld [vmem:[#allocation5 + $0x380] sm:$0xff]  ;;  %1075 = vmatpush.msra.mxu2 %v718_v2  ;;  %v315_v35 = vld [vmem:[%s9835_s6 + $0x28] sm:$0xff]  ;;  %v9928_v49 = vld [vmem:[%s9835_s6 + $0x18] sm:$0xff]  ;;  %s8104_s10 = scalar_lea.hbm %s16049_s5, %s8794_s27  ;;  %s9613_s7 = scalar_lea.hbm %s16049_s5, 3072 }
  0x46   : > { %v9852_v4 = vld [vmem:[#allocation5 + $0x780] sm:$0xff]  ;;  %842 = vmatpush.msra.mxu0 %v518_v3  ;;  %v639_v42 = vld [vmem:[#allocation5 + $0x748] sm:$0xff]  ;;  %v356_v50 = vld [vmem:[%s9835_s6 + $0x170] sm:$0xff]  ;;  %s8107_s13 = sshll.u32 %s8104_s10, 4  ;;  %s8108_s13 = int_to_ptr.hbm [resolvable:$true] %s8107_s13 }
  0x47   : > { %v710_v5 = vld [vmem:[#allocation5 + $0x980] sm:$0xff]  ;;  %8753 = vmatpush.msra.mxu1 %v9852_v4  ;;  %8754 = vmatpush.msra.mxu3 %v9852_v4  ;;  %v383_v51 = vld [vmem:[%s9835_s6 + $0x248] sm:$0xff]  ;;  %v321_v52 = vld [vmem:[%s9835_s6 + $0x58] sm:$0xff]  ;;  %s9607_s28 = sshra.s32 %s8108_s13, 4  ;;  %s9608_s28 = int_to_ptr.hbm [resolvable:$true] %s9607_s28 }
  0x48   : > { %v510_v6 = vld [vmem:[#allocation5 + $0x340] sm:$0xff]  ;;  %1076 = vmatpush.msra.mxu2 %v710_v5  ;;  %v527_v53 = vld [vmem:[#allocation5 + $0x3c8] sm:$0xff]  ;;  %v528_v54 = vld [vmem:[#allocation5 + $0x3d0] sm:$0xff]  ;;  %s9609_s30 = scalar_lea.hbm %s9608_s28, 768  ;;  %p9614_p7 = scmp.lt.s32.totalorder %s9608_s28, %s16049_s5 }
  0x49   : > { %v9855_v7 = vld [vmem:[#allocation5 + $0x740] sm:$0xff]  ;;  %843 = vmatpush.msra.mxu0 %v510_v6  ;;  %v631_v55 = vld [vmem:[#allocation5 + $0x708] sm:$0xff]  ;;  %v520_v57 = vld [vmem:[#allocation5 + $0x390] sm:$0xff]  ;;  %p9610_p1 = scmp.ne.s32.totalorder %s9608_s28, %s9609_s30  ;;  %p9615_p2 = scmp.lt.s32.totalorder %s9613_s7, %s9609_s30 }
  0x4a   : > { %v702_v8 = vld [vmem:[#allocation5 + $0x940] sm:$0xff]  ;;  %8755 = vmatpush.msra.mxu1 %v9855_v7  ;;  %8756 = vmatpush.msra.mxu3 %v9855_v7  ;;  %v519_v56 = vld [vmem:[#allocation5 + $0x388] sm:$0xff]  ;;  %v512_v59 = vld [vmem:[#allocation5 + $0x350] sm:$0xff] }
  0x4b   : > { %v502_v9 = vld [vmem:[#allocation5 + $0x300] sm:$0xff]  ;;  %1077 = vmatpush.msra.mxu2 %v702_v8  ;;  %v511_v58 = vld [vmem:[#allocation5 + $0x348] sm:$0xff]  ;;  %v9940_v60 = vld [vmem:[%s9835_s6 + $0x30] sm:$0xff]  ;;  %p9611_p4 = pnand %p9610_p1, %p9796_p0  ;;  %p9616_p9 = por %p9615_p2, %p9614_p7 }
  0x4c   : > { %v9859_v10 = vld [vmem:[#allocation5 + $0x700] sm:$0xff]  ;;  %844 = vmatpush.msra.mxu0 %v502_v9  ;;  %v359_v61 = vld [vmem:[%s9835_s6 + $0x188] sm:$0xff]  ;;  %v504_v63 = vld [vmem:[#allocation5 + $0x310] sm:$0xff] }
  0x4d   : > { %v694_v11 = vld [vmem:[#allocation5 + $0x900] sm:$0xff]  ;;  %8757 = vmatpush.msra.mxu1 %v9859_v10  ;;  %8758 = vmatpush.msra.mxu3 %v9859_v10  ;;  %v324_v0 = vld [vmem:[%s9835_s6 + $0x70] sm:$0xff]  ;;  %v495_v2 = vld [vmem:[#allocation5 + $0x2c8] sm:$0xff]  ;;  %p9612_p8 = pneg %p9611_p4 }
  0x4e   : > { %v494_v12 = vld [vmem:[#allocation5 + $0x2c0] sm:$0xff]  ;;  %1078 = vmatpush.msra.mxu2 %v694_v11  ;;  %v496_v3 = vld [vmem:[#allocation5 + $0x2d0] sm:$0xff]  ;;  %v389_v9 = vld [vmem:[%s9835_s6 + $0x278] sm:$0xff] }
  0x4f   : > { %v9863_v13 = vld [vmem:[#allocation5 + $0x6c0] sm:$0xff]  ;;  %845 = vmatpush.msra.mxu0 %v494_v12  ;;  %v488_v5 = vld [vmem:[#allocation5 + $0x290] sm:$0xff]  ;;  %v327_v11 = vld [vmem:[%s9835_s6 + $0x88] sm:$0xff]  ;;  %p9617_p10 = pnand %p9616_p9, %p9612_p8 }
  0x50   : > { %v686_v14 = vld [vmem:[#allocation5 + $0x8c0] sm:$0xff]  ;;  %8759 = vmatpush.msra.mxu1 %v9863_v13  ;;  %8760 = vmatpush.msra.mxu3 %v9863_v13  ;;  %v480_v6 = vld [vmem:[#allocation5 + $0x250] sm:$0xff]  ;;  %v479_v12 = vld [vmem:[#allocation5 + $0x248] sm:$0xff] }
  0x51   : > { %v486_v15 = vld [vmem:[#allocation5 + $0x280] sm:$0xff]  ;;  %1079 = vmatpush.msra.mxu2 %v686_v14  ;;  %v464_v14 = vld [vmem:[#allocation5 + $0x1d0] sm:$0xff] }
  0x52   : > { %v9867_v16 = vld [vmem:[#allocation5 + $0x680] sm:$0xff]  ;;  %846 = vmatpush.msra.mxu0 %v486_v15  ;;  %v623_v15 = vld [vmem:[#allocation5 + $0x6c8] sm:$0xff] }
  0x53   : > { %v678_v17 = vld [vmem:[#allocation5 + $0x880] sm:$0xff]  ;;  %8761 = vmatpush.msra.mxu1 %v9867_v16  ;;  %8762 = vmatpush.msra.mxu3 %v9867_v16 }
  0x54   : > { %v478_v18 = vld [vmem:[#allocation5 + $0x240] sm:$0xff]  ;;  %1080 = vmatpush.msra.mxu2 %v678_v17  ;;  %v456_v17 = vld [vmem:[#allocation5 + $0x190] sm:$0xff] }
  0x55   : > { %v9871_v19 = vld [vmem:[#allocation5 + $0x640] sm:$0xff]  ;;  %847 = vmatpush.msra.mxu0 %v478_v18  ;;  %v448_v18 = vld [vmem:[#allocation5 + $0x150] sm:$0xff] }
  0x56   : > { %v670_v20 = vld [vmem:[#allocation5 + $0x840] sm:$0xff]  ;;  %8763 = vmatpush.msra.mxu1 %v9871_v19  ;;  %8764 = vmatpush.msra.mxu3 %v9871_v19 }
  0x57   : > { %v470_v21 = vld [vmem:[#allocation5 + $0x200] sm:$0xff]  ;;  %1081 = vmatpush.msra.mxu2 %v670_v20  ;;  %v365_v20 = vld [vmem:[%s9835_s6 + $0x1b8] sm:$0xff] }
  0x58   : > { %v9875_v22 = vld [vmem:[#allocation5 + $0x600] sm:$0xff]  ;;  %848 = vmatpush.msra.mxu0 %v470_v21  ;;  %v392_v21 = vld [vmem:[%s9835_s6 + $0x290] sm:$0xff] }
  0x59   : > { %v662_v23 = vld [vmem:[#allocation5 + $0x800] sm:$0xff]  ;;  %8765 = vmatpush.msra.mxu1 %v9875_v22  ;;  %8766 = vmatpush.msra.mxu3 %v9875_v22 }
  0x5a   : > { %v462_v25 = vld [vmem:[#allocation5 + $0x1c0] sm:$0xff]  ;;  %1082 = vmatpush.msra.mxu2 %v662_v23 }
  0x5b   : > { %v9881_v26 = vld [vmem:[#allocation5 + $0x5c0] sm:$0xff]  ;;  %8234 = vmatmul.msk.f32.vlgmr.msra.gmra.mxu2 %vm744_vm0, %v312_v24  ;;  %849 = vmatpush.msra.mxu0 %v462_v25  ;;  %v455_v24 = vld [vmem:[#allocation5 + $0x188] sm:$0xff] }
  0x5c   : > { %v454_v27 = vld [vmem:[#allocation5 + $0x180] sm:$0xff]  ;;  %8767 = vmatpush.msra.mxu1 %v9881_v26  ;;  %8768 = vmatpush.msra.mxu3 %v9881_v26  ;;  %v447_v25 = vld [vmem:[#allocation5 + $0x148] sm:$0xff] }
  0x5d   : > { %v9885_v29 = vld [vmem:[#allocation5 + $0x580] sm:$0xff]  ;;  %850 = vmatpush.msra.mxu0 %v454_v27  ;;  %1293 = vmatpush.msrb.mxu2 %v655_v28  ;;  %v439_v27 = vld [vmem:[#allocation5 + $0x108] sm:$0xff]  ;;  %v424_v28 = vld [vmem:[#allocation5 + $0x90] sm:$0xff] }
  0x5e   : > { %v446_v30 = vld [vmem:[#allocation5 + $0x140] sm:$0xff]  ;;  %8769 = vmatpush.msra.mxu1 %v9885_v29  ;;  %8770 = vmatpush.msra.mxu3 %v9885_v29 }
  0x5f   : > { %v9889_v32 = vld [vmem:[#allocation5 + $0x540] sm:$0xff]  ;;  %851 = vmatpush.msra.mxu0 %v446_v30  ;;  %1294 = vmatpush.msrb.mxu2 %v647_v31  ;;  %v9971_v30 = vld [vmem:[%s9835_s6 + $0x78] sm:$0xff]  ;;  %v368_v31 = vld [vmem:[%s9835_s6 + $0x1d0] sm:$0xff] }
  0x60   : > { %v438_v33 = vld [vmem:[#allocation5 + $0x100] sm:$0xff]  ;;  %8771 = vmatpush.msra.mxu1 %v9889_v32  ;;  %8772 = vmatpush.msra.mxu3 %v9889_v32 }
  0x61   : > { %v9893_v34 = vld [vmem:[#allocation5 + $0x500] sm:$0xff]  ;;  %852 = vmatpush.msra.mxu0 %v438_v33  ;;  %1295 = vmatpush.msrb.mxu2 %v639_v42  ;;  %v408_v33 = vld [vmem:[#allocation5 + $0x10] sm:$0xff] }
  0x62   : > { %v430_v36 = vld [vmem:[#allocation5 + $0xc0] sm:$0xff]  ;;  %8773 = vmatpush.msra.mxu1 %v9893_v34  ;;  %8774 = vmatpush.msra.mxu3 %v9893_v34  ;;  %v336_v42 = vld [vmem:[%s9835_s6 + $0xd0] sm:$0xff] }
  0x63   : > { %v9898_v37 = vld [vmem:[#allocation5 + $0x4c0] sm:$0xff]  ;;  %8235 = vmatmul.msk.f32.gmra.mxu2 %vm744_vm0, %v315_v35  ;;  %853 = vmatpush.msra.mxu0 %v430_v36  ;;  %v431_v35 = vld [vmem:[#allocation5 + $0xc8] sm:$0xff] }
  0x64   : > { %v422_v38 = vld [vmem:[#allocation5 + $0x80] sm:$0xff]  ;;  %8775 = vmatpush.msra.mxu1 %v9898_v37  ;;  %8776 = vmatpush.msra.mxu3 %v9898_v37  ;;  %v423_v36 = vld [vmem:[#allocation5 + $0x88] sm:$0xff] }
  0x65   : > { %v9903_v39 = vld [vmem:[#allocation5 + $0x480] sm:$0xff]  ;;  %854 = vmatpush.msra.mxu0 %v422_v38  ;;  %1296 = vmatpush.msrb.mxu2 %v631_v55  ;;  %v415_v38 = vld [vmem:[#allocation5 + $0x48] sm:$0xff]  ;;  %v10006_v55 = vld [vmem:[%s9835_s6 + $0xd8] sm:$0xff] }
  0x66   : > { %v414_v40 = vld [vmem:[#allocation5 + $0x40] sm:$0xff]  ;;  %8777 = vmatpush.msra.mxu1 %v9903_v39  ;;  %8778 = vmatpush.msra.mxu3 %v9903_v39 }
  0x67   : > { %v9907_v41 = vld [vmem:[#allocation5 + $0x440] sm:$0xff]  ;;  %855 = vmatpush.msra.mxu0 %v414_v40  ;;  %1297 = vmatpush.msrb.mxu2 %v623_v15  ;;  %v371_v40 = vld [vmem:[%s9835_s6 + $0x1e8] sm:$0xff] }
  0x68   : > { %v406_v43 = vld [vmem:[#allocation5] sm:$0xff]  ;;  %8779 = vmatpush.msra.mxu1 %v9907_v41  ;;  %8780 = vmatpush.msra.mxu3 %v9907_v41 }
  0x69   : > { %v9911_v44 = vld [vmem:[#allocation5 + $0x400] sm:$0xff]  ;;  %856 = vmatpush.msra.mxu0 %v406_v43  ;;  %v407_v43 = vld [vmem:[#allocation5 + $0x8] sm:$0xff] }
  0x6a   : > { %v9916_v45 = vld [vmem:[%s9835_s6] sm:$0xff]  ;;  %8781 = vmatpush.msra.mxu1 %v9911_v44  ;;  %8782 = vmatpush.msra.mxu3 %v9911_v44 }
  0x6b   : > { %v318_v48 = vld [vmem:[%s9835_s6 + $0x40] sm:$0xff]  ;;  %857 = vmatmul.f32.vlgmr.msra.gmra.mxu0 %v9916_v45  ;;  %1012 = vmatmul.f32.vlgmr.msra.gmra.mxu1 %v353_v46 }
  0x6c   : > { %954 = vmatpush.msrb.mxu0 %v9849_v1  ;;  %1039 = vmatmul.f32.vlgmr.msra.gmra.mxu3 %v380_v47  ;;  %v386_v62 = vld [vmem:[%s9835_s6 + $0x260] sm:$0xff]  ;;  %v503_v1 = vld [vmem:[#allocation5 + $0x308] sm:$0xff]  ;;  %v401_v47 = vld [vmem:[%s9835_s6 + $0x2d8] sm:$0xff] }
  0x6d   : > { %8236 = vmatmul.msk.f32.gmra.mxu2 %vm744_vm0, %v318_v48  ;;  %1180 = vmatpush.msrb.mxu3 %v527_v53  ;;  %v362_v8 = vld [vmem:[%s9835_s6 + $0x1a0] sm:$0xff]  ;;  %v339_v48 = vld [vmem:[%s9835_s6 + $0xe8] sm:$0xff]  ;;  %v404_v53 = vld [vmem:[%s9835_s6 + $0x2f0] sm:$0xff] }
  0x6e   : > { %955 = vmatpush.msrb.mxu0 %v9852_v4  ;;  %1519 = vmatpush.msrb.mxu1 %v528_v54  ;;  %v487_v4 = vld [vmem:[#allocation5 + $0x288] sm:$0xff]  ;;  %v330_v23 = vld [vmem:[%s9835_s6 + $0xa0] sm:$0xff] }
  0x6f   : > { %1181 = vmatpush.msrb.mxu3 %v519_v56  ;;  %v374_v46 = vld [vmem:[%s9835_s6 + $0x200] sm:$0xff]  ;;  %v345_v56 = vld [vmem:[%s9835_s6 + $0x118] sm:$0xff] }
  0x70   : > { %956 = vmatpush.msrb.mxu0 %v9855_v7  ;;  %1520 = vmatpush.msrb.mxu1 %v520_v57  ;;  %v9950_v7 = vld [vmem:[%s9835_s6 + $0x48] sm:$0xff]  ;;  %v342_v54 = vld [vmem:[%s9835_s6 + $0x100] sm:$0xff] }
  0x71   : > { %1182 = vmatpush.msrb.mxu3 %v511_v58  ;;  %v599_v57 = vld [vmem:[#allocation5 + $0x608] sm:$0xff]  ;;  %v10014_v58 = vld [vmem:[%s9835_s6 + $0xf0] sm:$0xff]  ;;  %v366_v15 = vld [vmem:[%s9835_s6 + $0x1c0] sm:$0xff] }
  0x72   : > { %957 = vmatpush.msrb.mxu0 %v9859_v10  ;;  %1521 = vmatpush.msrb.mxu1 %v512_v59  ;;  %v472_v10 = vld [vmem:[#allocation5 + $0x210] sm:$0xff] }
  0x73   : > { %860 = vmatmul.f32.gmra.mxu0 %v9928_v49  ;;  %1015 = vmatmul.f32.gmra.mxu1 %v356_v50  ;;  %v607_v50 = vld [vmem:[#allocation5 + $0x648] sm:$0xff]  ;;  %v348_v59 = vld [vmem:[%s9835_s6 + $0x130] sm:$0xff] }
  0x74   : > { %1042 = vmatmul.f32.gmra.mxu3 %v383_v51  ;;  %958 = vmatpush.msrb.mxu0 %v9863_v13  ;;  %v471_v13 = vld [vmem:[#allocation5 + $0x208] sm:$0xff]  ;;  %v9998_v51 = vld [vmem:[%s9835_s6 + $0xc0] sm:$0xff] }
  0x75   : > { %8237 = vmatmul.msk.f32.gmra.mxu2 %vm744_vm0, %v321_v52  ;;  %1522 = vmatpush.msrb.mxu1 %v504_v63  ;;  %v377_v52 = vld [vmem:[%s9835_s6 + $0x218] sm:$0xff]  ;;  %v656_v63 = vld [vmem:[#allocation5 + $0x7d0] sm:$0xff] }
  0x76   : > { %959 = vmatpush.msrb.mxu0 %v9867_v16  ;;  %1183 = vmatpush.msrb.mxu3 %v503_v1  ;;  %v463_v16 = vld [vmem:[#allocation5 + $0x1c8] sm:$0xff]  ;;  %v357_v1 = vld [vmem:[%s9835_s6 + $0x178] sm:$0xff] }
  0x77   : > { %1523 = vmatpush.msrb.mxu1 %v496_v3  ;;  %v10046_v3 = vld [vmem:[%s9835_s6 + $0x150] sm:$0xff] }
  0x78   : > { %960 = vmatpush.msrb.mxu0 %v9871_v19  ;;  %1184 = vmatpush.msrb.mxu3 %v495_v2  ;;  %v9961_v19 = vld [vmem:[%s9835_s6 + $0x60] sm:$0xff]  ;;  %v583_v2 = vld [vmem:[#allocation5 + $0x588] sm:$0xff] }
  0x79   : > { %1524 = vmatpush.msrb.mxu1 %v488_v5  ;;  %v360_v5 = vld [vmem:[%s9835_s6 + $0x190] sm:$0xff] }
  0x7a   : > { %961 = vmatpush.msrb.mxu0 %v9875_v22  ;;  %1185 = vmatpush.msrb.mxu3 %v487_v4  ;;  %v440_v22 = vld [vmem:[#allocation5 + $0x110] sm:$0xff] }
  0x7b   : > { %863 = vmatmul.f32.gmra.mxu0 %v9940_v60  ;;  %1018 = vmatmul.f32.gmra.mxu1 %v359_v61  ;;  %v10022_v61 = vld [vmem:[%s9835_s6 + $0x108] sm:$0xff]  ;;  %v648_v4 = vld [vmem:[#allocation5 + $0x790] sm:$0xff] }
  0x7c   : > { %1045 = vmatmul.f32.gmra.mxu3 %v386_v62  ;;  %962 = vmatpush.msrb.mxu0 %v9881_v26  ;;  %v432_v26 = vld [vmem:[#allocation5 + $0xd0] sm:$0xff]  ;;  %v591_v62 = vld [vmem:[#allocation5 + $0x5c8] sm:$0xff] }
  0x7d   : > { %8238 = vmatmul.msk.f32.gmra.mxu2 %vm744_vm0, %v324_v0  ;;  %1525 = vmatpush.msrb.mxu1 %v480_v6  ;;  %v354_v0 = vld [vmem:[%s9835_s6 + $0x160] sm:$0xff] }
  0x7e   : > { %963 = vmatpush.msrb.mxu0 %v9885_v29  ;;  %1186 = vmatpush.msrb.mxu3 %v479_v12  ;;  %v416_v29 = vld [vmem:[#allocation5 + $0x50] sm:$0xff] }
  0x7f   : > { %1526 = vmatpush.msrb.mxu1 %v472_v10 }
  0x80   : > { %1187 = vmatpush.msrb.mxu3 %v471_v13  ;;  %964 = vmatpush.msrb.mxu0 %v9889_v32  ;;  %v395_v32 = vld [vmem:[%s9835_s6 + $0x2a8] sm:$0xff]  ;;  %v10070_v13 = vld [vmem:[%s9835_s6 + $0x180] sm:$0xff] }
  0x81   : > { %1527 = vmatpush.msrb.mxu1 %v464_v14  ;;  %v640_v14 = vld [vmem:[#allocation5 + $0x750] sm:$0xff] }
  0x82   : > { %1188 = vmatpush.msrb.mxu3 %v463_v16  ;;  %965 = vmatpush.msrb.mxu0 %v9893_v34  ;;  %v333_v34 = vld [vmem:[%s9835_s6 + $0xb8] sm:$0xff] }
  0x83   : > { %866 = vmatmul.f32.gmra.mxu0 %v9950_v7  ;;  %1021 = vmatmul.f32.gmra.mxu1 %v362_v8  ;;  %v363_v8 = vld [vmem:[%s9835_s6 + $0x1a8] sm:$0xff] }
  0x84   : > { %1048 = vmatmul.f32.gmra.mxu3 %v389_v9  ;;  %1528 = vmatpush.msrb.mxu1 %v456_v17  ;;  %v575_v9 = vld [vmem:[#allocation5 + $0x548] sm:$0xff] }
  0x85   : > { %8239 = vmatmul.msk.f32.gmra.mxu2 %vm744_vm0, %v327_v11  ;;  %1189 = vmatpush.msrb.mxu3 %v455_v24 }
  0x86   : > { %1529 = vmatpush.msrb.mxu1 %v448_v18  ;;  %966 = vmatpush.msrb.mxu0 %v9898_v37  ;;  %v615_v37 = vld [vmem:[#allocation5 + $0x688] sm:$0xff] }
  0x87   : > { %1190 = vmatpush.msrb.mxu3 %v447_v25  ;;  %1298 = vmatpush.msrb.mxu2 %v615_v37 }
  0x88   : > { %1530 = vmatpush.msrb.mxu1 %v440_v22  ;;  %967 = vmatpush.msrb.mxu0 %v9903_v39  ;;  %v9982_v39 = vld [vmem:[%s9835_s6 + $0x90] sm:$0xff]  ;;  %v567_v22 = vld [vmem:[#allocation5 + $0x508] sm:$0xff] }
  0x89   : > { %1191 = vmatpush.msrb.mxu3 %v439_v27  ;;  %1299 = vmatpush.msrb.mxu2 %v607_v50  ;;  %v632_v27 = vld [vmem:[#allocation5 + $0x710] sm:$0xff] }
  0x8a   : > { %1531 = vmatpush.msrb.mxu1 %v432_v26  ;;  %968 = vmatpush.msrb.mxu0 %v9907_v41  ;;  %v398_v41 = vld [vmem:[%s9835_s6 + $0x2c0] sm:$0xff]  ;;  %v10100_v26 = vld [vmem:[%s9835_s6 + $0x1b0] sm:$0xff] }
  0x8b   : > { %869 = vmatmul.f32.gmra.mxu0 %v9961_v19  ;;  %1024 = vmatmul.f32.gmra.mxu1 %v365_v20 }
  0x8c   : > { %1051 = vmatmul.f32.gmra.mxu3 %v392_v21  ;;  %1532 = vmatpush.msrb.mxu1 %v424_v28  ;;  %v369_v21 = vld [vmem:[%s9835_s6 + $0x1d8] sm:$0xff] }
  0x8d   : > { %8240 = vmatmul.msk.f32.gmra.mxu2 %vm744_vm0, %v330_v23  ;;  %1192 = vmatpush.msrb.mxu3 %v431_v35  ;;  %v375_v35 = vld [vmem:[%s9835_s6 + $0x208] sm:$0xff] }
  0x8e   : > { %1533 = vmatpush.msrb.mxu1 %v416_v29  ;;  %969 = vmatpush.msrb.mxu0 %v9911_v44  ;;  %v9990_v44 = vld [vmem:[%s9835_s6 + $0xa8] sm:$0xff]  ;;  %v372_v29 = vld [vmem:[%s9835_s6 + $0x1f0] sm:$0xff] }
  0x8f   : > { %1193 = vmatpush.msrb.mxu3 %v423_v36  ;;  %1300 = vmatpush.msrb.mxu2 %v599_v57  ;;  %v559_v36 = vld [vmem:[#allocation5 + $0x4c8] sm:$0xff]  ;;  %v616_v57 = vld [vmem:[#allocation5 + $0x690] sm:$0xff] }
  0x90   : > { %1534 = vmatpush.msrb.mxu1 %v408_v33  ;;  %v10116_v33 = vld [vmem:[%s9835_s6 + $0x1c8] sm:$0xff] }
  0x91   : > { %1194 = vmatpush.msrb.mxu3 %v415_v38  ;;  %1301 = vmatpush.msrb.mxu2 %v591_v62 }
  0x93   : > { %872 = vmatmul.f32.gmra.mxu0 %v9971_v30  ;;  %1027 = vmatmul.f32.gmra.mxu1 %v368_v31 }
  0x94   : > { %1054 = vmatmul.f32.gmra.mxu3 %v395_v32  ;;  %1302 = vmatpush.msrb.mxu2 %v583_v2 }
  0x95   : > { %8241 = vmatmul.msk.f32.gmra.mxu2 %vm744_vm0, %v333_v34  ;;  %1195 = vmatpush.msrb.mxu3 %v407_v43  ;;  %v378_v43 = vld [vmem:[%s9835_s6 + $0x220] sm:$0xff] }
  0x96   : > { %1303 = vmatpush.msrb.mxu2 %v575_v9 }
  0x97   : > { %1632 = vmatpush.msra.mxu3 %v656_v63  ;;  %v10180_v63 = vld [vmem:[%s9835_s6 + $0x228] sm:$0xff] }
  0x98   : > { %1304 = vmatpush.msrb.mxu2 %v567_v22  ;;  %v10218_v22 = vld [vmem:[%s9835_s6 + $0x258] sm:$0xff] }
  0x99   : > { %1633 = vmatpush.msra.mxu3 %v648_v4 }
  0x9a   : > { %1305 = vmatpush.msrb.mxu2 %v559_v36 }
  0x9b   : > { %875 = vmatmul.f32.gmra.mxu0 %v9982_v39  ;;  %1030 = vmatmul.f32.gmra.mxu1 %v371_v40  ;;  %v10132_v40 = vld [vmem:[%s9835_s6 + $0x1e0] sm:$0xff] }
  0x9c   : > { %1057 = vmatmul.f32.gmra.mxu3 %v398_v41  ;;  %v624_v41 = vld [vmem:[#allocation5 + $0x6d0] sm:$0xff] }
  0x9d   : > { %8242 = vmatmul.msk.f32.gmra.mxu2 %vm744_vm0, %v336_v42  ;;  %1634 = vmatpush.msra.mxu3 %v640_v14 }
  0x9f   : > { %1635 = vmatpush.msra.mxu3 %v632_v27 }
  0xa1   : > { %1636 = vmatpush.msra.mxu3 %v624_v41 }
  0xa3   : > { %878 = vmatmul.f32.gmra.mxu0 %v9990_v44  ;;  %1033 = vmatmul.f32.gmra.mxu1 %v374_v46 }
  0xa4   : > { %1060 = vmatmul.f32.gmra.mxu3 %v401_v47 }
  0xa5   : > { %8243 = vmatmul.msk.f32.gmra.mxu2 %vm744_vm0, %v339_v48  ;;  %v10148_v48 = vld [vmem:[%s9835_s6 + $0x1f8] sm:$0xff]  ;;  %1637 = vmatpush.msra.mxu3 %v616_v57 }
  0xab   : > { %881 = vmatmul.f32.gmra.mxu0 %v9998_v51  ;;  %1036 = vmatmul.f32.gmra.mxu1 %v377_v52  ;;  %v551_v52 = vld [vmem:[#allocation5 + $0x488] sm:$0xff] }
  0xac   : > { %1063 = vmatmul.f32.gmra.mxu3 %v404_v53  ;;  %1306 = vmatpush.msrb.mxu2 %v551_v52 }
  0xad   : > { %8244 = vmatmul.msk.f32.gmra.mxu2 %vm744_vm0, %v342_v54 }
  0xb3   : > { %884 = vmatmul.f32.gmra.mxu0 %v10006_v55  ;;  %1535 = vmatmul.f32.vlgmr.msrb.gmra.mxu1 %v9916_v45 }
  0xb4   : > { %1196 = vmatmul.f32.vlgmr.msrb.gmra.mxu3 %v9916_v45  ;;  %v351_v45 = vld [vmem:[%s9835_s6 + $0x148] sm:$0xff] }
  0xb5   : > { %8245 = vmatmul.msk.f32.gmra.mxu2 %vm744_vm0, %v345_v56  ;;  %v10164_v56 = vld [vmem:[%s9835_s6 + $0x210] sm:$0xff] }
  0xbb   : > { %887 = vmatmul.f32.gmra.mxu0 %v10014_v58  ;;  %1538 = vmatmul.f32.gmra.mxu1 %v9928_v49 }
  0xbc   : > { %1199 = vmatmul.f32.gmra.mxu3 %v9928_v49  ;;  %v10030_v49 = vld [vmem:[%s9835_s6 + $0x120] sm:$0xff] }
  0xbd   : > { %8246 = vmatmul.msk.f32.gmra.mxu2 %vm744_vm0, %v348_v59  ;;  %v384_v59 = vld [vmem:[%s9835_s6 + $0x250] sm:$0xff] }
  0xc3   : > { %890 = vmatmul.f32.gmra.mxu0 %v10022_v61  ;;  %1541 = vmatmul.f32.gmra.mxu1 %v9940_v60 }
  0xc4   : > { %1202 = vmatmul.f32.gmra.mxu3 %v9940_v60  ;;  %v10038_v60 = vld [vmem:[%s9835_s6 + $0x138] sm:$0xff] }
  0xc5   : > { %8247 = vmatmul.msk.f32.gmra.mxu2 %vm744_vm0, %v351_v45 }
  0xcb   : > { %893 = vmatmul.f32.gmra.mxu0 %v10030_v49  ;;  %1544 = vmatmul.f32.gmra.mxu1 %v9950_v7 }
  0xcc   : > { %1205 = vmatmul.f32.gmra.mxu3 %v9950_v7  ;;  %v10056_v7 = vld [vmem:[%s9835_s6 + $0x168] sm:$0xff] }
  0xcd   : > { %8248 = vmatmul.msk.f32.gmra.mxu2 %vm744_vm0, %v354_v0  ;;  %v10185_v0 = vld [vmem:[%s9835_s6 + $0x268] sm:$0xff] }
  0xd3   : > { %896 = vmatmul.f32.gmra.mxu0 %v10038_v60  ;;  %1547 = vmatmul.f32.gmra.mxu1 %v9961_v19 }
  0xd4   : > { %1208 = vmatmul.f32.gmra.mxu3 %v9961_v19  ;;  %v10084_v19 = vld [vmem:[%s9835_s6 + $0x198] sm:$0xff] }
  0xd5   : > { %8249 = vmatmul.msk.f32.gmra.mxu2 %vm744_vm0, %v357_v1 }
  0xdb   : > { %899 = vmatmul.f32.gmra.mxu0 %v10046_v3  ;;  %1550 = vmatmul.f32.gmra.mxu1 %v9971_v30 }
  0xdc   : > { %1211 = vmatmul.f32.gmra.mxu3 %v9971_v30 }
  0xdd   : > { %8250 = vmatmul.msk.f32.gmra.mxu2 %vm744_vm0, %v360_v5  ;;  %v10199_v5 = vld [vmem:[%s9835_s6 + $0x240] sm:$0xff] }
  0xde   : > { %v10053_v6 = vpop.f32.mrf.mxu2 }
  0xdf   : > { %16328 = vst [vmem:[#allocation16_spill] sm:$0xff] %v10053_v6 }
  0xe3   : > { %902 = vmatmul.f32.gmra.mxu0 %v10056_v7  ;;  %1553 = vmatmul.f32.gmra.mxu1 %v9982_v39 }
  0xe4   : > { %1214 = vmatmul.f32.gmra.mxu3 %v9982_v39 }
  0xe5   : > { %8251 = vmatmul.msk.f32.gmra.mxu2 %vm744_vm0, %v363_v8  ;;  %v608_v8 = vld [vmem:[#allocation5 + $0x650] sm:$0xff] }
  0xe6   : > { %v10063_v10 = vpop.f32.mrf.mxu2  ;;  %1638 = vmatpush.msra.mxu3 %v608_v8  ;;  %v10256_v8 = vld [vmem:[%s9835_s6 + $0x288] sm:$0xff] }
  0xe7   : > { %16329 = vst [vmem:[#allocation17_spill] sm:$0xff] %v10063_v10 }
  0xe8   : > { %v10065_v11 = vpop.f32.mrf.mxu0  ;;  %v10067_v12 = vpop.f32.mrf.mxu1 }
  0xe9   : > { %16330 = vst [vmem:[#allocation18_spill] sm:$0xff] %v10065_v11 }
  0xea   : > { %16331 = vst [vmem:[#allocation19_spill] sm:$0xff] %v10067_v12 }
  0xeb   : > { %905 = vmatmul.f32.gmra.mxu0 %v10070_v13  ;;  %1556 = vmatmul.f32.gmra.mxu1 %v9990_v44 }
  0xec   : > { %1217 = vmatmul.f32.gmra.mxu3 %v9990_v44 }
  0xed   : > { %8252 = vmatmul.msk.f32.gmra.mxu2 %vm744_vm0, %v366_v15 }
  0xef   : > { %v10077_v16 = vpop.f32.mrf.mxu3 }
  0xf0   : > { %16332 = vst [vmem:[#allocation20_spill] sm:$0xff] %v10077_v16  ;;  %v10079_v17 = vpop.f32.mrf.mxu2  ;;  %v10081_v18 = vpop.f32.mrf.mxu0 }
  0xf1   : > { %16333 = vst [vmem:[#allocation21_spill] sm:$0xff] %v10079_v17  ;;  %v10086_v20 = vpop.f32.mrf.mxu1 }
  0xf2   : > { %16334 = vst [vmem:[#allocation22_spill] sm:$0xff] %v10081_v18  ;;  %v553_v18 = vld [vmem:[#allocation5 + $0x498] sm:$0xff] }
  0xf3   : > { %16335 = vst [vmem:[#allocation23_spill] sm:$0xff] %v10086_v20  ;;  %908 = vmatmul.f32.gmra.mxu0 %v10084_v19  ;;  %1559 = vmatmul.f32.gmra.mxu1 %v9998_v51  ;;  %v10310_v20 = vld [vmem:[%s9835_s6 + $0x2d0] sm:$0xff] }
  0xf4   : > { %1220 = vmatmul.f32.gmra.mxu3 %v9998_v51  ;;  %v381_v51 = vld [vmem:[%s9835_s6 + $0x238] sm:$0xff] }
  0xf5   : > { %8253 = vmatmul.msk.f32.gmra.mxu2 %vm744_vm0, %v369_v21 }
  0xf7   : > { %v10093_v23 = vpop.f32.mrf.mxu3 }
  0xf8   : > { %16336 = vst [vmem:[#allocation24_spill] sm:$0xff] %v10093_v23  ;;  %v10095_v24 = vpop.f32.mrf.mxu2  ;;  %v10097_v25 = vpop.f32.mrf.mxu0 }
  0xf9   : > { %16337 = vst [vmem:[#allocation25_spill] sm:$0xff] %v10095_v24  ;;  %v10102_v28 = vpop.f32.mrf.mxu1  ;;  %v609_v24 = vld [vmem:[#allocation5 + $0x658] sm:$0xff] }
  0xfa   : > { %16338 = vst [vmem:[#allocation26_spill] sm:$0xff] %v10097_v25  ;;  %v560_v25 = vld [vmem:[#allocation5 + $0x4d0] sm:$0xff] }
  0xfb   : > { %16339 = vst [vmem:[#allocation27_spill] sm:$0xff] %v10102_v28  ;;  %911 = vmatmul.f32.gmra.mxu0 %v10100_v26  ;;  %1562 = vmatmul.f32.gmra.mxu1 %v10006_v55 }
  0xfc   : > { %1223 = vmatmul.f32.gmra.mxu3 %v10006_v55 }
  0xfd   : > { %8254 = vmatmul.msk.f32.gmra.mxu2 %vm744_vm0, %v372_v29  ;;  %v10223_v29 = vld [vmem:[%s9835_s6 + $0x298] sm:$0xff] }
  0xff   : > { %v10109_v30 = vpop.f32.mrf.mxu3 }
 0x100   : > { %16340 = vst [vmem:[#allocation28_spill] sm:$0xff] %v10109_v30  ;;  %v10111_v31 = vpop.f32.mrf.mxu2  ;;  %v10113_v32 = vpop.f32.mrf.mxu0  ;;  %v10275_v30 = vld [vmem:[%s9835_s6 + $0x2a0] sm:$0xff] }
 0x101   : > { %16341 = vst [vmem:[#allocation29_spill] sm:$0xff] %v10111_v31  ;;  %v10118_v34 = vpop.f32.mrf.mxu1 }
 0x102   : > { %16342 = vst [vmem:[#allocation30_spill] sm:$0xff] %v10113_v32  ;;  %v10393_v32 = vld [vmem:[%s9835_s6 + $0x80] sm:$0xff] }
 0x103   : > { %16343 = vst [vmem:[#allocation31_spill] sm:$0xff] %v10118_v34  ;;  %914 = vmatmul.f32.gmra.mxu0 %v10116_v33  ;;  %1565 = vmatmul.f32.gmra.mxu1 %v10014_v58  ;;  %v405_v34 = vld [vmem:[%s9835_s6 + $0x2f8] sm:$0xff] }
 0x104   : > { %1226 = vmatmul.f32.gmra.mxu3 %v10014_v58 }
 0x105   : > { %8255 = vmatmul.msk.f32.gmra.mxu2 %vm744_vm0, %v375_v35 }
 0x107   : > { %v10125_v37 = vpop.f32.mrf.mxu3 }
 0x108   : > { %16344 = vst [vmem:[#allocation32_spill] sm:$0xff] %v10125_v37  ;;  %v10127_v38 = vpop.f32.mrf.mxu2  ;;  %v10129_v39 = vpop.f32.mrf.mxu0  ;;  %v592_v37 = vld [vmem:[#allocation5 + $0x5d0] sm:$0xff] }
 0x109   : > { %16345 = vst [vmem:[#allocation33_spill] sm:$0xff] %v10127_v38  ;;  %v10134_v42 = vpop.f32.mrf.mxu1  ;;  %v521_v38 = vld [vmem:[#allocation5 + $0x398] sm:$0xff] }
 0x10a   : > { %16346 = vst [vmem:[#allocation34_spill] sm:$0xff] %v10129_v39 }
 0x10b   : > { %16347 = vst [vmem:[#allocation35_spill] sm:$0xff] %v10134_v42  ;;  %917 = vmatmul.f32.gmra.mxu0 %v10132_v40  ;;  %1568 = vmatmul.f32.gmra.mxu1 %v10022_v61 }
 0x10c   : > { %1229 = vmatmul.f32.gmra.mxu3 %v10022_v61 }
 0x10d   : > { %8256 = vmatmul.msk.f32.gmra.mxu2 %vm744_vm0, %v378_v43  ;;  %v10237_v43 = vld [vmem:[%s9835_s6 + $0x270] sm:$0xff] }
 0x10f   : > { %v10141_v44 = vpop.f32.mrf.mxu3 }
 0x110   : > { %16348 = vst [vmem:[#allocation36_spill] sm:$0xff] %v10141_v44  ;;  %v10143_v46 = vpop.f32.mrf.mxu2  ;;  %v10145_v47 = vpop.f32.mrf.mxu0 }
 0x111   : > { %16349 = vst [vmem:[#allocation37_spill] sm:$0xff] %v10143_v46  ;;  %v10150_v50 = vpop.f32.mrf.mxu1 }
 0x112   : > { %16350 = vst [vmem:[#allocation38_spill] sm:$0xff] %v10145_v47 }
 0x113   : > { %16351 = vst [vmem:[#allocation39_spill] sm:$0xff] %v10150_v50  ;;  %920 = vmatmul.f32.gmra.mxu0 %v10148_v48  ;;  %1571 = vmatmul.f32.gmra.mxu1 %v10030_v49 }
 0x114   : > { %1232 = vmatmul.f32.gmra.mxu3 %v10030_v49 }
 0x115   : > { %8257 = vmatmul.msk.f32.gmra.mxu2 %vm744_vm0, %v381_v51  ;;  %v600_v51 = vld [vmem:[#allocation5 + $0x610] sm:$0xff] }
 0x116   : > { %1639 = vmatpush.msra.mxu3 %v600_v51  ;;  %v10261_v51 = vld [vmem:[%s9835_s6 + $0x2c8] sm:$0xff] }
 0x117   : > { %v10157_v53 = vpop.f32.mrf.mxu3 }
 0x118   : > { %16352 = vst [vmem:[#allocation40_spill] sm:$0xff] %v10157_v53  ;;  %v10159_v54 = vpop.f32.mrf.mxu2  ;;  %v10161_v55 = vpop.f32.mrf.mxu0  ;;  %1640 = vmatpush.msra.mxu3 %v592_v37  ;;  %v10294_v37 = vld [vmem:[%s9835_s6 + $0x2b8] sm:$0xff] }
 0x119   : > { %16353 = vst [vmem:[#allocation41_spill] sm:$0xff] %v10159_v54  ;;  %v10166_v58 = vpop.f32.mrf.mxu1  ;;  %v545_v53 = vld [vmem:[#allocation5 + $0x458] sm:$0xff] }
 0x11a   : > { %16354 = vst [vmem:[#allocation42_spill] sm:$0xff] %v10161_v55  ;;  %v10378_v55 = vld [vmem:[%s9835_s6 + $0x68] sm:$0xff] }
 0x11b   : > { %16355 = vst [vmem:[#allocation43_spill] sm:$0xff] %v10166_v58  ;;  %923 = vmatmul.f32.gmra.mxu0 %v10164_v56  ;;  %1574 = vmatmul.f32.gmra.mxu1 %v10038_v60  ;;  %v10483_v58 = vld [vmem:[%s9835_s6 + $0x110] sm:$0xff] }
 0x11c   : > { %1235 = vmatmul.f32.gmra.mxu3 %v10038_v60  ;;  %v543_v60 = vld [vmem:[#allocation5 + $0x448] sm:$0xff] }
 0x11d   : > { %8258 = vmatmul.msk.f32.gmra.mxu2 %vm744_vm0, %v384_v59 }
 0x11e   : > { %1307 = vmatpush.msrb.mxu2 %v543_v60 }
 0x11f   : > { %v10173_v61 = vpop.f32.mrf.mxu3 }
 0x120   : > { %16356 = vst [vmem:[#allocation44_spill] sm:$0xff] %v10173_v61  ;;  %v10175_v45 = vpop.f32.mrf.mxu2  ;;  %v10177_v62 = vpop.f32.mrf.mxu0  ;;  %v544_v61 = vld [vmem:[#allocation5 + $0x450] sm:$0xff] }
 0x121   : > { %16357 = vst [vmem:[#allocation45_spill] sm:$0xff] %v10175_v45  ;;  %v10182_v49 = vpop.f32.mrf.mxu1  ;;  %v10348_v45 = vld [vmem:[%s9835_s6 + $0x38] sm:$0xff] }
 0x122   : > { %16358 = vst [vmem:[#allocation46_spill] sm:$0xff] %v10177_v62  ;;  %v568_v62 = vld [vmem:[#allocation5 + $0x510] sm:$0xff] }
 0x123   : > { %16359 = vst [vmem:[#allocation47_spill] sm:$0xff] %v10182_v49  ;;  %926 = vmatmul.f32.gmra.mxu0 %v10180_v63  ;;  %1577 = vmatmul.f32.gmra.mxu1 %v10046_v3 }
 0x124   : > { %1238 = vmatmul.f32.gmra.mxu3 %v10046_v3  ;;  %v10204_v3 = vld [vmem:[%s9835_s6 + $0x280] sm:$0xff] }
 0x125   : > { %8259 = vmatmul.msk.f32.gmra.mxu2 %vm744_vm0, %v10185_v0 }
 0x127   : > { %v10192_v1 = vpop.f32.mrf.mxu3 }
 0x128   : > { %16360 = vst [vmem:[#allocation48_spill] sm:$0xff] %v10192_v1  ;;  %v10194_v2 = vpop.f32.mrf.mxu2  ;;  %v10196_v4 = vpop.f32.mrf.mxu0 }
 0x129   : > { %16361 = vst [vmem:[#allocation49_spill] sm:$0xff] %v10194_v2  ;;  %v10201_v9 = vpop.f32.mrf.mxu1 }
 0x12a   : > { %16362 = vst [vmem:[#allocation50_spill] sm:$0xff] %v10196_v4 }
 0x12b   : > { %16363 = vst [vmem:[#allocation51_spill] sm:$0xff] %v10201_v9  ;;  %929 = vmatmul.f32.gmra.mxu0 %v10199_v5  ;;  %1580 = vmatmul.f32.gmra.mxu1 %v10056_v7 }
 0x12c   : > { %1241 = vmatmul.f32.gmra.mxu3 %v10056_v7  ;;  %v535_v7 = vld [vmem:[#allocation5 + $0x408] sm:$0xff] }
 0x12d   : > { %8260 = vmatmul.msk.f32.gmra.mxu2 %vm744_vm0, %v10204_v3 }
 0x12e   : > { %1308 = vmatpush.msrb.mxu2 %v535_v7 }
 0x12f   : > { %v10211_v14 = vpop.f32.mrf.mxu3 }
 0x130   : > { %16364 = vst [vmem:[#allocation52_spill] sm:$0xff] %v10211_v14  ;;  %v10213_v15 = vpop.f32.mrf.mxu2  ;;  %v10215_v21 = vpop.f32.mrf.mxu0 }
 0x131   : > { %16365 = vst [vmem:[#allocation53_spill] sm:$0xff] %v10213_v15  ;;  %v10220_v27 = vpop.f32.mrf.mxu1 }
 0x132   : > { %16366 = vst [vmem:[#allocation54_spill] sm:$0xff] %v10215_v21  ;;  %v576_v21 = vld [vmem:[#allocation5 + $0x550] sm:$0xff] }
 0x133   : > { %16367 = vst [vmem:[#allocation55_spill] sm:$0xff] %v10220_v27  ;;  %932 = vmatmul.f32.gmra.mxu0 %v10218_v22  ;;  %1583 = vmatmul.f32.gmra.mxu1 %v10070_v13  ;;  %v10833_v27 = vld [vmem:[%s9835_s6 + $0x148] sm:$0xff] }
 0x134   : > { %1244 = vmatmul.f32.gmra.mxu3 %v10070_v13  ;;  %v10242_v13 = vld [vmem:[%s9835_s6 + $0x2b0] sm:$0xff] }
 0x135   : > { %8261 = vmatmul.msk.f32.gmra.mxu2 %vm744_vm0, %v10223_v29 }
 0x137   : > { %v10230_v35 = vpop.f32.mrf.mxu3 }
 0x138   : > { %v10232_v36 = vpop.f32.mrf.mxu2  ;;  %v10234_v41 = vpop.f32.mrf.mxu0 }
 0x139   : > { %16368 = vst [vmem:[#allocation56_spill] sm:$0xff] %v10232_v36  ;;  %v10239_v52 = vpop.f32.mrf.mxu1  ;;  %v10315_v36 = vld [vmem:[%s9835_s6 + $0x8] sm:$0xff] }
 0x13a   : > { %16369 = vst [vmem:[#allocation57_spill] sm:$0xff] %v10234_v41 }
 0x13b   : > { %935 = vmatmul.f32.gmra.mxu0 %v10237_v43  ;;  %1586 = vmatmul.f32.gmra.mxu1 %v10084_v19 }
 0x13c   : > { %1247 = vmatmul.f32.gmra.mxu3 %v10084_v19  ;;  %v719_v19 = vld [vmem:[#allocation5 + $0x9c8] sm:$0xff] }
 0x13d   : > { %8262 = vmatmul.msk.f32.gmra.mxu2 %vm744_vm0, %v10242_v13  ;;  %1414 = vmatpush.msra.mxu0 %v719_v19 }
 0x13e   : > { %8783 = vmatpush.msra.mxu2 %v719_v19 }
 0x13f   : > { %v10249_v57 = vpop.f32.mrf.mxu3 }
 0x140   : > { %v10251_v59 = vpop.f32.mrf.mxu2  ;;  %v10253_v60 = vpop.f32.mrf.mxu0 }
 0x141   : > { %16370 = vst [vmem:[#allocation58_spill] sm:$0xff] %v10251_v59  ;;  %v10258_v7 = vpop.f32.mrf.mxu1  ;;  %v10513_v59 = vld [vmem:[%s9835_s6 + $0x140] sm:$0xff] }
 0x142   : > { %16371 = vst [vmem:[#allocation59_spill] sm:$0xff] %v10253_v60  ;;  %v10333_v60 = vld [vmem:[%s9835_s6 + $0x20] sm:$0xff] }
 0x143   : > { %16372 = vst [vmem:[#allocation60_spill] sm:$0xff] %v10258_v7  ;;  %938 = vmatmul.f32.gmra.mxu0 %v10256_v8  ;;  %1589 = vmatmul.f32.gmra.mxu1 %v10100_v26 }
 0x144   : > { %1250 = vmatmul.f32.gmra.mxu3 %v10100_v26  ;;  %v10280_v26 = vld [vmem:[%s9835_s6 + $0x2e0] sm:$0xff] }
 0x145   : > { %8263 = vmatmul.msk.f32.gmra.mxu2 %vm744_vm0, %v10261_v51 }
 0x147   : > { %v10268_v14 = vpop.f32.mrf.mxu3 }
 0x148   : > { %v10270_v1 = vpop.f32.mrf.mxu2  ;;  %v10272_v44 = vpop.f32.mrf.mxu0 }
 0x149   : > { %16373 = vst [vmem:[#allocation61_spill] sm:$0xff] %v10270_v1  ;;  %v10277_v23 = vpop.f32.mrf.mxu1 }
 0x14a   : > { %16374 = vst [vmem:[#allocation62_spill] sm:$0xff] %v10272_v44  ;;  %v721_v44 = vld [vmem:[#allocation5 + $0x9d8] sm:$0xff] }
 0x14b   : > { %16375 = vst [vmem:[#allocation63_spill] sm:$0xff] %v10277_v23  ;;  %941 = vmatmul.f32.gmra.mxu0 %v10275_v30  ;;  %1592 = vmatmul.f32.gmra.mxu1 %v10116_v33 }
 0x14c   : > { %1253 = vmatmul.f32.gmra.mxu3 %v10116_v33 }
 0x14d   : > { %8264 = vmatmul.msk.f32.gmra.mxu2 %vm744_vm0, %v10280_v26 }
 0x14f   : > { %v10287_v19 = vpop.f32.mrf.mxu3 }
 0x150   : > { %v10289_v16 = vpop.f32.mrf.mxu2  ;;  %v10291_v9 = vpop.f32.mrf.mxu0 }
 0x151   : > { %16376 = vst [vmem:[#allocation64_spill] sm:$0xff] %v10289_v16  ;;  %v10296_v50 = vpop.f32.mrf.mxu1  ;;  %v584_v16 = vld [vmem:[#allocation5 + $0x590] sm:$0xff] }
 0x152   : > { %16377 = vst [vmem:[#allocation65_spill] sm:$0xff] %v10291_v9  ;;  %1641 = vmatpush.msra.mxu3 %v584_v16  ;;  %v10328_v16 = vld [vmem:[%s9835_s6 + $0x2e8] sm:$0xff] }
 0x153   : > { %944 = vmatmul.f32.gmra.mxu0 %v10294_v37  ;;  %1595 = vmatmul.f32.gmra.mxu1 %v10132_v40 }
 0x154   : > { %1256 = vmatmul.f32.gmra.mxu3 %v10132_v40 }
 0x155   : > { %8265 = vmatmul.msk.f32.gmra.mxu2 %vm744_vm0, %v405_v34  ;;  %v711_v34 = vld [vmem:[#allocation5 + $0x988] sm:$0xff]  ;;  %1642 = vmatpush.msra.mxu3 %v576_v21  ;;  %v10363_v21 = vld [vmem:[%s9835_s6 + $0x50] sm:$0xff] }
 0x156   : > { %1415 = vmatpush.msra.mxu0 %v711_v34  ;;  %8784 = vmatpush.msra.mxu2 %v711_v34 }
 0x157   : > { %v10303_v33 = vpop.f32.mrf.mxu3  ;;  %1643 = vmatpush.msra.mxu3 %v568_v62  ;;  %v617_v62 = vld [vmem:[#allocation5 + $0x698] sm:$0xff] }
 0x158   : > { %v10305_v42 = vpop.f32.mrf.mxu2  ;;  %v10307_v28 = vpop.f32.mrf.mxu0 }
 0x159   : > { %16378 = vst [vmem:[#allocation66_spill] sm:$0xff] %v10305_v42  ;;  %v10312_v12 = vpop.f32.mrf.mxu1  ;;  %1644 = vmatpush.msra.mxu3 %v560_v25  ;;  %v552_v25 = vld [vmem:[#allocation5 + $0x490] sm:$0xff] }
 0x15a   : > { %16379 = vst [vmem:[#allocation67_spill] sm:$0xff] %v10307_v28 }
 0x15b   : > { %947 = vmatmul.f32.gmra.mxu0 %v10310_v20  ;;  %1598 = vmatmul.f32.gmra.mxu1 %v10148_v48 }
 0x15c   : > { %1259 = vmatmul.f32.gmra.mxu3 %v10148_v48 }
 0x15d   : > { %1309 = vmatmul.f32.vlgmr.msrb.gmra.mxu2 %v10315_v36  ;;  %1645 = vmatpush.msra.mxu3 %v552_v25 }
 0x15f   : > { %v10321_v40 = vpop.f32.mrf.mxu3  ;;  %1646 = vmatpush.msra.mxu3 %v544_v61 }
 0x160   : > { %v10323_v42 = vpop.f32.mrf.mxu2  ;;  %v10325_v28 = vpop.f32.mrf.mxu0 }
 0x161   : > { %16380 = vst [vmem:[#allocation68_spill] sm:$0xff] %v10323_v42  ;;  %v10330_v2 = vpop.f32.mrf.mxu1 }
 0x162   : > { %16381 = vst [vmem:[#allocation69_spill] sm:$0xff] %v10325_v28  ;;  %v703_v28 = vld [vmem:[#allocation5 + $0x948] sm:$0xff] }
 0x163   : > { %16382 = vst [vmem:[#allocation70_spill] sm:$0xff] %v10330_v2  ;;  %950 = vmatmul.f32.gmra.mxu0 %v10328_v16  ;;  %1601 = vmatmul.f32.gmra.mxu1 %v10164_v56  ;;  %v449_v2 = vld [vmem:[#allocation5 + $0x158] sm:$0xff] }
 0x164   : > { %1262 = vmatmul.f32.gmra.mxu3 %v10164_v56  ;;  %1416 = vmatpush.msra.mxu0 %v703_v28 }
 0x165   : > { %1312 = vmatmul.f32.gmra.mxu2 %v10333_v60 }
 0x166   : > { %8785 = vmatpush.msra.mxu2 %v703_v28  ;;  %v657_v28 = vld [vmem:[#allocation5 + $0x7d8] sm:$0xff] }
 0x167   : > { %v10339_v48 = vpop.f32.mrf.mxu3  ;;  %1971 = vmatpush.msra.mxu1 %v657_v28  ;;  %v633_v28 = vld [vmem:[#allocation5 + $0x718] sm:$0xff] }
 0x168   : > { %v10341_v34 = vpop.f32.mrf.mxu2  ;;  %v10343_v42 = vpop.f32.mrf.mxu0 }
 0x169   : > { %16383 = vst [vmem:[#allocation71_spill] sm:$0xff] %v10341_v34  ;;  %v10345_v15 = vpop.f32.mrf.mxu1 }
 0x16a   : > { %16384 = vst [vmem:[#allocation72_spill] sm:$0xff] %v10343_v42 }
 0x16b   : > { %16385 = vst [vmem:[#allocation73_spill] sm:$0xff] %v10345_v15  ;;  %970 = vmatmul.f32.vlgmr.msrb.gmra.mxu0 %v10315_v36  ;;  %1604 = vmatmul.f32.gmra.mxu1 %v10180_v63  ;;  %v697_v15 = vld [vmem:[#allocation5 + $0x918] sm:$0xff] }
 0x16c   : > { %1265 = vmatmul.f32.gmra.mxu3 %v10180_v63  ;;  %v695_v63 = vld [vmem:[#allocation5 + $0x908] sm:$0xff] }
 0x16d   : > { %1315 = vmatmul.f32.gmra.mxu2 %v10348_v45  ;;  %1417 = vmatpush.msra.mxu0 %v695_v63 }
 0x16e   : > { %8786 = vmatpush.msra.mxu2 %v695_v63 }
 0x16f   : > { %v10354_v56 = vpop.f32.mrf.mxu3 }
 0x170   : > { %v10356_v34 = vpop.f32.mrf.mxu2  ;;  %v10358_v42 = vpop.f32.mrf.mxu0 }
 0x171   : > { %16386 = vst [vmem:[#allocation74_spill] sm:$0xff] %v10356_v34  ;;  %v10360_v41 = vpop.f32.mrf.mxu1 }
 0x172   : > { %16387 = vst [vmem:[#allocation75_spill] sm:$0xff] %v10358_v42  ;;  %v649_v42 = vld [vmem:[#allocation5 + $0x798] sm:$0xff] }
 0x173   : > { %16388 = vst [vmem:[#allocation76_spill] sm:$0xff] %v10360_v41  ;;  %973 = vmatmul.f32.gmra.mxu0 %v10333_v60  ;;  %1607 = vmatmul.f32.gmra.mxu1 %v10199_v5  ;;  %v465_v41 = vld [vmem:[#allocation5 + $0x1d8] sm:$0xff] }
 0x174   : > { %1268 = vmatmul.f32.gmra.mxu3 %v10199_v5  ;;  %1972 = vmatpush.msra.mxu1 %v649_v42  ;;  %v641_v5 = vld [vmem:[#allocation5 + $0x758] sm:$0xff] }
 0x175   : > { %1318 = vmatmul.f32.gmra.mxu2 %v10363_v21  ;;  %v625_v42 = vld [vmem:[#allocation5 + $0x6d8] sm:$0xff] }
 0x176   : > { %1973 = vmatpush.msra.mxu1 %v641_v5 }
 0x177   : > { %v10369_v34 = vpop.f32.mrf.mxu3 }
 0x178   : > { %v10371_v4 = vpop.f32.mrf.mxu2  ;;  %v10373_v54 = vpop.f32.mrf.mxu0  ;;  %1974 = vmatpush.msra.mxu1 %v633_v28  ;;  %v687_v28 = vld [vmem:[#allocation5 + $0x8c8] sm:$0xff] }
 0x179   : > { %16389 = vst [vmem:[#allocation77_spill] sm:$0xff] %v10371_v4  ;;  %v10375_v46 = vpop.f32.mrf.mxu1  ;;  %1418 = vmatpush.msra.mxu0 %v687_v28  ;;  %8787 = vmatpush.msra.mxu2 %v687_v28 }
 0x17a   : > { %16390 = vst [vmem:[#allocation78_spill] sm:$0xff] %v10373_v54  ;;  %1975 = vmatpush.msra.mxu1 %v625_v42  ;;  %v593_v42 = vld [vmem:[#allocation5 + $0x5d8] sm:$0xff] }
 0x17b   : > { %16391 = vst [vmem:[#allocation79_spill] sm:$0xff] %v10375_v46  ;;  %976 = vmatmul.f32.gmra.mxu0 %v10348_v45  ;;  %1610 = vmatmul.f32.gmra.mxu1 %v10218_v22 }
 0x17c   : > { %1271 = vmatmul.f32.gmra.mxu3 %v10218_v22  ;;  %1976 = vmatpush.msra.mxu1 %v617_v62  ;;  %v601_v22 = vld [vmem:[#allocation5 + $0x618] sm:$0xff] }
 0x17d   : > { %1321 = vmatmul.f32.gmra.mxu2 %v10378_v55 }
 0x17e   : > { %1977 = vmatpush.msra.mxu1 %v609_v24 }
 0x17f   : > { %v10384_v63 = vpop.f32.mrf.mxu3 }
 0x180   : > { %v10386_v4 = vpop.f32.mrf.mxu2  ;;  %v10388_v54 = vpop.f32.mrf.mxu0  ;;  %1978 = vmatpush.msra.mxu1 %v601_v22  ;;  %v10408_v22 = vld [vmem:[%s9835_s6 + $0x98] sm:$0xff] }
 0x181   : > { %16392 = vst [vmem:[#allocation80_spill] sm:$0xff] %v10386_v4  ;;  %v10390_v5 = vpop.f32.mrf.mxu1 }
 0x182   : > { %16393 = vst [vmem:[#allocation81_spill] sm:$0xff] %v10388_v54  ;;  %1979 = vmatpush.msra.mxu1 %v593_v42  ;;  %v585_v54 = vld [vmem:[#allocation5 + $0x598] sm:$0xff] }
 0x183   : > { %16394 = vst [vmem:[#allocation82_spill] sm:$0xff] %v10390_v5  ;;  %979 = vmatmul.f32.gmra.mxu0 %v10363_v21  ;;  %1613 = vmatmul.f32.gmra.mxu1 %v10237_v43  ;;  %v569_v42 = vld [vmem:[#allocation5 + $0x518] sm:$0xff]  ;;  %v10686_v5 = vld [vmem:[%s9835_s6 + $0xa0] sm:$0xff] }
 0x184   : > { %1274 = vmatmul.f32.gmra.mxu3 %v10237_v43  ;;  %1980 = vmatpush.msra.mxu1 %v585_v54  ;;  %v577_v43 = vld [vmem:[#allocation5 + $0x558] sm:$0xff] }
 0x185   : > { %1324 = vmatmul.f32.gmra.mxu2 %v10393_v32  ;;  %v561_v54 = vld [vmem:[#allocation5 + $0x4d8] sm:$0xff] }
 0x186   : > { %1981 = vmatpush.msra.mxu1 %v577_v43 }
 0x187   : > { %v10399_v62 = vpop.f32.mrf.mxu3 }
 0x188   : > { %v10401_v24 = vpop.f32.mrf.mxu2  ;;  %v10403_v17 = vpop.f32.mrf.mxu0  ;;  %1982 = vmatpush.msra.mxu1 %v569_v42  ;;  %v679_v42 = vld [vmem:[#allocation5 + $0x888] sm:$0xff] }
 0x189   : > { %16395 = vst [vmem:[#allocation83_spill] sm:$0xff] %v10401_v24  ;;  %v10405_v10 = vpop.f32.mrf.mxu1  ;;  %1419 = vmatpush.msra.mxu0 %v679_v42  ;;  %8788 = vmatpush.msra.mxu2 %v679_v42  ;;  %v10438_v24 = vld [vmem:[%s9835_s6 + $0xc8] sm:$0xff] }
 0x18a   : > { %16396 = vst [vmem:[#allocation84_spill] sm:$0xff] %v10403_v17  ;;  %1983 = vmatpush.msra.mxu1 %v561_v54  ;;  %v536_v54 = vld [vmem:[#allocation5 + $0x410] sm:$0xff]  ;;  %v10498_v17 = vld [vmem:[%s9835_s6 + $0x128] sm:$0xff] }
 0x18b   : > { %16397 = vst [vmem:[#allocation85_spill] sm:$0xff] %v10405_v10  ;;  %982 = vmatmul.f32.gmra.mxu0 %v10378_v55  ;;  %1616 = vmatmul.f32.gmra.mxu1 %v10256_v8  ;;  %v10665_v10 = vld [vmem:[%s9835_s6 + $0x88] sm:$0xff] }
 0x18c   : > { %1277 = vmatmul.f32.gmra.mxu3 %v10256_v8  ;;  %1984 = vmatpush.msra.mxu1 %v553_v18  ;;  %v10423_v8 = vld [vmem:[%s9835_s6 + $0xb0] sm:$0xff] }
 0x18d   : > { %1327 = vmatmul.f32.gmra.mxu2 %v10408_v22  ;;  %1647 = vmatpush.msra.mxu3 %v536_v54  ;;  %v671_v54 = vld [vmem:[#allocation5 + $0x848] sm:$0xff] }
 0x18e   : > { %1985 = vmatpush.msra.mxu1 %v545_v53  ;;  %1420 = vmatpush.msra.mxu0 %v671_v54 }
 0x18f   : > { %v10414_v28 = vpop.f32.mrf.mxu3  ;;  %8789 = vmatpush.msra.mxu2 %v671_v54  ;;  %v10468_v54 = vld [vmem:[%s9835_s6 + $0xf8] sm:$0xff]  ;;  %2092 = vmatpush.msrb.mxu3 %v721_v44 }
 0x190   : > { %v10416_v6 = vpop.f32.mrf.mxu2  ;;  %v10418_v43 = vpop.f32.mrf.mxu0 }
 0x191   : > { %16398 = vst [vmem:[#allocation86_spill] sm:$0xff] %v10416_v6  ;;  %v10420_v11 = vpop.f32.mrf.mxu1  ;;  %v537_v6 = vld [vmem:[#allocation5 + $0x418] sm:$0xff] }
 0x192   : > { %16399 = vst [vmem:[#allocation87_spill] sm:$0xff] %v10418_v43  ;;  %1986 = vmatpush.msra.mxu1 %v537_v6 }
 0x193   : > { %16400 = vst [vmem:[#allocation88_spill] sm:$0xff] %v10420_v11  ;;  %985 = vmatmul.f32.gmra.mxu0 %v10393_v32  ;;  %1619 = vmatmul.f32.gmra.mxu1 %v10275_v30 }
 0x194   : > { %1280 = vmatmul.f32.gmra.mxu3 %v10275_v30 }
 0x195   : > { %1330 = vmatmul.f32.gmra.mxu2 %v10423_v8 }
 0x197   : > { %v10429_v18 = vpop.f32.mrf.mxu3 }
 0x198   : > { %v10431_v53 = vpop.f32.mrf.mxu2  ;;  %v10433_v61 = vpop.f32.mrf.mxu0 }
 0x199   : > { %16401 = vst [vmem:[#allocation89_spill] sm:$0xff] %v10431_v53  ;;  %v10435_v25 = vpop.f32.mrf.mxu1 }
 0x19a   : > { %16402 = vst [vmem:[#allocation90_spill] sm:$0xff] %v10433_v61  ;;  %v10453_v61 = vld [vmem:[%s9835_s6 + $0xe0] sm:$0xff] }
 0x19b   : > { %16403 = vst [vmem:[#allocation91_spill] sm:$0xff] %v10435_v25  ;;  %988 = vmatmul.f32.gmra.mxu0 %v10408_v22  ;;  %1622 = vmatmul.f32.gmra.mxu1 %v10294_v37  ;;  %v10644_v25 = vld [vmem:[%s9835_s6 + $0x70] sm:$0xff] }
 0x19c   : > { %1283 = vmatmul.f32.gmra.mxu3 %v10294_v37 }
 0x19d   : > { %1333 = vmatmul.f32.gmra.mxu2 %v10438_v24 }
 0x19f   : > { %v10444_v6 = vpop.f32.mrf.mxu3 }
 0x1a0   : > { %v10446_v30 = vpop.f32.mrf.mxu2  ;;  %v10448_v42 = vpop.f32.mrf.mxu0 }
 0x1a1   : > { %16404 = vst [vmem:[#allocation92_spill] sm:$0xff] %v10446_v30  ;;  %v10450_v53 = vpop.f32.mrf.mxu1 }
 0x1a2   : > { %16405 = vst [vmem:[#allocation93_spill] sm:$0xff] %v10448_v42 }
 0x1a3   : > { %16406 = vst [vmem:[#allocation94_spill] sm:$0xff] %v10450_v53  ;;  %991 = vmatmul.f32.gmra.mxu0 %v10423_v8  ;;  %1625 = vmatmul.f32.gmra.mxu1 %v10310_v20  ;;  %v713_v53 = vld [vmem:[#allocation5 + $0x998] sm:$0xff] }
 0x1a4   : > { %1286 = vmatmul.f32.gmra.mxu3 %v10310_v20  ;;  %v663_v20 = vld [vmem:[#allocation5 + $0x808] sm:$0xff] }
 0x1a5   : > { %1336 = vmatmul.f32.gmra.mxu2 %v10453_v61  ;;  %1421 = vmatpush.msra.mxu0 %v663_v20 }
 0x1a6   : > { %8790 = vmatpush.msra.mxu2 %v663_v20  ;;  %2093 = vmatpush.msrb.mxu3 %v713_v53 }
 0x1a7   : > { %v10459_v37 = vpop.f32.mrf.mxu3 }
 0x1a8   : > { %v10461_v30 = vpop.f32.mrf.mxu2  ;;  %v10463_v42 = vpop.f32.mrf.mxu0 }
 0x1a9   : > { %16407 = vst [vmem:[#allocation95_spill] sm:$0xff] %v10461_v30  ;;  %v10465_v49 = vpop.f32.mrf.mxu1 }
 0x1aa   : > { %16408 = vst [vmem:[#allocation96_spill] sm:$0xff] %v10463_v42 }
 0x1ab   : > { %16409 = vst [vmem:[#allocation97_spill] sm:$0xff] %v10465_v49  ;;  %994 = vmatmul.f32.gmra.mxu0 %v10438_v24  ;;  %1628 = vmatmul.f32.gmra.mxu1 %v10328_v16 }
 0x1ac   : > { %1289 = vmatmul.f32.gmra.mxu3 %v10328_v16 }
 0x1ad   : > { %1339 = vmatmul.f32.gmra.mxu2 %v10468_v54 }
 0x1af   : > { %v10474_v43 = vpop.f32.mrf.mxu3 }
 0x1b0   : > { %v10476_v30 = vpop.f32.mrf.mxu2  ;;  %v10478_v42 = vpop.f32.mrf.mxu0 }
 0x1b1   : > { %16410 = vst [vmem:[#allocation98_spill] sm:$0xff] %v10476_v30  ;;  %v10480_v4 = vpop.f32.mrf.mxu1 }
 0x1b2   : > { %16411 = vst [vmem:[#allocation99_spill] sm:$0xff] %v10478_v42 }
 0x1b3   : > { %16412 = vst [vmem:[#allocation100_spill] sm:$0xff] %v10480_v4  ;;  %997 = vmatmul.f32.gmra.mxu0 %v10453_v61  ;;  %1987 = vmatmul.f32.vlgmr.msra.gmra.mxu1 %v10315_v36  ;;  %v10581_v4 = vld [vmem:[%s9835_s6 + $0x28] sm:$0xff] }
 0x1b4   : > { %1648 = vmatmul.f32.vlgmr.msra.gmra.mxu3 %v10315_v36  ;;  %v529_v36 = vld [vmem:[#allocation5 + $0x3d8] sm:$0xff] }
 0x1b5   : > { %1342 = vmatmul.f32.gmra.mxu2 %v10483_v58  ;;  %1858 = vmatpush.msrb.mxu0 %v529_v36 }
 0x1b7   : > { %v10489_v16 = vpop.f32.mrf.mxu3  ;;  %1859 = vmatpush.msrb.mxu0 %v521_v38  ;;  %v10546_v38 = vld [vmem:[%s9835_s6 + $0x170] sm:$0xff] }
 0x1b8   : > { %v10491_v20 = vpop.f32.mrf.mxu2  ;;  %v10493_v30 = vpop.f32.mrf.mxu0 }
 0x1b9   : > { %16413 = vst [vmem:[#allocation101_spill] sm:$0xff] %v10491_v20  ;;  %v10495_v42 = vpop.f32.mrf.mxu1 }
 0x1ba   : > { %16414 = vst [vmem:[#allocation102_spill] sm:$0xff] %v10493_v30 }
 0x1bb   : > { %16415 = vst [vmem:[#allocation103_spill] sm:$0xff] %v10495_v42  ;;  %1000 = vmatmul.f32.gmra.mxu0 %v10468_v54  ;;  %1990 = vmatmul.f32.gmra.mxu1 %v10333_v60 }
 0x1bc   : > { %1651 = vmatmul.f32.gmra.mxu3 %v10333_v60 }
 0x1bd   : > { %1345 = vmatmul.f32.gmra.mxu2 %v10498_v17 }
 0x1bf   : > { %v10504_v1 = vpop.f32.mrf.mxu3 }
 0x1c0   : > { %v10506_v9 = vpop.f32.mrf.mxu2  ;;  %v10508_v20 = vpop.f32.mrf.mxu0 }
 0x1c1   : > { %16416 = vst [vmem:[#allocation104_spill] sm:$0xff] %v10506_v9  ;;  %v10510_v30 = vpop.f32.mrf.mxu1 }
 0x1c2   : > { %16417 = vst [vmem:[#allocation105_spill] sm:$0xff] %v10508_v20 }
 0x1c3   : > { %16418 = vst [vmem:[#allocation106_spill] sm:$0xff] %v10510_v30  ;;  %1003 = vmatmul.f32.gmra.mxu0 %v10483_v58  ;;  %1993 = vmatmul.f32.gmra.mxu1 %v10348_v45  ;;  %v10560_v30 = vld [vmem:[%s9835_s6 + $0x10] sm:$0xff] }
 0x1c4   : > { %1654 = vmatmul.f32.gmra.mxu3 %v10348_v45  ;;  %v10531_v45 = vld [vmem:[%s9835_s6 + $0x158] sm:$0xff] }
 0x1c5   : > { %1348 = vmatmul.f32.gmra.mxu2 %v10513_v59 }
 0x1c7   : > { %v10519_v60 = vpop.f32.mrf.mxu3 }
 0x1c8   : > { %v10521_v36 = vpop.f32.mrf.mxu2  ;;  %v10523_v9 = vpop.f32.mrf.mxu0 }
 0x1c9   : > { %16419 = vst [vmem:[#allocation107_spill] sm:$0xff] %v10521_v36  ;;  %v10525_v20 = vpop.f32.mrf.mxu1 }
 0x1ca   : > { %16420 = vst [vmem:[#allocation108_spill] sm:$0xff] %v10523_v9 }
 0x1cb   : > { %16421 = vst [vmem:[#allocation109_spill] sm:$0xff] %v10525_v20  ;;  %1006 = vmatmul.f32.gmra.mxu0 %v10498_v17  ;;  %1996 = vmatmul.f32.gmra.mxu1 %v10363_v21 }
 0x1cc   : > { %1657 = vmatmul.f32.gmra.mxu3 %v10363_v21  ;;  %v513_v21 = vld [vmem:[#allocation5 + $0x358] sm:$0xff] }
 0x1cd   : > { %1351 = vmatmul.f32.gmra.mxu2 %v10531_v45  ;;  %1860 = vmatpush.msrb.mxu0 %v513_v21 }
 0x1cf   : > { %v10534_v36 = vpop.f32.mrf.mxu3 }
 0x1d0   : > { %v10536_v9 = vpop.f32.mrf.mxu2  ;;  %v10538_v47 = vpop.f32.mrf.mxu0 }
 0x1d1   : > { %16422 = vst [vmem:[#allocation110_spill] sm:$0xff] %v10536_v9  ;;  %v10540_v44 = vpop.f32.mrf.mxu1 }
 0x1d2   : > { %16423 = vst [vmem:[#allocation111_spill] sm:$0xff] %v10538_v47 }
 0x1d3   : > { %16424 = vst [vmem:[#allocation112_spill] sm:$0xff] %v10540_v44  ;;  %1009 = vmatmul.f32.gmra.mxu0 %v10513_v59  ;;  %1999 = vmatmul.f32.gmra.mxu1 %v10378_v55  ;;  %v726_v44 = vld [vmem:[#allocation7] sm:$0xff] }
 0x1d4   : > { %1660 = vmatmul.f32.gmra.mxu3 %v10378_v55  ;;  %v10557_v20 = vperm.slane %v726_v44, 1  ;;  %v10567_v55 = vld [vmem:[%s9835_s6 + $0x188] sm:$0xff] }
 0x1d5   : > { %1354 = vmatmul.f32.gmra.mxu2 %v10546_v38 }
 0x1d6   : > { %v1198_v21 = vadd.f32 %v10230_v35, %v10557_v20  ;;  %v10588_v35 = vld [vmem:[%s9835_s6 + $0x1a0] sm:$0xff] }
 0x1d7   : > { %v10549_v31 = vpop.f32.mrf.mxu3 }
 0x1d8   : > { %v10551_v9 = vpop.f32.mrf.mxu2  ;;  %v10553_v47 = vpop.f32.mrf.mxu0 }
 0x1d9   : > { %16425 = vst [vmem:[#allocation113_spill] sm:$0xff] %v10551_v9  ;;  %v10555_v39 = vpop.f32.mrf.mxu1 }
 0x1da   : > { %16426 = vst [vmem:[#allocation114_spill] sm:$0xff] %v10553_v47 }
 0x1db   : > { %16427 = vst [vmem:[#allocation115_spill] sm:$0xff] %v10555_v39  ;;  %8266 = vmatmul.msk.f32.vlgmr.msra.gmra.mxu0 %vm744_vm0, %v10560_v30  ;;  %2002 = vmatmul.f32.gmra.mxu1 %v10393_v32 }
 0x1dc   : > { %1663 = vmatmul.f32.gmra.mxu3 %v10393_v32  ;;  %v505_v32 = vld [vmem:[#allocation5 + $0x318] sm:$0xff] }
 0x1dd   : > { %1357 = vmatmul.f32.gmra.mxu2 %v10567_v55  ;;  %1861 = vmatpush.msrb.mxu0 %v505_v32  ;;  %v1204_v32 = vadd.f32 %v10268_v14, %v10557_v20  ;;  %v10630_v14 = vld [vmem:[%s9835_s6 + $0x1d0] sm:$0xff] }
 0x1df   : > { %v10572_v9 = vpop.f32.mrf.mxu3 }
 0x1e0   : > { %v1310_v44 = vpop.f32.mrf.mxu2  ;;  %v10574_v47 = vpop.f32.mrf.mxu0 }
 0x1e1   : > { %16428 = vst [vmem:[#allocation116_spill] sm:$0xff] %v10574_v47  ;;  %v10576_v39 = vadd.f32 %v1310_v44, %v1198_v21  ;;  %v10578_v42 = vpop.f32.mrf.mxu1  ;;  %v1201_v21 = vadd.f32 %v10249_v57, %v10557_v20  ;;  %v10609_v57 = vld [vmem:[%s9835_s6 + $0x1b8] sm:$0xff] }
 0x1e2   : > { %16430 = vst [vmem:[#allocation118_spill] sm:$0xff] %v10578_v42 }
 0x1e3   : > { %16429 = vst [vmem:[#allocation117_spill] sm:$0xff] %v10576_v39  ;;  %8267 = vmatmul.msk.f32.gmra.mxu0 %vm744_vm0, %v10581_v4  ;;  %2005 = vmatmul.f32.gmra.mxu1 %v10408_v22 }
 0x1e4   : > { %1666 = vmatmul.f32.gmra.mxu3 %v10408_v22  ;;  %v10602_v22 = vld [vmem:[%s9835_s6 + $0x40] sm:$0xff] }
 0x1e5   : > { %1360 = vmatmul.f32.gmra.mxu2 %v10588_v35 }
 0x1e7   : > { %v10593_v44 = vpop.f32.mrf.mxu3 }
 0x1e8   : > { %v1313_v47 = vpop.f32.mrf.mxu2  ;;  %v10595_v39 = vpop.f32.mrf.mxu0 }
 0x1e9   : > { %16431 = vst [vmem:[#allocation119_spill] sm:$0xff] %v10595_v39  ;;  %v10597_v42 = vadd.f32 %v1313_v47, %v1201_v21  ;;  %v10599_v49 = vpop.f32.mrf.mxu1  ;;  %v497_v47 = vld [vmem:[#allocation5 + $0x2d8] sm:$0xff] }
 0x1ea   : > { %16433 = vst [vmem:[#allocation121_spill] sm:$0xff] %v10599_v49  ;;  %1862 = vmatpush.msrb.mxu0 %v497_v47  ;;  %v1207_v47 = vadd.f32 %v10287_v19, %v10557_v20  ;;  %v10651_v19 = vld [vmem:[%s9835_s6 + $0x1e8] sm:$0xff] }
 0x1eb   : > { %16432 = vst [vmem:[#allocation120_spill] sm:$0xff] %v10597_v42  ;;  %8268 = vmatmul.msk.f32.gmra.mxu0 %vm744_vm0, %v10602_v22  ;;  %2008 = vmatmul.f32.gmra.mxu1 %v10423_v8 }
 0x1ec   : > { %1669 = vmatmul.f32.gmra.mxu3 %v10423_v8  ;;  %v10623_v8 = vld [vmem:[%s9835_s6 + $0x58] sm:$0xff] }
 0x1ed   : > { %1363 = vmatmul.f32.gmra.mxu2 %v10609_v57 }
 0x1ef   : > { %v10614_v53 = vpop.f32.mrf.mxu3 }
 0x1f0   : > { %v1316_v21 = vpop.f32.mrf.mxu2  ;;  %v10616_v42 = vpop.f32.mrf.mxu0 }
 0x1f1   : > { %16434 = vst [vmem:[#allocation122_spill] sm:$0xff] %v10616_v42  ;;  %v10618_v39 = vadd.f32 %v1316_v21, %v1204_v32  ;;  %v10620_v49 = vpop.f32.mrf.mxu1 }
 0x1f2   : > { %16436 = vst [vmem:[#allocation124_spill] sm:$0xff] %v10620_v49 }
 0x1f3   : > { %16435 = vst [vmem:[#allocation123_spill] sm:$0xff] %v10618_v39  ;;  %8269 = vmatmul.msk.f32.gmra.mxu0 %vm744_vm0, %v10623_v8  ;;  %2011 = vmatmul.f32.gmra.mxu1 %v10438_v24 }
 0x1f4   : > { %1672 = vmatmul.f32.gmra.mxu3 %v10438_v24  ;;  %v489_v24 = vld [vmem:[#allocation5 + $0x298] sm:$0xff] }
 0x1f5   : > { %1366 = vmatmul.f32.gmra.mxu2 %v10630_v14  ;;  %1863 = vmatpush.msrb.mxu0 %v489_v24 }
 0x1f7   : > { %v10635_v32 = vpop.f32.mrf.mxu3 }
 0x1f8   : > { %v1319_v21 = vpop.f32.mrf.mxu2  ;;  %v10637_v39 = vpop.f32.mrf.mxu0 }
 0x1f9   : > { %16437 = vst [vmem:[#allocation125_spill] sm:$0xff] %v10637_v39  ;;  %v10639_v42 = vadd.f32 %v1319_v21, %v1207_v47  ;;  %v10641_v49 = vpop.f32.mrf.mxu1  ;;  %v1210_v47 = vadd.f32 %v10303_v33, %v10557_v20  ;;  %v10672_v33 = vld [vmem:[%s9835_s6 + $0x200] sm:$0xff] }
 0x1fa   : > { %16439 = vst [vmem:[#allocation127_spill] sm:$0xff] %v10641_v49 }
 0x1fb   : > { %16438 = vst [vmem:[#allocation126_spill] sm:$0xff] %v10639_v42  ;;  %8270 = vmatmul.msk.f32.gmra.mxu0 %vm744_vm0, %v10644_v25  ;;  %2014 = vmatmul.f32.gmra.mxu1 %v10453_v61 }
 0x1fc   : > { %1675 = vmatmul.f32.gmra.mxu3 %v10453_v61  ;;  %v1213_v61 = vadd.f32 %v10321_v40, %v10557_v20  ;;  %v10693_v40 = vld [vmem:[%s9835_s6 + $0x218] sm:$0xff] }
 0x1fd   : > { %1369 = vmatmul.f32.gmra.mxu2 %v10651_v19 }
 0x1ff   : > { %v10656_v21 = vpop.f32.mrf.mxu3 }
 0x200   : > { %v1322_v42 = vpop.f32.mrf.mxu2  ;;  %v10658_v39 = vpop.f32.mrf.mxu0 }
 0x201   : > { %16440 = vst [vmem:[#allocation128_spill] sm:$0xff] %v10658_v39  ;;  %v10660_v49 = vadd.f32 %v1322_v42, %v1210_v47  ;;  %v10662_v11 = vpop.f32.mrf.mxu1 }
 0x202   : > { %16442 = vst [vmem:[#allocation130_spill] sm:$0xff] %v10662_v11  ;;  %v481_v11 = vld [vmem:[#allocation5 + $0x258] sm:$0xff] }
 0x203   : > { %16441 = vst [vmem:[#allocation129_spill] sm:$0xff] %v10660_v49  ;;  %8271 = vmatmul.msk.f32.gmra.mxu0 %vm744_vm0, %v10665_v10  ;;  %2017 = vmatmul.f32.gmra.mxu1 %v10468_v54 }
 0x204   : > { %1678 = vmatmul.f32.gmra.mxu3 %v10468_v54  ;;  %v705_v54 = vld [vmem:[#allocation5 + $0x958] sm:$0xff]  ;;  %1864 = vmatpush.msrb.mxu0 %v481_v11 }
 0x205   : > { %1372 = vmatmul.f32.gmra.mxu2 %v10672_v33  ;;  %2094 = vmatpush.msrb.mxu3 %v705_v54 }
 0x207   : > { %v10677_v42 = vpop.f32.mrf.mxu3  ;;  %2095 = vmatpush.msrb.mxu3 %v697_v15 }
 0x208   : > { %v1325_v24 = vpop.f32.mrf.mxu2  ;;  %v10679_v47 = vpop.f32.mrf.mxu0 }
 0x209   : > { %16443 = vst [vmem:[#allocation131_spill] sm:$0xff] %v10679_v47  ;;  %v10681_v49 = vadd.f32 %v1325_v24, %v1213_v61  ;;  %v10683_v39 = vpop.f32.mrf.mxu1  ;;  %v1216_v61 = vadd.f32 %v10339_v48, %v10557_v20  ;;  %v473_v48 = vld [vmem:[#allocation5 + $0x218] sm:$0xff] }
 0x20a   : > { %16445 = vst [vmem:[#allocation133_spill] sm:$0xff] %v10683_v39  ;;  %v10707_v39 = vld [vmem:[%s9835_s6 + $0xb8] sm:$0xff]  ;;  %1865 = vmatpush.msrb.mxu0 %v473_v48 }
 0x20b   : > { %16444 = vst [vmem:[#allocation132_spill] sm:$0xff] %v10681_v49  ;;  %8272 = vmatmul.msk.f32.gmra.mxu0 %vm744_vm0, %v10686_v5  ;;  %2020 = vmatmul.f32.gmra.mxu1 %v10483_v58 }
 0x20c   : > { %1681 = vmatmul.f32.gmra.mxu3 %v10483_v58  ;;  %v10714_v58 = vld [vmem:[%s9835_s6 + $0x230] sm:$0xff]  ;;  %1866 = vmatpush.msrb.mxu0 %v465_v41 }
 0x20d   : > { %1375 = vmatmul.f32.gmra.mxu2 %v10693_v40 }
 0x20f   : > { %v10698_v24 = vpop.f32.mrf.mxu3 }
 0x210   : > { %v1328_v11 = vpop.f32.mrf.mxu2  ;;  %v10700_v54 = vpop.f32.mrf.mxu0 }
 0x211   : > { %16446 = vst [vmem:[#allocation134_spill] sm:$0xff] %v10700_v54  ;;  %v10702_v49 = vadd.f32 %v1328_v11, %v1216_v61  ;;  %v10704_v47 = vpop.f32.mrf.mxu1  ;;  %v1219_v61 = vadd.f32 %v10354_v56, %v10557_v20  ;;  %v10735_v56 = vld [vmem:[%s9835_s6 + $0x248] sm:$0xff] }
 0x212   : > { %16448 = vst [vmem:[#allocation136_spill] sm:$0xff] %v10704_v47 }
 0x213   : > { %16447 = vst [vmem:[#allocation135_spill] sm:$0xff] %v10702_v49  ;;  %8273 = vmatmul.msk.f32.gmra.mxu0 %vm744_vm0, %v10707_v39  ;;  %2023 = vmatmul.f32.gmra.mxu1 %v10498_v17 }
 0x214   : > { %1684 = vmatmul.f32.gmra.mxu3 %v10498_v17  ;;  %v10728_v17 = vld [vmem:[%s9835_s6 + $0xd0] sm:$0xff] }
 0x215   : > { %1378 = vmatmul.f32.gmra.mxu2 %v10714_v58 }
 0x217   : > { %v10719_v11 = vpop.f32.mrf.mxu3 }
 0x218   : > { %v1331_v49 = vpop.f32.mrf.mxu2  ;;  %v10721_v54 = vpop.f32.mrf.mxu0 }
 0x219   : > { %16449 = vst [vmem:[#allocation137_spill] sm:$0xff] %v10721_v54  ;;  %v10723_v47 = vadd.f32 %v1331_v49, %v1219_v61  ;;  %v10725_v46 = vpop.f32.mrf.mxu1  ;;  %v1222_v49 = vadd.f32 %v10369_v34, %v10557_v20  ;;  %v10756_v34 = vld [vmem:[%s9835_s6 + $0x260] sm:$0xff] }
 0x21a   : > { %16451 = vst [vmem:[#allocation139_spill] sm:$0xff] %v10725_v46 }
 0x21b   : > { %16450 = vst [vmem:[#allocation138_spill] sm:$0xff] %v10723_v47  ;;  %8274 = vmatmul.msk.f32.gmra.mxu0 %vm744_vm0, %v10728_v17  ;;  %2026 = vmatmul.f32.gmra.mxu1 %v10513_v59 }
 0x21c   : > { %1687 = vmatmul.f32.gmra.mxu3 %v10513_v59  ;;  %v10749_v59 = vld [vmem:[%s9835_s6 + $0xe8] sm:$0xff] }
 0x21d   : > { %1381 = vmatmul.f32.gmra.mxu2 %v10735_v56 }
 0x21f   : > { %v10740_v48 = vpop.f32.mrf.mxu3 }
 0x220   : > { %v1334_v61 = vpop.f32.mrf.mxu2  ;;  %v10742_v54 = vpop.f32.mrf.mxu0 }
 0x221   : > { %16452 = vst [vmem:[#allocation140_spill] sm:$0xff] %v10742_v54  ;;  %v10744_v47 = vadd.f32 %v1334_v61, %v1222_v49  ;;  %v10746_v46 = vpop.f32.mrf.mxu1  ;;  %v1225_v49 = vadd.f32 %v10384_v63, %v10557_v20  ;;  %v10777_v63 = vld [vmem:[%s9835_s6 + $0x278] sm:$0xff] }
 0x222   : > { %16454 = vst [vmem:[#allocation142_spill] sm:$0xff] %v10746_v46 }
 0x223   : > { %16453 = vst [vmem:[#allocation141_spill] sm:$0xff] %v10744_v47  ;;  %8275 = vmatmul.msk.f32.gmra.mxu0 %vm744_vm0, %v10749_v59  ;;  %2029 = vmatmul.f32.gmra.mxu1 %v10531_v45 }
 0x224   : > { %1690 = vmatmul.f32.gmra.mxu3 %v10531_v45  ;;  %v10770_v45 = vld [vmem:[%s9835_s6 + $0x100] sm:$0xff] }
 0x225   : > { %1384 = vmatmul.f32.gmra.mxu2 %v10756_v34 }
 0x227   : > { %v10761_v61 = vpop.f32.mrf.mxu3 }
 0x228   : > { %v1337_v41 = vpop.f32.mrf.mxu2  ;;  %v10763_v47 = vpop.f32.mrf.mxu0 }
 0x229   : > { %16455 = vst [vmem:[#allocation143_spill] sm:$0xff] %v10763_v47  ;;  %v10765_v54 = vadd.f32 %v1337_v41, %v1225_v49  ;;  %v10767_v46 = vpop.f32.mrf.mxu1  ;;  %v457_v49 = vld [vmem:[#allocation5 + $0x198] sm:$0xff]  ;;  %v1228_v41 = vadd.f32 %v10399_v62, %v10557_v20  ;;  %v10798_v62 = vld [vmem:[%s9835_s6 + $0x290] sm:$0xff] }
 0x22a   : > { %16457 = vst [vmem:[#allocation145_spill] sm:$0xff] %v10767_v46  ;;  %1867 = vmatpush.msrb.mxu0 %v457_v49 }
 0x22b   : > { %16456 = vst [vmem:[#allocation144_spill] sm:$0xff] %v10765_v54  ;;  %8276 = vmatmul.msk.f32.gmra.mxu0 %vm744_vm0, %v10770_v45  ;;  %2032 = vmatmul.f32.gmra.mxu1 %v10546_v38 }
 0x22c   : > { %1693 = vmatmul.f32.gmra.mxu3 %v10546_v38  ;;  %v10791_v38 = vld [vmem:[%s9835_s6 + $0x118] sm:$0xff]  ;;  %1868 = vmatpush.msrb.mxu0 %v449_v2 }
 0x22d   : > { %1387 = vmatmul.f32.gmra.mxu2 %v10777_v63 }
 0x22f   : > { %v10782_v15 = vpop.f32.mrf.mxu3 }
 0x230   : > { %v1340_v54 = vpop.f32.mrf.mxu2  ;;  %v10784_v47 = vpop.f32.mrf.mxu0 }
 0x231   : > { %16458 = vst [vmem:[#allocation146_spill] sm:$0xff] %v10784_v47  ;;  %v10786_v46 = vadd.f32 %v1340_v54, %v1228_v41  ;;  %v10788_v23 = vpop.f32.mrf.mxu1  ;;  %v1231_v54 = vadd.f32 %v10414_v28, %v10557_v20  ;;  %v10819_v28 = vld [vmem:[%s9835_s6 + $0x2a8] sm:$0xff] }
 0x232   : > { %16460 = vst [vmem:[#allocation148_spill] sm:$0xff] %v10788_v23 }
 0x233   : > { %16459 = vst [vmem:[#allocation147_spill] sm:$0xff] %v10786_v46  ;;  %8277 = vmatmul.msk.f32.gmra.mxu0 %vm744_vm0, %v10791_v38  ;;  %2035 = vmatmul.f32.gmra.mxu1 %v10567_v55 }
 0x234   : > { %1696 = vmatmul.f32.gmra.mxu3 %v10567_v55  ;;  %v10812_v55 = vld [vmem:[%s9835_s6 + $0x130] sm:$0xff] }
 0x235   : > { %1390 = vmatmul.f32.gmra.mxu2 %v10798_v62 }
 0x237   : > { %v10803_v49 = vpop.f32.mrf.mxu3 }
 0x238   : > { %16461 = vst [vmem:[#allocation149_spill] sm:$0xff] %v10803_v49  ;;  %v1343_v41 = vpop.f32.mrf.mxu2  ;;  %v10805_v46 = vpop.f32.mrf.mxu0 }
 0x239   : > { %16462 = vst [vmem:[#allocation150_spill] sm:$0xff] %v10805_v46  ;;  %v10807_v47 = vadd.f32 %v1343_v41, %v1231_v54  ;;  %v10809_v23 = vpop.f32.mrf.mxu1  ;;  %v1234_v54 = vadd.f32 %v10429_v18, %v10557_v20  ;;  %v10840_v18 = vld [vmem:[%s9835_s6 + $0x2c0] sm:$0xff] }
 0x23a   : > { %16464 = vst [vmem:[#allocation152_spill] sm:$0xff] %v10809_v23  ;;  %v689_v23 = vld [vmem:[#allocation5 + $0x8d8] sm:$0xff] }
 0x23b   : > { %16463 = vst [vmem:[#allocation151_spill] sm:$0xff] %v10807_v47  ;;  %8278 = vmatmul.msk.f32.gmra.mxu0 %vm744_vm0, %v10812_v55  ;;  %2038 = vmatmul.f32.gmra.mxu1 %v10588_v35 }
 0x23c   : > { %1699 = vmatmul.f32.gmra.mxu3 %v10588_v35  ;;  %v720_v35 = vld [vmem:[#allocation5 + $0x9d0] sm:$0xff] }
 0x23d   : > { %1393 = vmatmul.f32.gmra.mxu2 %v10819_v28  ;;  %2096 = vmatpush.msrb.mxu3 %v689_v23  ;;  %v1240_v23 = vadd.f32 %v10459_v37, %v10557_v20  ;;  %v10882_v37 = vld [vmem:[%s9835_s6 + $0x2f0] sm:$0xff] }
 0x23e   : > { %1753 = vmatpush.msrb.mxu2 %v720_v35 }
 0x23f   : > { %v10824_v41 = vpop.f32.mrf.mxu3 }
 0x240   : > { %16465 = vst [vmem:[#allocation153_spill] sm:$0xff] %v10824_v41  ;;  %v1346_v2 = vpop.f32.mrf.mxu2  ;;  %v10826_v47 = vpop.f32.mrf.mxu0  ;;  %v10854_v41 = vld [vmem:[%s9835_s6 + $0x160] sm:$0xff] }
 0x241   : > { %16466 = vst [vmem:[#allocation154_spill] sm:$0xff] %v10826_v47  ;;  %v10828_v46 = vadd.f32 %v1346_v2, %v1234_v54  ;;  %v10830_v49 = vpop.f32.mrf.mxu1  ;;  %v441_v54 = vld [vmem:[#allocation5 + $0x118] sm:$0xff]  ;;  %v1237_v2 = vadd.f32 %v10444_v6, %v10557_v20 }
 0x242   : > { %16468 = vst [vmem:[#allocation156_spill] sm:$0xff] %v10830_v49  ;;  %1869 = vmatpush.msrb.mxu0 %v441_v54  ;;  %v10861_v6 = vld [vmem:[%s9835_s6 + $0x2d8] sm:$0xff] }
 0x243   : > { %16467 = vst [vmem:[#allocation155_spill] sm:$0xff] %v10828_v46  ;;  %8279 = vmatmul.msk.f32.gmra.mxu0 %vm744_vm0, %v10833_v27  ;;  %2041 = vmatmul.f32.gmra.mxu1 %v10609_v57 }
 0x244   : > { %1702 = vmatmul.f32.gmra.mxu3 %v10609_v57 }
 0x245   : > { %1396 = vmatmul.f32.gmra.mxu2 %v10840_v18 }
 0x247   : > { %v10845_v46 = vpop.f32.mrf.mxu3 }
 0x248   : > { %v1349_v47 = vpop.f32.mrf.mxu2  ;;  %v10847_v49 = vpop.f32.mrf.mxu0 }
 0x249   : > { %16469 = vst [vmem:[#allocation157_spill] sm:$0xff] %v10847_v49  ;;  %v10849_v7 = vadd.f32 %v1349_v47, %v1237_v2  ;;  %v10851_v57 = vpop.f32.mrf.mxu1  ;;  %v712_v47 = vld [vmem:[#allocation5 + $0x990] sm:$0xff] }
 0x24a   : > { %16471 = vst [vmem:[#allocation159_spill] sm:$0xff] %v10851_v57  ;;  %1754 = vmatpush.msrb.mxu2 %v712_v47  ;;  %v10875_v57 = vld [vmem:[%s9835_s6 + $0x178] sm:$0xff]  ;;  %v704_v47 = vld [vmem:[#allocation5 + $0x950] sm:$0xff] }
 0x24b   : > { %16470 = vst [vmem:[#allocation158_spill] sm:$0xff] %v10849_v7  ;;  %8280 = vmatmul.msk.f32.gmra.mxu0 %vm744_vm0, %v10854_v41  ;;  %2044 = vmatmul.f32.gmra.mxu1 %v10630_v14 }
 0x24c   : > { %1705 = vmatmul.f32.gmra.mxu3 %v10630_v14  ;;  %v433_v14 = vld [vmem:[#allocation5 + $0xd8] sm:$0xff]  ;;  %1755 = vmatpush.msrb.mxu2 %v704_v47 }
 0x24d   : > { %1399 = vmatmul.f32.gmra.mxu2 %v10861_v6  ;;  %1870 = vmatpush.msrb.mxu0 %v433_v14 }
 0x24f   : > { %v10866_v35 = vpop.f32.mrf.mxu3 }
 0x250   : > { %16472 = vst [vmem:[#allocation160_spill] sm:$0xff] %v10866_v35  ;;  %v1352_v54 = vpop.f32.mrf.mxu2  ;;  %v10868_v2 = vpop.f32.mrf.mxu0  ;;  %v696_v35 = vld [vmem:[#allocation5 + $0x910] sm:$0xff] }
 0x251   : > { %16473 = vst [vmem:[#allocation161_spill] sm:$0xff] %v10868_v2  ;;  %v10870_v7 = vadd.f32 %v1352_v54, %v1240_v23  ;;  %v10872_v49 = vpop.f32.mrf.mxu1  ;;  %v1243_v23 = vadd.f32 %v10474_v43, %v10557_v20  ;;  %1756 = vmatpush.msrb.mxu2 %v696_v35  ;;  %v1246_v43 = vadd.f32 %v10489_v16, %v10557_v20 }
 0x252   : > { %16475 = vst [vmem:[#allocation163_spill] sm:$0xff] %v10872_v49 }
 0x253   : > { %16474 = vst [vmem:[#allocation162_spill] sm:$0xff] %v10870_v7  ;;  %8281 = vmatmul.msk.f32.gmra.mxu0 %vm744_vm0, %v10875_v57  ;;  %2047 = vmatmul.f32.gmra.mxu1 %v10651_v19 }
 0x254   : > { %1708 = vmatmul.f32.gmra.mxu3 %v10651_v19  ;;  %v10896_v19 = vld [vmem:[%s9835_s6 + $0x190] sm:$0xff] }
 0x255   : > { %1402 = vmatmul.f32.gmra.mxu2 %v10882_v37 }
 0x257   : > { %v10887_v54 = vpop.f32.mrf.mxu3 }
 0x258   : > { %v1355_v14 = vpop.f32.mrf.mxu2  ;;  %v10889_v7 = vpop.f32.mrf.mxu0 }
 0x259   : > { %16476 = vst [vmem:[#allocation164_spill] sm:$0xff] %v10889_v7  ;;  %v10891_v2 = vadd.f32 %v1355_v14, %v1243_v23  ;;  %v10893_v49 = vpop.f32.mrf.mxu1 }
 0x25a   : > { %16478 = vst [vmem:[#allocation166_spill] sm:$0xff] %v10893_v49  ;;  %v688_v49 = vld [vmem:[#allocation5 + $0x8d0] sm:$0xff] }
 0x25b   : > { %16477 = vst [vmem:[#allocation165_spill] sm:$0xff] %v10891_v2  ;;  %8282 = vmatmul.msk.f32.gmra.mxu0 %vm744_vm0, %v10896_v19  ;;  %2050 = vmatmul.f32.gmra.mxu1 %v10672_v33  ;;  %v425_v2 = vld [vmem:[#allocation5 + $0x98] sm:$0xff] }
 0x25c   : > { %1711 = vmatmul.f32.gmra.mxu3 %v10672_v33  ;;  %1871 = vmatpush.msrb.mxu0 %v425_v2  ;;  %v10915_v33 = vld [vmem:[%s9835_s6 + $0x1a8] sm:$0xff] }
 0x25d   : > { %8291 = vmatmul.msk.f32.vlgmr.msra.gmra.mxu2 %vm744_vm0, %v10185_v0  ;;  %v1249_v0 = vadd.f32 %v10504_v1, %v10557_v20  ;;  %v1252_v1 = vadd.f32 %v10519_v60, %v10557_v20 }
 0x25e   : > { %1757 = vmatpush.msrb.mxu2 %v688_v49 }
 0x25f   : > { %v10906_v47 = vpop.f32.mrf.mxu3 }
 0x260   : > { %v1358_v23 = vpop.f32.mrf.mxu2  ;;  %v10908_v35 = vpop.f32.mrf.mxu0 }
 0x261   : > { %16479 = vst [vmem:[#allocation167_spill] sm:$0xff] %v10908_v35  ;;  %v10910_v14 = vadd.f32 %v1358_v23, %v1246_v43  ;;  %v10912_v7 = vpop.f32.mrf.mxu1  ;;  %v680_v35 = vld [vmem:[#allocation5 + $0x890] sm:$0xff] }
 0x262   : > { %16481 = vst [vmem:[#allocation169_spill] sm:$0xff] %v10912_v7  ;;  %v417_v7 = vld [vmem:[#allocation5 + $0x58] sm:$0xff]  ;;  %1758 = vmatpush.msrb.mxu2 %v680_v35 }
 0x263   : > { %16480 = vst [vmem:[#allocation168_spill] sm:$0xff] %v10910_v14  ;;  %8283 = vmatmul.msk.f32.gmra.mxu0 %vm744_vm0, %v10915_v33  ;;  %2053 = vmatmul.f32.gmra.mxu1 %v10693_v40  ;;  %v681_v14 = vld [vmem:[#allocation5 + $0x898] sm:$0xff] }
 0x264   : > { %1714 = vmatmul.f32.gmra.mxu3 %v10693_v40  ;;  %v10934_v40 = vld [vmem:[%s9835_s6 + $0x1c0] sm:$0xff]  ;;  %1872 = vmatpush.msrb.mxu0 %v417_v7  ;;  %v10953_v7 = vld [vmem:[%s9835_s6 + $0x1d8] sm:$0xff] }
 0x265   : > { %8292 = vmatmul.msk.f32.gmra.mxu2 %vm744_vm0, %v10204_v3  ;;  %2097 = vmatpush.msrb.mxu3 %v681_v14 }
 0x267   : > { %v10925_v16 = vpop.f32.mrf.mxu3 }
 0x268   : > { %v1361_v2 = vpop.f32.mrf.mxu2  ;;  %v10927_v49 = vpop.f32.mrf.mxu0 }
 0x269   : > { %16482 = vst [vmem:[#allocation170_spill] sm:$0xff] %v10927_v49  ;;  %v10929_v43 = vadd.f32 %v1361_v2, %v1249_v0  ;;  %v10931_v23 = vpop.f32.mrf.mxu1  ;;  %v664_v49 = vld [vmem:[#allocation5 + $0x810] sm:$0xff] }
 0x26a   : > { %16484 = vst [vmem:[#allocation172_spill] sm:$0xff] %v10931_v23  ;;  %v666_v23 = vld [vmem:[#allocation5 + $0x820] sm:$0xff] }
 0x26b   : > { %16483 = vst [vmem:[#allocation171_spill] sm:$0xff] %v10929_v43  ;;  %8284 = vmatmul.msk.f32.gmra.mxu0 %vm744_vm0, %v10934_v40  ;;  %2056 = vmatmul.f32.gmra.mxu1 %v10714_v58  ;;  %v672_v43 = vld [vmem:[#allocation5 + $0x850] sm:$0xff] }
 0x26c   : > { %1717 = vmatmul.f32.gmra.mxu3 %v10714_v58  ;;  %1759 = vmatpush.msrb.mxu2 %v672_v43 }
 0x26d   : > { %8293 = vmatmul.msk.f32.gmra.mxu2 %vm744_vm0, %v10223_v29  ;;  %v1255_v29 = vadd.f32 %v10534_v36, %v10557_v20  ;;  %v1258_v36 = vadd.f32 %v10549_v31, %v10557_v20  ;;  %v658_v31 = vld [vmem:[#allocation5 + $0x7e0] sm:$0xff] }
 0x26e   : > { %1760 = vmatpush.msrb.mxu2 %v664_v49 }
 0x26f   : > { %v10944_v3 = vpop.f32.mrf.mxu3 }
 0x270   : > { %v1364_v35 = vpop.f32.mrf.mxu2  ;;  %v10946_v14 = vpop.f32.mrf.mxu0 }
 0x271   : > { %16485 = vst [vmem:[#allocation173_spill] sm:$0xff] %v10946_v14  ;;  %v10948_v0 = vadd.f32 %v1364_v35, %v1252_v1  ;;  %v10950_v2 = vpop.f32.mrf.mxu1  ;;  %v10991_v14 = vld [vmem:[%s9835_s6 + $0x208] sm:$0xff] }
 0x272   : > { %16487 = vst [vmem:[#allocation175_spill] sm:$0xff] %v10950_v2  ;;  %v11126_v2 = vld [vmem:[%s9835_s6 + $0x48] sm:$0xff] }
 0x273   : > { %16486 = vst [vmem:[#allocation174_spill] sm:$0xff] %v10948_v0  ;;  %8285 = vmatmul.msk.f32.gmra.mxu0 %vm744_vm0, %v10953_v7  ;;  %2059 = vmatmul.f32.gmra.mxu1 %v10735_v56  ;;  %v409_v0 = vld [vmem:[#allocation5 + $0x18] sm:$0xff] }
 0x274   : > { %1720 = vmatmul.f32.gmra.mxu3 %v10735_v56  ;;  %1873 = vmatpush.msrb.mxu0 %v409_v0  ;;  %v10972_v56 = vld [vmem:[%s9835_s6 + $0x1f0] sm:$0xff] }
 0x275   : > { %8294 = vmatmul.msk.f32.gmra.mxu2 %vm744_vm0, %v10242_v13  ;;  %v530_v13 = vld [vmem:[#allocation5 + $0x3e0] sm:$0xff] }
 0x276   : > { %2197 = vmatpush.msra.mxu2 %v530_v13  ;;  %2310 = vmatpush.msra.mxu0 %v658_v31  ;;  %v11010_v31 = vld [vmem:[%s9835_s6 + $0x220] sm:$0xff] }
 0x277   : > { %v10963_v60 = vpop.f32.mrf.mxu3 }
 0x278   : > { %v1367_v58 = vpop.f32.mrf.mxu2  ;;  %v10965_v43 = vpop.f32.mrf.mxu0 }
 0x279   : > { %16488 = vst [vmem:[#allocation176_spill] sm:$0xff] %v10965_v43  ;;  %v10967_v1 = vadd.f32 %v1367_v58, %v1255_v29  ;;  %v10969_v35 = vpop.f32.mrf.mxu1  ;;  %v706_v43 = vld [vmem:[#allocation5 + $0x960] sm:$0xff] }
 0x27a   : > { %16490 = vst [vmem:[#allocation178_spill] sm:$0xff] %v10969_v35  ;;  %v11146_v35 = vld [vmem:[%s9835_s6 + $0x60] sm:$0xff] }
 0x27b   : > { %16489 = vst [vmem:[#allocation177_spill] sm:$0xff] %v10967_v1  ;;  %8286 = vmatmul.msk.f32.gmra.mxu0 %vm744_vm0, %v10972_v56  ;;  %2062 = vmatmul.f32.gmra.mxu1 %v10756_v34 }
 0x27c   : > { %1723 = vmatmul.f32.gmra.mxu3 %v10756_v34  ;;  %v1261_v34 = vadd.f32 %v10572_v9, %v10557_v20  ;;  %v11017_v9 = vld [vmem:[%s9835_s6 + $0x2f8] sm:$0xff]  ;;  %16512 = vst [vmem:[#allocation200_spill] sm:$0xff] %v11146_v35 }
 0x27d   : > { %8295 = vmatmul.msk.f32.gmra.mxu2 %vm744_vm0, %v10261_v51  ;;  %v722_v51 = vld [vmem:[#allocation5 + $0x9e0] sm:$0xff] }
 0x27e   : > { %2431 = vmatpush.msrb.mxu1 %v722_v51  ;;  %v690_v51 = vld [vmem:[#allocation5 + $0x8e0] sm:$0xff] }
 0x27f   : > { %v10982_v49 = vpop.f32.mrf.mxu3 }
 0x280   : > { %v1370_v0 = vpop.f32.mrf.mxu2  ;;  %v10984_v29 = vpop.f32.mrf.mxu0 }
 0x281   : > { %16491 = vst [vmem:[#allocation179_spill] sm:$0xff] %v10984_v29  ;;  %v10986_v58 = vadd.f32 %v1370_v0, %v1258_v36  ;;  %v10988_v1 = vpop.f32.mrf.mxu1  ;;  %v714_v36 = vld [vmem:[#allocation5 + $0x9a0] sm:$0xff] }
 0x282   : > { %16493 = vst [vmem:[#allocation181_spill] sm:$0xff] %v10988_v1  ;;  %2432 = vmatpush.msrb.mxu1 %v714_v36  ;;  %v698_v1 = vld [vmem:[#allocation5 + $0x920] sm:$0xff] }
 0x283   : > { %16492 = vst [vmem:[#allocation180_spill] sm:$0xff] %v10986_v58  ;;  %8287 = vmatmul.msk.f32.gmra.mxu0 %vm744_vm0, %v10991_v14  ;;  %2065 = vmatmul.f32.gmra.mxu1 %v10777_v63 }
 0x284   : > { %1726 = vmatmul.f32.gmra.mxu3 %v10777_v63  ;;  %2433 = vmatpush.msrb.mxu1 %v706_v43  ;;  %v1264_v43 = vadd.f32 %v10593_v44, %v10557_v20  ;;  %v650_v44 = vld [vmem:[#allocation5 + $0x7a0] sm:$0xff] }
 0x285   : > { %8296 = vmatmul.msk.f32.gmra.mxu2 %vm744_vm0, %v10280_v26  ;;  %v673_v26 = vld [vmem:[#allocation5 + $0x858] sm:$0xff]  ;;  %2311 = vmatpush.msra.mxu0 %v650_v44 }
 0x286   : > { %2098 = vmatpush.msrb.mxu3 %v673_v26  ;;  %2434 = vmatpush.msrb.mxu1 %v698_v1 }
 0x287   : > { %v11001_v13 = vpop.f32.mrf.mxu3 }
 0x288   : > { %v1373_v0 = vpop.f32.mrf.mxu2  ;;  %v11003_v58 = vpop.f32.mrf.mxu0  ;;  %2435 = vmatpush.msrb.mxu1 %v690_v51  ;;  %v11032_v51 = vld [vmem:[%s9835_s6 + $0x238] sm:$0xff] }
 0x289   : > { %16494 = vst [vmem:[#allocation182_spill] sm:$0xff] %v11003_v58  ;;  %v11005_v63 = vadd.f32 %v1373_v0, %v1261_v34  ;;  %v11007_v29 = vpop.f32.mrf.mxu1  ;;  %v522_v34 = vld [vmem:[#allocation5 + $0x3a0] sm:$0xff] }
 0x28a   : > { %16496 = vst [vmem:[#allocation184_spill] sm:$0xff] %v11007_v29  ;;  %2198 = vmatpush.msra.mxu2 %v522_v34  ;;  %v682_v0 = vld [vmem:[#allocation5 + $0x8a0] sm:$0xff]  ;;  %v665_v29 = vld [vmem:[#allocation5 + $0x818] sm:$0xff] }
 0x28b   : > { %16495 = vst [vmem:[#allocation183_spill] sm:$0xff] %v11005_v63  ;;  %8288 = vmatmul.msk.f32.gmra.mxu0 %vm744_vm0, %v11010_v31  ;;  %2068 = vmatmul.f32.gmra.mxu1 %v10798_v62  ;;  %v674_v58 = vld [vmem:[#allocation5 + $0x860] sm:$0xff] }
 0x28c   : > { %1729 = vmatmul.f32.gmra.mxu3 %v10798_v62  ;;  %2436 = vmatpush.msrb.mxu1 %v682_v0 }
 0x28d   : > { %8297 = vmatmul.msk.f32.gmra.mxu2 %vm744_vm0, %v11017_v9  ;;  %2099 = vmatpush.msrb.mxu3 %v665_v29 }
 0x28e   : > { %2437 = vmatpush.msrb.mxu1 %v674_v58  ;;  %v1267_v58 = vadd.f32 %v10614_v53, %v10557_v20  ;;  %v514_v53 = vld [vmem:[#allocation5 + $0x360] sm:$0xff] }
 0x28f   : > { %v11023_v36 = vpop.f32.mrf.mxu3  ;;  %2199 = vmatpush.msra.mxu2 %v514_v53 }
 0x290   : > { %v1376_v26 = vpop.f32.mrf.mxu2  ;;  %v11025_v63 = vpop.f32.mrf.mxu0  ;;  %2438 = vmatpush.msrb.mxu1 %v666_v23  ;;  %v1270_v23 = vadd.f32 %v10635_v32, %v10557_v20  ;;  %v642_v32 = vld [vmem:[#allocation5 + $0x760] sm:$0xff] }
 0x291   : > { %16497 = vst [vmem:[#allocation185_spill] sm:$0xff] %v11025_v63  ;;  %v11027_v62 = vadd.f32 %v1376_v26, %v1264_v43  ;;  %v11029_v1 = vpop.f32.mrf.mxu1  ;;  %2312 = vmatpush.msra.mxu0 %v642_v32  ;;  %v11088_v63 = vld [vmem:[%s9835_s6 + $0x18] sm:$0xff] }
 0x293   : > { %16498 = vst [vmem:[#allocation186_spill] sm:$0xff] %v11027_v62  ;;  %8289 = vmatmul.msk.f32.gmra.mxu0 %vm744_vm0, %v11032_v51  ;;  %2071 = vmatmul.f32.gmra.mxu1 %v10819_v28  ;;  %v11070_v62 = vld [vmem:[%s9835_s6] sm:$0xff] }
 0x294   : > { %1732 = vmatmul.f32.gmra.mxu3 %v10819_v28  ;;  %v11051_v28 = vld [vmem:[%s9835_s6 + $0x250] sm:$0xff] }
 0x295   : > { %8298 = vmatmul.msk.f32.vlgmr.msrb.gmra.mxu2 %vm744_vm0, %v10560_v30 }
 0x297   : > { %v11042_v34 = vpop.f32.mrf.mxu3 }
 0x298   : > { %v1379_v29 = vpop.f32.mrf.mxu2  ;;  %v11044_v43 = vpop.f32.mrf.mxu0 }
 0x299   : > { %16499 = vst [vmem:[#allocation187_spill] sm:$0xff] %v11044_v43  ;;  %v11046_v0 = vadd.f32 %v1379_v29, %v1267_v58  ;;  %v11048_v26 = vpop.f32.mrf.mxu1 }
 0x29b   : > { %16500 = vst [vmem:[#allocation188_spill] sm:$0xff] %v11046_v0  ;;  %8290 = vmatmul.msk.f32.gmra.mxu0 %vm744_vm0, %v11051_v28  ;;  %2074 = vmatmul.f32.gmra.mxu1 %v10840_v18 }
 0x29c   : > { %1735 = vmatmul.f32.gmra.mxu3 %v10840_v18  ;;  %v1273_v18 = vadd.f32 %v10656_v21, %v10557_v20  ;;  %v506_v21 = vld [vmem:[#allocation5 + $0x320] sm:$0xff] }
 0x29d   : > { %8299 = vmatmul.msk.f32.gmra.mxu2 %vm744_vm0, %v10581_v4 }
 0x29e   : > { %2200 = vmatpush.msra.mxu2 %v506_v21 }
 0x29f   : > { %v11061_v44 = vpop.f32.mrf.mxu3 }
 0x2a0   : > { %v1382_v58 = vpop.f32.mrf.mxu2  ;;  %v11063_v29 = vpop.f32.mrf.mxu0 }
 0x2a1   : > { %16501 = vst [vmem:[#allocation189_spill] sm:$0xff] %v11063_v29  ;;  %v11065_v43 = vadd.f32 %v1382_v58, %v1270_v23  ;;  %v11067_v0 = vpop.f32.mrf.mxu1 }
 0x2a2   : > { %16503 = vst [vmem:[#allocation191_spill] sm:$0xff] %v11067_v0  ;;  %v11106_v0 = vld [vmem:[%s9835_s6 + $0x30] sm:$0xff] }
 0x2a3   : > { %16502 = vst [vmem:[#allocation190_spill] sm:$0xff] %v11065_v43  ;;  %1874 = vmatmul.f32.vlgmr.msrb.gmra.mxu0 %v11070_v62  ;;  %2077 = vmatmul.f32.gmra.mxu1 %v10861_v6 }
 0x2a4   : > { %1738 = vmatmul.f32.gmra.mxu3 %v10861_v6  ;;  %v1276_v6 = vadd.f32 %v10677_v42, %v10557_v20  ;;  %v634_v42 = vld [vmem:[#allocation5 + $0x720] sm:$0xff] }
 0x2a5   : > { %8300 = vmatmul.msk.f32.gmra.mxu2 %vm744_vm0, %v10602_v22  ;;  %2313 = vmatpush.msra.mxu0 %v634_v42 }
 0x2a7   : > { %v11079_v53 = vpop.f32.mrf.mxu3 }
 0x2a8   : > { %v1385_v23 = vpop.f32.mrf.mxu2  ;;  %v11081_v58 = vpop.f32.mrf.mxu0 }
 0x2a9   : > { %16504 = vst [vmem:[#allocation192_spill] sm:$0xff] %v11081_v58  ;;  %v11083_v43 = vadd.f32 %v1385_v23, %v1273_v18  ;;  %v11085_v29 = vpop.f32.mrf.mxu1 }
 0x2aa   : > { %16505 = vst [vmem:[#allocation193_spill] sm:$0xff] %v11085_v29 }
 0x2ab   : > { %1877 = vmatmul.f32.gmra.mxu0 %v11088_v63  ;;  %2080 = vmatmul.f32.gmra.mxu1 %v10882_v37 }
 0x2ac   : > { %1741 = vmatmul.f32.gmra.mxu3 %v10882_v37  ;;  %v1279_v37 = vadd.f32 %v10698_v24, %v10557_v20  ;;  %v1282_v24 = vadd.f32 %v10719_v11, %v10557_v20  ;;  %v1285_v11 = vadd.f32 %v10740_v48, %v10557_v20  ;;  %v490_v48 = vld [vmem:[#allocation5 + $0x2a0] sm:$0xff] }
 0x2ad   : > { %8301 = vmatmul.msk.f32.gmra.mxu2 %vm744_vm0, %v10623_v8 }
 0x2af   : > { %v11097_v32 = vpop.f32.mrf.mxu3 }
 0x2b0   : > { %v1388_v18 = vpop.f32.mrf.mxu2  ;;  %v11099_v23 = vpop.f32.mrf.mxu0 }
 0x2b1   : > { %16506 = vst [vmem:[#allocation194_spill] sm:$0xff] %v11099_v23  ;;  %v11101_v58 = vadd.f32 %v1388_v18, %v1276_v6  ;;  %v11103_v29 = vpop.f32.mrf.mxu1 }
 0x2b2   : > { %16507 = vst [vmem:[#allocation195_spill] sm:$0xff] %v11103_v29 }
 0x2b3   : > { %1880 = vmatmul.f32.gmra.mxu0 %v11106_v0  ;;  %8362 = vmatmul.msk.f32.vlgmr.msrb.gmra.mxu1 %vm744_vm0, %v10560_v30 }
 0x2b4   : > { %8330 = vmatmul.msk.f32.vlgmr.msrb.gmra.mxu3 %vm744_vm0, %v10560_v30  ;;  %v498_v30 = vld [vmem:[#allocation5 + $0x2e0] sm:$0xff] }
 0x2b5   : > { %8302 = vmatmul.msk.f32.gmra.mxu2 %vm744_vm0, %v10644_v25 }
 0x2b6   : > { %2201 = vmatpush.msra.mxu2 %v498_v30 }
 0x2b7   : > { %v11117_v21 = vpop.f32.mrf.mxu3 }
 0x2b8   : > { %v1391_v6 = vpop.f32.mrf.mxu2  ;;  %v11119_v18 = vpop.f32.mrf.mxu0  ;;  %2202 = vmatpush.msra.mxu2 %v490_v48 }
 0x2b9   : > { %16508 = vst [vmem:[#allocation196_spill] sm:$0xff] %v11119_v18  ;;  %v11121_v23 = vadd.f32 %v1391_v6, %v1279_v37  ;;  %v11123_v29 = vpop.f32.mrf.mxu1 }
 0x2ba   : > { %16509 = vst [vmem:[#allocation197_spill] sm:$0xff] %v11123_v29 }
 0x2bb   : > { %1883 = vmatmul.f32.gmra.mxu0 %v11126_v2  ;;  %8363 = vmatmul.msk.f32.gmra.mxu1 %vm744_vm0, %v10581_v4 }
 0x2bc   : > { %8331 = vmatmul.msk.f32.gmra.mxu3 %vm744_vm0, %v10581_v4  ;;  %v626_v4 = vld [vmem:[#allocation5 + $0x6e0] sm:$0xff] }
 0x2bd   : > { %8303 = vmatmul.msk.f32.gmra.mxu2 %vm744_vm0, %v10665_v10  ;;  %2314 = vmatpush.msra.mxu0 %v626_v4  ;;  %v1288_v4 = vadd.f32 %v10761_v61, %v10557_v20  ;;  %v1291_v61 = vadd.f32 %v10782_v15, %v10557_v20  ;;  %v482_v20 = vld [vmem:[#allocation5 + $0x260] sm:$0xff] }
 0x2be   : > { %2203 = vmatpush.msra.mxu2 %v482_v20 }
 0x2bf   : > { %v11137_v42 = vpop.f32.mrf.mxu3 }
 0x2c0   : > { %v1394_v37 = vpop.f32.mrf.mxu2  ;;  %v11139_v6 = vpop.f32.mrf.mxu0 }
 0x2c1   : > { %16510 = vst [vmem:[#allocation198_spill] sm:$0xff] %v11139_v6  ;;  %v11141_v18 = vadd.f32 %v1394_v37, %v1282_v24  ;;  %v11143_v29 = vpop.f32.mrf.mxu1 }
 0x2c2   : > { %16511 = vst [vmem:[#allocation199_spill] sm:$0xff] %v11143_v29 }
 0x2c3   : > { %1886 = vmatmul.f32.gmra.mxu0 %v11146_v35  ;;  %8364 = vmatmul.msk.f32.gmra.mxu1 %vm744_vm0, %v10602_v22  ;;  %v531_v35 = vld [vmem:[#allocation5 + $0x3e8] sm:$0xff] }
 0x2c4   : > { %8332 = vmatmul.msk.f32.gmra.mxu3 %vm744_vm0, %v10602_v22  ;;  %v11166_v22 = vld [vmem:[%s9835_s6 + $0x78] sm:$0xff] }
 0x2c5   : > { %8304 = vmatmul.msk.f32.gmra.mxu2 %vm744_vm0, %v10686_v5  ;;  %2536 = vmatpush.msra.mxu3 %v531_v35  ;;  %16515 = vst [vmem:[#allocation203_spill] sm:$0xff] %v11166_v22 }
 0x2c7   : > { %v11157_v30 = vpop.f32.mrf.mxu3 }
 0x2c8   : > { %v1397_v24 = vpop.f32.mrf.mxu2  ;;  %v11159_v37 = vpop.f32.mrf.mxu0 }
 0x2c9   : > { %16513 = vst [vmem:[#allocation201_spill] sm:$0xff] %v11159_v37  ;;  %v11161_v6 = vadd.f32 %v1397_v24, %v1285_v11  ;;  %v11163_v29 = vpop.f32.mrf.mxu1 }
 0x2ca   : > { %16514 = vst [vmem:[#allocation202_spill] sm:$0xff] %v11163_v29 }
 0x2cb   : > { %1889 = vmatmul.f32.gmra.mxu0 %v11166_v22  ;;  %8365 = vmatmul.msk.f32.gmra.mxu1 %vm744_vm0, %v10623_v8  ;;  %v11186_v22 = vld [vmem:[%s9835_s6 + $0x90] sm:$0xff] }
 0x2cc   : > { %8333 = vmatmul.msk.f32.gmra.mxu3 %vm744_vm0, %v10623_v8  ;;  %16518 = vst [vmem:[#allocation206_spill] sm:$0xff] %v11186_v22  ;;  %v618_v8 = vld [vmem:[#allocation5 + $0x6a0] sm:$0xff] }
 0x2cd   : > { %8305 = vmatmul.msk.f32.gmra.mxu2 %vm744_vm0, %v10707_v39  ;;  %2315 = vmatpush.msra.mxu0 %v618_v8 }
 0x2cf   : > { %v11177_v11 = vpop.f32.mrf.mxu3 }
 0x2d0   : > { %v1400_v35 = vpop.f32.mrf.mxu2  ;;  %v11179_v24 = vpop.f32.mrf.mxu0 }
 0x2d1   : > { %16516 = vst [vmem:[#allocation204_spill] sm:$0xff] %v11179_v24  ;;  %v11181_v37 = vadd.f32 %v1400_v35, %v1288_v4  ;;  %v11183_v29 = vpop.f32.mrf.mxu1 }
 0x2d2   : > { %16517 = vst [vmem:[#allocation205_spill] sm:$0xff] %v11183_v29 }
 0x2d3   : > { %1892 = vmatmul.f32.gmra.mxu0 %v11186_v22  ;;  %8366 = vmatmul.msk.f32.gmra.mxu1 %vm744_vm0, %v10644_v25  ;;  %v523_v22 = vld [vmem:[#allocation5 + $0x3a8] sm:$0xff] }
 0x2d4   : > { %8334 = vmatmul.msk.f32.gmra.mxu3 %vm744_vm0, %v10644_v25  ;;  %v11206_v25 = vld [vmem:[%s9835_s6 + $0xa8] sm:$0xff] }
 0x2d5   : > { %8306 = vmatmul.msk.f32.gmra.mxu2 %vm744_vm0, %v10728_v17  ;;  %2537 = vmatpush.msra.mxu3 %v523_v22 }
 0x2d7   : > { %v11197_v48 = vpop.f32.mrf.mxu3 }
 0x2d8   : > { %v1403_v4 = vpop.f32.mrf.mxu2  ;;  %v11199_v35 = vpop.f32.mrf.mxu0 }
 0x2d9   : > { %16519 = vst [vmem:[#allocation207_spill] sm:$0xff] %v11199_v35  ;;  %v11201_v24 = vadd.f32 %v1403_v4, %v1291_v61  ;;  %v11203_v29 = vpop.f32.mrf.mxu1  ;;  %v11225_v35 = vld [vmem:[%s9835_s6 + $0xc0] sm:$0xff] }
 0x2da   : > { %16520 = vst [vmem:[#allocation208_spill] sm:$0xff] %v11203_v29  ;;  %v11244_v29 = vld [vmem:[%s9835_s6 + $0xd8] sm:$0xff] }
 0x2db   : > { %1895 = vmatmul.f32.gmra.mxu0 %v11206_v25  ;;  %8367 = vmatmul.msk.f32.gmra.mxu1 %vm744_vm0, %v10665_v10  ;;  %16527 = vst [vmem:[#allocation215_spill] sm:$0xff] %v11244_v29 }
 0x2dc   : > { %8335 = vmatmul.msk.f32.gmra.mxu3 %vm744_vm0, %v10665_v10  ;;  %v610_v10 = vld [vmem:[#allocation5 + $0x660] sm:$0xff] }
 0x2dd   : > { %8307 = vmatmul.msk.f32.gmra.mxu2 %vm744_vm0, %v10749_v59  ;;  %2316 = vmatpush.msra.mxu0 %v610_v10 }
 0x2df   : > { %v11215_v15 = vpop.f32.mrf.mxu3 }
 0x2e0   : > { %v1498_v8 = vpop.f32.mrf.mxu2  ;;  %v11217_v61 = vpop.f32.mrf.mxu0 }
 0x2e1   : > { %16521 = vst [vmem:[#allocation209_spill] sm:$0xff] %v11217_v61  ;;  %v11220_v22 = vadd.f32 %v1498_v8, %v11083_v43  ;;  %v11222_v4 = vpop.f32.mrf.mxu1 }
 0x2e2   : > { %16523 = vst [vmem:[#allocation211_spill] sm:$0xff] %v11222_v4  ;;  %v515_v4 = vld [vmem:[#allocation5 + $0x368] sm:$0xff] }
 0x2e3   : > { %16522 = vst [vmem:[#allocation210_spill] sm:$0xff] %v11220_v22  ;;  %1898 = vmatmul.f32.gmra.mxu0 %v11225_v35  ;;  %8368 = vmatmul.msk.f32.gmra.mxu1 %vm744_vm0, %v10686_v5 }
 0x2e4   : > { %8336 = vmatmul.msk.f32.gmra.mxu3 %vm744_vm0, %v10686_v5  ;;  %v474_v5 = vld [vmem:[#allocation5 + $0x220] sm:$0xff] }
 0x2e5   : > { %8308 = vmatmul.msk.f32.gmra.mxu2 %vm744_vm0, %v10770_v45  ;;  %2538 = vmatpush.msra.mxu3 %v515_v4 }
 0x2e6   : > { %2204 = vmatpush.msra.mxu2 %v474_v5 }
 0x2e7   : > { %v11234_v43 = vpop.f32.mrf.mxu3 }
 0x2e8   : > { %v1501_v20 = vpop.f32.mrf.mxu2  ;;  %v11236_v8 = vpop.f32.mrf.mxu0 }
 0x2e9   : > { %16524 = vst [vmem:[#allocation212_spill] sm:$0xff] %v11236_v8  ;;  %v11239_v22 = vadd.f32 %v1501_v20, %v11101_v58  ;;  %v11241_v61 = vpop.f32.mrf.mxu1  ;;  %v11263_v8 = vld [vmem:[%s9835_s6 + $0xf0] sm:$0xff] }
 0x2ea   : > { %16526 = vst [vmem:[#allocation214_spill] sm:$0xff] %v11241_v61  ;;  %v11282_v61 = vld [vmem:[%s9835_s6 + $0x108] sm:$0xff] }
 0x2eb   : > { %16525 = vst [vmem:[#allocation213_spill] sm:$0xff] %v11239_v22  ;;  %1901 = vmatmul.f32.gmra.mxu0 %v11244_v29  ;;  %8369 = vmatmul.msk.f32.gmra.mxu1 %vm744_vm0, %v10707_v39 }
 0x2ec   : > { %8337 = vmatmul.msk.f32.gmra.mxu3 %vm744_vm0, %v10707_v39  ;;  %16531 = vst [vmem:[#allocation219_spill] sm:$0xff] %v11263_v8  ;;  %v602_v39 = vld [vmem:[#allocation5 + $0x620] sm:$0xff] }
 0x2ed   : > { %8309 = vmatmul.msk.f32.gmra.mxu2 %vm744_vm0, %v10791_v38  ;;  %2317 = vmatpush.msra.mxu0 %v602_v39  ;;  %16535 = vst [vmem:[#allocation223_spill] sm:$0xff] %v11282_v61 }
 0x2ef   : > { %v11253_v58 = vpop.f32.mrf.mxu3 }
 0x2f0   : > { %v1504_v10 = vpop.f32.mrf.mxu2  ;;  %v11255_v20 = vpop.f32.mrf.mxu0 }
 0x2f1   : > { %16528 = vst [vmem:[#allocation216_spill] sm:$0xff] %v11255_v20  ;;  %v11258_v4 = vadd.f32 %v1504_v10, %v11121_v23  ;;  %v11260_v22 = vpop.f32.mrf.mxu1 }
 0x2f2   : > { %16530 = vst [vmem:[#allocation218_spill] sm:$0xff] %v11260_v22  ;;  %v507_v22 = vld [vmem:[#allocation5 + $0x328] sm:$0xff] }
 0x2f3   : > { %16529 = vst [vmem:[#allocation217_spill] sm:$0xff] %v11258_v4  ;;  %1904 = vmatmul.f32.gmra.mxu0 %v11263_v8  ;;  %8370 = vmatmul.msk.f32.gmra.mxu1 %vm744_vm0, %v10728_v17  ;;  %v11431_v8 = vld [vmem:[%s9835_s6 + $0x1c8] sm:$0xff] }
 0x2f4   : > { %8338 = vmatmul.msk.f32.gmra.mxu3 %vm744_vm0, %v10728_v17  ;;  %v466_v17 = vld [vmem:[#allocation5 + $0x1e0] sm:$0xff]  ;;  %16567 = vst [vmem:[#allocation255_spill] sm:$0xff] %v11431_v8 }
 0x2f5   : > { %8310 = vmatmul.msk.f32.gmra.mxu2 %vm744_vm0, %v10812_v55  ;;  %2539 = vmatpush.msra.mxu3 %v507_v22 }
 0x2f6   : > { %2205 = vmatpush.msra.mxu2 %v466_v17 }
 0x2f7   : > { %v11272_v23 = vpop.f32.mrf.mxu3 }
 0x2f8   : > { %v1507_v5 = vpop.f32.mrf.mxu2  ;;  %v11274_v10 = vpop.f32.mrf.mxu0 }
 0x2f9   : > { %16532 = vst [vmem:[#allocation220_spill] sm:$0xff] %v11274_v10  ;;  %v11277_v4 = vadd.f32 %v1507_v5, %v11141_v18  ;;  %v11279_v20 = vpop.f32.mrf.mxu1  ;;  %v11301_v10 = vld [vmem:[%s9835_s6 + $0x120] sm:$0xff] }
 0x2fa   : > { %16534 = vst [vmem:[#allocation222_spill] sm:$0xff] %v11279_v20  ;;  %v11320_v20 = vld [vmem:[%s9835_s6 + $0x138] sm:$0xff] }
 0x2fb   : > { %16533 = vst [vmem:[#allocation221_spill] sm:$0xff] %v11277_v4  ;;  %1907 = vmatmul.f32.gmra.mxu0 %v11282_v61  ;;  %8371 = vmatmul.msk.f32.gmra.mxu1 %vm744_vm0, %v10749_v59 }
 0x2fc   : > { %8339 = vmatmul.msk.f32.gmra.mxu3 %vm744_vm0, %v10749_v59  ;;  %16540 = vst [vmem:[#allocation228_spill] sm:$0xff] %v11301_v10  ;;  %v594_v59 = vld [vmem:[#allocation5 + $0x5e0] sm:$0xff] }
 0x2fd   : > { %8311 = vmatmul.msk.f32.gmra.mxu2 %vm744_vm0, %v10833_v27  ;;  %2318 = vmatpush.msra.mxu0 %v594_v59  ;;  %16545 = vst [vmem:[#allocation233_spill] sm:$0xff] %v11320_v20 }
 0x2ff   : > { %v11291_v18 = vpop.f32.mrf.mxu3 }
 0x300   : > { %16536 = vst [vmem:[#allocation224_spill] sm:$0xff] %v11291_v18  ;;  %v1510_v39 = vpop.f32.mrf.mxu2  ;;  %v11293_v5 = vpop.f32.mrf.mxu0 }
 0x301   : > { %16537 = vst [vmem:[#allocation225_spill] sm:$0xff] %v11293_v5  ;;  %v11296_v22 = vadd.f32 %v1510_v39, %v11161_v6  ;;  %v11298_v4 = vpop.f32.mrf.mxu1 }
 0x302   : > { %16539 = vst [vmem:[#allocation227_spill] sm:$0xff] %v11298_v4  ;;  %v499_v4 = vld [vmem:[#allocation5 + $0x2e8] sm:$0xff] }
 0x303   : > { %16538 = vst [vmem:[#allocation226_spill] sm:$0xff] %v11296_v22  ;;  %1910 = vmatmul.f32.gmra.mxu0 %v11301_v10  ;;  %8372 = vmatmul.msk.f32.gmra.mxu1 %vm744_vm0, %v10770_v45 }
 0x304   : > { %8340 = vmatmul.msk.f32.gmra.mxu3 %vm744_vm0, %v10770_v45  ;;  %v458_v45 = vld [vmem:[#allocation5 + $0x1a0] sm:$0xff] }
 0x305   : > { %8312 = vmatmul.msk.f32.gmra.mxu2 %vm744_vm0, %v10854_v41  ;;  %2540 = vmatpush.msra.mxu3 %v499_v4 }
 0x306   : > { %2206 = vmatpush.msra.mxu2 %v458_v45 }
 0x307   : > { %v11310_v6 = vpop.f32.mrf.mxu3 }
 0x308   : > { %16541 = vst [vmem:[#allocation229_spill] sm:$0xff] %v11310_v6  ;;  %v1513_v17 = vpop.f32.mrf.mxu2  ;;  %v11312_v39 = vpop.f32.mrf.mxu0 }
 0x309   : > { %16542 = vst [vmem:[#allocation230_spill] sm:$0xff] %v11312_v39  ;;  %v11315_v22 = vadd.f32 %v1513_v17, %v11181_v37  ;;  %v11317_v5 = vpop.f32.mrf.mxu1  ;;  %v11339_v39 = vld [vmem:[%s9835_s6 + $0x150] sm:$0xff] }
 0x30a   : > { %16544 = vst [vmem:[#allocation232_spill] sm:$0xff] %v11317_v5  ;;  %v11357_v5 = vld [vmem:[%s9835_s6 + $0x168] sm:$0xff] }
 0x30b   : > { %16543 = vst [vmem:[#allocation231_spill] sm:$0xff] %v11315_v22  ;;  %1913 = vmatmul.f32.gmra.mxu0 %v11320_v20  ;;  %8373 = vmatmul.msk.f32.gmra.mxu1 %vm744_vm0, %v10791_v38  ;;  %v11404_v20 = vld [vmem:[#allocation7] sm:$0xff] }
 0x30c   : > { %8341 = vmatmul.msk.f32.gmra.mxu3 %vm744_vm0, %v10791_v38  ;;  %16550 = vst [vmem:[#allocation238_spill] sm:$0xff] %v11339_v39  ;;  %v586_v38 = vld [vmem:[#allocation5 + $0x5a0] sm:$0xff] }
 0x30d   : > { %8313 = vmatmul.msk.f32.gmra.mxu2 %vm744_vm0, %v10875_v57  ;;  %2319 = vmatpush.msra.mxu0 %v586_v38  ;;  %16554 = vst [vmem:[#allocation242_spill] sm:$0xff] %v11357_v5 }
 0x30e   : > { %16563 = vst [vmem:[#allocation251_spill] sm:$0xff] %v11404_v20 }
 0x30f   : > { %v11329_v37 = vpop.f32.mrf.mxu3 }
 0x310   : > { %16546 = vst [vmem:[#allocation234_spill] sm:$0xff] %v11329_v37  ;;  %v1516_v59 = vpop.f32.mrf.mxu2  ;;  %v11331_v4 = vpop.f32.mrf.mxu0 }
 0x311   : > { %16547 = vst [vmem:[#allocation235_spill] sm:$0xff] %v11331_v4  ;;  %v11334_v17 = vadd.f32 %v1516_v59, %v11201_v24  ;;  %v11336_v22 = vpop.f32.mrf.mxu1  ;;  %v491_v4 = vld [vmem:[#allocation5 + $0x2a8] sm:$0xff] }
 0x312   : > { %16549 = vst [vmem:[#allocation237_spill] sm:$0xff] %v11336_v22  ;;  %2541 = vmatpush.msra.mxu3 %v491_v4 }
 0x313   : > { %16548 = vst [vmem:[#allocation236_spill] sm:$0xff] %v11334_v17  ;;  %1916 = vmatmul.f32.gmra.mxu0 %v11339_v39  ;;  %8374 = vmatmul.msk.f32.gmra.mxu1 %vm744_vm0, %v10812_v55 }
 0x314   : > { %8342 = vmatmul.msk.f32.gmra.mxu3 %vm744_vm0, %v10812_v55  ;;  %v450_v55 = vld [vmem:[#allocation5 + $0x160] sm:$0xff] }
 0x315   : > { %8314 = vmatmul.msk.f32.gmra.mxu2 %vm744_vm0, %v10896_v19 }
 0x316   : > { %2207 = vmatpush.msra.mxu2 %v450_v55 }
 0x317   : > { %v11348_v45 = vpop.f32.mrf.mxu3 }
 0x318   : > { %16551 = vst [vmem:[#allocation239_spill] sm:$0xff] %v11348_v45  ;;  %v11350_v24 = vpop.f32.mrf.mxu2  ;;  %v11352_v59 = vpop.f32.mrf.mxu0  ;;  %v11410_v45 = vld [vmem:[%s9835_s6 + $0x1b0] sm:$0xff] }
 0x319   : > { %16552 = vst [vmem:[#allocation240_spill] sm:$0xff] %v11352_v59  ;;  %v11354_v17 = vpop.f32.mrf.mxu1 }
 0x31a   : > { %16553 = vst [vmem:[#allocation241_spill] sm:$0xff] %v11354_v17 }
 0x31b   : > { %1919 = vmatmul.f32.gmra.mxu0 %v11357_v5  ;;  %8375 = vmatmul.msk.f32.gmra.mxu1 %vm744_vm0, %v10833_v27  ;;  %v11373_v5 = vld [vmem:[%s9835_s6 + $0x180] sm:$0xff]  ;;  %16564 = vst [vmem:[#allocation252_spill] sm:$0xff] %v11410_v45 }
 0x31c   : > { %8343 = vmatmul.msk.f32.gmra.mxu3 %vm744_vm0, %v10833_v27  ;;  %16557 = vst [vmem:[#allocation245_spill] sm:$0xff] %v11373_v5  ;;  %v578_v27 = vld [vmem:[#allocation5 + $0x560] sm:$0xff] }
 0x31d   : > { %8315 = vmatmul.msk.f32.gmra.mxu2 %vm744_vm0, %v10915_v33  ;;  %2320 = vmatpush.msra.mxu0 %v578_v27 }
 0x31f   : > { %v11366_v38 = vpop.f32.mrf.mxu3 }
 0x320   : > { %16555 = vst [vmem:[#allocation243_spill] sm:$0xff] %v11366_v38  ;;  %v1765_v59 = vpop.f32.mrf.mxu2  ;;  %v11368_v17 = vpop.f32.mrf.mxu0  ;;  %v11389_v38 = vld [vmem:[%s9835_s6 + $0x198] sm:$0xff] }
 0x321   : > { %v11370_v22 = vpop.f32.mrf.mxu1  ;;  %16560 = vst [vmem:[#allocation248_spill] sm:$0xff] %v11389_v38 }
 0x322   : > { %16556 = vst [vmem:[#allocation244_spill] sm:$0xff] %v11370_v22 }
 0x323   : > { %1922 = vmatmul.f32.gmra.mxu0 %v11373_v5  ;;  %8376 = vmatmul.msk.f32.gmra.mxu1 %vm744_vm0, %v10854_v41  ;;  %v483_v5 = vld [vmem:[#allocation5 + $0x268] sm:$0xff] }
 0x324   : > { %8344 = vmatmul.msk.f32.gmra.mxu3 %vm744_vm0, %v10854_v41  ;;  %v442_v41 = vld [vmem:[#allocation5 + $0x120] sm:$0xff] }
 0x325   : > { %8316 = vmatmul.msk.f32.gmra.mxu2 %vm744_vm0, %v10934_v40  ;;  %2542 = vmatpush.msra.mxu3 %v483_v5 }
 0x326   : > { %2208 = vmatpush.msra.mxu2 %v442_v41  ;;  %v570_v41 = vld [vmem:[#allocation5 + $0x520] sm:$0xff] }
 0x327   : > { %v11382_v4 = vpop.f32.mrf.mxu3  ;;  %2321 = vmatpush.msra.mxu0 %v570_v41  ;;  %v16569_v41 = vld [vmem:[#allocation152_spill] sm:$0xff] }
 0x328   : > { %16558 = vst [vmem:[#allocation246_spill] sm:$0xff] %v11382_v4  ;;  %v11384_v55 = vpop.f32.mrf.mxu2  ;;  %v1878_v22 = vpop.f32.mrf.mxu0 }
 0x329   : > { %v11386_v39 = vpop.f32.mrf.mxu1 }
 0x32a   : > { %16559 = vst [vmem:[#allocation247_spill] sm:$0xff] %v11386_v39 }
 0x32b   : > { %1925 = vmatmul.f32.gmra.mxu0 %v11389_v38  ;;  %8377 = vmatmul.msk.f32.gmra.mxu1 %vm744_vm0, %v10875_v57  ;;  %v11407_v38 = vperm.slane %v11404_v20, 2 }
 0x32c   : > { %8345 = vmatmul.msk.f32.gmra.mxu3 %vm744_vm0, %v10875_v57 }
 0x32d   : > { %8317 = vmatmul.msk.f32.gmra.mxu2 %vm744_vm0, %v10953_v7  ;;  %v1549_v57 = vadd.f32 %v10296_v50, %v11407_v38 }
 0x32f   : > { %v11398_v27 = vpop.f32.mrf.mxu3 }
 0x330   : > { %16561 = vst [vmem:[#allocation249_spill] sm:$0xff] %v11398_v27  ;;  %v11400_v39 = vpop.f32.mrf.mxu2  ;;  %v1881_v5 = vpop.f32.mrf.mxu0 }
 0x331   : > { %v11402_v4 = vpop.f32.mrf.mxu1 }
 0x332   : > { %16562 = vst [vmem:[#allocation250_spill] sm:$0xff] %v11402_v4  ;;  %v1662_v4 = vadd.f32 %v10887_v54, %v1549_v57  ;;  %v1540_v54 = vadd.f32 %v10239_v52, %v11407_v38 }
 0x333   : > { %1928 = vmatmul.f32.gmra.mxu0 %v11410_v45  ;;  %8378 = vmatmul.msk.f32.gmra.mxu1 %vm744_vm0, %v10896_v19  ;;  %v11423_v45 = vperm.slane %v11404_v20, 3 }
 0x334   : > { %8346 = vmatmul.msk.f32.gmra.mxu3 %vm744_vm0, %v10896_v19  ;;  %v475_v19 = vld [vmem:[#allocation5 + $0x228] sm:$0xff] }
 0x335   : > { %8318 = vmatmul.msk.f32.gmra.mxu2 %vm744_vm0, %v10972_v56  ;;  %v1879_v50 = vadd.f32 %v1878_v22, %v11423_v45  ;;  %2543 = vmatpush.msra.mxu3 %v475_v19  ;;  %v434_v22 = vld [vmem:[#allocation5 + $0xe0] sm:$0xff] }
 0x336   : > { %2209 = vmatpush.msra.mxu2 %v434_v22  ;;  %v11460_v22 = vld [vmem:[%s9835_s6 + $0x1e0] sm:$0xff] }
 0x337   : > { %v2101_v27 = vpop.f32.mrf.mxu3  ;;  %v1992_v19 = vadd.f32 %v16569_v41, %v1879_v50  ;;  %v16576_v41 = vld [vmem:[#allocation156_spill] sm:$0xff] }
 0x338   : > { %v1774_v10 = vpop.f32.mrf.mxu2  ;;  %v1884_v37 = vpop.f32.mrf.mxu0 }
 0x339   : > { %v11425_v61 = vadd.f32 %v1774_v10, %v1662_v4  ;;  %v11427_v6 = vpop.f32.mrf.mxu1  ;;  %v1552_v10 = vadd.f32 %v10312_v12, %v11407_v38  ;;  %v16568_v4 = vld [vmem:[#allocation153_spill] sm:$0xff]  ;;  %v1876_v12 = vadd.f32 %v11368_v17, %v11423_v45  ;;  %v16574_v17 = vld [vmem:[#allocation70_spill] sm:$0xff] }
 0x33a   : > { %16566 = vst [vmem:[#allocation254_spill] sm:$0xff] %v11427_v6  ;;  %v1653_v57 = vadd.f32 %v16568_v4, %v1540_v54  ;;  %v1882_v54 = vadd.f32 %v1881_v5, %v11423_v45  ;;  %v16575_v5 = vld [vmem:[#allocation148_spill] sm:$0xff]  ;;  %v562_v4 = vld [vmem:[#allocation5 + $0x4e0] sm:$0xff] }
 0x33b   : > { %16565 = vst [vmem:[#allocation253_spill] sm:$0xff] %v11425_v61  ;;  %1931 = vmatmul.f32.gmra.mxu0 %v11431_v8  ;;  %8379 = vmatmul.msk.f32.gmra.mxu1 %vm744_vm0, %v10915_v33  ;;  %v1665_v61 = vadd.f32 %v10906_v47, %v1552_v10  ;;  %v16572_v47 = vld [vmem:[#allocation60_spill] sm:$0xff]  ;;  %v1989_v10 = vadd.f32 %v16575_v5, %v1876_v12 }
 0x33c   : > { %8347 = vmatmul.msk.f32.gmra.mxu3 %vm744_vm0, %v10915_v33  ;;  %v11447_v52 = vadd.f32 %v1765_v59, %v1653_v57  ;;  %v1555_v59 = vadd.f32 %v16574_v17, %v11407_v38  ;;  %2322 = vmatpush.msra.mxu0 %v562_v4  ;;  %v426_v4 = vld [vmem:[#allocation5 + $0xa0] sm:$0xff] }
 0x33d   : > { %8319 = vmatmul.msk.f32.gmra.mxu2 %vm744_vm0, %v10991_v14 }
 0x33e   : > { %16570 = vst [vmem:[#allocation153_spill] sm:$0xff] %v11447_v52  ;;  %2210 = vmatpush.msra.mxu2 %v426_v4 }
 0x33f   : > { %v2104_v8 = vpop.f32.mrf.mxu3 }
 0x340   : > { %v1777_v6 = vpop.f32.mrf.mxu2  ;;  %v2105_v33 = vadd.f32 %v2104_v8, %v1992_v19  ;;  %v11449_v20 = vpop.f32.mrf.mxu0  ;;  %v1543_v8 = vadd.f32 %v16572_v47, %v11407_v38  ;;  %v1995_v19 = vadd.f32 %v16576_v41, %v1882_v54  ;;  %v2102_v47 = vadd.f32 %v2101_v27, %v1989_v10  ;;  %v11495_v27 = vld [vmem:[%s9835_s6 + $0x1f8] sm:$0xff] }
 0x341   : > { %v11453_v18 = vadd.f32 %v1777_v6, %v1665_v61  ;;  %v11455_v29 = vpop.f32.mrf.mxu1  ;;  %v16573_v61 = vld [vmem:[#allocation55_spill] sm:$0xff] }
 0x342   : > { %v8889_v50 = vpack.i.bf16 %v2105_v33, %v11447_v52  ;;  %v1537_v6 = vadd.f32 %v16573_v61, %v11407_v38  ;;  %v1656_v57 = vadd.f32 %v10845_v46, %v1543_v8  ;;  %v1885_v8 = vadd.f32 %v1884_v37, %v11423_v45  ;;  %v16582_v37 = vld [vmem:[#allocation73_spill] sm:$0xff] }
 0x343   : > { %16571 = vst [vmem:[#allocation152_spill] sm:$0xff] %v11453_v18  ;;  %1934 = vmatmul.f32.gmra.mxu0 %v11460_v22  ;;  %8380 = vmatmul.msk.f32.gmra.mxu1 %vm744_vm0, %v10934_v40  ;;  %v1558_v10 = vadd.f32 %v16582_v37, %v11407_v38 }
 0x344   : > { %8348 = vmatmul.msk.f32.gmra.mxu3 %vm744_vm0, %v10934_v40  ;;  %8890 = vrot.lane.b32.xlu0 %v8889_v50, %s9677_s24  ;;  %v16577_v40 = vld [vmem:[#allocation149_spill] sm:$0xff]  ;;  %v1668_v50 = vadd.f32 %v10925_v16, %v1555_v59  ;;  %v11482_v17 = vadd.f32 %v11384_v55, %v1656_v57  ;;  %v467_v55 = vld [vmem:[#allocation5 + $0x1e8] sm:$0xff] }
 0x345   : > { %8320 = vmatmul.msk.f32.gmra.mxu2 %vm744_vm0, %v11010_v31  ;;  %v1650_v33 = vadd.f32 %v16577_v40, %v1537_v6  ;;  %v16583_v57 = vld [vmem:[#allocation160_spill] sm:$0xff]  ;;  %2544 = vmatpush.msra.mxu3 %v467_v55 }
 0x346   : > { %16578 = vst [vmem:[#allocation60_spill] sm:$0xff] %v11482_v17 }
 0x347   : > { %v2107_v61 = vpop.f32.mrf.mxu3  ;;  %v11485_v18 = vadd.f32 %v11350_v24, %v1650_v33  ;;  %v16581_v24 = vld [vmem:[#allocation63_spill] sm:$0xff] }
 0x348   : > { %v1780_v12 = vpop.f32.mrf.mxu2  ;;  %v2108_v5 = vadd.f32 %v2107_v61, %v1995_v19  ;;  %v1890_v52 = vpop.f32.mrf.mxu0  ;;  %v1546_v59 = vadd.f32 %v16581_v24, %v11407_v38  ;;  %v16584_v19 = vld [vmem:[#allocation159_spill] sm:$0xff]  ;;  %v11524_v24 = vld [vmem:[%s9835_s6 + $0x210] sm:$0xff] }
 0x349   : > { %16579 = vst [vmem:[#allocation55_spill] sm:$0xff] %v11485_v18  ;;  %v11487_v46 = vadd.f32 %v1780_v12, %v1668_v50  ;;  %v11489_v54 = vpop.f32.mrf.mxu1  ;;  %v8894_v16 = vpack.i.bf16 %v2102_v47, %v11485_v18  ;;  %v1998_v40 = vadd.f32 %v16584_v19, %v1885_v8  ;;  %v554_v8 = vld [vmem:[#allocation5 + $0x4a0] sm:$0xff]  ;;  %v459_v19 = vld [vmem:[#allocation5 + $0x1a8] sm:$0xff]  ;;  %v524_v18 = vld [vmem:[#allocation5 + $0x3b0] sm:$0xff] }
 0x34a   : > { %v8899_v6 = vpack.i.bf16 %v2108_v5, %v11482_v17  ;;  %v1659_v41 = vadd.f32 %v16583_v57, %v1546_v59  ;;  %2323 = vmatpush.msra.mxu0 %v554_v8  ;;  %v1888_v57 = vadd.f32 %v11449_v20, %v11423_v45  ;;  %2545 = vmatpush.msra.mxu3 %v459_v19  ;;  %v418_v20 = vld [vmem:[#allocation5 + $0x60] sm:$0xff] }
 0x34b   : > { %16580 = vst [vmem:[#allocation70_spill] sm:$0xff] %v11487_v46  ;;  %1937 = vmatmul.f32.gmra.mxu0 %v11495_v27  ;;  %8381 = vmatmul.msk.f32.gmra.mxu1 %vm744_vm0, %v10953_v7  ;;  %v9257_v46 = vld [vmem:[%s9835_s6 + $0x2b8] sm:$0xff] }
 0x34c   : > { %8349 = vmatmul.msk.f32.gmra.mxu3 %vm744_vm0, %v10953_v7  ;;  %8900 = vrot.lane.b32.xlu2 %v8899_v6, %s9677_s24  ;;  %v1671_v7 = vadd.f32 %v10944_v3, %v1558_v10  ;;  %v11514_v50 = vadd.f32 %v11400_v39, %v1659_v41  ;;  %v16587_v3 = vld [vmem:[#allocation76_spill] sm:$0xff]  ;;  %v1891_v41 = vadd.f32 %v1890_v52, %v11423_v45  ;;  %v16590_v52 = vld [vmem:[#allocation163_spill] sm:$0xff] }
 0x34d   : > { %8321 = vmatmul.msk.f32.gmra.mxu2 %vm744_vm0, %v11032_v51  ;;  %8895 = vrot.lane.b32.xlu0 %v8894_v16, %s9677_s24  ;;  %v1561_v39 = vadd.f32 %v16587_v3, %v11407_v38 }
 0x34e   : > { %16585 = vst [vmem:[#allocation148_spill] sm:$0xff] %v11514_v50  ;;  %2211 = vmatpush.msra.mxu2 %v418_v20  ;;  %v546_v20 = vld [vmem:[#allocation5 + $0x460] sm:$0xff] }
 0x34f   : > { %v2110_v33 = vpop.f32.mrf.mxu3  ;;  %v1674_v55 = vadd.f32 %v10963_v60, %v1561_v39  ;;  %v16589_v60 = vld [vmem:[#allocation79_spill] sm:$0xff]  ;;  %2324 = vmatpush.msra.mxu0 %v546_v20 }
 0x350   : > { %v1783_v47 = vpop.f32.mrf.mxu2  ;;  %v2111_v61 = vadd.f32 %v2110_v33, %v1998_v40  ;;  %v11516_v12 = vpop.f32.mrf.mxu0  ;;  %v11547_v40 = vld [vmem:[%s9835_s6 + $0x228] sm:$0xff]  ;;  %v410_v20 = vld [vmem:[#allocation5 + $0x20] sm:$0xff] }
 0x351   : > { %v11518_v5 = vadd.f32 %v1783_v47, %v1671_v7  ;;  %v11520_v6 = vpop.f32.mrf.mxu1  ;;  %v1564_v7 = vadd.f32 %v16589_v60, %v11407_v38  ;;  %v11557_v33 = vld [vmem:[%s9835_s6 + $0x268] sm:$0xff]  ;;  %v2001_v47 = vadd.f32 %v16590_v52, %v1888_v57  ;;  %2212 = vmatpush.msra.mxu2 %v410_v20  ;;  %v532_v20 = vld [vmem:[#allocation5 + $0x3f0] sm:$0xff] }
 0x352   : > { %v8904_v16 = vpack.i.bf16 %v2111_v61, %v11514_v50  ;;  %v16591_v61 = vld [vmem:[#allocation166_spill] sm:$0xff]  ;;  %2875 = vmatpush.msra.mxu1 %v532_v20 }
 0x353   : > { %16586 = vst [vmem:[#allocation156_spill] sm:$0xff] %v11518_v5  ;;  %1940 = vmatmul.f32.gmra.mxu0 %v11524_v24  ;;  %8382 = vmatmul.msk.f32.gmra.mxu1 %vm744_vm0, %v10972_v56  ;;  %v1677_v3 = vadd.f32 %v10982_v49, %v1564_v7  ;;  %v16593_v49 = vld [vmem:[#allocation82_spill] sm:$0xff]  ;;  %v516_v5 = vld [vmem:[#allocation5 + $0x370] sm:$0xff] }
 0x354   : > { %8350 = vmatmul.msk.f32.gmra.mxu3 %vm744_vm0, %v10972_v56  ;;  %8905 = vrot.lane.b32.xlu1 %v8904_v16, %s9677_s24  ;;  %v2004_v16 = vadd.f32 %v16591_v61, %v1891_v41  ;;  %v11577_v41 = vld [vmem:[%s9835_s6 + $0x240] sm:$0xff] }
 0x355   : > { %8322 = vmatmul.msk.f32.gmra.mxu2 %vm744_vm0, %v11051_v28  ;;  %v11587_v7 = vld [vmem:[%s9835_s6 + $0x280] sm:$0xff]  ;;  %2876 = vmatpush.msra.mxu1 %v524_v18 }
 0x357   : > { %v2113_v59 = vpop.f32.mrf.mxu3  ;;  %2877 = vmatpush.msra.mxu1 %v516_v5  ;;  %v659_v5 = vld [vmem:[#allocation5 + $0x7e8] sm:$0xff] }
 0x358   : > { %v1786_v37 = vpop.f32.mrf.mxu2  ;;  %v11537_v10 = vpop.f32.mrf.mxu0  ;;  %v11564_v39 = vadd.f32 %v2113_v59, %v2001_v47  ;;  %v1567_v59 = vadd.f32 %v16593_v49, %v11407_v38  ;;  %2649 = vmatpush.msrb.mxu2 %v659_v5  ;;  %v723_v5 = vld [vmem:[#allocation5 + $0x9e8] sm:$0xff] }
 0x359   : > { %v11539_v4 = vadd.f32 %v1786_v37, %v1674_v55  ;;  %v11541_v56 = vpop.f32.mrf.mxu1 }
 0x35a   : > { %v1680_v52 = vadd.f32 %v11001_v13, %v1567_v59  ;;  %v16596_v13 = vld [vmem:[#allocation85_spill] sm:$0xff] }
 0x35b   : > { %16588 = vst [vmem:[#allocation149_spill] sm:$0xff] %v11539_v4  ;;  %1943 = vmatmul.f32.gmra.mxu0 %v11547_v40  ;;  %8383 = vmatmul.msk.f32.gmra.mxu1 %vm744_vm0, %v10991_v14  ;;  %v1570_v49 = vadd.f32 %v16596_v13, %v11407_v38  ;;  %v11611_v59 = vld [vmem:[%s9835_s6 + $0x298] sm:$0xff]  ;;  %v9251_v13 = vld [vmem:[%s9835_s6 + $0x270] sm:$0xff] }
 0x35c   : > { %8351 = vmatmul.msk.f32.gmra.mxu3 %vm744_vm0, %v10991_v14 }
 0x35d   : > { %8323 = vmatmul.msk.f32.gmra.mxu2 %vm744_vm0, %v11557_v33 }
 0x35f   : > { %v2116_v14 = vpop.f32.mrf.mxu3 }
 0x360   : > { %v1789_v8 = vpop.f32.mrf.mxu2  ;;  %v11566_v55 = vadd.f32 %v2116_v14, %v2004_v16  ;;  %v11568_v37 = vpop.f32.mrf.mxu0  ;;  %v451_v14 = vld [vmem:[#allocation5 + $0x168] sm:$0xff] }
 0x361   : > { %v11570_v60 = vadd.f32 %v1789_v8, %v1677_v3  ;;  %v11572_v19 = vpop.f32.mrf.mxu1  ;;  %v11601_v8 = vld [vmem:[%s9835_s6 + $0x258] sm:$0xff]  ;;  %2546 = vmatpush.msra.mxu3 %v451_v14  ;;  %v16600_v14 = vld [vmem:[#allocation88_spill] sm:$0xff] }
 0x362   : > { %16595 = vst [vmem:[#allocation160_spill] sm:$0xff] %v11601_v8 }
 0x363   : > { %16592 = vst [vmem:[#allocation63_spill] sm:$0xff] %v11570_v60  ;;  %1946 = vmatmul.f32.gmra.mxu0 %v11577_v41  ;;  %8384 = vmatmul.msk.f32.gmra.mxu1 %vm744_vm0, %v11010_v31 }
 0x364   : > { %8352 = vmatmul.msk.f32.gmra.mxu3 %vm744_vm0, %v11010_v31 }
 0x365   : > { %8324 = vmatmul.msk.f32.gmra.mxu2 %vm744_vm0, %v11587_v7 }
 0x367   : > { %v11592_v47 = vpop.f32.mrf.mxu3 }
 0x368   : > { %v1792_v61 = vpop.f32.mrf.mxu2  ;;  %v11594_v16 = vpop.f32.mrf.mxu0 }
 0x369   : > { %v11596_v3 = vadd.f32 %v1792_v61, %v1680_v52  ;;  %v11598_v31 = vpop.f32.mrf.mxu1  ;;  %v1683_v52 = vadd.f32 %v11023_v36, %v1570_v49  ;;  %v1573_v36 = vadd.f32 %v16600_v14, %v11407_v38  ;;  %v11632_v49 = vld [vmem:[%s9835_s6 + $0x2b0] sm:$0xff] }
 0x36b   : > { %16594 = vst [vmem:[#allocation73_spill] sm:$0xff] %v11596_v3  ;;  %1949 = vmatmul.f32.gmra.mxu0 %v11601_v8  ;;  %8385 = vmatmul.msk.f32.gmra.mxu1 %vm744_vm0, %v11032_v51  ;;  %v443_v3 = vld [vmem:[#allocation5 + $0x128] sm:$0xff]  ;;  %v444_v8 = vld [vmem:[#allocation5 + $0x130] sm:$0xff] }
 0x36c   : > { %8353 = vmatmul.msk.f32.gmra.mxu3 %vm744_vm0, %v11032_v51 }
 0x36d   : > { %8325 = vmatmul.msk.f32.gmra.mxu2 %vm744_vm0, %v11611_v59  ;;  %2547 = vmatpush.msra.mxu3 %v443_v3  ;;  %v500_v3 = vld [vmem:[#allocation5 + $0x2f0] sm:$0xff] }
 0x36f   : > { %v11616_v61 = vpop.f32.mrf.mxu3 }
 0x370   : > { %16597 = vst [vmem:[#allocation159_spill] sm:$0xff] %v11616_v61  ;;  %v1795_v57 = vpop.f32.mrf.mxu2  ;;  %v11618_v50 = vpop.f32.mrf.mxu0  ;;  %v508_v61 = vld [vmem:[#allocation5 + $0x330] sm:$0xff] }
 0x371   : > { %v11620_v51 = vadd.f32 %v1795_v57, %v1683_v52  ;;  %v11622_v17 = vpop.f32.mrf.mxu1  ;;  %v538_v57 = vld [vmem:[#allocation5 + $0x420] sm:$0xff]  ;;  %v1686_v52 = vadd.f32 %v11042_v34, %v1573_v36  ;;  %2878 = vmatpush.msra.mxu1 %v508_v61 }
 0x372   : > { %16599 = vst [vmem:[#allocation79_spill] sm:$0xff] %v11622_v17  ;;  %2325 = vmatpush.msra.mxu0 %v538_v57  ;;  %v9253_v57 = vld [vmem:[%s9835_s6 + $0x288] sm:$0xff] }
 0x373   : > { %16598 = vst [vmem:[#allocation76_spill] sm:$0xff] %v11620_v51  ;;  %1952 = vmatmul.f32.gmra.mxu0 %v9251_v13  ;;  %8386 = vmatmul.msk.f32.gmra.mxu1 %vm744_vm0, %v11051_v28  ;;  %v16604_v34 = vld [vmem:[#allocation91_spill] sm:$0xff] }
 0x374   : > { %8354 = vmatmul.msk.f32.gmra.mxu3 %vm744_vm0, %v11051_v28  ;;  %v1576_v18 = vadd.f32 %v16604_v34, %v11407_v38  ;;  %2879 = vmatpush.msra.mxu1 %v500_v3  ;;  %v11674_v3 = vld [vmem:[%s9835_s6 + $0x2e0] sm:$0xff] }
 0x375   : > { %8326 = vmatmul.msk.f32.gmra.mxu2 %vm744_vm0, %v11632_v49  ;;  %2770 = vmatpush.msrb.mxu0 %v723_v5  ;;  %v436_v5 = vld [vmem:[#allocation5 + $0xf0] sm:$0xff] }
 0x376   : > { %v1689_v36 = vadd.f32 %v11061_v44, %v1576_v18  ;;  %v16607_v44 = vld [vmem:[#allocation94_spill] sm:$0xff] }
 0x377   : > { %v11637_v13 = vpop.f32.mrf.mxu3  ;;  %v1579_v18 = vadd.f32 %v16607_v44, %v11407_v38 }
 0x378   : > { %v1798_v17 = vpop.f32.mrf.mxu2  ;;  %v11639_v28 = vpop.f32.mrf.mxu0 }
 0x379   : > { %16601 = vst [vmem:[#allocation163_spill] sm:$0xff] %v11639_v28  ;;  %v11641_v14 = vadd.f32 %v1798_v17, %v1686_v52  ;;  %v11643_v51 = vpop.f32.mrf.mxu1  ;;  %v11653_v17 = vld [vmem:[%s9835_s6 + $0x2c8] sm:$0xff]  ;;  %v9255_v28 = vld [vmem:[%s9835_s6 + $0x2a0] sm:$0xff] }
 0x37a   : > { %16603 = vst [vmem:[#allocation82_spill] sm:$0xff] %v11643_v51  ;;  %v476_v51 = vld [vmem:[#allocation5 + $0x230] sm:$0xff] }
 0x37b   : > { %16602 = vst [vmem:[#allocation166_spill] sm:$0xff] %v11641_v14  ;;  %1955 = vmatmul.f32.gmra.mxu0 %v9253_v57  ;;  %8387 = vmatmul.msk.f32.gmra.mxu1 %vm744_vm0, %v11557_v33  ;;  %v484_v14 = vld [vmem:[#allocation5 + $0x270] sm:$0xff] }
 0x37c   : > { %8355 = vmatmul.msk.f32.gmra.mxu3 %vm744_vm0, %v11557_v33  ;;  %v492_v33 = vld [vmem:[#allocation5 + $0x2b0] sm:$0xff] }
 0x37d   : > { %8327 = vmatmul.msk.f32.gmra.mxu2 %vm744_vm0, %v11653_v17  ;;  %2880 = vmatpush.msra.mxu1 %v492_v33  ;;  %v460_v33 = vld [vmem:[#allocation5 + $0x1b0] sm:$0xff] }
 0x37f   : > { %v11658_v20 = vpop.f32.mrf.mxu3  ;;  %2881 = vmatpush.msra.mxu1 %v484_v14  ;;  %v468_v14 = vld [vmem:[#allocation5 + $0x1f0] sm:$0xff] }
 0x380   : > { %v1801_v61 = vpop.f32.mrf.mxu2  ;;  %v11660_v52 = vpop.f32.mrf.mxu0 }
 0x381   : > { %v11662_v57 = vadd.f32 %v1801_v61, %v1689_v36  ;;  %v11664_v34 = vpop.f32.mrf.mxu1  ;;  %2882 = vmatpush.msra.mxu1 %v476_v51 }
 0x382   : > { %16606 = vst [vmem:[#allocation88_spill] sm:$0xff] %v11664_v34  ;;  %v435_v34 = vld [vmem:[#allocation5 + $0xe8] sm:$0xff] }
 0x383   : > { %16605 = vst [vmem:[#allocation85_spill] sm:$0xff] %v11662_v57  ;;  %1958 = vmatmul.f32.gmra.mxu0 %v9255_v28  ;;  %8388 = vmatmul.msk.f32.gmra.mxu1 %vm744_vm0, %v11587_v7  ;;  %v1692_v28 = vadd.f32 %v11079_v53, %v1579_v18  ;;  %v452_v57 = vld [vmem:[#allocation5 + $0x170] sm:$0xff] }
 0x384   : > { %8356 = vmatmul.msk.f32.gmra.mxu3 %vm744_vm0, %v11587_v7  ;;  %2883 = vmatpush.msra.mxu1 %v468_v14  ;;  %v16609_v53 = vld [vmem:[#allocation97_spill] sm:$0xff]  ;;  %v651_v14 = vld [vmem:[#allocation5 + $0x7a8] sm:$0xff] }
 0x385   : > { %8328 = vmatmul.msk.f32.gmra.mxu2 %vm744_vm0, %v11674_v3  ;;  %v1582_v18 = vadd.f32 %v16609_v53, %v11407_v38  ;;  %2548 = vmatpush.msra.mxu3 %v435_v34  ;;  %v419_v34 = vld [vmem:[#allocation5 + $0x68] sm:$0xff]  ;;  %v420_v53 = vld [vmem:[#allocation5 + $0x70] sm:$0xff] }
 0x386   : > { %2884 = vmatpush.msra.mxu1 %v460_v33  ;;  %2650 = vmatpush.msrb.mxu2 %v651_v14  ;;  %v428_v33 = vld [vmem:[#allocation5 + $0xb0] sm:$0xff] }
 0x387   : > { %v11679_v36 = vpop.f32.mrf.mxu3  ;;  %v16611_v14 = vld [vmem:[#allocation100_spill] sm:$0xff] }
 0x388   : > { %v1804_v7 = vpop.f32.mrf.mxu2  ;;  %v1914_v51 = vpop.f32.mrf.mxu0  ;;  %2885 = vmatpush.msra.mxu1 %v452_v57 }
 0x389   : > { %v11681_v61 = vadd.f32 %v1804_v7, %v1692_v28  ;;  %v11683_v44 = vpop.f32.mrf.mxu1  ;;  %v427_v28 = vld [vmem:[#allocation5 + $0xa8] sm:$0xff] }
 0x38a   : > { %2886 = vmatpush.msra.mxu1 %v444_v8  ;;  %2549 = vmatpush.msra.mxu3 %v427_v28 }
 0x38b   : > { %16608 = vst [vmem:[#allocation91_spill] sm:$0xff] %v11681_v61  ;;  %1961 = vmatmul.f32.gmra.mxu0 %v9257_v46  ;;  %8389 = vmatmul.msk.f32.gmra.mxu1 %vm744_vm0, %v11611_v59  ;;  %v1695_v46 = vadd.f32 %v11097_v32, %v1582_v18  ;;  %v412_v32 = vld [vmem:[#allocation5 + $0x30] sm:$0xff] }
 0x38c   : > { %8357 = vmatmul.msk.f32.gmra.mxu3 %vm744_vm0, %v11611_v59  ;;  %2887 = vmatpush.msra.mxu1 %v436_v5  ;;  %v411_v5 = vld [vmem:[#allocation5 + $0x28] sm:$0xff]  ;;  %v9258_v18 = vld [vmem:[%s9835_s6 + $0x2d0] sm:$0xff] }
 0x38d   : > { %8329 = vmatmul.msk.f32.gmra.mxu2 %vm744_vm0, %v11017_v9  ;;  %2550 = vmatpush.msra.mxu3 %v419_v34 }
 0x38e   : > { %2888 = vmatpush.msra.mxu1 %v428_v33 }
 0x38f   : > { %v11695_v57 = vpop.f32.mrf.mxu3  ;;  %2551 = vmatpush.msra.mxu3 %v411_v5  ;;  %v643_v5 = vld [vmem:[#allocation5 + $0x768] sm:$0xff] }
 0x390   : > { %v1807_v59 = vpop.f32.mrf.mxu2  ;;  %v11697_v8 = vpop.f32.mrf.mxu0  ;;  %2889 = vmatpush.msra.mxu1 %v420_v53  ;;  %2651 = vmatpush.msrb.mxu2 %v643_v5 }
 0x391   : > { %v11699_v7 = vadd.f32 %v1807_v59, %v1695_v46  ;;  %v11701_v9 = vpop.f32.mrf.mxu1  ;;  %v1585_v46 = vadd.f32 %v16611_v14, %v11407_v38 }
 0x392   : > { %2890 = vmatpush.msra.mxu1 %v412_v32  ;;  %v1915_v32 = vadd.f32 %v1914_v51, %v11423_v45 }
 0x393   : > { %16610 = vst [vmem:[#allocation94_spill] sm:$0xff] %v11699_v7  ;;  %1964 = vmatmul.f32.gmra.mxu0 %v9258_v18  ;;  %8390 = vmatmul.msk.f32.gmra.mxu1 %vm744_vm0, %v11632_v49  ;;  %v1698_v28 = vadd.f32 %v11117_v21, %v1585_v46  ;;  %v9259_v7 = vld [vmem:[%s9835_s6 + $0x2e8] sm:$0xff] }
 0x394   : > { %8358 = vmatmul.msk.f32.gmra.mxu3 %vm744_vm0, %v11632_v49  ;;  %v1912_v49 = vadd.f32 %v11660_v52, %v11423_v45  ;;  %v2028_v52 = vadd.f32 %v11048_v26, %v1915_v32  ;;  %v16615_v26 = vld [vmem:[#allocation106_spill] sm:$0xff] }
 0x395   : > { %2213 = vmatmul.f32.vlgmr.msra.gmra.mxu2 %v11070_v62  ;;  %v16613_v62 = vld [vmem:[#allocation103_spill] sm:$0xff] }
 0x396   : > { %v1588_v21 = vadd.f32 %v16613_v62, %v11407_v38  ;;  %v2025_v14 = vadd.f32 %v11029_v1, %v1912_v49  ;;  %v9260_v1 = vld [vmem:[%s9835_s6 + $0x8] sm:$0xff] }
 0x397   : > { %v2137_v33 = vpop.f32.mrf.mxu3 }
 0x398   : > { %v1810_v59 = vpop.f32.mrf.mxu2  ;;  %v11712_v34 = vpop.f32.mrf.mxu0  ;;  %v1701_v51 = vadd.f32 %v11137_v42, %v1588_v21  ;;  %v11732_v46 = vadd.f32 %v2137_v33, %v2025_v14  ;;  %v1591_v42 = vadd.f32 %v16615_v26, %v11407_v38  ;;  %v715_v33 = vld [vmem:[#allocation5 + $0x9a8] sm:$0xff] }
 0x399   : > { %v11714_v53 = vadd.f32 %v1810_v59, %v1698_v28  ;;  %v11716_v18 = vpop.f32.mrf.mxu1  ;;  %2771 = vmatpush.msrb.mxu0 %v715_v33 }
 0x39a   : > { %v1704_v49 = vadd.f32 %v11157_v30, %v1591_v42 }
 0x39b   : > { %16612 = vst [vmem:[#allocation97_spill] sm:$0xff] %v11714_v53  ;;  %1967 = vmatmul.f32.gmra.mxu0 %v9259_v7  ;;  %8391 = vmatmul.msk.f32.gmra.mxu1 %vm744_vm0, %v11653_v17 }
 0x39c   : > { %8359 = vmatmul.msk.f32.gmra.mxu3 %vm744_vm0, %v11653_v17 }
 0x39d   : > { %2216 = vmatmul.f32.gmra.mxu2 %v11088_v63 }
 0x39f   : > { %v2140_v7 = vpop.f32.mrf.mxu3 }
 0x3a0   : > { %v1813_v28 = vpop.f32.mrf.mxu2  ;;  %v11734_v59 = vadd.f32 %v2140_v7, %v2028_v52  ;;  %v11736_v17 = vpop.f32.mrf.mxu0  ;;  %v635_v7 = vld [vmem:[#allocation5 + $0x728] sm:$0xff] }
 0x3a1   : > { %v11738_v61 = vadd.f32 %v1813_v28, %v1701_v51  ;;  %v11740_v62 = vpop.f32.mrf.mxu1  ;;  %v9262_v51 = vld [vmem:[%s9835_s6 + $0x2f8] sm:$0xff]  ;;  %2652 = vmatpush.msrb.mxu2 %v635_v7 }
 0x3a3   : > { %16614 = vst [vmem:[#allocation100_spill] sm:$0xff] %v11738_v61  ;;  %2326 = vmatmul.f32.vlgmr.msra.gmra.mxu0 %v9260_v1  ;;  %8392 = vmatmul.msk.f32.gmra.mxu1 %vm744_vm0, %v11674_v3 }
 0x3a4   : > { %8360 = vmatmul.msk.f32.gmra.mxu3 %vm744_vm0, %v11674_v3  ;;  %v9261_v3 = vld [vmem:[%s9835_s6 + $0x20] sm:$0xff] }
 0x3a5   : > { %2219 = vmatmul.f32.gmra.mxu2 %v11106_v0  ;;  %v16617_v0 = vld [vmem:[#allocation109_spill] sm:$0xff] }
 0x3a6   : > { %v1594_v30 = vadd.f32 %v16617_v0, %v11407_v38 }
 0x3a7   : > { %v11753_v32 = vpop.f32.mrf.mxu3 }
 0x3a8   : > { %v1816_v21 = vpop.f32.mrf.mxu2  ;;  %v11755_v5 = vpop.f32.mrf.mxu0  ;;  %v1707_v28 = vadd.f32 %v11177_v11, %v1594_v30  ;;  %v16622_v11 = vld [vmem:[#allocation200_spill] sm:$0xff] }
 0x3a9   : > { %v11757_v14 = vadd.f32 %v1816_v21, %v1704_v49  ;;  %v11759_v52 = vpop.f32.mrf.mxu1  ;;  %v9263_v21 = vld [vmem:[%s9835_s6 + $0x38] sm:$0xff] }
 0x3ab   : > { %16616 = vst [vmem:[#allocation103_spill] sm:$0xff] %v11757_v14  ;;  %2329 = vmatmul.f32.gmra.mxu0 %v9261_v3  ;;  %8393 = vmatmul.msk.f32.gmra.mxu1 %vm744_vm0, %v9262_v51  ;;  %v9264_v3 = vld [vmem:[%s9835_s6] sm:$0xff]  ;;  %v660_v14 = vld [vmem:[#allocation5 + $0x7f0] sm:$0xff] }
 0x3ac   : > { %8361 = vmatmul.msk.f32.gmra.mxu3 %vm744_vm0, %v9262_v51 }
 0x3ad   : > { %2222 = vmatmul.f32.gmra.mxu2 %v11126_v2  ;;  %v16621_v2 = vld [vmem:[#allocation112_spill] sm:$0xff]  ;;  %2988 = vmatpush.msrb.mxu3 %v660_v14 }
 0x3ae   : > { %v1597_v51 = vadd.f32 %v16621_v2, %v11407_v38  ;;  %v16626_v2 = vld [vmem:[#allocation115_spill] sm:$0xff] }
 0x3af   : > { %v11769_v1 = vpop.f32.mrf.mxu3 }
 0x3b0   : > { %16618 = vst [vmem:[#allocation106_spill] sm:$0xff] %v11769_v1  ;;  %v1819_v26 = vpop.f32.mrf.mxu2  ;;  %v11771_v42 = vpop.f32.mrf.mxu0  ;;  %v1710_v0 = vadd.f32 %v11197_v48, %v1597_v51  ;;  %v16627_v48 = vld [vmem:[#allocation203_spill] sm:$0xff] }
 0x3b1   : > { %v11773_v33 = vadd.f32 %v1819_v26, %v1707_v28  ;;  %v11775_v49 = vpop.f32.mrf.mxu1  ;;  %v627_v51 = vld [vmem:[#allocation5 + $0x6e8] sm:$0xff] }
 0x3b2   : > { %16620 = vst [vmem:[#allocation256_spill] sm:$0xff] %v11775_v49  ;;  %2653 = vmatpush.msrb.mxu2 %v627_v51  ;;  %v9267_v49 = vld [vmem:[%s9835_s6 + $0x68] sm:$0xff]  ;;  %v16631_v51 = vld [vmem:[#allocation206_spill] sm:$0xff] }
 0x3b3   : > { %16619 = vst [vmem:[#allocation109_spill] sm:$0xff] %v11773_v33  ;;  %2332 = vmatmul.f32.gmra.mxu0 %v9263_v21  ;;  %2891 = vmatmul.f32.vlgmr.msra.gmra.mxu1 %v9264_v3  ;;  %v9265_v21 = vld [vmem:[%s9835_s6 + $0x50] sm:$0xff] }
 0x3b4   : > { %2552 = vmatmul.f32.vlgmr.msra.gmra.mxu3 %v9264_v3  ;;  %v9266_v3 = vld [vmem:[%s9835_s6 + $0x18] sm:$0xff] }
 0x3b5   : > { %2225 = vmatmul.f32.gmra.mxu2 %v16622_v11  ;;  %v1600_v11 = vadd.f32 %v16626_v2, %v11407_v38  ;;  %v16630_v2 = vld [vmem:[#allocation118_spill] sm:$0xff] }
 0x3b7   : > { %v11783_v30 = vpop.f32.mrf.mxu3  ;;  %v1713_v33 = vadd.f32 %v11215_v15, %v1600_v11  ;;  %v707_v15 = vld [vmem:[#allocation5 + $0x968] sm:$0xff] }
 0x3b8   : > { %v1822_v7 = vpop.f32.mrf.mxu2  ;;  %v11785_v28 = vpop.f32.mrf.mxu0  ;;  %2772 = vmatpush.msrb.mxu0 %v707_v15 }
 0x3b9   : > { %16623 = vst [vmem:[#allocation112_spill] sm:$0xff] %v11785_v28  ;;  %v11787_v26 = vadd.f32 %v1822_v7, %v1710_v0  ;;  %v11789_v63 = vpop.f32.mrf.mxu1  ;;  %v9269_v28 = vld [vmem:[%s9835_s6 + $0x80] sm:$0xff] }
 0x3ba   : > { %16625 = vst [vmem:[#allocation257_spill] sm:$0xff] %v11789_v63 }
 0x3bb   : > { %16624 = vst [vmem:[#allocation200_spill] sm:$0xff] %v11787_v26  ;;  %2335 = vmatmul.f32.gmra.mxu0 %v9265_v21  ;;  %2894 = vmatmul.f32.gmra.mxu1 %v9266_v3 }
 0x3bc   : > { %2555 = vmatmul.f32.gmra.mxu3 %v9266_v3  ;;  %v9268_v3 = vld [vmem:[%s9835_s6 + $0x30] sm:$0xff] }
 0x3bd   : > { %2228 = vmatmul.f32.gmra.mxu2 %v16627_v48  ;;  %v1603_v48 = vadd.f32 %v16630_v2, %v11407_v38  ;;  %v16634_v2 = vld [vmem:[#allocation121_spill] sm:$0xff] }
 0x3bf   : > { %v11797_v0 = vpop.f32.mrf.mxu3  ;;  %v1716_v11 = vadd.f32 %v11234_v43, %v1603_v48  ;;  %v619_v43 = vld [vmem:[#allocation5 + $0x6a8] sm:$0xff] }
 0x3c0   : > { %v1825_v7 = vpop.f32.mrf.mxu2  ;;  %v1935_v26 = vpop.f32.mrf.mxu0  ;;  %2654 = vmatpush.msrb.mxu2 %v619_v43 }
 0x3c1   : > { %v11799_v63 = vadd.f32 %v1825_v7, %v1713_v33  ;;  %v11801_v21 = vpop.f32.mrf.mxu1 }
 0x3c2   : > { %16629 = vst [vmem:[#allocation203_spill] sm:$0xff] %v11801_v21 }
 0x3c3   : > { %16628 = vst [vmem:[#allocation115_spill] sm:$0xff] %v11799_v63  ;;  %2338 = vmatmul.f32.gmra.mxu0 %v9267_v49  ;;  %2897 = vmatmul.f32.gmra.mxu1 %v9268_v3 }
 0x3c4   : > { %2558 = vmatmul.f32.gmra.mxu3 %v9268_v3  ;;  %v9270_v3 = vld [vmem:[%s9835_s6 + $0x48] sm:$0xff] }
 0x3c5   : > { %2231 = vmatmul.f32.gmra.mxu2 %v16631_v51  ;;  %v1606_v51 = vadd.f32 %v16634_v2, %v11407_v38  ;;  %v9272_v2 = vld [vmem:[%s9835_s6 + $0x60] sm:$0xff] }
 0x3c7   : > { %v11809_v33 = vpop.f32.mrf.mxu3  ;;  %v1719_v48 = vadd.f32 %v11253_v58, %v1606_v51 }
 0x3c8   : > { %v1828_v7 = vpop.f32.mrf.mxu2  ;;  %v1938_v21 = vpop.f32.mrf.mxu0 }
 0x3c9   : > { %v11811_v63 = vadd.f32 %v1828_v7, %v1716_v11  ;;  %v11813_v49 = vpop.f32.mrf.mxu1 }
 0x3ca   : > { %16633 = vst [vmem:[#allocation206_spill] sm:$0xff] %v11813_v49 }
 0x3cb   : > { %16632 = vst [vmem:[#allocation118_spill] sm:$0xff] %v11811_v63  ;;  %2341 = vmatmul.f32.gmra.mxu0 %v9269_v28  ;;  %2900 = vmatmul.f32.gmra.mxu1 %v9270_v3 }
 0x3cc   : > { %2561 = vmatmul.f32.gmra.mxu3 %v9270_v3  ;;  %v9271_v3 = vld [vmem:[%s9835_s6 + $0x98] sm:$0xff] }
 0x3cd   : > { %2234 = vmatmul.f32.gmra.mxu2 %v11206_v25  ;;  %v16639_v25 = vld [vmem:[#allocation124_spill] sm:$0xff] }
 0x3ce   : > { %v1609_v14 = vadd.f32 %v16639_v25, %v11407_v38  ;;  %v9274_v25 = vld [vmem:[%s9835_s6 + $0x78] sm:$0xff] }
 0x3cf   : > { %v11821_v15 = vpop.f32.mrf.mxu3 }
 0x3d0   : > { %16635 = vst [vmem:[#allocation121_spill] sm:$0xff] %v11821_v15  ;;  %v1831_v11 = vpop.f32.mrf.mxu2  ;;  %v11823_v7 = vpop.f32.mrf.mxu0  ;;  %v1722_v58 = vadd.f32 %v11272_v23, %v1609_v14  ;;  %v16644_v14 = vld [vmem:[#allocation215_spill] sm:$0xff] }
 0x3d1   : > { %16636 = vst [vmem:[#allocation258_spill] sm:$0xff] %v11823_v7  ;;  %v11825_v28 = vadd.f32 %v1831_v11, %v1719_v48  ;;  %v11827_v63 = vpop.f32.mrf.mxu1  ;;  %v1939_v7 = vadd.f32 %v1938_v21, %v11423_v45  ;;  %v16647_v21 = vld [vmem:[#allocation224_spill] sm:$0xff] }
 0x3d2   : > { %16638 = vst [vmem:[#allocation260_spill] sm:$0xff] %v11827_v63  ;;  %v9273_v63 = vld [vmem:[%s9835_s6 + $0xb0] sm:$0xff] }
 0x3d3   : > { %16637 = vst [vmem:[#allocation259_spill] sm:$0xff] %v11825_v28  ;;  %2344 = vmatmul.f32.gmra.mxu0 %v9271_v3  ;;  %2903 = vmatmul.f32.gmra.mxu1 %v9272_v2  ;;  %v1936_v3 = vadd.f32 %v1935_v26, %v11423_v45  ;;  %v16646_v26 = vld [vmem:[#allocation208_spill] sm:$0xff] }
 0x3d4   : > { %2564 = vmatmul.f32.gmra.mxu3 %v9272_v2  ;;  %v652_v2 = vld [vmem:[#allocation5 + $0x7b0] sm:$0xff] }
 0x3d5   : > { %2237 = vmatmul.f32.gmra.mxu2 %v11225_v35  ;;  %v16643_v35 = vld [vmem:[#allocation127_spill] sm:$0xff]  ;;  %2989 = vmatpush.msrb.mxu3 %v652_v2 }
 0x3d6   : > { %v1612_v23 = vadd.f32 %v16643_v35, %v11407_v38 }
 0x3d7   : > { %v2161_v51 = vpop.f32.mrf.mxu3 }
 0x3d8   : > { %v1834_v43 = vpop.f32.mrf.mxu2  ;;  %v11835_v48 = vpop.f32.mrf.mxu0 }
 0x3d9   : > { %16640 = vst [vmem:[#allocation124_spill] sm:$0xff] %v11835_v48  ;;  %v11837_v11 = vadd.f32 %v1834_v43, %v1722_v58  ;;  %v11839_v28 = vpop.f32.mrf.mxu1  ;;  %v611_v58 = vld [vmem:[#allocation5 + $0x668] sm:$0xff]  ;;  %v16645_v43 = vld [vmem:[#allocation205_spill] sm:$0xff]  ;;  %v1725_v48 = vadd.f32 %v16647_v21, %v1612_v23 }
 0x3da   : > { %16642 = vst [vmem:[#allocation262_spill] sm:$0xff] %v11839_v28  ;;  %v2052_v28 = vadd.f32 %v16646_v26, %v1939_v7  ;;  %2655 = vmatpush.msrb.mxu2 %v611_v58  ;;  %v9276_v7 = vld [vmem:[%s9835_s6 + $0x90] sm:$0xff]  ;;  %v699_v23 = vld [vmem:[#allocation5 + $0x928] sm:$0xff] }
 0x3db   : > { %16641 = vst [vmem:[#allocation261_spill] sm:$0xff] %v11837_v11  ;;  %2347 = vmatmul.f32.gmra.mxu0 %v9273_v63  ;;  %2906 = vmatmul.f32.gmra.mxu1 %v9274_v25  ;;  %v2049_v11 = vadd.f32 %v16645_v43, %v1936_v3 }
 0x3dc   : > { %2567 = vmatmul.f32.gmra.mxu3 %v9274_v25  ;;  %2773 = vmatpush.msrb.mxu0 %v699_v23  ;;  %v16659_v23 = vld [vmem:[#allocation223_spill] sm:$0xff] }
 0x3dd   : > { %2240 = vmatmul.f32.gmra.mxu2 %v16644_v14  ;;  %v11851_v49 = vadd.f32 %v2161_v51, %v2049_v11  ;;  %v9275_v14 = vld [vmem:[%s9835_s6 + $0xc8] sm:$0xff]  ;;  %v16651_v51 = vld [vmem:[#allocation130_spill] sm:$0xff] }
 0x3de   : > { %v16652_v11 = vld [vmem:[#allocation219_spill] sm:$0xff] }
 0x3df   : > { %v2164_v63 = vpop.f32.mrf.mxu3 }
 0x3e0   : > { %v1837_v25 = vpop.f32.mrf.mxu2  ;;  %v11853_v15 = vadd.f32 %v2164_v63, %v2052_v28  ;;  %v11855_v35 = vpop.f32.mrf.mxu0  ;;  %v1615_v28 = vadd.f32 %v16651_v51, %v11407_v38  ;;  %v9278_v51 = vld [vmem:[%s9835_s6 + $0xa8] sm:$0xff] }
 0x3e1   : > { %16648 = vst [vmem:[#allocation127_spill] sm:$0xff] %v11855_v35  ;;  %v11857_v1 = vadd.f32 %v1837_v25, %v1725_v48  ;;  %v11859_v2 = vpop.f32.mrf.mxu1  ;;  %v16653_v48 = vld [vmem:[#allocation229_spill] sm:$0xff]  ;;  %v9285_v35 = vld [vmem:[%s9835_s6 + $0x140] sm:$0xff] }
 0x3e2   : > { %16650 = vst [vmem:[#allocation205_spill] sm:$0xff] %v11859_v2  ;;  %v1728_v58 = vadd.f32 %v16653_v48, %v1615_v28  ;;  %v603_v48 = vld [vmem:[#allocation5 + $0x628] sm:$0xff] }
 0x3e3   : > { %16649 = vst [vmem:[#allocation215_spill] sm:$0xff] %v11857_v1  ;;  %2350 = vmatmul.f32.gmra.mxu0 %v9275_v14  ;;  %2909 = vmatmul.f32.gmra.mxu1 %v9276_v7  ;;  %v644_v14 = vld [vmem:[#allocation5 + $0x770] sm:$0xff] }
 0x3e4   : > { %2570 = vmatmul.f32.gmra.mxu3 %v9276_v7  ;;  %v9277_v7 = vld [vmem:[%s9835_s6 + $0xe0] sm:$0xff]  ;;  %2656 = vmatpush.msrb.mxu2 %v603_v48  ;;  %v628_v1 = vld [vmem:[#allocation5 + $0x6f0] sm:$0xff] }
 0x3e5   : > { %2243 = vmatmul.f32.gmra.mxu2 %v16652_v11  ;;  %v16658_v11 = vld [vmem:[#allocation133_spill] sm:$0xff]  ;;  %2990 = vmatpush.msrb.mxu3 %v644_v14  ;;  %v16665_v14 = vld [vmem:[#allocation136_spill] sm:$0xff]  ;;  %v16667_v48 = vld [vmem:[#allocation239_spill] sm:$0xff] }
 0x3e6   : > { %v1618_v28 = vadd.f32 %v16658_v11, %v11407_v38  ;;  %v9280_v11 = vld [vmem:[%s9835_s6 + $0xc0] sm:$0xff] }
 0x3e7   : > { %v11869_v43 = vpop.f32.mrf.mxu3 }
 0x3e8   : > { %16654 = vst [vmem:[#allocation208_spill] sm:$0xff] %v11869_v43  ;;  %v1840_v26 = vpop.f32.mrf.mxu2  ;;  %v11871_v21 = vpop.f32.mrf.mxu0 }
 0x3e9   : > { %16655 = vst [vmem:[#allocation224_spill] sm:$0xff] %v11871_v21  ;;  %v11873_v63 = vadd.f32 %v1840_v26, %v1728_v58  ;;  %v11875_v25 = vpop.f32.mrf.mxu1  ;;  %v16660_v58 = vld [vmem:[#allocation234_spill] sm:$0xff] }
 0x3ea   : > { %16657 = vst [vmem:[#allocation219_spill] sm:$0xff] %v11875_v25  ;;  %v1731_v26 = vadd.f32 %v16660_v58, %v1618_v28  ;;  %v16666_v28 = vld [vmem:[#allocation228_spill] sm:$0xff] }
 0x3eb   : > { %16656 = vst [vmem:[#allocation130_spill] sm:$0xff] %v11873_v63  ;;  %2353 = vmatmul.f32.gmra.mxu0 %v9277_v7  ;;  %2912 = vmatmul.f32.gmra.mxu1 %v9278_v51 }
 0x3ec   : > { %2573 = vmatmul.f32.gmra.mxu3 %v9278_v51  ;;  %v9279_v51 = vld [vmem:[%s9835_s6 + $0xf8] sm:$0xff] }
 0x3ed   : > { %2246 = vmatmul.f32.gmra.mxu2 %v16659_v23  ;;  %v1621_v23 = vadd.f32 %v16665_v14, %v11407_v38  ;;  %v9282_v14 = vld [vmem:[%s9835_s6 + $0xd8] sm:$0xff] }
 0x3ef   : > { %v11883_v3 = vpop.f32.mrf.mxu3  ;;  %v1734_v58 = vadd.f32 %v16667_v48, %v1621_v23  ;;  %v16672_v23 = vld [vmem:[#allocation139_spill] sm:$0xff]  ;;  %v16673_v48 = vld [vmem:[#allocation233_spill] sm:$0xff] }
 0x3f0   : > { %16661 = vst [vmem:[#allocation229_spill] sm:$0xff] %v11883_v3  ;;  %v1843_v63 = vpop.f32.mrf.mxu2  ;;  %v11885_v25 = vpop.f32.mrf.mxu0 }
 0x3f1   : > { %16662 = vst [vmem:[#allocation133_spill] sm:$0xff] %v11885_v25  ;;  %v11887_v7 = vadd.f32 %v1843_v63, %v1731_v26  ;;  %v11889_v43 = vpop.f32.mrf.mxu1  ;;  %v595_v25 = vld [vmem:[#allocation5 + $0x5e8] sm:$0xff] }
 0x3f2   : > { %16664 = vst [vmem:[#allocation234_spill] sm:$0xff] %v11889_v43  ;;  %2657 = vmatpush.msrb.mxu2 %v595_v25 }
 0x3f3   : > { %16663 = vst [vmem:[#allocation223_spill] sm:$0xff] %v11887_v7  ;;  %2356 = vmatmul.f32.gmra.mxu0 %v9279_v51  ;;  %2915 = vmatmul.f32.gmra.mxu1 %v9280_v11  ;;  %v636_v51 = vld [vmem:[#allocation5 + $0x730] sm:$0xff] }
 0x3f4   : > { %2576 = vmatmul.f32.gmra.mxu3 %v9280_v11  ;;  %v9281_v11 = vld [vmem:[%s9835_s6 + $0x110] sm:$0xff] }
 0x3f5   : > { %2249 = vmatmul.f32.gmra.mxu2 %v16666_v28  ;;  %2991 = vmatpush.msrb.mxu3 %v636_v51  ;;  %v1624_v28 = vadd.f32 %v16672_v23, %v11407_v38  ;;  %v16678_v23 = vld [vmem:[#allocation142_spill] sm:$0xff] }
 0x3f6   : > { %v1627_v25 = vadd.f32 %v16678_v23, %v11407_v38  ;;  %v16684_v23 = vld [vmem:[#allocation145_spill] sm:$0xff] }
 0x3f7   : > { %v11897_v2 = vpop.f32.mrf.mxu3  ;;  %2992 = vmatpush.msrb.mxu3 %v628_v1  ;;  %v16691_v1 = vld [vmem:[#allocation245_spill] sm:$0xff] }
 0x3f8   : > { %16668 = vst [vmem:[#allocation136_spill] sm:$0xff] %v11897_v2  ;;  %v1846_v63 = vpop.f32.mrf.mxu2  ;;  %v11899_v26 = vpop.f32.mrf.mxu0  ;;  %v9283_v2 = vld [vmem:[%s9835_s6 + $0x128] sm:$0xff] }
 0x3f9   : > { %16669 = vst [vmem:[#allocation228_spill] sm:$0xff] %v11899_v26  ;;  %v11901_v43 = vadd.f32 %v1846_v63, %v1734_v58  ;;  %v11903_v7 = vpop.f32.mrf.mxu1  ;;  %v16674_v58 = vld [vmem:[#allocation243_spill] sm:$0xff] }
 0x3fa   : > { %16671 = vst [vmem:[#allocation263_spill] sm:$0xff] %v11903_v7  ;;  %v1737_v63 = vadd.f32 %v16674_v58, %v1624_v28  ;;  %v691_v28 = vld [vmem:[#allocation5 + $0x8e8] sm:$0xff]  ;;  %v16680_v58 = vld [vmem:[#allocation246_spill] sm:$0xff] }
 0x3fb   : > { %16670 = vst [vmem:[#allocation239_spill] sm:$0xff] %v11901_v43  ;;  %2359 = vmatmul.f32.gmra.mxu0 %v9281_v11  ;;  %2918 = vmatmul.f32.gmra.mxu1 %v9282_v14  ;;  %v1740_v3 = vadd.f32 %v16680_v58, %v1627_v25  ;;  %v16685_v25 = vld [vmem:[#allocation242_spill] sm:$0xff] }
 0x3fc   : > { %2579 = vmatmul.f32.gmra.mxu3 %v9282_v14  ;;  %v9284_v14 = vld [vmem:[%s9835_s6 + $0xf0] sm:$0xff]  ;;  %2774 = vmatpush.msrb.mxu0 %v691_v28  ;;  %v587_v28 = vld [vmem:[#allocation5 + $0x5a8] sm:$0xff] }
 0x3fd   : > { %2252 = vmatmul.f32.gmra.mxu2 %v16673_v48  ;;  %v16679_v48 = vld [vmem:[#allocation238_spill] sm:$0xff] }
 0x3fe   : > { %2658 = vmatpush.msrb.mxu2 %v587_v28 }
 0x3ff   : > { %v11911_v43 = vpop.f32.mrf.mxu3 }
 0x400   : > { %16675 = vst [vmem:[#allocation139_spill] sm:$0xff] %v11911_v43  ;;  %v1849_v7 = vpop.f32.mrf.mxu2  ;;  %v1959_v51 = vpop.f32.mrf.mxu0 }
 0x401   : > { %v11913_v26 = vadd.f32 %v1849_v7, %v1737_v63  ;;  %v11915_v11 = vpop.f32.mrf.mxu1 }
 0x402   : > { %16677 = vst [vmem:[#allocation243_spill] sm:$0xff] %v11915_v11 }
 0x403   : > { %16676 = vst [vmem:[#allocation233_spill] sm:$0xff] %v11913_v26  ;;  %2362 = vmatmul.f32.gmra.mxu0 %v9283_v2  ;;  %2921 = vmatmul.f32.gmra.mxu1 %v9284_v14 }
 0x404   : > { %2582 = vmatmul.f32.gmra.mxu3 %v9284_v14  ;;  %v9286_v14 = vld [vmem:[%s9835_s6 + $0x108] sm:$0xff] }
 0x405   : > { %2255 = vmatmul.f32.gmra.mxu2 %v16679_v48  ;;  %v1630_v48 = vadd.f32 %v16684_v23, %v11407_v38  ;;  %v9288_v38 = vld [vmem:[%s9835_s6 + $0x120] sm:$0xff] }
 0x407   : > { %v11923_v7 = vpop.f32.mrf.mxu3 }
 0x408   : > { %16681 = vst [vmem:[#allocation142_spill] sm:$0xff] %v11923_v7  ;;  %v1852_v63 = vpop.f32.mrf.mxu2  ;;  %v1962_v11 = vpop.f32.mrf.mxu0 }
 0x409   : > { %v11925_v26 = vadd.f32 %v1852_v63, %v1740_v3  ;;  %v11927_v2 = vpop.f32.mrf.mxu1  ;;  %v16686_v3 = vld [vmem:[#allocation249_spill] sm:$0xff] }
 0x40a   : > { %16683 = vst [vmem:[#allocation246_spill] sm:$0xff] %v11927_v2  ;;  %v1743_v58 = vadd.f32 %v16686_v3, %v1630_v48  ;;  %v1960_v3 = vadd.f32 %v1959_v51, %v11423_v45 }
 0x40b   : > { %16682 = vst [vmem:[#allocation238_spill] sm:$0xff] %v11925_v26  ;;  %2365 = vmatmul.f32.gmra.mxu0 %v9285_v35  ;;  %2924 = vmatmul.f32.gmra.mxu1 %v9286_v14 }
 0x40c   : > { %2585 = vmatmul.f32.gmra.mxu3 %v9286_v14  ;;  %v9287_v14 = vld [vmem:[%s9835_s6 + $0x158] sm:$0xff] }
 0x40d   : > { %2258 = vmatmul.f32.gmra.mxu2 %v16685_v25 }
 0x40f   : > { %v11935_v63 = vpop.f32.mrf.mxu3 }
 0x410   : > { %16687 = vst [vmem:[#allocation145_spill] sm:$0xff] %v11935_v63  ;;  %v1855_v26 = vpop.f32.mrf.mxu2  ;;  %v11937_v2 = vpop.f32.mrf.mxu0 }
 0x411   : > { %16688 = vst [vmem:[#allocation242_spill] sm:$0xff] %v11937_v2  ;;  %v11939_v35 = vadd.f32 %v1855_v26, %v1743_v58  ;;  %v11941_v7 = vpop.f32.mrf.mxu1  ;;  %v620_v26 = vld [vmem:[#allocation5 + $0x6b0] sm:$0xff]  ;;  %v1963_v58 = vadd.f32 %v1962_v11, %v11423_v45 }
 0x412   : > { %16690 = vst [vmem:[#allocation264_spill] sm:$0xff] %v11941_v7  ;;  %2993 = vmatpush.msrb.mxu3 %v620_v26  ;;  %v16695_v2 = vld [vmem:[#allocation237_spill] sm:$0xff] }
 0x413   : > { %16689 = vst [vmem:[#allocation249_spill] sm:$0xff] %v11939_v35  ;;  %2368 = vmatmul.f32.gmra.mxu0 %v9287_v14  ;;  %2927 = vmatmul.f32.gmra.mxu1 %v9288_v38  ;;  %v9289_v35 = vld [vmem:[%s9835_s6 + $0x170] sm:$0xff]  ;;  %v9290_v14 = vld [vmem:[%s9835_s6 + $0x138] sm:$0xff]  ;;  %v2073_v7 = vadd.f32 %v16695_v2, %v1960_v3  ;;  %v9291_v2 = vld [vmem:[%s9835_s6 + $0x188] sm:$0xff] }
 0x414   : > { %2588 = vmatmul.f32.gmra.mxu3 %v9288_v38  ;;  %v16694_v38 = vld [vmem:[#allocation248_spill] sm:$0xff] }
 0x415   : > { %2261 = vmatmul.f32.gmra.mxu2 %v16691_v1  ;;  %v579_v1 = vld [vmem:[#allocation5 + $0x568] sm:$0xff] }
 0x416   : > { %2659 = vmatpush.msrb.mxu2 %v579_v1 }
 0x417   : > { %v2185_v23 = vpop.f32.mrf.mxu3 }
 0x418   : > { %v11946_v48 = vpop.f32.mrf.mxu2  ;;  %v11948_v25 = vpop.f32.mrf.mxu0  ;;  %v11959_v51 = vadd.f32 %v2185_v23, %v2073_v7  ;;  %v683_v23 = vld [vmem:[#allocation5 + $0x8a8] sm:$0xff] }
 0x419   : > { %16692 = vst [vmem:[#allocation245_spill] sm:$0xff] %v11948_v25  ;;  %v11950_v28 = vpop.f32.mrf.mxu1  ;;  %v16696_v25 = vld [vmem:[#allocation241_spill] sm:$0xff]  ;;  %2775 = vmatpush.msrb.mxu0 %v683_v23 }
 0x41a   : > { %16693 = vst [vmem:[#allocation265_spill] sm:$0xff] %v11950_v28  ;;  %v2076_v28 = vadd.f32 %v16696_v25, %v1963_v58  ;;  %v9292_v25 = vld [vmem:[%s9835_s6 + $0x150] sm:$0xff] }
 0x41b   : > { %2371 = vmatmul.f32.gmra.mxu0 %v9289_v35  ;;  %2930 = vmatmul.f32.gmra.mxu1 %v9290_v14 }
 0x41c   : > { %2591 = vmatmul.f32.gmra.mxu3 %v9290_v14  ;;  %v612_v14 = vld [vmem:[#allocation5 + $0x670] sm:$0xff] }
 0x41d   : > { %2264 = vmatmul.f32.gmra.mxu2 %v16694_v38  ;;  %v16699_v38 = vld [vmem:[#allocation251_spill] sm:$0xff]  ;;  %2994 = vmatpush.msrb.mxu3 %v612_v14 }
 0x41e   : > { %v11970_v21 = vperm.slane %v16699_v38, 4 }
 0x41f   : > { %v2188_v63 = vpop.f32.mrf.mxu3 }
 0x420   : > { %v11961_v11 = vadd.f32 %v2188_v63, %v2076_v28  ;;  %v2217_v26 = vpop.f32.mrf.mxu2  ;;  %v11963_v35 = vpop.f32.mrf.mxu0  ;;  %v16700_v63 = vld [vmem:[#allocation252_spill] sm:$0xff] }
 0x421   : > { %v11965_v43 = vpop.f32.mrf.mxu1  ;;  %v2218_v7 = vadd.f32 %v2217_v26, %v11970_v21 }
 0x422   : > { %16697 = vst [vmem:[#allocation248_spill] sm:$0xff] %v11961_v11  ;;  %v9293_v11 = vld [vmem:[%s9835_s6 + $0x1a0] sm:$0xff] }
 0x423   : > { %16698 = vst [vmem:[#allocation237_spill] sm:$0xff] %v11965_v43  ;;  %2374 = vmatmul.f32.gmra.mxu0 %v9291_v2  ;;  %2933 = vmatmul.f32.gmra.mxu1 %v9292_v25  ;;  %v16702_v2 = vld [vmem:[#allocation254_spill] sm:$0xff] }
 0x424   : > { %2594 = vmatmul.f32.gmra.mxu3 %v9292_v25  ;;  %v9294_v25 = vld [vmem:[%s9835_s6 + $0x168] sm:$0xff] }
 0x425   : > { %2267 = vmatmul.f32.gmra.mxu2 %v16700_v63  ;;  %v16703_v63 = vld [vmem:[#allocation255_spill] sm:$0xff] }
 0x427   : > { %v11976_v28 = vpop.f32.mrf.mxu3 }
 0x428   : > { %v2220_v3 = vpop.f32.mrf.mxu2  ;;  %v2330_v58 = vpop.f32.mrf.mxu0 }
 0x429   : > { %v2331_v1 = vadd.f32 %v2330_v58, %v2218_v7  ;;  %v11978_v38 = vpop.f32.mrf.mxu1  ;;  %v2221_v26 = vadd.f32 %v2220_v3, %v11970_v21  ;;  %v571_v7 = vld [vmem:[#allocation5 + $0x528] sm:$0xff]  ;;  %v16705_v3 = vpack.i.bf16 %v11564_v39, %v11566_v55  ;;  %v9298_v39 = vld [vmem:[%s9835_s6 + $0x198] sm:$0xff] }
 0x42a   : > { %16701 = vst [vmem:[#allocation241_spill] sm:$0xff] %v11978_v38  ;;  %2660 = vmatpush.msrb.mxu2 %v571_v7  ;;  %v9295_v38 = vld [vmem:[%s9835_s6 + $0x1b8] sm:$0xff]  ;;  %v16707_v55 = vld [vmem:[#allocation152_spill] sm:$0xff] }
 0x42b   : > { %v2444_v43 = vadd.f32 %v16702_v2, %v2331_v1  ;;  %2377 = vmatmul.f32.gmra.mxu0 %v9293_v11  ;;  %2936 = vmatmul.f32.gmra.mxu1 %v9294_v25 }
 0x42c   : > { %2597 = vmatmul.f32.gmra.mxu3 %v9294_v25  ;;  %v9296_v25 = vld [vmem:[%s9835_s6 + $0x180] sm:$0xff] }
 0x42d   : > { %2270 = vmatmul.f32.gmra.mxu2 %v16703_v63  ;;  %3569 = vrot.lane.b32.xlu2 %v2444_v43, %s9677_s24 }
 0x42f   : > { %v11986_v23 = vpop.f32.mrf.mxu3 }
 0x430   : > { %v2223_v14 = vpop.f32.mrf.mxu2  ;;  %v2333_v58 = vpop.f32.mrf.mxu0 }
 0x431   : > { %v2334_v1 = vadd.f32 %v2333_v58, %v2221_v26  ;;  %v11988_v2 = vpop.f32.mrf.mxu1  ;;  %v2224_v43 = vadd.f32 %v2223_v14, %v11970_v21  ;;  %v604_v58 = vld [vmem:[#allocation5 + $0x630] sm:$0xff]  ;;  %v2215_v14 = vadd.f32 %v11946_v48, %v11970_v21 }
 0x432   : > { %16704 = vst [vmem:[#allocation251_spill] sm:$0xff] %v11988_v2  ;;  %2995 = vmatpush.msrb.mxu3 %v604_v58  ;;  %v16710_v58 = vld [vmem:[#allocation250_spill] sm:$0xff] }
 0x433   : > { %v2447_v11 = vadd.f32 %v11455_v29, %v2334_v1  ;;  %2380 = vmatmul.f32.gmra.mxu0 %v9295_v38  ;;  %2939 = vmatmul.f32.gmra.mxu1 %v9296_v25  ;;  %v9297_v1 = vld [vmem:[%s9835_s6 + $0x1d0] sm:$0xff] }
 0x434   : > { %2600 = vmatmul.f32.gmra.mxu3 %v9296_v25 }
 0x435   : > { %2273 = vmatmul.f32.gmra.mxu2 %v11460_v22  ;;  %8910 = vrot.lane.b32.xlu2 %v16705_v3, %s9677_s24 }
 0x436   : > { %3666 = vrot.lane.b32.xlu0 %v2447_v11, %s9677_s24  ;;  %v16708_v11 = vld [vmem:[#allocation253_spill] sm:$0xff] }
 0x437   : > { %v12000_v26 = vpop.f32.mrf.mxu3  ;;  %v8914_v25 = vpack.i.bf16 %v16708_v11, %v16707_v55  ;;  %v9299_v55 = vld [vmem:[%s9835_s6 + $0x1e8] sm:$0xff]  ;;  %v9301_v11 = vld [vmem:[%s9835_s6 + $0x200] sm:$0xff] }
 0x438   : > { %v2226_v29 = vpop.f32.mrf.mxu2  ;;  %v2336_v38 = vpop.f32.mrf.mxu0 }
 0x439   : > { %v2337_v63 = vadd.f32 %v2336_v38, %v2224_v43  ;;  %v12002_v7 = vpop.f32.mrf.mxu1  ;;  %v563_v43 = vld [vmem:[#allocation5 + $0x4e8] sm:$0xff] }
 0x43a   : > { %16706 = vst [vmem:[#allocation252_spill] sm:$0xff] %v12002_v7  ;;  %2661 = vmatpush.msrb.mxu2 %v563_v43 }
 0x43b   : > { %v2450_v22 = vadd.f32 %v11489_v54, %v2337_v63  ;;  %2383 = vmatmul.f32.gmra.mxu0 %v9297_v1  ;;  %2942 = vmatmul.f32.gmra.mxu1 %v9298_v39  ;;  %v2328_v54 = vadd.f32 %v11963_v35, %v2215_v14  ;;  %v675_v35 = vld [vmem:[#allocation5 + $0x868] sm:$0xff] }
 0x43c   : > { %2603 = vmatmul.f32.gmra.mxu3 %v9298_v39  ;;  %v2227_v39 = vadd.f32 %v2226_v29, %v11970_v21  ;;  %2776 = vmatpush.msrb.mxu0 %v675_v35  ;;  %v16712_v35 = vld [vmem:[#allocation178_spill] sm:$0xff] }
 0x43d   : > { %2276 = vmatmul.f32.gmra.mxu2 %v11495_v27  ;;  %3672 = vrot.lane.b32.xlu1 %v2450_v22, %s9677_s24  ;;  %v2441_v1 = vadd.f32 %v16710_v58, %v2328_v54  ;;  %v9300_v27 = vld [vmem:[%s9835_s6 + $0x1b0] sm:$0xff] }
 0x43e   : > { %8915 = vrot.lane.b32.xlu2 %v8914_v25, %s9677_s24 }
 0x43f   : > { %v12015_v48 = vpop.f32.mrf.mxu3 }
 0x440   : > { %v2229_v3 = vpop.f32.mrf.mxu2  ;;  %v2339_v38 = vpop.f32.mrf.mxu0 }
 0x441   : > { %v12017_v63 = vpop.f32.mrf.mxu1  ;;  %v2230_v22 = vadd.f32 %v2229_v3, %v11970_v21  ;;  %v2340_v14 = vadd.f32 %v2339_v38, %v2227_v39  ;;  %v596_v3 = vld [vmem:[#allocation5 + $0x5f0] sm:$0xff]  ;;  %v9302_v38 = vld [vmem:[%s9835_s6 + $0x1c8] sm:$0xff]  ;;  %v653_v39 = vld [vmem:[#allocation5 + $0x7b8] sm:$0xff] }
 0x442   : > { %16709 = vst [vmem:[#allocation254_spill] sm:$0xff] %v12017_v63  ;;  %2996 = vmatpush.msrb.mxu3 %v596_v3  ;;  %v1894_v3 = vadd.f32 %v11516_v12, %v11423_v45  ;;  %v613_v12 = vld [vmem:[#allocation5 + $0x678] sm:$0xff] }
 0x443   : > { %2386 = vmatmul.f32.gmra.mxu0 %v9299_v55  ;;  %2945 = vmatmul.f32.gmra.mxu1 %v9300_v27  ;;  %v1903_v55 = vadd.f32 %v11594_v16, %v11423_v45 }
 0x444   : > { %2606 = vmatmul.f32.gmra.mxu3 %v9300_v27  ;;  %v2453_v27 = vadd.f32 %v11520_v6, %v2340_v14 }
 0x445   : > { %2279 = vmatmul.f32.gmra.mxu2 %v11524_v24  ;;  %3563 = vrot.lane.b32.xlu1 %v2441_v1, %s9677_s24  ;;  %v661_v24 = vld [vmem:[#allocation5 + $0x7f8] sm:$0xff]  ;;  %v2016_v63 = vadd.f32 %v16712_v35, %v1903_v55 }
 0x446   : > { %3327 = vmatpush.msrb.mxu1 %v661_v24  ;;  %v629_v24 = vld [vmem:[#allocation5 + $0x6f8] sm:$0xff] }
 0x447   : > { %v12026_v25 = vpop.f32.mrf.mxu3  ;;  %v2129_v6 = vadd.f32 %v11658_v20, %v2016_v63 }
 0x448   : > { %v2232_v43 = vpop.f32.mrf.mxu2  ;;  %v2342_v29 = vpop.f32.mrf.mxu0  ;;  %3328 = vmatpush.msrb.mxu1 %v653_v39 }
 0x449   : > { %v2343_v54 = vadd.f32 %v2342_v29, %v2230_v22  ;;  %v12030_v58 = vpop.f32.mrf.mxu1  ;;  %v2233_v16 = vadd.f32 %v2232_v43, %v11970_v21  ;;  %v555_v22 = vld [vmem:[#allocation5 + $0x4a8] sm:$0xff]  ;;  %v645_v29 = vld [vmem:[#allocation5 + $0x778] sm:$0xff]  ;;  %v8919_v20 = vpack.i.bf16 %v2129_v6, %v11570_v60 }
 0x44a   : > { %16711 = vst [vmem:[#allocation255_spill] sm:$0xff] %v12030_v58  ;;  %2662 = vmatpush.msrb.mxu2 %v555_v22  ;;  %3329 = vmatpush.msrb.mxu1 %v645_v29  ;;  %v637_v43 = vld [vmem:[#allocation5 + $0x738] sm:$0xff]  ;;  %v12470_v60 = vld [vmem:[%s9835_s6 + $0xc8] sm:$0xff] }
 0x44b   : > { %v2456_v1 = vadd.f32 %v11541_v56, %v2343_v54  ;;  %2389 = vmatmul.f32.gmra.mxu0 %v9301_v11  ;;  %2948 = vmatmul.f32.gmra.mxu1 %v9302_v38 }
 0x44c   : > { %2609 = vmatmul.f32.gmra.mxu3 %v9302_v38  ;;  %3330 = vmatpush.msrb.mxu1 %v637_v43  ;;  %v621_v38 = vld [vmem:[#allocation5 + $0x6b8] sm:$0xff] }
 0x44d   : > { %2282 = vmatmul.f32.gmra.mxu2 %v11547_v40  ;;  %3769 = vrot.lane.b32.xlu1 %v2453_v27, %s9677_s24  ;;  %v1900_v40 = vadd.f32 %v11568_v37, %v11423_v45  ;;  %v9303_v27 = vld [vmem:[%s9835_s6 + $0x218] sm:$0xff]  ;;  %v16714_v37 = vld [vmem:[#allocation175_spill] sm:$0xff] }
 0x44e   : > { %3775 = vrot.lane.b32.xlu0 %v2456_v1, %s9677_s24  ;;  %v9304_v1 = vld [vmem:[%s9835_s6 + $0x1e0] sm:$0xff]  ;;  %3331 = vmatpush.msrb.mxu1 %v629_v24  ;;  %v597_v24 = vld [vmem:[#allocation5 + $0x5f8] sm:$0xff] }
 0x44f   : > { %v12042_v56 = vpop.f32.mrf.mxu3  ;;  %v2013_v39 = vadd.f32 %v16714_v37, %v1900_v40  ;;  %v589_v37 = vld [vmem:[#allocation5 + $0x5b8] sm:$0xff] }
 0x450   : > { %v2235_v11 = vpop.f32.mrf.mxu2  ;;  %v2345_v14 = vpop.f32.mrf.mxu0  ;;  %3332 = vmatpush.msrb.mxu1 %v621_v38 }
 0x451   : > { %v2346_v55 = vadd.f32 %v2345_v14, %v2233_v16  ;;  %v12046_v54 = vpop.f32.mrf.mxu1  ;;  %v2236_v35 = vadd.f32 %v2235_v11, %v11970_v21  ;;  %v16715_v16 = vld [vmem:[#allocation169_spill] sm:$0xff] }
 0x452   : > { %16713 = vst [vmem:[#allocation250_spill] sm:$0xff] %v12046_v54  ;;  %v2007_v22 = vadd.f32 %v16715_v16, %v1894_v3  ;;  %3333 = vmatpush.msrb.mxu1 %v613_v12  ;;  %v1897_v3 = vadd.f32 %v11537_v10, %v11423_v45  ;;  %v16718_v10 = vld [vmem:[#allocation160_spill] sm:$0xff]  ;;  %v16720_v12 = vld [vmem:[#allocation181_spill] sm:$0xff] }
 0x453   : > { %v2459_v63 = vadd.f32 %v11572_v19, %v2346_v55  ;;  %2392 = vmatmul.f32.gmra.mxu0 %v9303_v27  ;;  %2951 = vmatmul.f32.gmra.mxu1 %v9304_v1  ;;  %v2126_v19 = vadd.f32 %v11637_v13, %v2013_v39  ;;  %v588_v55 = vld [vmem:[#allocation5 + $0x5b0] sm:$0xff]  ;;  %v1906_v13 = vadd.f32 %v11618_v50, %v11423_v45  ;;  %v9306_v27 = vld [vmem:[%s9835_s6 + $0x1f8] sm:$0xff]  ;;  %v547_v50 = vld [vmem:[#allocation5 + $0x468] sm:$0xff] }
 0x454   : > { %2612 = vmatmul.f32.gmra.mxu3 %v9304_v1  ;;  %v2120_v6 = vadd.f32 %v11592_v47, %v2007_v22  ;;  %v16717_v1 = vld [vmem:[#allocation70_spill] sm:$0xff]  ;;  %v16719_v39 = vld [vmem:[#allocation172_spill] sm:$0xff]  ;;  %2663 = vmatpush.msrb.mxu2 %v547_v50 }
 0x455   : > { %2285 = vmatmul.f32.gmra.mxu2 %v11577_v41  ;;  %8920 = vrot.lane.b32.xlu1 %v8919_v20, %s9677_s24  ;;  %v605_v41 = vld [vmem:[#allocation5 + $0x638] sm:$0xff]  ;;  %v8929_v47 = vpack.i.bf16 %v2126_v19, %v11539_v4  ;;  %v2019_v16 = vadd.f32 %v16720_v12, %v1906_v13  ;;  %v16721_v19 = vld [vmem:[#allocation159_spill] sm:$0xff]  ;;  %v724_v12 = vld [vmem:[#allocation5 + $0x9f0] sm:$0xff] }
 0x456   : > { %3872 = vrot.lane.b32.xlu2 %v2459_v63, %s9677_s24  ;;  %2997 = vmatpush.msrb.mxu3 %v588_v55  ;;  %v9305_v63 = vld [vmem:[%s9835_s6 + $0x230] sm:$0xff]  ;;  %v8934_v38 = vpack.i.bf16 %v2120_v6, %v16717_v1  ;;  %v16723_v13 = vld [vmem:[#allocation163_spill] sm:$0xff]  ;;  %v469_v1 = vld [vmem:[#allocation5 + $0x1f8] sm:$0xff] }
 0x457   : > { %v12061_v29 = vpop.f32.mrf.mxu3  ;;  %3334 = vmatpush.msrb.mxu1 %v605_v41  ;;  %v539_v50 = vld [vmem:[#allocation5 + $0x428] sm:$0xff] }
 0x458   : > { %v2238_v14 = vpop.f32.mrf.mxu2  ;;  %v2348_v11 = vpop.f32.mrf.mxu0  ;;  %2664 = vmatpush.msrb.mxu2 %v539_v50  ;;  %v9311_v50 = vld [vmem:[%s9835_s6 + $0x228] sm:$0xff] }
 0x459   : > { %v2349_v43 = vadd.f32 %v2348_v11, %v2236_v35  ;;  %v12064_v40 = vpop.f32.mrf.mxu1  ;;  %3335 = vmatpush.msrb.mxu1 %v597_v24  ;;  %v2010_v35 = vadd.f32 %v16719_v39, %v1897_v3  ;;  %v2132_v11 = vadd.f32 %v11679_v36, %v2019_v16  ;;  %v573_v3 = vld [vmem:[#allocation5 + $0x538] sm:$0xff]  ;;  %v1909_v24 = vadd.f32 %v16723_v13, %v11423_v45  ;;  %v667_v39 = vld [vmem:[#allocation5 + $0x828] sm:$0xff] }
 0x45a   : > { %16716 = vst [vmem:[#allocation178_spill] sm:$0xff] %v12064_v40  ;;  %v2239_v36 = vadd.f32 %v2238_v14, %v11970_v21  ;;  %2777 = vmatpush.msrb.mxu0 %v667_v39  ;;  %v533_v16 = vld [vmem:[#allocation5 + $0x3f8] sm:$0xff]  ;;  %3109 = vmatpush.msra.mxu2 %v724_v12 }
 0x45b   : > { %v2462_v20 = vadd.f32 %v11598_v31, %v2349_v43  ;;  %2395 = vmatmul.f32.gmra.mxu0 %v9305_v63  ;;  %2954 = vmatmul.f32.gmra.mxu1 %v9306_v27  ;;  %v581_v31 = vld [vmem:[#allocation5 + $0x578] sm:$0xff]  ;;  %v2123_v6 = vadd.f32 %v16721_v19, %v2010_v35  ;;  %v16724_v63 = vld [vmem:[#allocation156_spill] sm:$0xff] }
 0x45c   : > { %2615 = vmatmul.f32.gmra.mxu3 %v9306_v27  ;;  %3336 = vmatpush.msrb.mxu1 %v589_v37  ;;  %v12095_v35 = vld [vmem:[%s9835_s6 + $0x270] sm:$0xff]  ;;  %v541_v12 = vld [vmem:[#allocation5 + $0x438] sm:$0xff] }
 0x45d   : > { %2288 = vmatmul.f32.gmra.mxu2 %v16718_v10  ;;  %8930 = vrot.lane.b32.xlu1 %v8929_v47, %s9677_s24  ;;  %v9307_v47 = vld [vmem:[%s9835_s6 + $0x248] sm:$0xff]  ;;  %v8924_v27 = vpack.i.bf16 %v2123_v6, %v16724_v63  ;;  %v565_v10 = vld [vmem:[#allocation5 + $0x4f8] sm:$0xff] }
 0x45e   : > { %8935 = vrot.lane.b32.xlu2 %v8934_v38, %s9677_s24  ;;  %3878 = vrot.lane.b32.xlu0 %v2462_v20, %s9677_s24  ;;  %v9308_v20 = vld [vmem:[%s9835_s6 + $0x210] sm:$0xff]  ;;  %v557_v6 = vld [vmem:[#allocation5 + $0x4b8] sm:$0xff] }
 0x45f   : > { %v12081_v22 = vpop.f32.mrf.mxu3  ;;  %3337 = vmatpush.msrb.mxu1 %v581_v31  ;;  %v16725_v38 = vld [vmem:[#allocation73_spill] sm:$0xff]  ;;  %v16726_v31 = vld [vmem:[#allocation184_spill] sm:$0xff]  ;;  %3214 = vmatpush.msra.mxu0 %v533_v16 }
 0x460   : > { %v2241_v41 = vpop.f32.mrf.mxu2  ;;  %v2351_v43 = vpop.f32.mrf.mxu0  ;;  %v8944_v37 = vpack.i.bf16 %v2132_v11, %v16725_v38  ;;  %v2022_v19 = vadd.f32 %v16726_v31, %v1909_v24  ;;  %v716_v11 = vld [vmem:[#allocation5 + $0x9b0] sm:$0xff]  ;;  %v16731_v38 = vld [vmem:[#allocation82_spill] sm:$0xff] }
 0x461   : > { %v12085_v55 = vpop.f32.mrf.mxu1  ;;  %3338 = vmatpush.msrb.mxu1 %v573_v3  ;;  %v525_v3 = vld [vmem:[#allocation5 + $0x3b8] sm:$0xff]  ;;  %3110 = vmatpush.msra.mxu2 %v716_v11  ;;  %v16728_v31 = vld [vmem:[#allocation76_spill] sm:$0xff] }
 0x462   : > { %16722 = vst [vmem:[#allocation175_spill] sm:$0xff] %v12085_v55  ;;  %v2135_v13 = vadd.f32 %v11695_v57, %v2022_v19  ;;  %3215 = vmatpush.msra.mxu0 %v525_v3  ;;  %v708_v16 = vld [vmem:[#allocation5 + $0x970] sm:$0xff]  ;;  %v517_v11 = vld [vmem:[#allocation5 + $0x378] sm:$0xff] }
 0x463   : > { %2398 = vmatmul.f32.gmra.mxu0 %v9307_v47  ;;  %2957 = vmatmul.f32.gmra.mxu1 %v9308_v20  ;;  %v2352_v47 = vadd.f32 %v2351_v43, %v2239_v36  ;;  %v2242_v43 = vadd.f32 %v2241_v41, %v11970_v21  ;;  %v16729_v36 = vld [vmem:[#allocation79_spill] sm:$0xff]  ;;  %v700_v3 = vld [vmem:[#allocation5 + $0x930] sm:$0xff]  ;;  %v9317_v63 = vld [vmem:[%s9835_s6 + $0x258] sm:$0xff] }
 0x464   : > { %2618 = vmatmul.f32.gmra.mxu3 %v9308_v20  ;;  %3339 = vmatpush.msrb.mxu1 %v565_v10  ;;  %v9310_v10 = vld [vmem:[%s9835_s6 + $0x260] sm:$0xff]  ;;  %v8939_v57 = vpack.i.bf16 %v2135_v13, %v16728_v31  ;;  %v509_v13 = vld [vmem:[#allocation5 + $0x338] sm:$0xff]  ;;  %v684_v31 = vld [vmem:[#allocation5 + $0x8b0] sm:$0xff] }
 0x465   : > { %2291 = vmatmul.f32.gmra.mxu2 %v12095_v35  ;;  %v2465_v19 = vadd.f32 %v16729_v36, %v2352_v47  ;;  %3216 = vmatpush.msra.mxu0 %v517_v11  ;;  %v501_v36 = vld [vmem:[#allocation5 + $0x2f8] sm:$0xff]  ;;  %v676_v11 = vld [vmem:[#allocation5 + $0x870] sm:$0xff] }
 0x466   : > { %8945 = vrot.lane.b32.xlu2 %v8944_v37, %s9677_s24  ;;  %8925 = vrot.lane.b32.xlu0 %v8924_v27, %s9677_s24  ;;  %v549_v27 = vld [vmem:[#allocation5 + $0x478] sm:$0xff]  ;;  %v580_v37 = vld [vmem:[#allocation5 + $0x570] sm:$0xff] }
 0x467   : > { %v12101_v14 = vpop.f32.mrf.mxu3  ;;  %3340 = vmatpush.msrb.mxu1 %v557_v6  ;;  %v12114_v6 = vld [vmem:[%s9835_s6 + $0x288] sm:$0xff]  ;;  %2998 = vmatpush.msrb.mxu3 %v580_v37  ;;  %v692_v37 = vld [vmem:[#allocation5 + $0x8f0] sm:$0xff] }
 0x468   : > { %v12104_v20 = vpop.f32.mrf.mxu2  ;;  %v2354_v39 = vpop.f32.mrf.mxu0  ;;  %3111 = vmatpush.msra.mxu2 %v708_v16  ;;  %3217 = vmatpush.msra.mxu0 %v509_v13  ;;  %v12128_v16 = vld [vmem:[%s9835_s6 + $0x2a0] sm:$0xff] }
 0x469   : > { %v12106_v24 = vpop.f32.mrf.mxu1  ;;  %3341 = vmatpush.msrb.mxu1 %v549_v27  ;;  %v2355_v47 = vadd.f32 %v2354_v39, %v2242_v43  ;;  %v493_v39 = vld [vmem:[#allocation5 + $0x2b8] sm:$0xff] }
 0x46a   : > { %16727 = vst [vmem:[#allocation169_spill] sm:$0xff] %v12106_v24  ;;  %3112 = vmatpush.msra.mxu2 %v700_v3  ;;  %3218 = vmatpush.msra.mxu0 %v501_v36  ;;  %v485_v3 = vld [vmem:[#allocation5 + $0x278] sm:$0xff] }
 0x46b   : > { %2401 = vmatmul.f32.gmra.mxu0 %v9310_v10  ;;  %2960 = vmatmul.f32.gmra.mxu1 %v9311_v50  ;;  %v477_v36 = vld [vmem:[#allocation5 + $0x238] sm:$0xff] }
 0x46c   : > { %2621 = vmatmul.f32.gmra.mxu3 %v9311_v50  ;;  %3342 = vmatpush.msrb.mxu1 %v541_v12  ;;  %v2468_v12 = vadd.f32 %v16731_v38, %v2355_v47  ;;  %v668_v38 = vld [vmem:[#allocation5 + $0x830] sm:$0xff] }
 0x46d   : > { %2294 = vmatmul.f32.gmra.mxu2 %v12114_v6  ;;  %3219 = vmatpush.msra.mxu0 %v493_v39  ;;  %v9316_v39 = vld [vmem:[%s9835_s6 + $0x290] sm:$0xff] }
 0x46e   : > { %3975 = vrot.lane.b32.xlu2 %v2465_v19, %s9677_s24  ;;  %8940 = vrot.lane.b32.xlu0 %v8939_v57, %s9677_s24  ;;  %v9313_v19 = vld [vmem:[%s9835_s6 + $0x278] sm:$0xff]  ;;  %v9314_v57 = vld [vmem:[%s9835_s6 + $0x240] sm:$0xff] }
 0x46f   : > { %v12119_v41 = vpop.f32.mrf.mxu3  ;;  %3113 = vmatpush.msra.mxu2 %v692_v37  ;;  %3220 = vmatpush.msra.mxu0 %v485_v3  ;;  %v461_v3 = vld [vmem:[#allocation5 + $0x1b8] sm:$0xff] }
 0x470   : > { %v2247_v27 = vpop.f32.mrf.mxu2  ;;  %v2357_v10 = vpop.f32.mrf.mxu0 }
 0x471   : > { %v12121_v50 = vpop.f32.mrf.mxu1  ;;  %v2248_v43 = vadd.f32 %v2247_v27, %v11970_v21  ;;  %3114 = vmatpush.msra.mxu2 %v684_v31  ;;  %v2245_v31 = vadd.f32 %v12104_v20, %v11970_v21  ;;  %3221 = vmatpush.msra.mxu0 %v477_v36  ;;  %v12151_v20 = vpop.permute.xlu2 %8900 }
 0x472   : > { %16730 = vst [vmem:[#allocation160_spill] sm:$0xff] %v12121_v50 }
 0x473   : > { %2404 = vmatmul.f32.gmra.mxu0 %v9313_v19  ;;  %2963 = vmatmul.f32.gmra.mxu1 %v9314_v57 }
 0x474   : > { %2624 = vmatmul.f32.gmra.mxu3 %v9314_v57  ;;  %3115 = vmatpush.msra.mxu2 %v676_v11  ;;  %v572_v57 = vld [vmem:[#allocation5 + $0x530] sm:$0xff]  ;;  %v12143_v11 = vld [vmem:[%s9835_s6 + $0x2b8] sm:$0xff] }
 0x475   : > { %2297 = vmatmul.f32.gmra.mxu2 %v12128_v16  ;;  %2999 = vmatpush.msrb.mxu3 %v572_v57 }
 0x476   : > { %3981 = vrot.lane.b32.xlu0 %v2468_v12, %s9677_s24  ;;  %3116 = vmatpush.msra.mxu2 %v668_v38  ;;  %v564_v38 = vld [vmem:[#allocation5 + $0x4f0] sm:$0xff] }
 0x477   : > { %v12132_v13 = vpop.f32.mrf.mxu3  ;;  %3222 = vmatpush.msra.mxu0 %v469_v1  ;;  %3000 = vmatpush.msrb.mxu3 %v564_v38 }
 0x478   : > { %v2250_v47 = vpop.f32.mrf.mxu2  ;;  %v2360_v37 = vpop.f32.mrf.mxu0 }
 0x479   : > { %v2361_v27 = vadd.f32 %v2360_v37, %v2248_v43  ;;  %v12134_v19 = vpop.f32.mrf.mxu1  ;;  %v2251_v43 = vadd.f32 %v2250_v47, %v11970_v21  ;;  %v453_v47 = vld [vmem:[#allocation5 + $0x178] sm:$0xff]  ;;  %3223 = vmatpush.msra.mxu0 %v461_v3 }
 0x47a   : > { %16732 = vst [vmem:[#allocation172_spill] sm:$0xff] %v12134_v19  ;;  %v556_v19 = vld [vmem:[#allocation5 + $0x4b0] sm:$0xff] }
 0x47b   : > { %v2474_v12 = vadd.f32 %v11683_v44, %v2361_v27  ;;  %2407 = vmatmul.f32.gmra.mxu0 %v9316_v39  ;;  %2966 = vmatmul.f32.gmra.mxu1 %v9317_v63  ;;  %v16733_v44 = vpack.i.bf16 %v11732_v46, %v11734_v59  ;;  %v445_v39 = vld [vmem:[#allocation5 + $0x138] sm:$0xff]  ;;  %v1927_v46 = vadd.f32 %v11755_v5, %v11423_v45  ;;  %v16735_v59 = vld [vmem:[#allocation88_spill] sm:$0xff] }
 0x47c   : > { %2627 = vmatmul.f32.gmra.mxu3 %v9317_v63  ;;  %v2358_v63 = vadd.f32 %v2357_v10, %v2245_v31  ;;  %3224 = vmatpush.msra.mxu0 %v453_v47  ;;  %v9319_v31 = vld [vmem:[%s9835_s6 + $0x2a8] sm:$0xff]  ;;  %v16736_v3 = vld [vmem:[#allocation85_spill] sm:$0xff] }
 0x47d   : > { %2300 = vmatmul.f32.gmra.mxu2 %v12143_v11  ;;  %4084 = vrot.lane.b32.xlu1 %v2474_v12, %s9677_s24  ;;  %v12168_v47 = vld [vmem:[%s9835_s6 + $0x2d0] sm:$0xff] }
 0x47e   : > { %8950 = vrot.lane.b32.xlu0 %v16733_v44, %s9677_s24  ;;  %3001 = vmatpush.msrb.mxu3 %v556_v19  ;;  %v2471_v1 = vadd.f32 %v16735_v59, %v2358_v63  ;;  %v437_v44 = vld [vmem:[#allocation5 + $0xf8] sm:$0xff] }
 0x47f   : > { %v12153_v37 = vpop.f32.mrf.mxu3  ;;  %3225 = vmatpush.msra.mxu0 %v445_v39  ;;  %v16738_v19 = vld [vmem:[#allocation197_spill] sm:$0xff] }
 0x480   : > { %v2253_v27 = vpop.f32.mrf.mxu2  ;;  %v2363_v36 = vpop.f32.mrf.mxu0  ;;  %v2040_v63 = vadd.f32 %v16738_v19, %v1927_v46  ;;  %v1924_v19 = vadd.f32 %v11736_v17, %v11423_v45 }
 0x481   : > { %v2364_v57 = vadd.f32 %v2363_v36, %v2251_v43  ;;  %v12155_v12 = vpop.f32.mrf.mxu1  ;;  %v16737_v43 = vld [vmem:[#allocation166_spill] sm:$0xff]  ;;  %v548_v36 = vld [vmem:[#allocation5 + $0x470] sm:$0xff]  ;;  %v2254_v5 = vadd.f32 %v2253_v27, %v11970_v21  ;;  %3226 = vmatpush.msra.mxu0 %v437_v44 }
 0x482   : > { %16734 = vst [vmem:[#allocation181_spill] sm:$0xff] %v12155_v12  ;;  %v8954_v38 = vpack.i.bf16 %v16737_v43, %v16736_v3  ;;  %3002 = vmatpush.msrb.mxu3 %v548_v36  ;;  %v725_v27 = vld [vmem:[#allocation5 + $0x9f8] sm:$0xff]  ;;  %v9321_v36 = vld [vmem:[%s9835_s6 + $0x2c0] sm:$0xff] }
 0x483   : > { %v2477_v10 = vadd.f32 %v11701_v9, %v2364_v57  ;;  %2410 = vmatmul.f32.gmra.mxu0 %v9319_v31  ;;  %2969 = vmatmul.f32.gmra.mxu1 %v12095_v35  ;;  %v12172_v9 = vpop.permute.xlu0 %8890  ;;  %v540_v57 = vld [vmem:[#allocation5 + $0x430] sm:$0xff]  ;;  %v16751_v43 = vld [vmem:[#allocation103_spill] sm:$0xff] }
 0x484   : > { %2630 = vmatmul.f32.gmra.mxu3 %v12095_v35  ;;  %v429_v35 = vld [vmem:[#allocation5 + $0xb8] sm:$0xff] }
 0x485   : > { %2303 = vmatmul.f32.gmra.mxu2 %v12168_v47  ;;  %4078 = vrot.lane.b32.xlu1 %v2471_v1, %s9677_s24  ;;  %v2153_v1 = vadd.f32 %v11797_v0, %v2040_v63  ;;  %v413_v0 = vld [vmem:[#allocation5 + $0x38] sm:$0xff] }
 0x486   : > { %4181 = vrot.lane.b32.xlu2 %v2477_v10, %s9677_s24  ;;  %8955 = vrot.lane.b32.xlu0 %v8954_v38, %s9677_s24  ;;  %v421_v38 = vld [vmem:[#allocation5 + $0x78] sm:$0xff] }
 0x487   : > { %v12177_v39 = vpop.f32.mrf.mxu3  ;;  %v12179_v59 = vpop.permute.xlu2 %3569  ;;  %3227 = vmatpush.msra.mxu0 %v429_v35  ;;  %3003 = vmatpush.msrb.mxu3 %v540_v57  ;;  %v8959_v63 = vpack.i.bf16 %v2153_v1, %v11738_v61  ;;  %v12195_v35 = vld [vmem:[%s9835_s6 + $0x2e8] sm:$0xff]  ;;  %v709_v57 = vld [vmem:[#allocation5 + $0x978] sm:$0xff] }
 0x488   : > { %v2256_v31 = vpop.f32.mrf.mxu2  ;;  %v2366_v3 = vpop.f32.mrf.mxu0  ;;  %8490 = vmatpush.xpose.msk.msra.mxu1 %vm744_vm0, %v12179_v59  ;;  %v16785_v61 = vld [vmem:[#allocation136_spill] sm:$0xff] }
 0x489   : > { %v2367_v46 = vadd.f32 %v2366_v3, %v2254_v5  ;;  %v12184_v10 = vpop.f32.mrf.mxu1  ;;  %3448 = vmatpush.msra.mxu3 %v725_v27  ;;  %3228 = vmatpush.msra.mxu0 %v421_v38  ;;  %v717_v3 = vld [vmem:[#allocation5 + $0x9b8] sm:$0xff]  ;;  %v2257_v5 = vadd.f32 %v2256_v31, %v11970_v21  ;;  %v16098_v38 = vunpack.i.h.bf16 %v12172_v9 }
 0x48a   : > { %16739 = vst [vmem:[#allocation159_spill] sm:$0xff] %v12184_v10 }
 0x48b   : > { %v2480_v44 = vadd.f32 %v11716_v18, %v2367_v46  ;;  %2413 = vmatmul.f32.gmra.mxu0 %v9321_v36  ;;  %2972 = vmatmul.f32.gmra.mxu1 %v12114_v6  ;;  %v16740_v18 = vld [vmem:[#allocation195_spill] sm:$0xff]  ;;  %v1918_v46 = vadd.f32 %v11697_v8, %v11423_v45  ;;  %v701_v8 = vld [vmem:[#allocation5 + $0x938] sm:$0xff] }
 0x48c   : > { %2633 = vmatmul.f32.gmra.mxu3 %v12114_v6  ;;  %v2037_v17 = vadd.f32 %v16740_v18, %v1924_v19  ;;  %3229 = vmatpush.msra.mxu0 %v413_v0  ;;  %v8892_v19 = vunpack.i.l.bf16 %v12172_v9  ;;  %v12210_v0 = vpop.permute.xlu0 %8895  ;;  %v16742_v18 = vld [vmem:[#allocation191_spill] sm:$0xff] }
 0x48d   : > { %2306 = vmatmul.f32.gmra.mxu2 %v12195_v35  ;;  %4187 = vrot.lane.b32.xlu1 %v2480_v44, %s9677_s24 }
 0x48e   : > { %8960 = vrot.lane.b32.xlu2 %v8959_v63, %s9677_s24  ;;  %3449 = vmatpush.msra.mxu3 %v717_v3  ;;  %v2150_v6 = vadd.f32 %v11783_v30, %v2037_v17  ;;  %v9323_v3 = vld [vmem:[%s9835_s6 + $0x2d8] sm:$0xff]  ;;  %v2031_v17 = vadd.f32 %v16742_v18, %v1918_v46  ;;  %v1930_v18 = vadd.f32 %v11771_v42, %v11423_v45 }
 0x48f   : > { %v12201_v27 = vpop.f32.mrf.mxu3  ;;  %v685_v42 = vld [vmem:[#allocation5 + $0x8b8] sm:$0xff] }
 0x490   : > { %v2259_v1 = vpop.f32.mrf.mxu2  ;;  %v2369_v31 = vpop.f32.mrf.mxu0  ;;  %3450 = vmatpush.msra.mxu3 %v709_v57  ;;  %v8969_v30 = vpack.i.bf16 %v2150_v6, %v11714_v53  ;;  %v12221_v57 = vld [vmem:[%s9835_s6 + $0x8] sm:$0xff]  ;;  %v2144_v46 = vadd.f32 %v11753_v32, %v2031_v17 }
 0x491   : > { %v2370_v44 = vadd.f32 %v2369_v31, %v2257_v5  ;;  %v12208_v36 = vpop.f32.mrf.mxu1  ;;  %v16097_v5 = vunpack.i.h.bf16 %v12210_v0  ;;  %v8897_v31 = vunpack.i.l.bf16 %v12210_v0  ;;  %v2260_v6 = vadd.f32 %v2259_v1, %v11970_v21  ;;  %v16744_v17 = vld [vmem:[#allocation91_spill] sm:$0xff] }
 0x492   : > { %16741 = vst [vmem:[#allocation163_spill] sm:$0xff] %v12208_v36  ;;  %3451 = vmatpush.msra.mxu3 %v701_v8  ;;  %v8974_v8 = vpack.i.bf16 %v2144_v46, %v16744_v17  ;;  %v16100_v36 = vunpack.i.h.bf16 %v12151_v20 }
 0x493   : > { %v2483_v63 = vadd.f32 %v11740_v62, %v2370_v44  ;;  %2416 = vmatmul.f32.gmra.mxu0 %v9323_v3  ;;  %2975 = vmatmul.f32.gmra.mxu1 %v12128_v16  ;;  %v3573_v62 = vsel %vm744_vm0, %v8892_v19, %v16098_v38  ;;  %v3571_v19 = vsel %vm744_vm0, %v8897_v31, %v16097_v5  ;;  %v16745_v5 = vld [vmem:[#allocation199_spill] sm:$0xff] }
 0x494   : > { %2636 = vmatmul.f32.gmra.mxu3 %v12128_v16  ;;  %v693_v16 = vld [vmem:[#allocation5 + $0x8f8] sm:$0xff]  ;;  %v12252_v38 = vld [vmem:[%s9835_s6 + $0x20] sm:$0xff] }
 0x495   : > { %2665 = vmatmul.f32.vlgmr.msrb.gmra.mxu2 %v12221_v57  ;;  %4284 = vrot.lane.b32.xlu0 %v2483_v63, %s9677_s24 }
 0x496   : > { %3601 = vmatpush.xpose.msrb.mxu2 %v3573_v62  ;;  %8970 = vrot.lane.b32.xlu2 %v8969_v30, %s9677_s24  ;;  %v1921_v30 = vadd.f32 %v11712_v34, %v11423_v45  ;;  %v12244_v62 = vld [vmem:[%s9835_s6 + $0x2f0] sm:$0xff]  ;;  %v677_v34 = vld [vmem:[#allocation5 + $0x878] sm:$0xff] }
 0x497   : > { %v12231_v44 = vpop.f32.mrf.mxu3  ;;  %3452 = vmatpush.msra.mxu3 %v693_v16  ;;  %v2043_v16 = vadd.f32 %v16745_v5, %v1930_v18  ;;  %v669_v5 = vld [vmem:[#allocation5 + $0x838] sm:$0xff] }
 0x498   : > { %v2262_v3 = vpop.f32.mrf.mxu2  ;;  %v2372_v1 = vpop.f32.mrf.mxu0  ;;  %v16748_v18 = vld [vmem:[#allocation106_spill] sm:$0xff] }
 0x499   : > { %v12238_v63 = vpop.f32.mrf.mxu1  ;;  %v2373_v32 = vadd.f32 %v2372_v1, %v2260_v6  ;;  %v16746_v6 = vld [vmem:[#allocation193_spill] sm:$0xff]  ;;  %3453 = vmatpush.msra.mxu3 %v685_v42 }
 0x49a   : > { %16743 = vst [vmem:[#allocation184_spill] sm:$0xff] %v12238_v63  ;;  %3602 = vmatpush.xpose.msrb.mxu2 %v3571_v19  ;;  %v2034_v46 = vadd.f32 %v16746_v6, %v1921_v30  ;;  %v12257_v19 = vpop.permute.xlu2 %8910  ;;  %v16750_v30 = vld [vmem:[#allocation112_spill] sm:$0xff] }
 0x49b   : > { %2419 = vmatmul.f32.gmra.mxu0 %v12244_v62  ;;  %2978 = vmatmul.f32.gmra.mxu1 %v12143_v11  ;;  %v2486_v31 = vadd.f32 %v11759_v52, %v2373_v32  ;;  %16747 = vst [vmem:[#allocation79_spill] sm:$0xff] %v12257_v19  ;;  %v2156_v52 = vadd.f32 %v11809_v33, %v2043_v16  ;;  %v16752_v33 = vunpack.i.h.bf16 %v12172_v9  ;;  %v16754_v9 = vld [vmem:[#allocation202_spill] sm:$0xff]  ;;  %v12300_v63 = vld [vmem:[%s9835_s6 + $0x28] sm:$0xff]  ;;  %v16764_v40 = vunpack.i.l.bf16 %v12257_v19 }
 0x49c   : > { %2639 = vmatmul.f32.gmra.mxu3 %v12143_v11  ;;  %v2147_v1 = vadd.f32 %v16748_v18, %v2034_v46  ;;  %v1933_v6 = vadd.f32 %v16750_v30, %v11423_v45  ;;  %v2263_v16 = vadd.f32 %v2262_v3, %v11970_v21  ;;  %v12275_v46 = vld [vmem:[%s9835_s6 + $0x10] sm:$0xff]  ;;  %v12289_v3 = vpop.permute.xlu1 %8905 }
 0x49d   : > { %2668 = vmatmul.f32.gmra.mxu2 %v12252_v38  ;;  %8975 = vrot.lane.b32.xlu0 %v8974_v8, %s9677_s24  ;;  %v3574_v42 = vsel %vm744_vm0, %v16752_v33, %v12179_v59 }
 0x49e   : > { %4290 = vrot.lane.b32.xlu1 %v2486_v31, %s9677_s24  ;;  %3454 = vmatpush.msra.mxu3 %v677_v34  ;;  %v8984_v31 = vpack.i.bf16 %v2156_v52, %v16751_v43  ;;  %v16753_v34 = vld [vmem:[#allocation94_spill] sm:$0xff]  ;;  %v2046_v59 = vadd.f32 %v16754_v9, %v1933_v6 }
 0x49f   : > { %v12261_v11 = vpop.f32.mrf.mxu3  ;;  %v8964_v18 = vpack.i.bf16 %v2147_v1, %v16753_v34  ;;  %v12283_v52 = vld [vmem:[%s9835_s6 + $0x38] sm:$0xff] }
 0x4a0   : > { %v2265_v32 = vpop.f32.mrf.mxu2  ;;  %v2375_v8 = vpop.f32.mrf.mxu0  ;;  %3455 = vmatpush.msra.mxu3 %v669_v5  ;;  %v16755_v1 = vld [vmem:[#allocation121_spill] sm:$0xff] }
 0x4a1   : > { %v12264_v17 = vpop.f32.mrf.mxu1  ;;  %v2376_v5 = vadd.f32 %v2375_v8, %v2263_v16  ;;  %v16758_v8 = vld [vmem:[#allocation109_spill] sm:$0xff]  ;;  %v2266_v16 = vadd.f32 %v2265_v32, %v11970_v21 }
 0x4a2   : > { %16749 = vst [vmem:[#allocation82_spill] sm:$0xff] %v12264_v17  ;;  %v12294_v33 = vpop.permute.xlu2 %8915  ;;  %v16757_v17 = vld [vmem:[#allocation256_spill] sm:$0xff] }
 0x4a3   : > { %8394 = vmatmul.msk.f32.vlgmr.msrb.gmra.mxu0 %vm744_vm0, %v12275_v46  ;;  %2981 = vmatmul.f32.gmra.mxu1 %v12168_v47  ;;  %v8918_v54 = vunpack.i.h.bf16 %v12294_v33 }
 0x4a4   : > { %2642 = vmatmul.f32.gmra.mxu3 %v12168_v47  ;;  %3624 = vmatpush.xpose.msrb.mxu0 %v3574_v42  ;;  %v2159_v47 = vadd.f32 %v16755_v1, %v2046_v59 }
 0x4a5   : > { %2671 = vmatmul.f32.gmra.mxu2 %v12283_v52  ;;  %8985 = vrot.lane.b32.xlu0 %v8984_v31, %s9677_s24  ;;  %v2489_v31 = vadd.f32 %v16757_v17, %v2376_v5 }
 0x4a6   : > { %8965 = vrot.lane.b32.xlu1 %v8964_v18, %s9677_s24  ;;  %v8979_v6 = vpack.i.bf16 %v2159_v47, %v16758_v8  ;;  %v12309_v18 = vld [vmem:[%s9835_s6 + $0x50] sm:$0xff]  ;;  %v12324_v8 = vld [vmem:[%s9835_s6 + $0x40] sm:$0xff] }
 0x4a7   : > { %v12291_v30 = vpop.f32.mrf.mxu3 }
 0x4a8   : > { %v2268_v42 = vpop.f32.mrf.mxu2  ;;  %v2378_v43 = vpop.f32.mrf.mxu0 }
 0x4a9   : > { %v12296_v34 = vpop.f32.mrf.mxu1  ;;  %v2379_v59 = vadd.f32 %v2378_v43, %v2266_v16  ;;  %v8917_v16 = vunpack.i.l.bf16 %v12294_v33 }
 0x4aa   : > { %16756 = vst [vmem:[#allocation88_spill] sm:$0xff] %v12296_v34  ;;  %v12339_v34 = vld [vmem:[%s9835_s6 + $0x68] sm:$0xff] }
 0x4ab   : > { %8395 = vmatmul.msk.f32.gmra.mxu0 %vm744_vm0, %v12300_v63  ;;  %2984 = vmatmul.f32.gmra.mxu1 %v12195_v35 }
 0x4ac   : > { %2645 = vmatmul.f32.gmra.mxu3 %v12195_v35  ;;  %v16099_v35 = vunpack.i.h.bf16 %v12289_v3 }
 0x4ad   : > { %2674 = vmatmul.f32.gmra.mxu2 %v12309_v18  ;;  %4387 = vrot.lane.b32.xlu0 %v2489_v31, %s9677_s24  ;;  %v16761_v31 = vld [vmem:[#allocation257_spill] sm:$0xff] }
 0x4ae   : > { %8980 = vrot.lane.b32.xlu1 %v8979_v6, %s9677_s24  ;;  %v2492_v6 = vadd.f32 %v16761_v31, %v2379_v59 }
 0x4af   : > { %v12314_v17 = vpop.f32.mrf.mxu3  ;;  %v12316_v9 = vpop.permute.xlu1 %3672 }
 0x4b0   : > { %v2271_v5 = vpop.f32.mrf.mxu2  ;;  %v12318_v1 = vpop.permute.xlu2 %3872  ;;  %v3677_v43 = vsel %vm744_vm0, %v16099_v35, %v12316_v9 }
 0x4b1   : > { %16759 = vst [vmem:[#allocation197_spill] sm:$0xff] %v12318_v1  ;;  %v2381_v32 = vpop.f32.mrf.mxu0  ;;  %v12320_v47 = vpop.f32.mrf.mxu1  ;;  %v2272_v59 = vadd.f32 %v2271_v5, %v11970_v21  ;;  %v16762_v5 = vunpack.i.h.bf16 %v12210_v0  ;;  %v12367_v0 = vld [vmem:[%s9835_s6 + $0x58] sm:$0xff] }
 0x4b2   : > { %16760 = vst [vmem:[#allocation195_spill] sm:$0xff] %v12320_v47  ;;  %v12336_v47 = vpop.permute.xlu0 %3666 }
 0x4b3   : > { %8396 = vmatmul.msk.f32.gmra.mxu0 %vm744_vm0, %v12324_v8  ;;  %3343 = vmatmul.f32.vlgmr.msrb.gmra.mxu1 %v12221_v57 }
 0x4b4   : > { %3004 = vmatmul.f32.vlgmr.msrb.gmra.mxu3 %v12221_v57 }
 0x4b5   : > { %2677 = vmatmul.f32.gmra.mxu2 %v12339_v34  ;;  %3727 = vmatpush.xpose.msrb.mxu3 %v3677_v43  ;;  %v3675_v43 = vsel %vm744_vm0, %v16100_v36, %v12336_v47  ;;  %v3779_v36 = vsel %vm744_vm0, %v8917_v16, %v16764_v40  ;;  %v2269_v40 = vadd.f32 %v2268_v42, %v11970_v21  ;;  %v16766_v16 = vld [vmem:[#allocation206_spill] sm:$0xff] }
 0x4b6   : > { %4393 = vrot.lane.b32.xlu1 %v2492_v6, %s9677_s24 }
 0x4b7   : > { %v12346_v35 = vpop.f32.mrf.mxu3  ;;  %v3564_v57 = vpop.permute.xlu1 %3563  ;;  %v2382_v42 = vadd.f32 %v2381_v32, %v2269_v40  ;;  %v16773_v40 = vld [vmem:[#allocation260_spill] sm:$0xff] }
 0x4b8   : > { %v2274_v10 = vpop.f32.mrf.mxu2  ;;  %v12348_v12 = vpop.permute.xlu2 %8935  ;;  %8491 = vmatpush.xpose.msk.msra.mxu1 %vm744_vm0, %v3564_v57  ;;  %v3572_v6 = vsel %vm744_vm0, %v16762_v5, %v3564_v57 }
 0x4b9   : > { %v16102_v31 = vunpack.i.h.bf16 %v12348_v12  ;;  %v8937_v50 = vunpack.i.l.bf16 %v12348_v12  ;;  %3728 = vmatpush.xpose.msrb.mxu3 %v3675_v43  ;;  %v2384_v24 = vpop.f32.mrf.mxu0  ;;  %v12360_v55 = vpop.f32.mrf.mxu1  ;;  %3625 = vmatpush.xpose.msrb.mxu0 %v3572_v6  ;;  %v16101_v43 = vunpack.i.h.bf16 %v12257_v19  ;;  %v16783_v19 = vld [vmem:[#allocation218_spill] sm:$0xff] }
 0x4ba   : > { %16763 = vst [vmem:[#allocation191_spill] sm:$0xff] %v12360_v55  ;;  %v2385_v58 = vadd.f32 %v2384_v24, %v2272_v59  ;;  %v12382_v24 = vld [vmem:[%s9835_s6 + $0x80] sm:$0xff] }
 0x4bb   : > { %8397 = vmatmul.msk.f32.gmra.mxu0 %vm744_vm0, %v12367_v0  ;;  %3346 = vmatmul.f32.gmra.mxu1 %v12252_v38  ;;  %v12375_v57 = vsel %vm744_vm0, %v8937_v50, %v16102_v31  ;;  %v16767_v50 = vpack.i.bf16 %v11851_v49, %v11853_v15  ;;  %v12401_v15 = vld [vmem:[%s9835_s6 + $0x70] sm:$0xff] }
 0x4bc   : > { %3807 = vmatpush.xpose.msrb.mxu1 %v3779_v36  ;;  %16765 = vst [vmem:[#allocation199_spill] sm:$0xff] %v12375_v57  ;;  %v2498_v33 = vadd.f32 %v16766_v16, %v2385_v58  ;;  %3007 = vmatmul.f32.gmra.mxu3 %v12252_v38  ;;  %v2275_v36 = vadd.f32 %v2274_v10, %v11970_v21  ;;  %v16769_v16 = vld [vmem:[#allocation224_spill] sm:$0xff] }
 0x4bd   : > { %2680 = vmatmul.f32.gmra.mxu2 %v12382_v24  ;;  %v3777_v58 = vsel %vm744_vm0, %v8918_v54, %v16101_v43  ;;  %v1951_v49 = vadd.f32 %v16769_v16, %v11423_v45  ;;  %v16770_v54 = vld [vmem:[#allocation115_spill] sm:$0xff]  ;;  %v16774_v16 = vld [vmem:[#allocation222_spill] sm:$0xff] }
 0x4be   : > { %8990 = vrot.lane.b32.xlu1 %v16767_v50, %s9677_s24  ;;  %4496 = vrot.lane.b32.xlu2 %v2498_v33, %s9677_s24  ;;  %v16771_v33 = vld [vmem:[#allocation200_spill] sm:$0xff] }
 0x4bf   : > { %v12394_v38 = vpop.f32.mrf.mxu3  ;;  %v8994_v50 = vpack.i.bf16 %v16771_v33, %v16770_v54  ;;  %v2064_v31 = vadd.f32 %v16774_v16, %v1951_v49  ;;  %v16776_v33 = vld [vmem:[#allocation124_spill] sm:$0xff] }
 0x4c0   : > { %3808 = vmatpush.xpose.msrb.mxu1 %v3777_v58  ;;  %v2277_v59 = vpop.f32.mrf.mxu2  ;;  %v16772_v58 = vld [vmem:[#allocation203_spill] sm:$0xff] }
 0x4c1   : > { %v2387_v5 = vpop.f32.mrf.mxu0  ;;  %v12396_v10 = vpop.f32.mrf.mxu1  ;;  %v2495_v32 = vadd.f32 %v16772_v58, %v2382_v42  ;;  %v16775_v58 = vld [vmem:[#allocation139_spill] sm:$0xff] }
 0x4c2   : > { %v2388_v6 = vadd.f32 %v2387_v5, %v2275_v36  ;;  %16768 = vst [vmem:[#allocation193_spill] sm:$0xff] %v12396_v10  ;;  %v12412_v36 = vld [vmem:[%s9835_s6 + $0x98] sm:$0xff]  ;;  %v2278_v5 = vadd.f32 %v2277_v59, %v11970_v21  ;;  %v1945_v59 = vadd.f32 %v16776_v33, %v11423_v45  ;;  %v12432_v16 = vld [vmem:[%s9835_s6 + $0x88] sm:$0xff]  ;;  %v12441_v33 = vld [vmem:[%s9835_s6 + $0xb0] sm:$0xff] }
 0x4c3   : > { %8398 = vmatmul.msk.f32.gmra.mxu0 %vm744_vm0, %v12401_v15  ;;  %3349 = vmatmul.f32.gmra.mxu1 %v12283_v52  ;;  %16779 = vst [vmem:[#allocation112_spill] sm:$0xff] %v12432_v16  ;;  %v16800_v10 = vld [vmem:[#allocation219_spill] sm:$0xff] }
 0x4c4   : > { %v2501_v43 = vadd.f32 %v16773_v40, %v2388_v6  ;;  %3010 = vmatmul.f32.gmra.mxu3 %v12283_v52  ;;  %v12422_v6 = vpop.permute.xlu0 %3775  ;;  %v2177_v40 = vadd.f32 %v16775_v58, %v2064_v31  ;;  %v16781_v31 = vld [vmem:[#allocation215_spill] sm:$0xff] }
 0x4c5   : > { %2683 = vmatmul.f32.gmra.mxu2 %v12412_v36 }
 0x4c6   : > { %8995 = vrot.lane.b32.xlu1 %v8994_v50, %s9677_s24  ;;  %4490 = vrot.lane.b32.xlu2 %v2495_v32, %s9677_s24  ;;  %v16778_v32 = vld [vmem:[#allocation127_spill] sm:$0xff]  ;;  %v8999_v58 = vpack.i.bf16 %v2177_v40, %v16781_v31 }
 0x4c7   : > { %4593 = vrot.lane.b32.xlu0 %v2501_v43, %s9677_s24  ;;  %v12420_v42 = vpop.f32.mrf.mxu3  ;;  %v1948_v49 = vadd.f32 %v16778_v32, %v11423_v45  ;;  %v16780_v43 = vld [vmem:[#allocation262_spill] sm:$0xff] }
 0x4c8   : > { %v2280_v52 = vpop.f32.mrf.mxu2 }
 0x4c9   : > { %v2390_v54 = vpop.f32.mrf.mxu0  ;;  %v12427_v50 = vpop.f32.mrf.mxu1  ;;  %v2281_v32 = vadd.f32 %v2280_v52, %v11970_v21  ;;  %v2061_v7 = vadd.f32 %v16783_v19, %v1948_v49  ;;  %v12460_v19 = vld [vmem:[%s9835_s6 + $0xa0] sm:$0xff] }
 0x4ca   : > { %v2391_v57 = vadd.f32 %v2390_v54, %v2278_v5  ;;  %16777 = vst [vmem:[#allocation106_spill] sm:$0xff] %v12427_v50  ;;  %v16782_v54 = vld [vmem:[#allocation214_spill] sm:$0xff]  ;;  %v16789_v49 = vld [vmem:[#allocation259_spill] sm:$0xff] }
 0x4cb   : > { %8399 = vmatmul.msk.f32.gmra.mxu0 %vm744_vm0, %v12432_v16  ;;  %3352 = vmatmul.f32.gmra.mxu1 %v12309_v18  ;;  %v2058_v5 = vadd.f32 %v16782_v54, %v1945_v59  ;;  %v2174_v2 = vadd.f32 %v16785_v61, %v2061_v7  ;;  %v16786_v59 = vld [vmem:[#allocation258_spill] sm:$0xff]  ;;  %16788 = vst [vmem:[#allocation121_spill] sm:$0xff] %v12460_v19  ;;  %v16791_v61 = vld [vmem:[#allocation261_spill] sm:$0xff] }
 0x4cc   : > { %v2504_v55 = vadd.f32 %v16780_v43, %v2391_v57  ;;  %3013 = vmatmul.f32.gmra.mxu3 %v12309_v18  ;;  %v16784_v18 = vld [vmem:[#allocation229_spill] sm:$0xff]  ;;  %v1942_v52 = vadd.f32 %v16786_v59, %v11423_v45 }
 0x4cd   : > { %2686 = vmatmul.f32.gmra.mxu2 %v12441_v33  ;;  %v2171_v40 = vadd.f32 %v16784_v18, %v2058_v5  ;;  %v16790_v5 = vld [vmem:[#allocation205_spill] sm:$0xff]  ;;  %v9009_v7 = vpack.i.bf16 %v2174_v2, %v16791_v61  ;;  %v16793_v2 = vld [vmem:[#allocation208_spill] sm:$0xff] }
 0x4ce   : > { %4599 = vrot.lane.b32.xlu2 %v2504_v55, %s9677_s24  ;;  %v16795_v61 = vld [vmem:[#allocation228_spill] sm:$0xff]  ;;  %v12494_v50 = vld [vmem:[%s9835_s6 + $0xb8] sm:$0xff] }
 0x4cf   : > { %9000 = vrot.lane.b32.xlu0 %v8999_v58, %s9677_s24  ;;  %v12449_v57 = vpop.f32.mrf.mxu3  ;;  %v9004_v58 = vpack.i.bf16 %v2171_v40, %v16789_v49  ;;  %v12477_v40 = vpop.permute.xlu1 %3769  ;;  %v1957_v4 = vadd.f32 %v16795_v61, %v11423_v45  ;;  %16797 = vst [vmem:[#allocation257_spill] sm:$0xff] %v12494_v50  ;;  %v12508_v61 = vld [vmem:[%s9835_s6 + $0xe0] sm:$0xff] }
 0x4d0   : > { %v2283_v43 = vpop.f32.mrf.mxu2  ;;  %v12452_v31 = vpop.permute.xlu0 %3878 }
 0x4d1   : > { %v2393_v53 = vpop.f32.mrf.mxu0  ;;  %v12457_v55 = vpop.f32.mrf.mxu1  ;;  %v2284_v59 = vadd.f32 %v2283_v43, %v11970_v21 }
 0x4d2   : > { %v2394_v54 = vadd.f32 %v2393_v53, %v2281_v32  ;;  %16787 = vst [vmem:[#allocation202_spill] sm:$0xff] %v12457_v55  ;;  %v16792_v53 = vld [vmem:[#allocation211_spill] sm:$0xff] }
 0x4d3   : > { %8400 = vmatmul.msk.f32.gmra.mxu0 %vm744_vm0, %v12460_v19  ;;  %3355 = vmatmul.f32.gmra.mxu1 %v12339_v34  ;;  %v2055_v32 = vadd.f32 %v16792_v53, %v1942_v52 }
 0x4d4   : > { %v2507_v18 = vadd.f32 %v16790_v5, %v2394_v54  ;;  %3016 = vmatmul.f32.gmra.mxu3 %v12339_v34 }
 0x4d5   : > { %2689 = vmatmul.f32.gmra.mxu2 %v12470_v60  ;;  %v2168_v54 = vadd.f32 %v16793_v2, %v2055_v32  ;;  %v16799_v2 = vld [vmem:[#allocation118_spill] sm:$0xff] }
 0x4d6   : > { %4696 = vrot.lane.b32.xlu1 %v2507_v18, %s9677_s24  ;;  %9005 = vrot.lane.b32.xlu2 %v9004_v58, %s9677_s24  ;;  %v16794_v18 = vld [vmem:[#allocation133_spill] sm:$0xff] }
 0x4d7   : > { %9010 = vrot.lane.b32.xlu0 %v9009_v7, %s9677_s24  ;;  %v12480_v34 = vpop.f32.mrf.mxu3  ;;  %v1954_v58 = vadd.f32 %v16794_v18, %v11423_v45  ;;  %v9014_v18 = vpack.i.bf16 %v2168_v54, %v16799_v2  ;;  %v16803_v54 = vld [vmem:[#allocation142_spill] sm:$0xff]  ;;  %v12521_v16 = vpop.permute.xlu1 %8920 }
 0x4d8   : > { %v2286_v5 = vpop.f32.mrf.mxu2  ;;  %v12483_v49 = vpop.permute.xlu0 %8925  ;;  %16806 = vst [vmem:[#allocation203_spill] sm:$0xff] %v12521_v16  ;;  %v12551_v16 = vld [vmem:[%s9835_s6 + $0xe8] sm:$0xff] }
 0x4d9   : > { %v16113_v52 = vunpack.i.h.bf16 %v12483_v49  ;;  %v8927_v43 = vunpack.i.l.bf16 %v12483_v49  ;;  %v2396_v53 = vpop.f32.mrf.mxu0  ;;  %v12491_v55 = vpop.f32.mrf.mxu1  ;;  %16814 = vst [vmem:[#allocation262_spill] sm:$0xff] %v12551_v16 }
 0x4da   : > { %v2397_v7 = vadd.f32 %v2396_v53, %v2284_v59  ;;  %16796 = vst [vmem:[#allocation256_spill] sm:$0xff] %v12491_v55  ;;  %v16801_v59 = vld [vmem:[#allocation227_spill] sm:$0xff]  ;;  %v16802_v55 = vld [vmem:[#allocation232_spill] sm:$0xff] }
 0x4db   : > { %8401 = vmatmul.msk.f32.gmra.mxu0 %vm744_vm0, %v12494_v50  ;;  %3358 = vmatmul.f32.gmra.mxu1 %v12382_v24  ;;  %v12502_v32 = vsel %vm744_vm0, %v8927_v43, %v16113_v52  ;;  %v2067_v53 = vadd.f32 %v16801_v59, %v1954_v58  ;;  %v2070_v50 = vadd.f32 %v16802_v55, %v1957_v4  ;;  %v12526_v4 = vld [vmem:[%s9835_s6 + $0xd0] sm:$0xff]  ;;  %v16809_v55 = vld [vmem:[#allocation130_spill] sm:$0xff] }
 0x4dc   : > { %16798 = vst [vmem:[#allocation206_spill] sm:$0xff] %v12502_v32  ;;  %v2510_v19 = vadd.f32 %v16800_v10, %v2397_v7  ;;  %3019 = vmatmul.f32.gmra.mxu3 %v12382_v24  ;;  %v16804_v7 = vld [vmem:[#allocation145_spill] sm:$0xff] }
 0x4dd   : > { %2692 = vmatmul.f32.gmra.mxu2 %v12508_v61  ;;  %v2180_v10 = vadd.f32 %v16803_v54, %v2067_v53  ;;  %v2183_v52 = vadd.f32 %v16804_v7, %v2070_v50  ;;  %16808 = vst [vmem:[#allocation222_spill] sm:$0xff] %v12526_v4  ;;  %v2287_v50 = vadd.f32 %v2286_v5, %v11970_v21  ;;  %v12536_v53 = vld [vmem:[%s9835_s6 + $0xf8] sm:$0xff] }
 0x4de   : > { %9015 = vrot.lane.b32.xlu1 %v9014_v18, %s9677_s24  ;;  %4702 = vrot.lane.b32.xlu2 %v2510_v19, %s9677_s24  ;;  %v16810_v18 = vld [vmem:[#allocation223_spill] sm:$0xff] }
 0x4df   : > { %v12515_v43 = vpop.f32.mrf.mxu3  ;;  %v9024_v19 = vpack.i.bf16 %v2180_v10, %v16809_v55  ;;  %v9019_v59 = vpack.i.bf16 %v2183_v52, %v16810_v18  ;;  %v12544_v55 = vpop.permute.xlu2 %8945 }
 0x4e0   : > { %v2289_v24 = vpop.f32.mrf.mxu2  ;;  %v12519_v2 = vpop.permute.xlu0 %8940  ;;  %16811 = vst [vmem:[#allocation139_spill] sm:$0xff] %v12544_v55 }
 0x4e1   : > { %16805 = vst [vmem:[#allocation224_spill] sm:$0xff] %v12519_v2  ;;  %v2399_v32 = vpop.f32.mrf.mxu0  ;;  %v12523_v58 = vpop.f32.mrf.mxu1  ;;  %v2290_v54 = vadd.f32 %v2289_v24, %v11970_v21 }
 0x4e2   : > { %16807 = vst [vmem:[#allocation260_spill] sm:$0xff] %v12523_v58  ;;  %v2400_v10 = vadd.f32 %v2399_v32, %v2287_v50  ;;  %v12556_v24 = vpop.permute.xlu1 %8930  ;;  %v16816_v32 = vld [vmem:[#allocation234_spill] sm:$0xff] }
 0x4e3   : > { %8402 = vmatmul.msk.f32.gmra.mxu0 %vm744_vm0, %v12526_v4  ;;  %3361 = vmatmul.f32.gmra.mxu1 %v12412_v36  ;;  %16815 = vst [vmem:[#allocation214_spill] sm:$0xff] %v12556_v24  ;;  %v12598_v4 = vld [vmem:[%s9835_s6 + $0x118] sm:$0xff] }
 0x4e4   : > { %3022 = vmatmul.f32.gmra.mxu3 %v12412_v36  ;;  %16828 = vst [vmem:[#allocation228_spill] sm:$0xff] %v12598_v4 }
 0x4e5   : > { %2695 = vmatmul.f32.gmra.mxu2 %v12536_v53 }
 0x4e6   : > { %9025 = vrot.lane.b32.xlu1 %v9024_v19, %s9677_s24  ;;  %9020 = vrot.lane.b32.xlu2 %v9019_v59, %s9677_s24  ;;  %v2513_v19 = vadd.f32 %v16816_v32, %v2400_v10  ;;  %v16817_v59 = vld [vmem:[#allocation263_spill] sm:$0xff] }
 0x4e7   : > { %v12542_v7 = vpop.f32.mrf.mxu3  ;;  %v12572_v10 = vld [vmem:[%s9835_s6 + $0x100] sm:$0xff] }
 0x4e8   : > { %v2292_v52 = vpop.f32.mrf.mxu2  ;;  %v12548_v2 = vpop.permute.xlu0 %3981  ;;  %16820 = vst [vmem:[#allocation136_spill] sm:$0xff] %v12572_v10 }
 0x4e9   : > { %v2402_v18 = vpop.f32.mrf.mxu0  ;;  %v12546_v36 = vpop.f32.mrf.mxu1  ;;  %16813 = vst [vmem:[#allocation127_spill] sm:$0xff] %v12548_v2 }
 0x4ea   : > { %v2403_v5 = vadd.f32 %v2402_v18, %v2290_v54  ;;  %16812 = vst [vmem:[#allocation124_spill] sm:$0xff] %v12546_v36  ;;  %v12562_v18 = vld [vmem:[%s9835_s6 + $0x110] sm:$0xff] }
 0x4eb   : > { %8403 = vmatmul.msk.f32.gmra.mxu0 %vm744_vm0, %v12551_v16  ;;  %3364 = vmatmul.f32.gmra.mxu1 %v12441_v33 }
 0x4ec   : > { %v2516_v50 = vadd.f32 %v16817_v59, %v2403_v5  ;;  %3025 = vmatmul.f32.gmra.mxu3 %v12441_v33  ;;  %v12577_v33 = vpop.permute.xlu2 %3975 }
 0x4ed   : > { %2698 = vmatmul.f32.gmra.mxu2 %v12562_v18  ;;  %16821 = vst [vmem:[#allocation258_spill] sm:$0xff] %v12577_v33 }
 0x4ee   : > { %4799 = vrot.lane.b32.xlu1 %v2513_v19, %s9677_s24  ;;  %4805 = vrot.lane.b32.xlu2 %v2516_v50, %s9677_s24  ;;  %v12585_v19 = vld [vmem:[%s9835_s6 + $0x128] sm:$0xff] }
 0x4ef   : > { %v12567_v54 = vpop.f32.mrf.mxu3  ;;  %v12579_v5 = vpop.permute.xlu1 %4084  ;;  %v16824_v50 = vld [vmem:[#allocation248_spill] sm:$0xff] }
 0x4f0   : > { %16818 = vst [vmem:[#allocation218_spill] sm:$0xff] %v12567_v54  ;;  %v2295_v55 = vpop.f32.mrf.mxu2  ;;  %v12582_v32 = vpop.permute.xlu0 %8950 }
 0x4f1   : > { %v2405_v36 = vpop.f32.mrf.mxu0  ;;  %v12569_v24 = vpop.f32.mrf.mxu1  ;;  %16822 = vst [vmem:[#allocation205_spill] sm:$0xff] %v12579_v5  ;;  %v2296_v59 = vadd.f32 %v2295_v55, %v11970_v21  ;;  %v16829_v55 = vld [vmem:[#allocation233_spill] sm:$0xff] }
 0x4f2   : > { %16819 = vst [vmem:[#allocation229_spill] sm:$0xff] %v12569_v24  ;;  %v16825_v24 = vpack.i.bf16 %v11959_v51, %v16824_v50  ;;  %v2293_v51 = vadd.f32 %v2292_v52, %v11970_v21 }
 0x4f3   : > { %8404 = vmatmul.msk.f32.gmra.mxu0 %vm744_vm0, %v12572_v10  ;;  %3367 = vmatmul.f32.gmra.mxu1 %v12470_v60  ;;  %16823 = vst [vmem:[#allocation211_spill] sm:$0xff] %v12582_v32  ;;  %v16830_v32 = vld [vmem:[#allocation239_spill] sm:$0xff] }
 0x4f4   : > { %3028 = vmatmul.f32.gmra.mxu3 %v12470_v60  ;;  %v9034_v54 = vpack.i.bf16 %v16830_v32, %v16829_v55  ;;  %v12605_v33 = vpop.permute.xlu2 %4181  ;;  %v16835_v32 = vld [vmem:[#allocation245_spill] sm:$0xff] }
 0x4f5   : > { %2701 = vmatmul.f32.gmra.mxu2 %v12585_v19  ;;  %16831 = vst [vmem:[#allocation219_spill] sm:$0xff] %v12605_v33  ;;  %v1969_v33 = vadd.f32 %v16835_v32, %v11423_v45  ;;  %v16840_v32 = vld [vmem:[#allocation247_spill] sm:$0xff] }
 0x4f6   : > { %9030 = vrot.lane.b32.xlu2 %v16825_v24, %s9677_s24  ;;  %v16832_v24 = vld [vmem:[#allocation246_spill] sm:$0xff] }
 0x4f7   : > { %v12593_v58 = vpop.f32.mrf.mxu3 }
 0x4f8   : > { %16826 = vst [vmem:[#allocation208_spill] sm:$0xff] %v12593_v58  ;;  %v2298_v10 = vpop.f32.mrf.mxu2  ;;  %v12619_v55 = vpop.permute.xlu0 %8955 }
 0x4f9   : > { %v2408_v5 = vpop.f32.mrf.mxu0  ;;  %v12595_v60 = vpop.f32.mrf.mxu1 }
 0x4fa   : > { %v2409_v16 = vadd.f32 %v2408_v5, %v2296_v59  ;;  %16827 = vst [vmem:[#allocation133_spill] sm:$0xff] %v12595_v60  ;;  %v12611_v5 = vld [vmem:[%s9835_s6 + $0x140] sm:$0xff]  ;;  %v2299_v59 = vadd.f32 %v2298_v10, %v11970_v21  ;;  %v12615_v60 = vpop.permute.xlu1 %4078  ;;  %v12628_v10 = vld [vmem:[%s9835_s6 + $0x130] sm:$0xff] }
 0x4fb   : > { %8405 = vmatmul.msk.f32.gmra.mxu0 %vm744_vm0, %v12598_v4  ;;  %3370 = vmatmul.f32.gmra.mxu1 %v12508_v61  ;;  %16833 = vst [vmem:[#allocation227_spill] sm:$0xff] %v12615_v60  ;;  %v16839_v60 = vld [vmem:[#allocation264_spill] sm:$0xff] }
 0x4fc   : > { %v2522_v50 = vadd.f32 %v16832_v24, %v2409_v16  ;;  %3031 = vmatmul.f32.gmra.mxu3 %v12508_v61  ;;  %v2406_v16 = vadd.f32 %v2405_v36, %v2293_v51  ;;  %16837 = vst [vmem:[#allocation145_spill] sm:$0xff] %v12628_v10  ;;  %v12637_v36 = vld [vmem:[%s9835_s6 + $0x158] sm:$0xff]  ;;  %v2082_v51 = vadd.f32 %v16840_v32, %v1969_v33 }
 0x4fd   : > { %2704 = vmatmul.f32.gmra.mxu2 %v12611_v5  ;;  %v16844_v33 = vld [vmem:[#allocation242_spill] sm:$0xff] }
 0x4fe   : > { %9035 = vrot.lane.b32.xlu2 %v9034_v54, %s9677_s24  ;;  %4908 = vrot.lane.b32.xlu0 %v2522_v50, %s9677_s24  ;;  %v16838_v54 = vld [vmem:[#allocation243_spill] sm:$0xff]  ;;  %v1966_v32 = vadd.f32 %v16844_v33, %v11423_v45  ;;  %v16849_v45 = vld [vmem:[#allocation244_spill] sm:$0xff] }
 0x4ff   : > { %v12621_v52 = vpop.f32.mrf.mxu3  ;;  %v2519_v50 = vadd.f32 %v16838_v54, %v2406_v16 }
 0x500   : > { %16834 = vst [vmem:[#allocation232_spill] sm:$0xff] %v12621_v52  ;;  %v2301_v24 = vpop.f32.mrf.mxu2 }
 0x501   : > { %v2411_v61 = vpop.f32.mrf.mxu0  ;;  %v12625_v58 = vpop.f32.mrf.mxu1 }
 0x502   : > { %v2412_v4 = vadd.f32 %v2411_v61, %v2299_v59  ;;  %16836 = vst [vmem:[#allocation142_spill] sm:$0xff] %v12625_v58  ;;  %v12641_v59 = vpop.permute.xlu2 %8960  ;;  %v2302_v61 = vadd.f32 %v2301_v24, %v11970_v21 }
 0x503   : > { %8406 = vmatmul.msk.f32.gmra.mxu0 %vm744_vm0, %v12628_v10  ;;  %3373 = vmatmul.f32.gmra.mxu1 %v12536_v53  ;;  %16841 = vst [vmem:[#allocation234_spill] sm:$0xff] %v12641_v59 }
 0x504   : > { %v2525_v52 = vadd.f32 %v16839_v60, %v2412_v4  ;;  %3034 = vmatmul.f32.gmra.mxu3 %v12536_v53  ;;  %v2195_v53 = vadd.f32 %v11986_v23, %v2082_v51  ;;  %v12651_v60 = vpop.permute.xlu1 %4187  ;;  %v16848_v23 = vld [vmem:[#allocation265_spill] sm:$0xff] }
 0x505   : > { %2707 = vmatmul.f32.gmra.mxu2 %v12637_v36  ;;  %16843 = vst [vmem:[#allocation248_spill] sm:$0xff] %v12651_v60  ;;  %v12667_v60 = vld [vmem:[%s9835_s6 + $0x170] sm:$0xff] }
 0x506   : > { %5005 = vrot.lane.b32.xlu1 %v2525_v52, %s9677_s24  ;;  %4902 = vrot.lane.b32.xlu0 %v2519_v50, %s9677_s24  ;;  %v12658_v52 = vld [vmem:[%s9835_s6 + $0x148] sm:$0xff]  ;;  %v16847_v50 = vld [vmem:[#allocation249_spill] sm:$0xff] }
 0x507   : > { %v12646_v16 = vpop.f32.mrf.mxu3  ;;  %v12648_v4 = vpop.permute.xlu0 %4284  ;;  %16846 = vst [vmem:[#allocation245_spill] sm:$0xff] %v12658_v52  ;;  %v9039_v10 = vpack.i.bf16 %v2195_v53, %v16847_v50 }
 0x508   : > { %16842 = vst [vmem:[#allocation263_spill] sm:$0xff] %v12648_v4  ;;  %v2304_v54 = vpop.f32.mrf.mxu2 }
 0x509   : > { %v2414_v58 = vpop.f32.mrf.mxu0  ;;  %v12655_v24 = vpop.f32.mrf.mxu1 }
 0x50a   : > { %v2415_v59 = vadd.f32 %v2414_v58, %v2302_v61  ;;  %16845 = vst [vmem:[#allocation246_spill] sm:$0xff] %v12655_v24  ;;  %v2079_v58 = vadd.f32 %v16849_v45, %v1966_v32  ;;  %v2305_v61 = vadd.f32 %v2304_v54, %v11970_v21  ;;  %v12683_v54 = vpop.permute.xlu2 %8970 }
 0x50b   : > { %8407 = vmatmul.msk.f32.gmra.mxu0 %vm744_vm0, %v12658_v52  ;;  %3376 = vmatmul.f32.gmra.mxu1 %v12562_v18  ;;  %16852 = vst [vmem:[#allocation247_spill] sm:$0xff] %v12683_v54  ;;  %v12698_v52 = vld [vmem:[%s9835_s6 + $0x160] sm:$0xff]  ;;  %v16857_v54 = vld [vmem:[#allocation237_spill] sm:$0xff] }
 0x50c   : > { %v2528_v51 = vadd.f32 %v16848_v23, %v2415_v59  ;;  %3037 = vmatmul.f32.gmra.mxu3 %v12562_v18  ;;  %v2192_v59 = vadd.f32 %v11976_v28, %v2079_v58  ;;  %v12692_v28 = vld [vmem:[#allocation7] sm:$0xff]  ;;  %16855 = vst [vmem:[#allocation244_spill] sm:$0xff] %v12698_v52 }
 0x50d   : > { %2710 = vmatmul.f32.gmra.mxu2 %v12667_v60  ;;  %v12695_v58 = vperm.slane %v12692_v28, 5 }
 0x50e   : > { %9040 = vrot.lane.b32.xlu1 %v9039_v10, %s9677_s24  ;;  %5011 = vrot.lane.b32.xlu0 %v2528_v51, %s9677_s24 }
 0x50f   : > { %v12674_v33 = vpop.f32.mrf.mxu3  ;;  %v12676_v53 = vpop.permute.xlu0 %8975 }
 0x510   : > { %16850 = vst [vmem:[#allocation243_spill] sm:$0xff] %v12674_v33  ;;  %v2307_v18 = vpop.f32.mrf.mxu2  ;;  %v12679_v23 = vpop.permute.xlu1 %4290  ;;  %v16139_v50 = vunpack.i.h.bf16 %v12676_v53  ;;  %v8977_v32 = vunpack.i.l.bf16 %v12676_v53  ;;  %v12728_v33 = vld [vmem:[%s9835_s6 + $0x178] sm:$0xff] }
 0x511   : > { %16851 = vst [vmem:[#allocation264_spill] sm:$0xff] %v12679_v23  ;;  %v2417_v10 = vpop.f32.mrf.mxu0  ;;  %v12685_v24 = vpop.f32.mrf.mxu1 }
 0x512   : > { %v2418_v45 = vadd.f32 %v2417_v10, %v2305_v61  ;;  %16853 = vst [vmem:[#allocation242_spill] sm:$0xff] %v12685_v24  ;;  %v12690_v51 = vsel %vm744_vm0, %v8977_v32, %v16139_v50  ;;  %v16856_v61 = vld [vmem:[#allocation238_spill] sm:$0xff]  ;;  %v12707_v32 = vld [vmem:[%s9835_s6 + $0x188] sm:$0xff]  ;;  %v2308_v50 = vadd.f32 %v2307_v18, %v11970_v21 }
 0x513   : > { %16854 = vst [vmem:[#allocation265_spill] sm:$0xff] %v12690_v51  ;;  %8408 = vmatmul.msk.f32.gmra.mxu0 %vm744_vm0, %v12698_v52  ;;  %3379 = vmatmul.f32.gmra.mxu1 %v12585_v19  ;;  %v9044_v10 = vpack.i.bf16 %v2192_v59, %v16856_v61  ;;  %v2554_v51 = vadd.f32 %v12000_v26, %v12695_v58 }
 0x514   : > { %v2531_v24 = vadd.f32 %v16857_v54, %v2418_v45  ;;  %3040 = vmatmul.f32.gmra.mxu3 %v12585_v19  ;;  %16861 = vst [vmem:[#allocation268_spill] sm:$0xff] %v12728_v33 }
 0x515   : > { %2713 = vmatmul.f32.gmra.mxu2 %v12707_v32 }
 0x516   : > { %9045 = vrot.lane.b32.xlu1 %v9044_v10, %s9677_s24  ;;  %5108 = vrot.lane.b32.xlu2 %v2531_v24, %s9677_s24 }
 0x517   : > { %v12715_v52 = vpop.f32.mrf.mxu3 }
 0x518   : > { %v2666_v59 = vpop.f32.mrf.mxu2  ;;  %v12717_v54 = vpop.permute.xlu1 %8965 }
 0x519   : > { %v12719_v19 = vadd.f32 %v2666_v59, %v2554_v51  ;;  %v16145_v45 = vunpack.i.h.bf16 %v12717_v54  ;;  %v8967_v61 = vunpack.i.l.bf16 %v12717_v54  ;;  %v12723_v21 = vpop.permute.xlu2 %4496  ;;  %v2420_v18 = vpop.f32.mrf.mxu0  ;;  %v16863_v51 = vld [vmem:[#allocation241_spill] sm:$0xff] }
 0x51a   : > { %16859 = vst [vmem:[#allocation266_spill] sm:$0xff] %v12723_v21  ;;  %v2421_v10 = vadd.f32 %v2420_v18, %v2308_v50  ;;  %v12725_v24 = vpop.f32.mrf.mxu1  ;;  %v9359_v50 = vld [vmem:[%s9835_s6 + $0x1a0] sm:$0xff]  ;;  %v2557_v18 = vadd.f32 %v12015_v48, %v12695_v58  ;;  %v9361_v48 = vld [vmem:[%s9835_s6 + $0x1b8] sm:$0xff] }
 0x51b   : > { %16858 = vst [vmem:[#allocation237_spill] sm:$0xff] %v12719_v19  ;;  %8409 = vmatmul.msk.f32.gmra.mxu0 %vm744_vm0, %v12728_v33  ;;  %3382 = vmatmul.f32.gmra.mxu1 %v12611_v5  ;;  %v12736_v26 = vsel %vm744_vm0, %v8967_v61, %v16145_v45 }
 0x51c   : > { %16860 = vst [vmem:[#allocation267_spill] sm:$0xff] %v12725_v24  ;;  %v2534_v59 = vadd.f32 %v16863_v51, %v2421_v10  ;;  %3043 = vmatmul.f32.gmra.mxu3 %v12611_v5  ;;  %v12757_v51 = vld [vmem:[%s9835_s6 + $0x190] sm:$0xff] }
 0x51d   : > { %16862 = vst [vmem:[#allocation269_spill] sm:$0xff] %v12736_v26  ;;  %2716 = vmatmul.f32.gmra.mxu2 %v9359_v50 }
 0x51e   : > { %5114 = vrot.lane.b32.xlu0 %v2534_v59, %s9677_s24  ;;  %16869 = vst [vmem:[#allocation274_spill] sm:$0xff] %v12757_v51 }
 0x51f   : > { %v12744_v19 = vpop.f32.mrf.mxu3 }
 0x520   : > { %v2669_v21 = vpop.f32.mrf.mxu2  ;;  %v12752_v10 = vpop.permute.xlu1 %8980 }
 0x521   : > { %v12746_v24 = vadd.f32 %v2669_v21, %v2557_v18  ;;  %v12748_v33 = vpop.permute.xlu2 %4490  ;;  %v12750_v61 = vpop.f32.mrf.mxu0  ;;  %16867 = vst [vmem:[#allocation272_spill] sm:$0xff] %v12752_v10  ;;  %v2560_v21 = vadd.f32 %v12026_v25, %v12695_v58  ;;  %v12777_v10 = vld [vmem:[%s9835_s6 + $0x1a8] sm:$0xff] }
 0x522   : > { %16865 = vst [vmem:[#allocation270_spill] sm:$0xff] %v12748_v33  ;;  %v12754_v5 = vpop.f32.mrf.mxu1 }
 0x523   : > { %16864 = vst [vmem:[#allocation241_spill] sm:$0xff] %v12746_v24  ;;  %8410 = vmatmul.msk.f32.gmra.mxu0 %vm744_vm0, %v12757_v51  ;;  %3385 = vmatmul.f32.gmra.mxu1 %v12637_v36 }
 0x524   : > { %16866 = vst [vmem:[#allocation271_spill] sm:$0xff] %v12750_v61  ;;  %3046 = vmatmul.f32.gmra.mxu3 %v12637_v36  ;;  %v9363_v36 = vld [vmem:[%s9835_s6 + $0x1d0] sm:$0xff] }
 0x525   : > { %16868 = vst [vmem:[#allocation273_spill] sm:$0xff] %v12754_v5  ;;  %2719 = vmatmul.f32.gmra.mxu2 %v9361_v48 }
 0x526   : > { %16875 = vst [vmem:[#allocation280_spill] sm:$0xff] %v12777_v10 }
 0x527   : > { %v12766_v59 = vpop.f32.mrf.mxu3 }
 0x528   : > { %16870 = vst [vmem:[#allocation275_spill] sm:$0xff] %v12766_v59  ;;  %v2672_v18 = vpop.f32.mrf.mxu2  ;;  %v12782_v25 = vpop.permute.xlu1 %4393  ;;  %v12820_v59 = vld [vmem:[%s9835_s6 + $0x1d8] sm:$0xff] }
 0x529   : > { %v12768_v45 = vadd.f32 %v2672_v18, %v2560_v21  ;;  %v12770_v61 = vpop.permute.xlu2 %4599  ;;  %v12772_v24 = vpop.f32.mrf.mxu0  ;;  %16876 = vst [vmem:[#allocation281_spill] sm:$0xff] %v12782_v25  ;;  %v2563_v21 = vadd.f32 %v12042_v56, %v12695_v58 }
 0x52a   : > { %16872 = vst [vmem:[#allocation277_spill] sm:$0xff] %v12770_v61  ;;  %v12774_v33 = vpop.f32.mrf.mxu1 }
 0x52b   : > { %16871 = vst [vmem:[#allocation276_spill] sm:$0xff] %v12768_v45  ;;  %8411 = vmatmul.msk.f32.gmra.mxu0 %vm744_vm0, %v12777_v10  ;;  %3388 = vmatmul.f32.gmra.mxu1 %v12667_v60  ;;  %v2566_v10 = vadd.f32 %v12061_v29, %v12695_v58  ;;  %v2569_v29 = vadd.f32 %v12081_v22, %v12695_v58  ;;  %v9369_v22 = vld [vmem:[%s9835_s6 + $0x218] sm:$0xff] }
 0x52c   : > { %16873 = vst [vmem:[#allocation278_spill] sm:$0xff] %v12772_v24  ;;  %3049 = vmatmul.f32.gmra.mxu3 %v12667_v60  ;;  %v12797_v60 = vld [vmem:[%s9835_s6 + $0x1c0] sm:$0xff] }
 0x52d   : > { %16874 = vst [vmem:[#allocation279_spill] sm:$0xff] %v12774_v33  ;;  %2722 = vmatmul.f32.gmra.mxu2 %v9363_v36 }
 0x52e   : > { %16880 = vst [vmem:[#allocation285_spill] sm:$0xff] %v12797_v60 }
 0x52f   : > { %v12788_v18 = vpop.f32.mrf.mxu3  ;;  %16885 = vst [vmem:[#allocation290_spill] sm:$0xff] %v12820_v59 }
 0x530   : > { %16877 = vst [vmem:[#allocation282_spill] sm:$0xff] %v12788_v18  ;;  %v2675_v45 = vpop.f32.mrf.mxu2 }
 0x531   : > { %v2676_v24 = vadd.f32 %v2675_v45, %v2563_v21  ;;  %v12790_v61 = vpop.permute.xlu2 %9005  ;;  %v12792_v26 = vpop.f32.mrf.mxu0  ;;  %v9365_v21 = vld [vmem:[%s9835_s6 + $0x1e8] sm:$0xff] }
 0x532   : > { %16878 = vst [vmem:[#allocation283_spill] sm:$0xff] %v12790_v61  ;;  %v16156_v33 = vunpack.i.h.bf16 %v12790_v61  ;;  %v9007_v5 = vunpack.i.l.bf16 %v12790_v61  ;;  %v12808_v45 = vpop.f32.mrf.mxu1 }
 0x533   : > { %16879 = vst [vmem:[#allocation284_spill] sm:$0xff] %v12792_v26  ;;  %8412 = vmatmul.msk.f32.gmra.mxu0 %vm744_vm0, %v12797_v60  ;;  %3391 = vmatmul.f32.gmra.mxu1 %v12707_v32  ;;  %v12811_v26 = vpop.permute.xlu1 %8990 }
 0x534   : > { %3052 = vmatmul.f32.gmra.mxu3 %v12707_v32  ;;  %v12806_v56 = vsel %vm744_vm0, %v9007_v5, %v16156_v33  ;;  %16882 = vst [vmem:[#allocation287_spill] sm:$0xff] %v12808_v45  ;;  %v9367_v5 = vld [vmem:[%s9835_s6 + $0x200] sm:$0xff]  ;;  %v12836_v45 = vld [vmem:[%s9835_s6 + $0x1f0] sm:$0xff] }
 0x535   : > { %16881 = vst [vmem:[#allocation286_spill] sm:$0xff] %v12806_v56  ;;  %2725 = vmatmul.f32.gmra.mxu2 %v9365_v21 }
 0x536   : > { %16883 = vst [vmem:[#allocation288_spill] sm:$0xff] %v12811_v26 }
 0x537   : > { %v12815_v60 = vpop.f32.mrf.mxu3  ;;  %16889 = vst [vmem:[#allocation294_spill] sm:$0xff] %v12836_v45 }
 0x538   : > { %v2678_v51 = vpop.f32.mrf.mxu2 }
 0x539   : > { %v2679_v18 = vadd.f32 %v2678_v51, %v2566_v10  ;;  %v2788_v32 = vpop.f32.mrf.mxu0 }
 0x53a   : > { %v12817_v61 = vadd.f32 %v2788_v32, %v2676_v24  ;;  %v12827_v33 = vpop.f32.mrf.mxu1 }
 0x53b   : > { %8413 = vmatmul.msk.f32.gmra.mxu0 %vm744_vm0, %v12820_v59  ;;  %3394 = vmatmul.f32.gmra.mxu1 %v9359_v50  ;;  %16886 = vst [vmem:[#allocation291_spill] sm:$0xff] %v12827_v33  ;;  %v12831_v51 = vpop.permute.xlu1 %8995 }
 0x53c   : > { %16884 = vst [vmem:[#allocation289_spill] sm:$0xff] %v12817_v61  ;;  %3055 = vmatmul.f32.gmra.mxu3 %v9359_v50  ;;  %v2572_v50 = vadd.f32 %v12101_v14, %v12695_v58  ;;  %v9371_v14 = vld [vmem:[%s9835_s6 + $0x230] sm:$0xff] }
 0x53d   : > { %2728 = vmatmul.f32.gmra.mxu2 %v9367_v5 }
 0x53f   : > { %v12829_v10 = vpop.f32.mrf.mxu3 }
 0x540   : > { %16887 = vst [vmem:[#allocation292_spill] sm:$0xff] %v12829_v10  ;;  %v2681_v24 = vpop.f32.mrf.mxu2  ;;  %v12870_v10 = vld [vmem:[%s9835_s6 + $0x220] sm:$0xff] }
 0x541   : > { %v2682_v32 = vadd.f32 %v2681_v24, %v2569_v29  ;;  %v2791_v61 = vpop.f32.mrf.mxu0  ;;  %16898 = vst [vmem:[#allocation303_spill] sm:$0xff] %v12870_v10 }
 0x542   : > { %v12833_v56 = vadd.f32 %v2791_v61, %v2679_v18  ;;  %v12847_v61 = vpop.f32.mrf.mxu1 }
 0x543   : > { %8414 = vmatmul.msk.f32.gmra.mxu0 %vm744_vm0, %v12836_v45  ;;  %3397 = vmatmul.f32.gmra.mxu1 %v9361_v48  ;;  %16892 = vst [vmem:[#allocation297_spill] sm:$0xff] %v12847_v61  ;;  %v12852_v45 = vld [vmem:[%s9835_s6 + $0x208] sm:$0xff] }
 0x544   : > { %16888 = vst [vmem:[#allocation293_spill] sm:$0xff] %v12833_v56  ;;  %3058 = vmatmul.f32.gmra.mxu3 %v9361_v48  ;;  %v2575_v48 = vadd.f32 %v12119_v41, %v12695_v58 }
 0x545   : > { %2731 = vmatmul.f32.gmra.mxu2 %v9369_v22  ;;  %16894 = vst [vmem:[#allocation299_spill] sm:$0xff] %v12852_v45 }
 0x547   : > { %v12843_v33 = vpop.f32.mrf.mxu3 }
 0x548   : > { %16890 = vst [vmem:[#allocation295_spill] sm:$0xff] %v12843_v33  ;;  %v2684_v29 = vpop.f32.mrf.mxu2  ;;  %v12845_v24 = vpop.permute.xlu1 %4696 }
 0x549   : > { %16891 = vst [vmem:[#allocation296_spill] sm:$0xff] %v12845_v24  ;;  %v2685_v18 = vadd.f32 %v2684_v29, %v2572_v50  ;;  %v2794_v56 = vpop.f32.mrf.mxu0 }
 0x54a   : > { %v12849_v59 = vadd.f32 %v2794_v56, %v2682_v32 }
 0x54b   : > { %8415 = vmatmul.msk.f32.gmra.mxu0 %vm744_vm0, %v12852_v45  ;;  %3400 = vmatmul.f32.gmra.mxu1 %v9363_v36  ;;  %v12865_v45 = vpop.f32.mrf.mxu1 }
 0x54c   : > { %16893 = vst [vmem:[#allocation298_spill] sm:$0xff] %v12849_v59  ;;  %3061 = vmatmul.f32.gmra.mxu3 %v9363_v36 }
 0x54d   : > { %2734 = vmatmul.f32.gmra.mxu2 %v9371_v14  ;;  %16896 = vst [vmem:[#allocation301_spill] sm:$0xff] %v12865_v45 }
 0x54f   : > { %v12859_v33 = vpop.f32.mrf.mxu3 }
 0x550   : > { %16895 = vst [vmem:[#allocation300_spill] sm:$0xff] %v12859_v33  ;;  %v2687_v50 = vpop.f32.mrf.mxu2  ;;  %v12861_v29 = vpop.permute.xlu1 %9015  ;;  %v12887_v33 = vld [vmem:[%s9835_s6 + $0x238] sm:$0xff] }
 0x551   : > { %v2688_v56 = vadd.f32 %v2687_v50, %v2575_v48  ;;  %v16161_v32 = vunpack.i.h.bf16 %v12861_v29  ;;  %v9017_v59 = vunpack.i.l.bf16 %v12861_v29  ;;  %v2797_v61 = vpop.f32.mrf.mxu0  ;;  %v9373_v48 = vld [vmem:[%s9835_s6 + $0x248] sm:$0xff]  ;;  %v2578_v50 = vadd.f32 %v12132_v13, %v12695_v58  ;;  %16901 = vst [vmem:[#allocation306_spill] sm:$0xff] %v12887_v33 }
 0x552   : > { %v12867_v36 = vadd.f32 %v2797_v61, %v2685_v18  ;;  %v2581_v13 = vadd.f32 %v12153_v37, %v12695_v58  ;;  %v2584_v37 = vadd.f32 %v12177_v39, %v12695_v58  ;;  %v2587_v39 = vadd.f32 %v12201_v27, %v12695_v58  ;;  %v9381_v27 = vld [vmem:[%s9835_s6 + $0x2a8] sm:$0xff] }
 0x553   : > { %8416 = vmatmul.msk.f32.gmra.mxu0 %vm744_vm0, %v12870_v10  ;;  %3403 = vmatmul.f32.gmra.mxu1 %v9365_v21  ;;  %v12877_v41 = vsel %vm744_vm0, %v9017_v59, %v16161_v32  ;;  %v12891_v59 = vpop.f32.mrf.mxu1 }
 0x554   : > { %16897 = vst [vmem:[#allocation302_spill] sm:$0xff] %v12867_v36  ;;  %3064 = vmatmul.f32.gmra.mxu3 %v9365_v21  ;;  %v9375_v21 = vld [vmem:[%s9835_s6 + $0x260] sm:$0xff] }
 0x555   : > { %16899 = vst [vmem:[#allocation304_spill] sm:$0xff] %v12877_v41  ;;  %2737 = vmatmul.f32.gmra.mxu2 %v9373_v48 }
 0x556   : > { %16902 = vst [vmem:[#allocation307_spill] sm:$0xff] %v12891_v59 }
 0x557   : > { %v12882_v61 = vpop.f32.mrf.mxu3 }
 0x558   : > { %v2690_v18 = vpop.f32.mrf.mxu2  ;;  %v12906_v41 = vpop.permute.xlu1 %9025 }
 0x559   : > { %v2691_v36 = vadd.f32 %v2690_v18, %v2578_v50  ;;  %v2800_v45 = vpop.f32.mrf.mxu0  ;;  %16905 = vst [vmem:[#allocation310_spill] sm:$0xff] %v12906_v41 }
 0x55a   : > { %v12884_v10 = vadd.f32 %v2800_v45, %v2688_v56 }
 0x55b   : > { %8417 = vmatmul.msk.f32.gmra.mxu0 %vm744_vm0, %v12887_v33  ;;  %3406 = vmatmul.f32.gmra.mxu1 %v9367_v5  ;;  %v12984_v33 = vld [vmem:[%s9835_s6 + $0x2c8] sm:$0xff] }
 0x55c   : > { %16900 = vst [vmem:[#allocation305_spill] sm:$0xff] %v12884_v10  ;;  %3067 = vmatmul.f32.gmra.mxu3 %v9367_v5  ;;  %v12901_v10 = vld [vmem:[%s9835_s6 + $0x250] sm:$0xff]  ;;  %v9377_v5 = vld [vmem:[%s9835_s6 + $0x278] sm:$0xff] }
 0x55d   : > { %2740 = vmatmul.f32.gmra.mxu2 %v9375_v21  ;;  %16904 = vst [vmem:[#allocation309_spill] sm:$0xff] %v12901_v10 }
 0x55f   : > { %v12896_v50 = vpop.f32.mrf.mxu3 }
 0x560   : > { %v2693_v18 = vpop.f32.mrf.mxu2 }
 0x561   : > { %v2694_v45 = vadd.f32 %v2693_v18, %v2581_v13  ;;  %v2803_v56 = vpop.f32.mrf.mxu0  ;;  %v12910_v13 = vpop.f32.mrf.mxu1 }
 0x562   : > { %v12898_v32 = vadd.f32 %v2803_v56, %v2691_v36  ;;  %16906 = vst [vmem:[#allocation311_spill] sm:$0xff] %v12910_v13 }
 0x563   : > { %8418 = vmatmul.msk.f32.gmra.mxu0 %vm744_vm0, %v12901_v10  ;;  %3409 = vmatmul.f32.gmra.mxu1 %v9369_v22  ;;  %v12917_v10 = vld [vmem:[%s9835_s6 + $0x268] sm:$0xff] }
 0x564   : > { %16903 = vst [vmem:[#allocation308_spill] sm:$0xff] %v12898_v32  ;;  %3070 = vmatmul.f32.gmra.mxu3 %v9369_v22  ;;  %v9379_v22 = vld [vmem:[%s9835_s6 + $0x290] sm:$0xff] }
 0x565   : > { %2743 = vmatmul.f32.gmra.mxu2 %v9377_v5  ;;  %16908 = vst [vmem:[#allocation313_spill] sm:$0xff] %v12917_v10 }
 0x567   : > { %v12912_v18 = vpop.f32.mrf.mxu3 }
 0x568   : > { %v2696_v36 = vpop.f32.mrf.mxu2 }
 0x569   : > { %v2697_v56 = vadd.f32 %v2696_v36, %v2584_v37  ;;  %v2806_v32 = vpop.f32.mrf.mxu0  ;;  %v12926_v37 = vpop.permute.xlu1 %4799 }
 0x56a   : > { %v12914_v59 = vadd.f32 %v2806_v32, %v2694_v45  ;;  %16910 = vst [vmem:[#allocation315_spill] sm:$0xff] %v12926_v37  ;;  %v12928_v32 = vpop.f32.mrf.mxu1 }
 0x56b   : > { %8419 = vmatmul.msk.f32.gmra.mxu0 %vm744_vm0, %v12917_v10  ;;  %3412 = vmatmul.f32.gmra.mxu1 %v9371_v14  ;;  %16911 = vst [vmem:[#allocation316_spill] sm:$0xff] %v12928_v32  ;;  %v12933_v10 = vld [vmem:[%s9835_s6 + $0x280] sm:$0xff] }
 0x56c   : > { %16907 = vst [vmem:[#allocation312_spill] sm:$0xff] %v12914_v59  ;;  %3073 = vmatmul.f32.gmra.mxu3 %v9371_v14  ;;  %v2590_v14 = vadd.f32 %v12231_v44, %v12695_v58  ;;  %v9383_v44 = vld [vmem:[%s9835_s6 + $0x2c0] sm:$0xff] }
 0x56d   : > { %2746 = vmatmul.f32.gmra.mxu2 %v9379_v22  ;;  %16913 = vst [vmem:[#allocation318_spill] sm:$0xff] %v12933_v10 }
 0x56f   : > { %v12924_v41 = vpop.f32.mrf.mxu3 }
 0x570   : > { %16909 = vst [vmem:[#allocation314_spill] sm:$0xff] %v12924_v41  ;;  %v2699_v36 = vpop.f32.mrf.mxu2 }
 0x571   : > { %v2700_v45 = vadd.f32 %v2699_v36, %v2587_v39  ;;  %v2809_v59 = vpop.f32.mrf.mxu0 }
 0x572   : > { %v12930_v13 = vadd.f32 %v2809_v59, %v2697_v56 }
 0x573   : > { %8420 = vmatmul.msk.f32.gmra.mxu0 %vm744_vm0, %v12933_v10  ;;  %3415 = vmatmul.f32.gmra.mxu1 %v9373_v48  ;;  %v12949_v10 = vld [vmem:[%s9835_s6 + $0x298] sm:$0xff] }
 0x574   : > { %16912 = vst [vmem:[#allocation317_spill] sm:$0xff] %v12930_v13  ;;  %3076 = vmatmul.f32.gmra.mxu3 %v9373_v48  ;;  %v12944_v13 = vpop.f32.mrf.mxu1  ;;  %v2593_v48 = vadd.f32 %v12261_v11, %v12695_v58 }
 0x575   : > { %2749 = vmatmul.f32.gmra.mxu2 %v9381_v27  ;;  %16916 = vst [vmem:[#allocation321_spill] sm:$0xff] %v12944_v13 }
 0x576   : > { %16918 = vst [vmem:[#allocation323_spill] sm:$0xff] %v12949_v10 }
 0x577   : > { %v12940_v41 = vpop.f32.mrf.mxu3 }
 0x578   : > { %16914 = vst [vmem:[#allocation319_spill] sm:$0xff] %v12940_v41  ;;  %v2702_v39 = vpop.f32.mrf.mxu2  ;;  %v12942_v36 = vpop.permute.xlu1 %5005 }
 0x579   : > { %16915 = vst [vmem:[#allocation320_spill] sm:$0xff] %v12942_v36  ;;  %v2703_v59 = vadd.f32 %v2702_v39, %v2590_v14  ;;  %v2812_v56 = vpop.f32.mrf.mxu0 }
 0x57a   : > { %v12946_v32 = vadd.f32 %v2812_v56, %v2700_v45 }
 0x57b   : > { %8421 = vmatmul.msk.f32.gmra.mxu0 %vm744_vm0, %v12949_v10  ;;  %3418 = vmatmul.f32.gmra.mxu1 %v9375_v21 }
 0x57c   : > { %16917 = vst [vmem:[#allocation322_spill] sm:$0xff] %v12946_v32  ;;  %3079 = vmatmul.f32.gmra.mxu3 %v9375_v21  ;;  %v12965_v21 = vld [vmem:[%s9835_s6 + $0x2b0] sm:$0xff] }
 0x57d   : > { %2752 = vmatmul.f32.gmra.mxu2 %v9383_v44  ;;  %16921 = vst [vmem:[#allocation326_spill] sm:$0xff] %v12965_v21 }
 0x57f   : > { %v12956_v14 = vpop.f32.mrf.mxu3 }
 0x580   : > { %16919 = vst [vmem:[#allocation324_spill] sm:$0xff] %v12956_v14  ;;  %v2705_v39 = vpop.f32.mrf.mxu2  ;;  %v12958_v36 = vpop.permute.xlu1 %9040 }
 0x581   : > { %v2706_v45 = vadd.f32 %v2705_v39, %v2593_v48  ;;  %v16170_v56 = vunpack.i.h.bf16 %v12958_v36  ;;  %v9042_v32 = vunpack.i.l.bf16 %v12958_v36  ;;  %v2815_v13 = vpop.f32.mrf.mxu0  ;;  %v12974_v48 = vpop.f32.mrf.mxu1  ;;  %v9385_v39 = vld [vmem:[%s9835_s6 + $0x2d8] sm:$0xff] }
 0x582   : > { %v12962_v10 = vadd.f32 %v2815_v13, %v2703_v59  ;;  %v2596_v13 = vadd.f32 %v12291_v30, %v12695_v58  ;;  %v2599_v30 = vadd.f32 %v12314_v17, %v12695_v58  ;;  %v16925_v17 = vunpack.i.h.bf16 %v12289_v3 }
 0x583   : > { %8422 = vmatmul.msk.f32.gmra.mxu0 %vm744_vm0, %v12965_v21  ;;  %3421 = vmatmul.f32.gmra.mxu1 %v9377_v5  ;;  %v12972_v11 = vsel %vm744_vm0, %v9042_v32, %v16170_v56 }
 0x584   : > { %16920 = vst [vmem:[#allocation325_spill] sm:$0xff] %v12962_v10  ;;  %3082 = vmatmul.f32.gmra.mxu3 %v9377_v5 }
 0x585   : > { %16922 = vst [vmem:[#allocation327_spill] sm:$0xff] %v12972_v11  ;;  %2755 = vmatmul.f32.gmra.mxu2 %v9385_v39 }
 0x587   : > { %v12979_v59 = vpop.f32.mrf.mxu3 }
 0x588   : > { %v2708_v10 = vpop.f32.mrf.mxu2 }
 0x589   : > { %v2709_v14 = vadd.f32 %v2708_v10, %v2596_v13  ;;  %v2818_v21 = vpop.f32.mrf.mxu0  ;;  %v12991_v5 = vpop.f32.mrf.mxu1 }
 0x58a   : > { %v12981_v41 = vadd.f32 %v2818_v21, %v2706_v45  ;;  %v8907_v45 = vunpack.i.l.bf16 %v12289_v3 }
 0x58b   : > { %8423 = vmatmul.msk.f32.gmra.mxu0 %vm744_vm0, %v12984_v33  ;;  %3424 = vmatmul.f32.gmra.mxu1 %v9379_v22 }
 0x58c   : > { %16923 = vst [vmem:[#allocation328_spill] sm:$0xff] %v12981_v41  ;;  %3085 = vmatmul.f32.gmra.mxu3 %v9379_v22  ;;  %v12999_v41 = vld [vmem:[%s9835_s6 + $0x2e0] sm:$0xff]  ;;  %v3676_v22 = vsel %vm744_vm0, %v8907_v45, %v16925_v17  ;;  %v13021_v45 = vld [vmem:[%s9835_s6 + $0x2f8] sm:$0xff] }
 0x58d   : > { %2758 = vmatmul.f32.gmra.mxu2 %v12244_v62  ;;  %v8902_v62 = vunpack.i.l.bf16 %v12151_v20 }
 0x58f   : > { %v12993_v32 = vpop.f32.mrf.mxu3 }
 0x590   : > { %v2711_v10 = vpop.f32.mrf.mxu2 }
 0x591   : > { %v2712_v21 = vadd.f32 %v2711_v10, %v2599_v30  ;;  %v2821_v13 = vpop.f32.mrf.mxu0 }
 0x592   : > { %v12996_v56 = vadd.f32 %v2821_v13, %v2709_v14  ;;  %v2602_v14 = vadd.f32 %v12346_v35, %v12695_v58  ;;  %v13013_v13 = vpop.f32.mrf.mxu1 }
 0x593   : > { %8424 = vmatmul.msk.f32.gmra.mxu0 %vm744_vm0, %v12999_v41  ;;  %3427 = vmatmul.f32.gmra.mxu1 %v9381_v27 }
 0x594   : > { %16924 = vst [vmem:[#allocation329_spill] sm:$0xff] %v12996_v56  ;;  %3088 = vmatmul.f32.gmra.mxu3 %v9381_v27  ;;  %v16926_v27 = vunpack.i.h.bf16 %v12151_v20  ;;  %v2605_v20 = vadd.f32 %v12394_v38, %v12695_v58 }
 0x595   : > { %8426 = vmatmul.msk.f32.vlgmr.msra.gmra.mxu2 %vm744_vm0, %v12275_v46 }
 0x596   : > { %3704 = vmatpush.xpose.msra.mxu2 %v3676_v22  ;;  %v3674_v11 = vsel %vm744_vm0, %v8902_v62, %v16926_v27 }
 0x597   : > { %v13011_v30 = vpop.f32.mrf.mxu3 }
 0x598   : > { %v2714_v10 = vpop.f32.mrf.mxu2 }
 0x599   : > { %v2715_v56 = vadd.f32 %v2714_v10, %v2602_v14  ;;  %v2824_v46 = vpop.f32.mrf.mxu0  ;;  %v9389_v14 = vld [vmem:[%s9835_s6] sm:$0xff] }
 0x59a   : > { %3705 = vmatpush.xpose.msra.mxu2 %v3674_v11  ;;  %v13018_v3 = vadd.f32 %v2824_v46, %v2712_v21  ;;  %v13031_v21 = vpop.f32.mrf.mxu1 }
 0x59b   : > { %8425 = vmatmul.msk.f32.gmra.mxu0 %vm744_vm0, %v13021_v45  ;;  %3430 = vmatmul.f32.gmra.mxu1 %v9383_v44 }
 0x59c   : > { %16927 = vst [vmem:[#allocation330_spill] sm:$0xff] %v13018_v3  ;;  %3091 = vmatmul.f32.gmra.mxu3 %v9383_v44  ;;  %v9398_v3 = vld [vmem:[%s9835_s6 + $0x78] sm:$0xff] }
 0x59d   : > { %8427 = vmatmul.msk.f32.gmra.mxu2 %vm744_vm0, %v12300_v63  ;;  %v2608_v63 = vadd.f32 %v12420_v42, %v12695_v58  ;;  %v2611_v42 = vadd.f32 %v12449_v57, %v12695_v58  ;;  %v2614_v57 = vadd.f32 %v12480_v34, %v12695_v58  ;;  %v16934_v34 = vld [vmem:[#allocation34_spill] sm:$0xff] }
 0x59f   : > { %v13029_v35 = vpop.f32.mrf.mxu3 }
 0x5a0   : > { %v2717_v62 = vpop.f32.mrf.mxu2 }
 0x5a1   : > { %v2718_v11 = vadd.f32 %v2717_v62, %v2605_v20  ;;  %v2827_v17 = vpop.f32.mrf.mxu0 }
 0x5a2   : > { %v13033_v22 = vadd.f32 %v2827_v17, %v2715_v56  ;;  %v9392_v17 = vld [vmem:[%s9835_s6 + $0x30] sm:$0xff] }
 0x5a3   : > { %3230 = vmatmul.f32.vlgmr.msra.gmra.mxu0 %v9389_v14  ;;  %3433 = vmatmul.f32.gmra.mxu1 %v9385_v39  ;;  %v16931_v14 = vld [vmem:[#allocation55_spill] sm:$0xff] }
 0x5a4   : > { %16928 = vst [vmem:[#allocation331_spill] sm:$0xff] %v13033_v22  ;;  %3094 = vmatmul.f32.gmra.mxu3 %v9385_v39  ;;  %8494 = vmatpush.xpose.msk.msra.mxu0 %vm744_vm0, %v12316_v9  ;;  %v9390_v39 = vld [vmem:[%s9835_s6 + $0x18] sm:$0xff]  ;;  %v9391_v9 = vld [vmem:[%s9835_s6 + $0x2f0] sm:$0xff] }
 0x5a5   : > { %8428 = vmatmul.msk.f32.gmra.mxu2 %vm744_vm0, %v12324_v8  ;;  %v13050_v8 = vpop.f32.mrf.mxu1 }
 0x5a7   : > { %v13042_v38 = vpop.f32.mrf.mxu3 }
 0x5a8   : > { %v2720_v44 = vpop.f32.mrf.mxu2  ;;  %8495 = vmatpush.xpose.msk.msra.mxu0 %vm744_vm0, %v12336_v47 }
 0x5a9   : > { %v2721_v56 = vadd.f32 %v2720_v44, %v2608_v63  ;;  %v2830_v10 = vpop.f32.mrf.mxu0  ;;  %v16932_v63 = vunpack.i.h.bf16 %v12483_v49  ;;  %v9393_v44 = vld [vmem:[%s9835_s6 + $0x10] sm:$0xff] }
 0x5aa   : > { %v13046_v27 = vadd.f32 %v2830_v10, %v2718_v11  ;;  %v16933_v10 = vunpack.i.h.bf16 %v12348_v12  ;;  %v16936_v12 = vld [vmem:[#allocation153_spill] sm:$0xff] }
 0x5ab   : > { %3233 = vmatmul.f32.gmra.mxu0 %v9390_v39  ;;  %3436 = vmatmul.f32.gmra.mxu1 %v9391_v9 }
 0x5ac   : > { %16929 = vst [vmem:[#allocation332_spill] sm:$0xff] %v13046_v27  ;;  %3097 = vmatmul.f32.gmra.mxu3 %v9391_v9  ;;  %v3881_v39 = vsel %vm744_vm0, %v16933_v10, %v12318_v1  ;;  %v2617_v10 = vadd.f32 %v12515_v43, %v12695_v58  ;;  %v9397_v43 = vld [vmem:[%s9835_s6 + $0x40] sm:$0xff]  ;;  %v9400_v1 = vld [vmem:[%s9835_s6 + $0x90] sm:$0xff] }
 0x5ad   : > { %8429 = vmatmul.msk.f32.gmra.mxu2 %vm744_vm0, %v12367_v0  ;;  %v3883_v0 = vsel %vm744_vm0, %v16932_v63, %v12452_v31  ;;  %v9395_v63 = vld [vmem:[%s9835_s6 + $0x28] sm:$0xff] }
 0x5af   : > { %v13056_v47 = vpop.f32.mrf.mxu3 }
 0x5b0   : > { %v2723_v46 = vpop.f32.mrf.mxu2 }
 0x5b1   : > { %v2724_v20 = vadd.f32 %v2723_v46, %v2611_v42  ;;  %v2833_v62 = vpop.f32.mrf.mxu0 }
 0x5b2   : > { %v13058_v11 = vadd.f32 %v2833_v62, %v2721_v56  ;;  %v13075_v56 = vpop.f32.mrf.mxu1 }
 0x5b3   : > { %3236 = vmatmul.f32.gmra.mxu0 %v9392_v17  ;;  %8492 = vmatmul.msk.f32.vlgmr.msra.gmra.mxu1 %vm744_vm0, %v16931_v14  ;;  %v9394_v14 = vld [vmem:[%s9835_s6 + $0x48] sm:$0xff] }
 0x5b4   : > { %16930 = vst [vmem:[#allocation333_spill] sm:$0xff] %v13058_v11  ;;  %8458 = vmatmul.msk.f32.vlgmr.msra.gmra.mxu3 %vm744_vm0, %v9393_v44  ;;  %3933 = vmatpush.xpose.msra.mxu1 %v3883_v0  ;;  %v16937_v0 = vld [vmem:[#allocation131_spill] sm:$0xff] }
 0x5b5   : > { %8430 = vmatmul.msk.f32.gmra.mxu2 %vm744_vm0, %v12401_v15  ;;  %8498 = vmatpush.xpose.msk.msra.mxu3 %vm744_vm0, %v12422_v6  ;;  %v13084_v15 = vperm.slane %v12692_v28, 0 }
 0x5b7   : > { %v13077_v49 = vpop.f32.mrf.mxu3  ;;  %v871_v62 = vadd.f32 %v16934_v34, %v13084_v15 }
 0x5b8   : > { %v2726_v9 = vpop.f32.mrf.mxu2  ;;  %3934 = vmatpush.xpose.msra.mxu1 %v3881_v39 }
 0x5b9   : > { %v2727_v42 = vadd.f32 %v2726_v9, %v2614_v57  ;;  %8499 = vmatpush.xpose.msk.msra.mxu3 %vm744_vm0, %v12477_v40  ;;  %v2836_v46 = vpop.f32.mrf.mxu0  ;;  %v984_v44 = vadd.f32 %v16937_v0, %v871_v62  ;;  %v16938_v57 = vld [vmem:[#allocation112_spill] sm:$0xff]  ;;  %v16939_v9 = vld [vmem:[#allocation29_spill] sm:$0xff]  ;;  %v9396_v62 = vld [vmem:[%s9835_s6 + $0x60] sm:$0xff]  ;;  %v13113_v0 = vperm.slane %v12692_v28, 6  ;;  %v2620_v28 = vadd.f32 %v12542_v7, %v12695_v58 }
 0x5ba   : > { %v13090_v17 = vadd.f32 %v2836_v46, %v2724_v20  ;;  %v13105_v34 = vpop.f32.mrf.mxu1  ;;  %v9399_v7 = vld [vmem:[%s9835_s6 + $0x58] sm:$0xff] }
 0x5bb   : > { %3239 = vmatmul.f32.gmra.mxu0 %v9394_v14  ;;  %8493 = vmatmul.msk.f32.gmra.mxu1 %vm744_vm0, %v16936_v12  ;;  %v1097_v46 = vadd.f32 %v16939_v9, %v984_v44  ;;  %v16942_v44 = vld [vmem:[#allocation134_spill] sm:$0xff] }
 0x5bc   : > { %16935 = vst [vmem:[#allocation55_spill] sm:$0xff] %v13090_v17  ;;  %8459 = vmatmul.msk.f32.gmra.mxu3 %vm744_vm0, %v9395_v63  ;;  %v16940_v63 = vld [vmem:[#allocation38_spill] sm:$0xff] }
 0x5bd   : > { %8431 = vmatmul.msk.f32.gmra.mxu2 %vm744_vm0, %v16938_v57  ;;  %v874_v11 = vadd.f32 %v16940_v63, %v13084_v15  ;;  %v16945_v63 = vld [vmem:[#allocation258_spill] sm:$0xff] }
 0x5bf   : > { %v13102_v20 = vpop.f32.mrf.mxu3  ;;  %v987_v57 = vadd.f32 %v16942_v44, %v874_v11 }
 0x5c0   : > { %v2729_v39 = vpop.f32.mrf.mxu2 }
 0x5c1   : > { %v2730_v14 = vadd.f32 %v2729_v39, %v2617_v10  ;;  %v2839_v12 = vpop.f32.mrf.mxu0  ;;  %v16943_v10 = vld [vmem:[#allocation121_spill] sm:$0xff] }
 0x5c2   : > { %v13109_v17 = vadd.f32 %v2839_v12, %v2727_v42  ;;  %v16944_v42 = vld [vmem:[#allocation193_spill] sm:$0xff]  ;;  %v13131_v22 = vpop.f32.mrf.mxu1 }
 0x5c3   : > { %3242 = vmatmul.f32.gmra.mxu0 %v9396_v62  ;;  %3809 = vmatmul.f32.vlgmr.msrb.gmra.mxu1 %v1097_v46  ;;  %v2947_v39 = vadd.f32 %v16944_v42, %v13113_v0  ;;  %v16946_v62 = vld [vmem:[#allocation33_spill] sm:$0xff]  ;;  %16947 = vst [vmem:[#allocation153_spill] sm:$0xff] %v13131_v22  ;;  %v8958_v22 = vunpack.i.h.bf16 %v12619_v55 }
 0x5c4   : > { %16941 = vst [vmem:[#allocation34_spill] sm:$0xff] %v13109_v17  ;;  %8460 = vmatmul.msk.f32.gmra.mxu3 %vm744_vm0, %v9397_v43  ;;  %8506 = vmatpush.xpose.msk.msrb.mxu1 %vm744_vm0, %v12548_v2  ;;  %v1100_v43 = vadd.f32 %v16946_v62, %v987_v57  ;;  %v16949_v42 = vld [vmem:[#allocation257_spill] sm:$0xff]  ;;  %v16951_v57 = vld [vmem:[#allocation218_spill] sm:$0xff] }
 0x5c5   : > { %8432 = vmatmul.msk.f32.gmra.mxu2 %vm744_vm0, %v16943_v10 }
 0x5c7   : > { %v3059_v9 = vpop.f32.mrf.mxu3 }
 0x5c8   : > { %v2732_v46 = vpop.f32.mrf.mxu2  ;;  %v13126_v12 = vadd.f32 %v3059_v9, %v2947_v39  ;;  %8507 = vmatpush.xpose.msk.msrb.mxu1 %vm744_vm0, %v16945_v63  ;;  %v16950_v39 = vld [vmem:[#allocation106_spill] sm:$0xff] }
 0x5c9   : > { %v2733_v11 = vadd.f32 %v2732_v46, %v2620_v28  ;;  %v2842_v44 = vpop.f32.mrf.mxu0  ;;  %v2950_v9 = vadd.f32 %v16950_v39, %v13113_v0  ;;  %v2623_v28 = vadd.f32 %v16951_v57, %v12695_v58 }
 0x5ca   : > { %v13133_v27 = vadd.f32 %v2842_v44, %v2730_v14  ;;  %v8957_v14 = vunpack.i.l.bf16 %v12619_v55  ;;  %v16954_v44 = vld [vmem:[#allocation182_spill] sm:$0xff]  ;;  %v16960_v55 = vld [vmem:[#allocation208_spill] sm:$0xff] }
 0x5cb   : > { %3245 = vmatmul.f32.gmra.mxu0 %v9398_v3  ;;  %3812 = vmatmul.f32.gmra.mxu1 %v1100_v43  ;;  %v16953_v43 = vld [vmem:[#allocation135_spill] sm:$0xff] }
 0x5cc   : > { %16948 = vst [vmem:[#allocation131_spill] sm:$0xff] %v13133_v27  ;;  %8461 = vmatmul.msk.f32.gmra.mxu3 %vm744_vm0, %v9399_v7  ;;  %v1442_v17 = vadd.f32 %v16954_v44, %v16953_v43  ;;  %v16955_v7 = vld [vmem:[#allocation211_spill] sm:$0xff] }
 0x5cd   : > { %8433 = vmatmul.msk.f32.gmra.mxu2 %vm744_vm0, %v16949_v42  ;;  %v16173_v27 = vunpack.i.l.bf16 %v16955_v7 }
 0x5cf   : > { %v3062_v46 = vpop.f32.mrf.mxu3  ;;  %v4191_v57 = vsel %vm744_vm0, %v8957_v14, %v16173_v27 }
 0x5d0   : > { %v2735_v62 = vpop.f32.mrf.mxu2  ;;  %v13145_v3 = vadd.f32 %v3062_v46, %v2950_v9  ;;  %v9401_v9 = vld [vmem:[%s9835_s6 + $0x70] sm:$0xff]  ;;  %v16175_v46 = vunpack.i.h.bf16 %v16955_v7  ;;  %v16964_v7 = vld [vmem:[#allocation262_spill] sm:$0xff] }
 0x5d1   : > { %v2736_v63 = vadd.f32 %v2735_v62, %v2623_v28  ;;  %v2845_v2 = vpop.f32.mrf.mxu0  ;;  %v13160_v28 = vpop.f32.mrf.mxu1  ;;  %v16958_v62 = vld [vmem:[#allocation222_spill] sm:$0xff] }
 0x5d2   : > { %16952 = vst [vmem:[#allocation112_spill] sm:$0xff] %v13145_v3  ;;  %v13151_v39 = vadd.f32 %v2845_v2, %v2733_v11  ;;  %v4189_v14 = vsel %vm744_vm0, %v8958_v22, %v16175_v46  ;;  %v16965_v22 = vld [vmem:[#allocation256_spill] sm:$0xff]  ;;  %v16974_v46 = vld [vmem:[#allocation62_spill] sm:$0xff] }
 0x5d3   : > { %3248 = vmatmul.f32.gmra.mxu0 %v9400_v1  ;;  %3935 = vmatmul.f32.vlgmr.msra.gmra.mxu1 %v1442_v17  ;;  %16957 = vst [vmem:[#allocation38_spill] sm:$0xff] %v13160_v28  ;;  %v16959_v1 = vld [vmem:[#allocation202_spill] sm:$0xff]  ;;  %v2626_v17 = vadd.f32 %v16960_v55, %v12695_v58  ;;  %v9403_v55 = vld [vmem:[%s9835_s6 + $0x88] sm:$0xff] }
 0x5d4   : > { %16956 = vst [vmem:[#allocation29_spill] sm:$0xff] %v13151_v39  ;;  %8462 = vmatmul.msk.f32.gmra.mxu3 %vm744_vm0, %v9401_v9  ;;  %4219 = vmatpush.xpose.msra.mxu1 %v4191_v57  ;;  %v2953_v2 = vadd.f32 %v16959_v1, %v13113_v0  ;;  %v16961_v57 = vld [vmem:[#allocation138_spill] sm:$0xff]  ;;  %v16962_v9 = vld [vmem:[#allocation185_spill] sm:$0xff]  ;;  %v9402_v1 = vld [vmem:[%s9835_s6 + $0xa8] sm:$0xff] }
 0x5d5   : > { %8434 = vmatmul.msk.f32.gmra.mxu2 %vm744_vm0, %v16958_v62  ;;  %v1445_v27 = vadd.f32 %v16962_v9, %v16961_v57 }
 0x5d7   : > { %v3065_v11 = vpop.f32.mrf.mxu3 }
 0x5d8   : > { %v2738_v43 = vpop.f32.mrf.mxu2  ;;  %v13171_v44 = vadd.f32 %v3065_v11, %v2953_v2  ;;  %4220 = vmatpush.xpose.msra.mxu1 %v4189_v14  ;;  %v2956_v2 = vadd.f32 %v16965_v22, %v13113_v0  ;;  %v16966_v11 = vld [vmem:[#allocation232_spill] sm:$0xff]  ;;  %v16969_v22 = vunpack.i.h.bf16 %v12717_v54  ;;  %v16972_v54 = vunpack.i.h.bf16 %v12676_v53  ;;  %v16977_v53 = vld [vmem:[#allocation157_spill] sm:$0xff] }
 0x5d9   : > { %v2739_v39 = vadd.f32 %v2738_v43, %v2626_v17  ;;  %v2848_v28 = vpop.f32.mrf.mxu0  ;;  %v2629_v14 = vadd.f32 %v16966_v11, %v12695_v58  ;;  %v13186_v17 = vpop.f32.mrf.mxu1 }
 0x5da   : > { %v13175_v3 = vadd.f32 %v2848_v28, %v2736_v63  ;;  %v4295_v11 = vsel %vm744_vm0, %v16969_v22, %v12679_v23 }
 0x5db   : > { %3251 = vmatmul.f32.gmra.mxu0 %v9402_v1  ;;  %3938 = vmatmul.f32.gmra.mxu1 %v1445_v27  ;;  %v9404_v1 = vld [vmem:[%s9835_s6 + $0xc0] sm:$0xff] }
 0x5dc   : > { %16963 = vst [vmem:[#allocation134_spill] sm:$0xff] %v13175_v3  ;;  %8463 = vmatmul.msk.f32.gmra.mxu3 %vm744_vm0, %v9403_v55  ;;  %v16968_v55 = vld [vmem:[#allocation149_spill] sm:$0xff]  ;;  %v16976_v3 = vld [vmem:[#allocation63_spill] sm:$0xff] }
 0x5dd   : > { %8435 = vmatmul.msk.f32.gmra.mxu2 %vm744_vm0, %v16964_v7 }
 0x5df   : > { %v3068_v63 = vpop.f32.mrf.mxu3 }
 0x5e0   : > { %v2741_v28 = vpop.f32.mrf.mxu2  ;;  %v13188_v43 = vadd.f32 %v3068_v63, %v2956_v2  ;;  %v16970_v2 = vld [vmem:[#allocation136_spill] sm:$0xff]  ;;  %v2632_v63 = vadd.f32 %v12646_v16, %v12695_v58  ;;  %v9405_v16 = vld [vmem:[%s9835_s6 + $0xd8] sm:$0xff] }
 0x5e1   : > { %v2742_v57 = vadd.f32 %v2741_v28, %v2629_v14  ;;  %v2851_v27 = vpop.f32.mrf.mxu0 }
 0x5e2   : > { %v13190_v9 = vadd.f32 %v2851_v27, %v2739_v39  ;;  %v16971_v39 = vld [vmem:[#allocation260_spill] sm:$0xff]  ;;  %v4293_v27 = vsel %vm744_vm0, %v16972_v54, %v12648_v4  ;;  %v16981_v54 = vld [vmem:[#allocation243_spill] sm:$0xff] }
 0x5e3   : > { %3254 = vmatmul.f32.gmra.mxu0 %v9404_v1  ;;  %8508 = vmatmul.msk.f32.vlgmr.msrb.gmra.mxu1 %vm744_vm0, %v16968_v55  ;;  %v2959_v14 = vadd.f32 %v16971_v39, %v13113_v0  ;;  %v895_v39 = vadd.f32 %v16974_v46, %v13084_v15  ;;  %v16980_v46 = vld [vmem:[#allocation124_spill] sm:$0xff] }
 0x5e4   : > { %16967 = vst [vmem:[#allocation121_spill] sm:$0xff] %v13190_v9  ;;  %8464 = vmatmul.msk.f32.gmra.mxu3 %vm744_vm0, %v16943_v10  ;;  %4345 = vmatpush.xpose.msrb.mxu1 %v4295_v11  ;;  %v13213_v10 = vpop.f32.mrf.mxu1 }
 0x5e5   : > { %8436 = vmatmul.msk.f32.gmra.mxu2 %vm744_vm0, %v16970_v2 }
 0x5e7   : > { %v3071_v28 = vpop.f32.mrf.mxu3 }
 0x5e8   : > { %v2744_v1 = vpop.f32.mrf.mxu2  ;;  %v13211_v55 = vadd.f32 %v3071_v28, %v2959_v14  ;;  %4346 = vmatpush.xpose.msrb.mxu1 %v4293_v27  ;;  %v1008_v14 = vadd.f32 %v16977_v53, %v895_v39  ;;  %v13225_v28 = vpop.permute.xlu0 %8985  ;;  %v2635_v27 = vadd.f32 %v16981_v54, %v12695_v58  ;;  %v16983_v39 = vld [vmem:[#allocation65_spill] sm:$0xff] }
 0x5e9   : > { %v2745_v22 = vadd.f32 %v2744_v1, %v2632_v63  ;;  %v2854_v11 = vpop.f32.mrf.mxu0  ;;  %16978 = vst [vmem:[#allocation257_spill] sm:$0xff] %v13225_v28  ;;  %v16979_v63 = vld [vmem:[#allocation228_spill] sm:$0xff]  ;;  %v898_v53 = vadd.f32 %v16983_v39, %v13084_v15  ;;  %v16987_v54 = vld [vmem:[#allocation229_spill] sm:$0xff] }
 0x5ea   : > { %16973 = vst [vmem:[#allocation193_spill] sm:$0xff] %v13211_v55  ;;  %v13217_v9 = vadd.f32 %v2854_v11, %v2742_v57  ;;  %v2962_v57 = vadd.f32 %v16980_v46, %v13113_v0  ;;  %v9406_v55 = vld [vmem:[%s9835_s6 + $0xf0] sm:$0xff] }
 0x5eb   : > { %3257 = vmatmul.f32.gmra.mxu0 %v9405_v16  ;;  %8509 = vmatmul.msk.f32.gmra.mxu1 %vm744_vm0, %v16976_v3  ;;  %v16982_v16 = vld [vmem:[#allocation58_spill] sm:$0xff] }
 0x5ec   : > { %16975 = vst [vmem:[#allocation33_spill] sm:$0xff] %v13217_v9  ;;  %8465 = vmatmul.msk.f32.gmra.mxu3 %vm744_vm0, %v16949_v42  ;;  %v1121_v9 = vadd.f32 %v16982_v16, %v1008_v14  ;;  %v13238_v28 = vpop.f32.mrf.mxu1  ;;  %v16985_v14 = vld [vmem:[#allocation161_spill] sm:$0xff] }
 0x5ed   : > { %8437 = vmatmul.msk.f32.gmra.mxu2 %vm744_vm0, %v16979_v63  ;;  %v1011_v46 = vadd.f32 %v16985_v14, %v898_v53  ;;  %v9407_v14 = vld [vmem:[%s9835_s6 + $0x108] sm:$0xff] }
 0x5ef   : > { %v3074_v1 = vpop.f32.mrf.mxu3 }
 0x5f0   : > { %v2747_v11 = vpop.f32.mrf.mxu2  ;;  %v13233_v3 = vadd.f32 %v3074_v1, %v2962_v57  ;;  %v16986_v57 = vld [vmem:[#allocation145_spill] sm:$0xff] }
 0x5f1   : > { %v2748_v42 = vadd.f32 %v2747_v11, %v2635_v27  ;;  %v2857_v4 = vpop.f32.mrf.mxu0  ;;  %v2965_v27 = vadd.f32 %v16987_v54, %v13113_v0  ;;  %v16992_v54 = vld [vmem:[#allocation245_spill] sm:$0xff] }
 0x5f2   : > { %v13240_v23 = vadd.f32 %v2857_v4, %v2745_v22  ;;  %v2638_v4 = vadd.f32 %v12715_v52, %v12695_v58 }
 0x5f3   : > { %3260 = vmatmul.f32.gmra.mxu0 %v9406_v55  ;;  %4221 = vmatmul.f32.vlgmr.msra.gmra.mxu1 %v1121_v9  ;;  %v13254_v55 = vpop.permute.xlu0 %4387 }
 0x5f4   : > { %16984 = vst [vmem:[#allocation106_spill] sm:$0xff] %v13240_v23  ;;  %8466 = vmatmul.msk.f32.gmra.mxu3 %vm744_vm0, %v16958_v62  ;;  %8522 = vmatpush.xpose.msk.msra.mxu1 %vm744_vm0, %v12782_v25  ;;  %v16990_v62 = vld [vmem:[#allocation61_spill] sm:$0xff]  ;;  %v13266_v52 = vpop.f32.mrf.mxu1 }
 0x5f5   : > { %8438 = vmatmul.msk.f32.gmra.mxu2 %vm744_vm0, %v16986_v57  ;;  %16988 = vst [vmem:[#allocation218_spill] sm:$0xff] %v13254_v55  ;;  %v1124_v11 = vadd.f32 %v16990_v62, %v1011_v46  ;;  %v2641_v46 = vadd.f32 %v12744_v19, %v12695_v58 }
 0x5f7   : > { %v3077_v9 = vpop.f32.mrf.mxu3 }
 0x5f8   : > { %v2750_v22 = vpop.f32.mrf.mxu2  ;;  %v13256_v1 = vadd.f32 %v3077_v9, %v2965_v27  ;;  %8523 = vmatpush.xpose.msk.msra.mxu1 %vm744_vm0, %v13254_v55  ;;  %v16993_v27 = vld [vmem:[#allocation133_spill] sm:$0xff]  ;;  %v8998_v55 = vunpack.i.h.bf16 %v12831_v51 }
 0x5f9   : > { %v2751_v16 = vadd.f32 %v2750_v22, %v2638_v4  ;;  %v2860_v39 = vpop.f32.mrf.mxu0  ;;  %v2968_v9 = vadd.f32 %v16993_v27, %v13113_v0  ;;  %v9408_v27 = vld [vmem:[%s9835_s6 + $0x120] sm:$0xff] }
 0x5fa   : > { %16989 = vst [vmem:[#allocation135_spill] sm:$0xff] %v13256_v1  ;;  %v13261_v53 = vadd.f32 %v2860_v39, %v2748_v42  ;;  %v8997_v42 = vunpack.i.l.bf16 %v12831_v51  ;;  %v16996_v39 = vld [vmem:[#allocation201_spill] sm:$0xff]  ;;  %v17000_v51 = vld [vmem:[#allocation142_spill] sm:$0xff] }
 0x5fb   : > { %3263 = vmatmul.f32.gmra.mxu0 %v9407_v14  ;;  %4224 = vmatmul.f32.gmra.mxu1 %v1124_v11  ;;  %v16995_v11 = vld [vmem:[#allocation162_spill] sm:$0xff]  ;;  %v16181_v14 = vunpack.i.l.bf16 %v12811_v26 }
 0x5fc   : > { %16991 = vst [vmem:[#allocation182_spill] sm:$0xff] %v13261_v53  ;;  %8467 = vmatmul.msk.f32.gmra.mxu3 %vm744_vm0, %v16964_v7  ;;  %v1466_v7 = vadd.f32 %v16996_v39, %v16995_v11  ;;  %v13298_v11 = vpop.f32.mrf.mxu1  ;;  %v13303_v39 = vpop.permute.xlu0 %4593 }
 0x5fd   : > { %8439 = vmatmul.msk.f32.gmra.mxu2 %vm744_vm0, %v16992_v54  ;;  %v4603_v19 = vsel %vm744_vm0, %v8997_v42, %v16181_v14  ;;  %17002 = vst [vmem:[#allocation138_spill] sm:$0xff] %v13303_v39  ;;  %v17004_v14 = vld [vmem:[#allocation204_spill] sm:$0xff] }
 0x5ff   : > { %v3080_v4 = vpop.f32.mrf.mxu3 }
 0x600   : > { %v2753_v22 = vpop.f32.mrf.mxu2  ;;  %v13275_v62 = vadd.f32 %v3080_v4, %v2968_v9  ;;  %v13287_v9 = vpop.permute.xlu2 %4702  ;;  %v16999_v4 = vld [vmem:[#allocation244_spill] sm:$0xff] }
 0x601   : > { %v2754_v23 = vadd.f32 %v2753_v22, %v2641_v46  ;;  %v2863_v53 = vpop.f32.mrf.mxu0  ;;  %16998 = vst [vmem:[#allocation208_spill] sm:$0xff] %v13287_v9  ;;  %v16182_v46 = vunpack.i.h.bf16 %v12811_v26 }
 0x602   : > { %16994 = vst [vmem:[#allocation222_spill] sm:$0xff] %v13275_v62  ;;  %v13281_v25 = vadd.f32 %v2863_v53, %v2751_v16  ;;  %v2971_v16 = vadd.f32 %v17000_v51, %v13113_v0  ;;  %v17001_v53 = vld [vmem:[#allocation275_spill] sm:$0xff] }
 0x603   : > { %3266 = vmatmul.f32.gmra.mxu0 %v9408_v27  ;;  %4347 = vmatmul.f32.vlgmr.msrb.gmra.mxu1 %v1466_v7  ;;  %v2644_v22 = vadd.f32 %v17001_v53, %v12695_v58  ;;  %v9409_v53 = vld [vmem:[%s9835_s6 + $0x138] sm:$0xff] }
 0x604   : > { %16997 = vst [vmem:[#allocation202_spill] sm:$0xff] %v13281_v25  ;;  %8468 = vmatmul.msk.f32.gmra.mxu3 %vm744_vm0, %v16970_v2  ;;  %4631 = vmatpush.xpose.msrb.mxu1 %v4603_v19  ;;  %v4601_v2 = vsel %vm744_vm0, %v8998_v55, %v16182_v46  ;;  %v17003_v19 = vld [vmem:[#allocation165_spill] sm:$0xff]  ;;  %v17006_v55 = vld [vmem:[#allocation268_spill] sm:$0xff]  ;;  %v17012_v46 = vld [vmem:[#allocation283_spill] sm:$0xff] }
 0x605   : > { %8440 = vmatmul.msk.f32.gmra.mxu2 %vm744_vm0, %v16999_v4  ;;  %v1469_v25 = vadd.f32 %v17004_v14, %v17003_v19  ;;  %v17009_v14 = vld [vmem:[#allocation282_spill] sm:$0xff]  ;;  %v13324_v19 = vpop.f32.mrf.mxu1 }
 0x607   : > { %v3083_v42 = vpop.f32.mrf.mxu3 }
 0x608   : > { %v2756_v7 = vpop.f32.mrf.mxu2  ;;  %v13305_v27 = vadd.f32 %v3083_v42, %v2971_v16  ;;  %4632 = vmatpush.xpose.msrb.mxu1 %v4601_v2  ;;  %v17007_v16 = vld [vmem:[#allocation246_spill] sm:$0xff]  ;;  %v13318_v2 = vpop.permute.xlu2 %9020 }
 0x609   : > { %v2757_v51 = vadd.f32 %v2756_v7, %v2644_v22  ;;  %v2866_v62 = vpop.f32.mrf.mxu0  ;;  %v2974_v42 = vadd.f32 %v17007_v16, %v13113_v0  ;;  %17008 = vst [vmem:[#allocation262_spill] sm:$0xff] %v13318_v2  ;;  %v2647_v22 = vadd.f32 %v17009_v14, %v12695_v58  ;;  %v9410_v2 = vld [vmem:[%s9835_s6 + $0x150] sm:$0xff] }
 0x60a   : > { %v13309_v1 = vadd.f32 %v2866_v62, %v2754_v23  ;;  %v17015_v58 = vld [vmem:[#allocation97_spill] sm:$0xff] }
 0x60b   : > { %3269 = vmatmul.f32.gmra.mxu0 %v9409_v53  ;;  %4350 = vmatmul.f32.gmra.mxu1 %v1469_v25  ;;  %v13326_v53 = vpop.permute.xlu0 %9000 }
 0x60c   : > { %17005 = vst [vmem:[#allocation185_spill] sm:$0xff] %v13309_v1  ;;  %8469 = vmatmul.msk.f32.gmra.mxu3 %vm744_vm0, %v16979_v63  ;;  %v17013_v1 = vunpack.i.h.bf16 %v17012_v46 }
 0x60d   : > { %8441 = vmatmul.msk.f32.gmra.mxu2 %vm744_vm0, %v17006_v55  ;;  %17011 = vst [vmem:[#allocation232_spill] sm:$0xff] %v13326_v53  ;;  %v13358_v53 = vpop.f32.mrf.mxu1 }
 0x60e   : > { %v4707_v16 = vsel %vm744_vm0, %v17013_v1, %v13287_v9  ;;  %v17018_v1 = vld [vmem:[#allocation242_spill] sm:$0xff] }
 0x60f   : > { %v3086_v23 = vpop.f32.mrf.mxu3  ;;  %v2977_v46 = vadd.f32 %v17018_v1, %v13113_v0 }
 0x610   : > { %v2759_v62 = vpop.f32.mrf.mxu2  ;;  %v13322_v7 = vadd.f32 %v3086_v23, %v2974_v42  ;;  %v17016_v42 = vld [vmem:[#allocation251_spill] sm:$0xff]  ;;  %v17019_v23 = vunpack.i.h.bf16 %v12861_v29  ;;  %v17025_v29 = vld [vmem:[#allocation100_spill] sm:$0xff] }
 0x611   : > { %v2760_v25 = vadd.f32 %v2759_v62, %v2647_v22  ;;  %v2869_v63 = vpop.f32.mrf.mxu0  ;;  %v2893_v14 = vadd.f32 %v17016_v42, %v13113_v0  ;;  %v17017_v22 = vld [vmem:[#allocation274_spill] sm:$0xff] }
 0x612   : > { %17010 = vst [vmem:[#allocation256_spill] sm:$0xff] %v13322_v7  ;;  %v13332_v39 = vadd.f32 %v2869_v63, %v2757_v51  ;;  %v4705_v62 = vsel %vm744_vm0, %v17019_v23, %v12845_v24  ;;  %v9414_v7 = vld [vmem:[%s9835_s6 + $0x1b0] sm:$0xff] }
 0x613   : > { %3272 = vmatmul.f32.gmra.mxu0 %v9410_v2  ;;  %8524 = vmatmul.msk.f32.vlgmr.msra.gmra.mxu1 %vm744_vm0, %v17015_v58  ;;  %v3006_v51 = vadd.f32 %v12815_v60, %v2893_v14  ;;  %v17022_v58 = vld [vmem:[#allocation84_spill] sm:$0xff] }
 0x614   : > { %17014 = vst [vmem:[#allocation149_spill] sm:$0xff] %v13332_v39  ;;  %8470 = vmatmul.msk.f32.gmra.mxu3 %vm744_vm0, %v16986_v57  ;;  %4757 = vmatpush.xpose.msra.mxu1 %v4707_v16  ;;  %v13350_v57 = vpop.permute.xlu2 %4805  ;;  %v919_v42 = vadd.f32 %v17022_v58, %v13084_v15  ;;  %v9411_v14 = vld [vmem:[%s9835_s6 + $0x168] sm:$0xff] }
 0x615   : > { %8442 = vmatmul.msk.f32.gmra.mxu2 %vm744_vm0, %v17017_v22  ;;  %17020 = vst [vmem:[#allocation136_spill] sm:$0xff] %v13350_v57 }
 0x617   : > { %v3089_v2 = vpop.f32.mrf.mxu3 }
 0x618   : > { %v13352_v63 = vadd.f32 %v3089_v2, %v2977_v46  ;;  %v3118_v16 = vpop.f32.mrf.mxu2  ;;  %4758 = vmatpush.xpose.msra.mxu1 %v4705_v62  ;;  %v13365_v46 = vpop.permute.xlu0 %9010  ;;  %v17027_v2 = vld [vmem:[#allocation43_spill] sm:$0xff] }
 0x619   : > { %v13356_v39 = vadd.f32 %v3118_v16, %v3006_v51  ;;  %v2872_v1 = vpop.f32.mrf.mxu0  ;;  %17026 = vst [vmem:[#allocation157_spill] sm:$0xff] %v13365_v46  ;;  %v1032_v23 = vadd.f32 %v17027_v2, %v919_v42  ;;  %v17028_v51 = vld [vmem:[#allocation252_spill] sm:$0xff] }
 0x61a   : > { %17021 = vst [vmem:[#allocation260_spill] sm:$0xff] %v13352_v63  ;;  %v13360_v60 = vadd.f32 %v2872_v1, %v2760_v25  ;;  %v2896_v62 = vadd.f32 %v17028_v51, %v13113_v0  ;;  %v17029_v16 = vld [vmem:[#allocation280_spill] sm:$0xff]  ;;  %v17030_v25 = vld [vmem:[#allocation267_spill] sm:$0xff] }
 0x61b   : > { %17023 = vst [vmem:[#allocation62_spill] sm:$0xff] %v13356_v39  ;;  %3275 = vmatmul.f32.gmra.mxu0 %v9411_v14  ;;  %8525 = vmatmul.msk.f32.gmra.mxu1 %vm744_vm0, %v17025_v29  ;;  %v2980_v58 = vadd.f32 %v17030_v25, %v13113_v0  ;;  %v17031_v1 = vld [vmem:[#allocation292_spill] sm:$0xff]  ;;  %v9412_v63 = vld [vmem:[%s9835_s6 + $0x180] sm:$0xff] }
 0x61c   : > { %17024 = vst [vmem:[#allocation63_spill] sm:$0xff] %v13360_v60  ;;  %8471 = vmatmul.msk.f32.gmra.mxu3 %vm744_vm0, %v16992_v54  ;;  %v3009_v14 = vadd.f32 %v17031_v1, %v2896_v62  ;;  %v17033_v46 = vld [vmem:[#allocation80_spill] sm:$0xff]  ;;  %v17034_v54 = vld [vmem:[#allocation87_spill] sm:$0xff]  ;;  %v13384_v51 = vpop.permute.xlu2 %9030  ;;  %v17041_v1 = vld [vmem:[#allocation285_spill] sm:$0xff] }
 0x61d   : > { %8443 = vmatmul.msk.f32.gmra.mxu2 %vm744_vm0, %v17029_v16  ;;  %v1145_v24 = vadd.f32 %v17033_v46, %v1032_v23  ;;  %v922_v42 = vadd.f32 %v17034_v54, %v13084_v15  ;;  %17036 = vst [vmem:[#allocation243_spill] sm:$0xff] %v13384_v51  ;;  %v17038_v46 = vld [vmem:[#allocation47_spill] sm:$0xff] }
 0x61f   : > { %v3092_v29 = vpop.f32.mrf.mxu3  ;;  %v1035_v23 = vadd.f32 %v17038_v46, %v922_v42  ;;  %v17046_v46 = vld [vmem:[#allocation83_spill] sm:$0xff] }
 0x620   : > { %v13377_v60 = vadd.f32 %v3092_v29, %v2980_v58  ;;  %v3121_v39 = vpop.f32.mrf.mxu2  ;;  %v13389_v25 = vpop.permute.xlu0 %4908 }
 0x621   : > { %v13382_v2 = vadd.f32 %v3121_v39, %v3009_v14  ;;  %v13386_v9 = vpop.f32.mrf.mxu0  ;;  %17037 = vst [vmem:[#allocation58_spill] sm:$0xff] %v13389_v25  ;;  %v17039_v39 = vld [vmem:[#allocation254_spill] sm:$0xff]  ;;  %v13398_v58 = vpop.f32.mrf.mxu1  ;;  %v17043_v14 = vld [vmem:[#allocation295_spill] sm:$0xff] }
 0x622   : > { %17032 = vst [vmem:[#allocation228_spill] sm:$0xff] %v13377_v60  ;;  %v2899_v62 = vadd.f32 %v17039_v39, %v13113_v0  ;;  %v1148_v39 = vadd.f32 %v17046_v46, %v1035_v23 }
 0x623   : > { %17035 = vst [vmem:[#allocation124_spill] sm:$0xff] %v13382_v2  ;;  %3278 = vmatmul.f32.gmra.mxu0 %v9412_v63  ;;  %4633 = vmatmul.f32.vlgmr.msrb.gmra.mxu1 %v1145_v24  ;;  %v17042_v24 = vld [vmem:[#allocation273_spill] sm:$0xff] }
 0x624   : > { %8472 = vmatmul.msk.f32.gmra.mxu3 %vm744_vm0, %v16999_v4  ;;  %8538 = vmatpush.xpose.msk.msrb.mxu1 %vm744_vm0, %v13350_v57  ;;  %17040 = vst [vmem:[#allocation65_spill] sm:$0xff] %v13398_v58  ;;  %v2983_v63 = vadd.f32 %v17042_v24, %v13113_v0  ;;  %v3012_v29 = vadd.f32 %v17043_v14, %v2899_v62  ;;  %v9413_v57 = vld [vmem:[%s9835_s6 + $0x198] sm:$0xff]  ;;  %v9036_v60 = vpop.permute.xlu2 %9035  ;;  %v17047_v62 = vld [vmem:[#allocation255_spill] sm:$0xff]  ;;  %v16194_v58 = vunpack.i.l.bf16 %v13384_v51 }
 0x625   : > { %8444 = vmatmul.msk.f32.gmra.mxu2 %vm744_vm0, %v17041_v1  ;;  %v2902_v24 = vadd.f32 %v17047_v62, %v13113_v0 }
 0x627   : > { %v3095_v54 = vpop.f32.mrf.mxu3 }
 0x628   : > { %v13405_v4 = vadd.f32 %v3095_v54, %v2983_v63  ;;  %v3124_v2 = vpop.f32.mrf.mxu2  ;;  %8539 = vmatpush.xpose.msk.msrb.mxu1 %vm744_vm0, %v12926_v37  ;;  %v17048_v63 = vld [vmem:[#allocation290_spill] sm:$0xff]  ;;  %v13423_v23 = vpop.permute.xlu0 %4902 }
 0x629   : > { %v13409_v42 = vadd.f32 %v3124_v2, %v3012_v29  ;;  %v13412_v25 = vpop.f32.mrf.mxu0  ;;  %v17049_v2 = vld [vmem:[#allocation279_spill] sm:$0xff]  ;;  %17050 = vst [vmem:[#allocation229_spill] sm:$0xff] %v13423_v23  ;;  %v17051_v29 = vld [vmem:[#allocation300_spill] sm:$0xff]  ;;  %v13426_v46 = vpop.f32.mrf.mxu1  ;;  %v17053_v37 = vld [vmem:[#allocation186_spill] sm:$0xff] }
 0x62a   : > { %17044 = vst [vmem:[#allocation161_spill] sm:$0xff] %v13405_v4  ;;  %v2986_v14 = vadd.f32 %v17049_v2, %v13113_v0  ;;  %v3015_v54 = vadd.f32 %v17051_v29, %v2902_v24  ;;  %v17054_v4 = vld [vmem:[#allocation230_spill] sm:$0xff]  ;;  %v9038_v2 = vunpack.i.h.bf16 %v9036_v60  ;;  %v17070_v23 = vld [vmem:[#allocation261_spill] sm:$0xff] }
 0x62b   : > { %17045 = vst [vmem:[#allocation145_spill] sm:$0xff] %v13409_v42  ;;  %3281 = vmatmul.f32.gmra.mxu0 %v9413_v57  ;;  %4636 = vmatmul.f32.gmra.mxu1 %v1148_v39  ;;  %v9037_v57 = vunpack.i.l.bf16 %v9036_v60  ;;  %v1490_v62 = vadd.f32 %v17054_v4, %v17053_v37  ;;  %v17056_v37 = vld [vmem:[#allocation250_spill] sm:$0xff] }
 0x62c   : > { %8473 = vmatmul.msk.f32.gmra.mxu3 %vm744_vm0, %v17006_v55  ;;  %v2905_v4 = vadd.f32 %v17056_v37, %v13113_v0  ;;  %v17057_v29 = vld [vmem:[#allocation294_spill] sm:$0xff] }
 0x62d   : > { %8445 = vmatmul.msk.f32.gmra.mxu2 %vm744_vm0, %v17048_v63  ;;  %v5015_v24 = vsel %vm744_vm0, %v9037_v57, %v16194_v58  ;;  %v9415_v58 = vld [vmem:[%s9835_s6 + $0x1c8] sm:$0xff] }
 0x62f   : > { %v3098_v39 = vpop.f32.mrf.mxu3 }
 0x630   : > { %v13428_v42 = vadd.f32 %v3098_v39, %v2986_v14  ;;  %v3127_v55 = vpop.f32.mrf.mxu2  ;;  %v16195_v14 = vunpack.i.h.bf16 %v13384_v51  ;;  %v13452_v57 = vpop.permute.xlu0 %5011  ;;  %v17059_v39 = vld [vmem:[#allocation188_spill] sm:$0xff] }
 0x631   : > { %v13433_v63 = vadd.f32 %v3127_v55, %v3015_v54  ;;  %v3237_v26 = vpop.f32.mrf.mxu0  ;;  %17058 = vst [vmem:[#allocation133_spill] sm:$0xff] %v13452_v57  ;;  %v17060_v55 = vld [vmem:[#allocation235_spill] sm:$0xff] }
 0x632   : > { %17052 = vst [vmem:[#allocation61_spill] sm:$0xff] %v13428_v42  ;;  %v5013_v54 = vsel %vm744_vm0, %v9038_v2, %v16195_v14  ;;  %v17088_v57 = vld [vmem:[#allocation111_spill] sm:$0xff] }
 0x633   : > { %17055 = vst [vmem:[#allocation245_spill] sm:$0xff] %v13433_v63  ;;  %3284 = vmatmul.f32.gmra.mxu0 %v9414_v7  ;;  %4759 = vmatmul.f32.vlgmr.msra.gmra.mxu1 %v1490_v62  ;;  %v3018_v7 = vadd.f32 %v12882_v61, %v2905_v4  ;;  %v1493_v62 = vadd.f32 %v17060_v55, %v17059_v39  ;;  %v17062_v61 = vld [vmem:[#allocation178_spill] sm:$0xff]  ;;  %v17063_v4 = vld [vmem:[#allocation299_spill] sm:$0xff]  ;;  %v13468_v39 = vpop.permute.xlu1 %9045 }
 0x634   : > { %8474 = vmatmul.msk.f32.gmra.mxu3 %vm744_vm0, %v17017_v22  ;;  %5043 = vmatpush.xpose.msra.mxu1 %v5015_v24  ;;  %v13456_v24 = vpop.f32.mrf.mxu1  ;;  %v2908_v2 = vadd.f32 %v17062_v61, %v13113_v0  ;;  %17064 = vst [vmem:[#allocation201_spill] sm:$0xff] %v13468_v39  ;;  %v9416_v55 = vld [vmem:[#allocation7] sm:$0xff] }
 0x635   : > { %8446 = vmatmul.msk.f32.gmra.mxu2 %vm744_vm0, %v17057_v29  ;;  %v9417_v63 = vld [vmem:[%s9835_s6 + $0x1e0] sm:$0xff] }
 0x636   : > { %v17089_v42 = vld [vmem:[#allocation287_spill] sm:$0xff] }
 0x637   : > { %v13447_v60 = vpop.f32.mrf.mxu3 }
 0x638   : > { %v3130_v22 = vpop.f32.mrf.mxu2  ;;  %5044 = vmatpush.xpose.msra.mxu1 %v5013_v54  ;;  %v3021_v54 = vadd.f32 %v12896_v50, %v2908_v2 }
 0x639   : > { %v13458_v37 = vadd.f32 %v3130_v22, %v3018_v7  ;;  %v3240_v29 = vpop.f32.mrf.mxu0  ;;  %v13470_v22 = vpop.permute.xlu0 %5114 }
 0x63a   : > { %17065 = vst [vmem:[#allocation244_spill] sm:$0xff] %v13470_v22 }
 0x63b   : > { %17061 = vst [vmem:[#allocation162_spill] sm:$0xff] %v13458_v37  ;;  %3287 = vmatmul.f32.gmra.mxu0 %v9415_v58  ;;  %4762 = vmatmul.f32.gmra.mxu1 %v1493_v62  ;;  %v13472_v58 = vperm.slane %v9416_v55, 7  ;;  %v17072_v55 = vld [vmem:[#allocation303_spill] sm:$0xff] }
 0x63c   : > { %8475 = vmatmul.msk.f32.gmra.mxu3 %vm744_vm0, %v17029_v16  ;;  %v13482_v2 = vpop.f32.mrf.mxu1 }
 0x63d   : > { %8447 = vmatmul.msk.f32.gmra.mxu2 %vm744_vm0, %v17063_v4  ;;  %17066 = vst [vmem:[#allocation142_spill] sm:$0xff] %v13472_v58  ;;  %v3238_v16 = vadd.f32 %v3237_v26, %v13472_v58  ;;  %v17068_v4 = vunpack.i.h.bf16 %v12958_v36  ;;  %v17071_v26 = vld [vmem:[#allocation175_spill] sm:$0xff]  ;;  %v13493_v36 = vpop.permute.xlu2 %5108  ;;  %v3241_v51 = vadd.f32 %v3240_v29, %v13472_v58  ;;  %v17083_v29 = vld [vmem:[#allocation306_spill] sm:$0xff] }
 0x63e   : > { %17069 = vst [vmem:[#allocation165_spill] sm:$0xff] %v13482_v2 }
 0x63f   : > { %v3460_v7 = vpop.f32.mrf.mxu3  ;;  %v5119_v50 = vsel %vm744_vm0, %v17068_v4, %v13470_v22  ;;  %17073 = vst [vmem:[#allocation204_spill] sm:$0xff] %v13493_v36 }
 0x640   : > { %v3133_v62 = vpop.f32.mrf.mxu2 }
 0x641   : > { %v13474_v14 = vadd.f32 %v3133_v62, %v3021_v54  ;;  %v3243_v37 = vpop.f32.mrf.mxu0  ;;  %v2911_v54 = vadd.f32 %v17071_v26, %v13113_v0  ;;  %v17074_v62 = vld [vmem:[#allocation297_spill] sm:$0xff]  ;;  %v17077_v26 = vld [vmem:[#allocation108_spill] sm:$0xff] }
 0x642   : > { %v3351_v4 = vadd.f32 %v17074_v62, %v3238_v16  ;;  %v9418_v62 = vld [vmem:[%s9835_s6 + $0x1f8] sm:$0xff] }
 0x643   : > { %17067 = vst [vmem:[#allocation275_spill] sm:$0xff] %v13474_v14  ;;  %3290 = vmatmul.f32.gmra.mxu0 %v9417_v63  ;;  %8540 = vmatmul.msk.f32.vlgmr.msrb.gmra.mxu1 %vm744_vm0, %v17070_v23  ;;  %v3024_v63 = vadd.f32 %v12912_v18, %v2911_v54  ;;  %v17075_v23 = vunpack.i.h.bf16 %v13468_v39  ;;  %v17079_v18 = vld [vmem:[#allocation215_spill] sm:$0xff]  ;;  %v3235_v54 = vadd.f32 %v13412_v25, %v13472_v58  ;;  %v17085_v25 = vld [vmem:[#allocation314_spill] sm:$0xff] }
 0x644   : > { %8476 = vmatmul.msk.f32.gmra.mxu3 %vm744_vm0, %v17041_v1  ;;  %5169 = vmatpush.xpose.msrb.mxu1 %v5119_v50 }
 0x645   : > { %8448 = vmatmul.msk.f32.gmra.mxu2 %vm744_vm0, %v17072_v55  ;;  %v5117_v1 = vsel %vm744_vm0, %v17075_v23, %v13493_v36  ;;  %v943_v55 = vadd.f32 %v17077_v26, %v13084_v15  ;;  %v9419_v23 = vld [vmem:[%s9835_s6 + $0x1d8] sm:$0xff]  ;;  %v3232_v26 = vadd.f32 %v13386_v9, %v13472_v58 }
 0x647   : > { %v3463_v61 = vpop.f32.mrf.mxu3  ;;  %v3345_v9 = vadd.f32 %v17089_v42, %v3232_v26  ;;  %v17092_v42 = vld [vmem:[#allocation309_spill] sm:$0xff] }
 0x648   : > { %v3136_v50 = vpop.f32.mrf.mxu2  ;;  %v13501_v14 = vadd.f32 %v3463_v61, %v3351_v4  ;;  %5170 = vmatpush.xpose.msrb.mxu1 %v5117_v1  ;;  %v17080_v61 = vld [vmem:[#allocation40_spill] sm:$0xff]  ;;  %v17081_v1 = vld [vmem:[#allocation169_spill] sm:$0xff] }
 0x649   : > { %v13505_v22 = vadd.f32 %v3136_v50, %v3024_v63  ;;  %v3246_v16 = vpop.f32.mrf.mxu0  ;;  %v1056_v4 = vadd.f32 %v17080_v61, %v943_v55  ;;  %v2914_v63 = vadd.f32 %v17081_v1, %v13113_v0  ;;  %v13518_v50 = vpop.f32.mrf.mxu1  ;;  %v17087_v1 = vld [vmem:[#allocation104_spill] sm:$0xff] }
 0x64a   : > { %17076 = vst [vmem:[#allocation268_spill] sm:$0xff] %v13501_v14  ;;  %v17086_v14 = vld [vmem:[#allocation291_spill] sm:$0xff] }
 0x64b   : > { %17078 = vst [vmem:[#allocation246_spill] sm:$0xff] %v13505_v22  ;;  %3293 = vmatmul.f32.gmra.mxu0 %v9418_v62  ;;  %8541 = vmatmul.msk.f32.gmra.mxu1 %vm744_vm0, %v17079_v18  ;;  %v17084_v62 = vld [vmem:[#allocation301_spill] sm:$0xff]  ;;  %v3027_v22 = vadd.f32 %v17085_v25, %v2914_v63  ;;  %v3348_v55 = vadd.f32 %v17086_v14, %v3235_v54 }
 0x64c   : > { %8477 = vmatmul.msk.f32.gmra.mxu3 %vm744_vm0, %v9419_v23  ;;  %17082 = vst [vmem:[#allocation282_spill] sm:$0xff] %v13518_v50  ;;  %v3354_v18 = vadd.f32 %v17084_v62, %v3241_v51  ;;  %v1169_v39 = vadd.f32 %v17087_v1, %v1056_v4  ;;  %v946_v50 = vadd.f32 %v17088_v57, %v13084_v15  ;;  %v9420_v62 = vld [vmem:[%s9835_s6 + $0x210] sm:$0xff] }
 0x64d   : > { %8449 = vmatmul.msk.f32.gmra.mxu2 %vm744_vm0, %v17083_v29  ;;  %v3461_v2 = vadd.f32 %v3460_v7, %v3348_v55  ;;  %v3244_v51 = vadd.f32 %v3243_v37, %v13472_v58  ;;  %v3458_v14 = vadd.f32 %v13447_v60, %v3345_v9  ;;  %v9421_v54 = vld [vmem:[%s9835_s6 + $0x1f0] sm:$0xff]  ;;  %v17093_v37 = vld [vmem:[#allocation307_spill] sm:$0xff]  ;;  %v3247_v1 = vadd.f32 %v3246_v16, %v13472_v58 }
 0x64e   : > { %v17090_v4 = vld [vmem:[#allocation44_spill] sm:$0xff] }
 0x64f   : > { %v3466_v23 = vpop.f32.mrf.mxu3  ;;  %v1059_v57 = vadd.f32 %v17090_v4, %v946_v50  ;;  %v3357_v7 = vadd.f32 %v17093_v37, %v3244_v51  ;;  %v17095_v50 = vld [vmem:[#allocation107_spill] sm:$0xff]  ;;  %v17097_v4 = vld [vmem:[#allocation313_spill] sm:$0xff] }
 0x650   : > { %v3139_v61 = vpop.f32.mrf.mxu2  ;;  %v13527_v36 = vadd.f32 %v3466_v23, %v3354_v18  ;;  %v9423_v51 = vld [vmem:[%s9835_s6 + $0x208] sm:$0xff] }
 0x651   : > { %v13532_v29 = vadd.f32 %v3139_v61, %v3027_v22  ;;  %v3249_v63 = vpop.f32.mrf.mxu0  ;;  %v17091_v22 = vld [vmem:[#allocation160_spill] sm:$0xff]  ;;  %v13547_v60 = vpop.f32.mrf.mxu1  ;;  %v1172_v61 = vadd.f32 %v17095_v50, %v1059_v57  ;;  %v9424_v50 = vld [vmem:[%s9835_s6 + $0x240] sm:$0xff] }
 0x652   : > { %v2917_v18 = vadd.f32 %v17091_v22, %v13113_v0  ;;  %v17098_v22 = vld [vmem:[#allocation311_spill] sm:$0xff]  ;;  %v17099_v57 = vld [vmem:[#allocation324_spill] sm:$0xff] }
 0x653   : > { %3296 = vmatmul.f32.gmra.mxu0 %v9420_v62  ;;  %5045 = vmatmul.f32.vlgmr.msra.gmra.mxu1 %v1169_v39  ;;  %v17094_v39 = vld [vmem:[#allocation319_spill] sm:$0xff] }
 0x654   : > { %8478 = vmatmul.msk.f32.gmra.mxu3 %vm744_vm0, %v9421_v54  ;;  %5620 = vmatpush.msra.mxu1 %v3461_v2  ;;  %v3030_v26 = vadd.f32 %v17094_v39, %v2917_v18  ;;  %v9422_v62 = vld [vmem:[%s9835_s6 + $0x228] sm:$0xff]  ;;  %v3360_v18 = vadd.f32 %v17098_v22, %v3247_v1  ;;  %v17102_v1 = vld [vmem:[#allocation298_spill] sm:$0xff] }
 0x655   : > { %8450 = vmatmul.msk.f32.gmra.mxu2 %vm744_vm0, %v17092_v42 }
 0x656   : > { %5621 = vmatpush.msra.mxu1 %v3458_v14  ;;  %v17096_v14 = vld [vmem:[#allocation172_spill] sm:$0xff] }
 0x657   : > { %v3469_v25 = vpop.f32.mrf.mxu3  ;;  %v2920_v54 = vadd.f32 %v17096_v14, %v13113_v0 }
 0x658   : > { %v3142_v23 = vpop.f32.mrf.mxu2  ;;  %v13549_v55 = vadd.f32 %v3469_v25, %v3357_v7  ;;  %v3250_v25 = vadd.f32 %v3249_v63, %v13472_v58  ;;  %v17106_v63 = vld [vmem:[#allocation316_spill] sm:$0xff] }
 0x659   : > { %v13551_v2 = vadd.f32 %v3142_v23, %v3030_v26  ;;  %v3252_v9 = vpop.f32.mrf.mxu0  ;;  %v3033_v42 = vadd.f32 %v17099_v57, %v2920_v54  ;;  %v13566_v39 = vpop.f32.mrf.mxu1  ;;  %v17104_v54 = vld [vmem:[#allocation318_spill] sm:$0xff] }
 0x65a   : > { %17100 = vst [vmem:[#allocation283_spill] sm:$0xff] %v13566_v39  ;;  %v3363_v22 = vadd.f32 %v17106_v63, %v3250_v25  ;;  %v9427_v25 = vld [vmem:[%s9835_s6 + $0x238] sm:$0xff]  ;;  %v9436_v39 = vld [vmem:[%s9835_s6 + $0x2d0] sm:$0xff] }
 0x65b   : > { %3299 = vmatmul.f32.gmra.mxu0 %v9422_v62  ;;  %5048 = vmatmul.f32.gmra.mxu1 %v1172_v61  ;;  %v17101_v61 = vld [vmem:[#allocation231_spill] sm:$0xff] }
 0x65c   : > { %8479 = vmatmul.msk.f32.gmra.mxu3 %vm744_vm0, %v9423_v51  ;;  %v9425_v62 = vld [vmem:[%s9835_s6 + $0x220] sm:$0xff]  ;;  %v17103_v51 = vld [vmem:[#allocation181_spill] sm:$0xff] }
 0x65d   : > { %8451 = vmatmul.msk.f32.gmra.mxu2 %vm744_vm0, %v17097_v4  ;;  %v2923_v14 = vadd.f32 %v17103_v51, %v13113_v0  ;;  %v17105_v4 = vld [vmem:[#allocation293_spill] sm:$0xff]  ;;  %v17108_v51 = vld [vmem:[#allocation236_spill] sm:$0xff] }
 0x65f   : > { %v3472_v16 = vpop.f32.mrf.mxu3 }
 0x660   : > { %v3145_v37 = vpop.f32.mrf.mxu2  ;;  %v13564_v7 = vadd.f32 %v3472_v16, %v3360_v18  ;;  %v3036_v18 = vadd.f32 %v12979_v59, %v2923_v14  ;;  %v17109_v59 = vld [vmem:[#allocation159_spill] sm:$0xff] }
 0x661   : > { %v13568_v26 = vadd.f32 %v3145_v37, %v3033_v42  ;;  %v3255_v23 = vpop.f32.mrf.mxu0  ;;  %v2926_v14 = vadd.f32 %v17109_v59, %v13113_v0  ;;  %v9429_v59 = vld [vmem:[%s9835_s6 + $0x250] sm:$0xff] }
 0x663   : > { %3302 = vmatmul.f32.gmra.mxu0 %v9424_v50  ;;  %5171 = vmatmul.f32.vlgmr.msrb.gmra.mxu1 %v17101_v61  ;;  %v3253_v50 = vadd.f32 %v3252_v9, %v13472_v58  ;;  %v3039_v63 = vadd.f32 %v12993_v32, %v2926_v14  ;;  %v17113_v32 = vld [vmem:[#allocation326_spill] sm:$0xff] }
 0x664   : > { %8480 = vmatmul.msk.f32.gmra.mxu3 %vm744_vm0, %v9425_v62  ;;  %5724 = vmatpush.msrb.mxu1 %v17102_v1  ;;  %v13588_v62 = vpop.f32.mrf.mxu1  ;;  %v9426_v1 = vld [vmem:[%s9835_s6 + $0x258] sm:$0xff] }
 0x665   : > { %8452 = vmatmul.msk.f32.gmra.mxu2 %vm744_vm0, %v17104_v54  ;;  %17107 = vst [vmem:[#allocation97_spill] sm:$0xff] %v13588_v62  ;;  %v17110_v54 = vld [vmem:[#allocation323_spill] sm:$0xff]  ;;  %v17158_v62 = vld [vmem:[#allocation60_spill] sm:$0xff] }
 0x666   : > { %5725 = vmatpush.msrb.mxu1 %v17105_v4  ;;  %v17111_v4 = vld [vmem:[#allocation321_spill] sm:$0xff] }
 0x667   : > { %v3475_v57 = vpop.f32.mrf.mxu3  ;;  %v3366_v9 = vadd.f32 %v17111_v4, %v3253_v50  ;;  %v17112_v50 = vld [vmem:[#allocation163_spill] sm:$0xff] }
 0x668   : > { %v3148_v42 = vpop.f32.mrf.mxu2  ;;  %v13583_v16 = vadd.f32 %v3475_v57, %v3363_v22 }
 0x669   : > { %v13585_v37 = vadd.f32 %v3148_v42, %v3036_v18  ;;  %v3258_v61 = vpop.f32.mrf.mxu0 }
 0x66b   : > { %3305 = vmatmul.f32.gmra.mxu0 %v9426_v1  ;;  %5174 = vmatmul.f32.gmra.mxu1 %v17108_v51  ;;  %v3256_v1 = vadd.f32 %v3255_v23, %v13472_v58 }
 0x66c   : > { %8481 = vmatmul.msk.f32.gmra.mxu3 %vm744_vm0, %v9427_v25  ;;  %v9428_v25 = vld [vmem:[%s9835_s6 + $0x270] sm:$0xff] }
 0x66d   : > { %8453 = vmatmul.msk.f32.gmra.mxu2 %vm744_vm0, %v17110_v54  ;;  %v2929_v54 = vadd.f32 %v17112_v50, %v13113_v0  ;;  %v3369_v14 = vadd.f32 %v12974_v48, %v3256_v1  ;;  %v9431_v50 = vld [vmem:[%s9835_s6 + $0x268] sm:$0xff] }
 0x66e   : > { %v17114_v48 = vld [vmem:[#allocation184_spill] sm:$0xff] }
 0x66f   : > { %v3478_v22 = vpop.f32.mrf.mxu3  ;;  %v3042_v4 = vadd.f32 %v13011_v30, %v2929_v54  ;;  %v2932_v1 = vadd.f32 %v17114_v48, %v13113_v0 }
 0x670   : > { %v3151_v18 = vpop.f32.mrf.mxu2  ;;  %v13600_v57 = vadd.f32 %v3478_v22, %v3366_v9 }
 0x671   : > { %v13602_v42 = vadd.f32 %v3151_v18, %v3039_v63  ;;  %v3261_v51 = vpop.f32.mrf.mxu0  ;;  %v3259_v18 = vadd.f32 %v3258_v61, %v13472_v58  ;;  %v3045_v54 = vadd.f32 %v13029_v35, %v2932_v1 }
 0x673   : > { %3308 = vmatmul.f32.gmra.mxu0 %v9428_v25  ;;  %v3372_v30 = vadd.f32 %v12991_v5, %v3259_v18 }
 0x674   : > { %8482 = vmatmul.msk.f32.gmra.mxu3 %vm744_vm0, %v9429_v59  ;;  %v9430_v59 = vld [vmem:[%s9835_s6 + $0x288] sm:$0xff] }
 0x675   : > { %8454 = vmatmul.msk.f32.gmra.mxu2 %vm744_vm0, %v17113_v32 }
 0x677   : > { %v3481_v9 = vpop.f32.mrf.mxu3 }
 0x678   : > { %v3154_v23 = vpop.f32.mrf.mxu2  ;;  %v13614_v63 = vadd.f32 %v3481_v9, %v3369_v14  ;;  %v3262_v9 = vadd.f32 %v3261_v51, %v13472_v58 }
 0x679   : > { %v13616_v22 = vadd.f32 %v3154_v23, %v3042_v4  ;;  %v3264_v25 = vpop.f32.mrf.mxu0 }
 0x67a   : > { %v3375_v35 = vadd.f32 %v13013_v13, %v3262_v9 }
 0x67b   : > { %3311 = vmatmul.f32.gmra.mxu0 %v9430_v59  ;;  %v9432_v59 = vld [vmem:[%s9835_s6 + $0x2a0] sm:$0xff] }
 0x67c   : > { %8483 = vmatmul.msk.f32.gmra.mxu3 %vm744_vm0, %v9431_v50  ;;  %v9433_v50 = vld [vmem:[%s9835_s6 + $0x280] sm:$0xff] }
 0x67d   : > { %8455 = vmatmul.msk.f32.gmra.mxu2 %vm744_vm0, %v12984_v33  ;;  %v17115_v33 = vld [vmem:[#allocation82_spill] sm:$0xff] }
 0x67e   : > { %v2935_v5 = vadd.f32 %v17115_v33, %v13113_v0 }
 0x67f   : > { %v3484_v32 = vpop.f32.mrf.mxu3 }
 0x680   : > { %v3157_v61 = vpop.f32.mrf.mxu2  ;;  %v13628_v14 = vadd.f32 %v3484_v32, %v3372_v30  ;;  %v3048_v18 = vadd.f32 %v13042_v38, %v2935_v5  ;;  %v17117_v38 = vld [vmem:[#allocation88_spill] sm:$0xff] }
 0x681   : > { %v13630_v4 = vadd.f32 %v3157_v61, %v3045_v54  ;;  %v3267_v23 = vpop.f32.mrf.mxu0  ;;  %v3265_v54 = vadd.f32 %v3264_v25, %v13472_v58  ;;  %v9434_v61 = vld [vmem:[%s9835_s6 + $0x2b8] sm:$0xff]  ;;  %v2938_v9 = vadd.f32 %v17117_v38, %v13113_v0  ;;  %v17118_v25 = vld [vmem:[#allocation119_spill] sm:$0xff] }
 0x683   : > { %3314 = vmatmul.f32.gmra.mxu0 %v9432_v59  ;;  %v9435_v59 = vld [vmem:[%s9835_s6 + $0x298] sm:$0xff]  ;;  %v3051_v5 = vadd.f32 %v13056_v47, %v2938_v9  ;;  %v17121_v47 = vld [vmem:[#allocation195_spill] sm:$0xff] }
 0x684   : > { %8484 = vmatmul.msk.f32.gmra.mxu3 %vm744_vm0, %v9433_v50  ;;  %v3378_v50 = vadd.f32 %v13031_v21, %v3265_v54  ;;  %v17120_v21 = vld [vmem:[#allocation22_spill] sm:$0xff]  ;;  %v17122_v9 = vld [vmem:[#allocation79_spill] sm:$0xff] }
 0x685   : > { %8456 = vmatmul.msk.f32.gmra.mxu2 %vm744_vm0, %v12999_v41  ;;  %v17116_v41 = vld [vmem:[#allocation18_spill] sm:$0xff]  ;;  %v862_v54 = vadd.f32 %v17120_v21, %v13084_v15  ;;  %v17127_v21 = vunpack.i.h.bf16 %v17122_v9 }
 0x686   : > { %v859_v13 = vadd.f32 %v17116_v41, %v13084_v15  ;;  %v17119_v41 = vld [vmem:[#allocation16_spill] sm:$0xff] }
 0x687   : > { %v3487_v48 = vpop.f32.mrf.mxu3 }
 0x688   : > { %v3160_v51 = vpop.f32.mrf.mxu2  ;;  %v13642_v1 = vadd.f32 %v3487_v48, %v3375_v35  ;;  %v972_v33 = vadd.f32 %v17118_v25, %v859_v13  ;;  %v2941_v13 = vadd.f32 %v17121_v47, %v13113_v0  ;;  %v17124_v25 = vld [vmem:[#allocation122_spill] sm:$0xff] }
 0x689   : > { %v13644_v30 = vadd.f32 %v3160_v51, %v3048_v18  ;;  %v3270_v32 = vpop.f32.mrf.mxu0 }
 0x68a   : > { %v1085_v38 = vadd.f32 %v17119_v41, %v972_v33  ;;  %v975_v33 = vadd.f32 %v17124_v25, %v862_v54  ;;  %v9438_v54 = vld [vmem:[%s9835_s6 + $0x2e8] sm:$0xff] }
 0x68b   : > { %3317 = vmatmul.f32.gmra.mxu0 %v9434_v61  ;;  %v3268_v61 = vadd.f32 %v3267_v23, %v13472_v58 }
 0x68c   : > { %8485 = vmatmul.msk.f32.gmra.mxu3 %vm744_vm0, %v9435_v59 }
 0x68d   : > { %8457 = vmatmul.msk.f32.gmra.mxu2 %vm744_vm0, %v13021_v45  ;;  %v9437_v45 = vld [vmem:[%s9835_s6 + $0x2b0] sm:$0xff] }
 0x68f   : > { %v3490_v35 = vpop.f32.mrf.mxu3 }
 0x690   : > { %v3163_v18 = vpop.f32.mrf.mxu2  ;;  %v13659_v48 = vadd.f32 %v3490_v35, %v3378_v50  ;;  %v17123_v50 = vunpack.i.l.bf16 %v17122_v9 }
 0x691   : > { %v13661_v51 = vadd.f32 %v3163_v18, %v3051_v5  ;;  %v3273_v59 = vpop.f32.mrf.mxu0  ;;  %v3054_v5 = vadd.f32 %v13077_v49, %v2941_v13  ;;  %v9439_v49 = vld [vmem:[%s9835_s6 + $0x2c8] sm:$0xff]  ;;  %v17129_v13 = vld [vmem:[#allocation26_spill] sm:$0xff] }
 0x692   : > { %v3780_v23 = vsel %vm744_vm0, %v17123_v50, %v12422_v6  ;;  %v3778_v6 = vsel %vm744_vm0, %v17127_v21, %v12477_v40  ;;  %v865_v50 = vadd.f32 %v17129_v13, %v13084_v15  ;;  %v17133_v21 = vld [vmem:[#allocation164_spill] sm:$0xff] }
 0x693   : > { %3320 = vmatmul.f32.gmra.mxu0 %v9436_v39  ;;  %v3381_v39 = vadd.f32 %v13050_v8, %v3268_v61  ;;  %v17128_v8 = vld [vmem:[#allocation17_spill] sm:$0xff] }
 0x694   : > { %8486 = vmatmul.msk.f32.gmra.mxu3 %vm744_vm0, %v9437_v45  ;;  %v1088_v61 = vadd.f32 %v17128_v8, %v975_v33 }
 0x695   : > { %3603 = vmatmul.f32.vlgmr.msrb.gmra.mxu2 %v1085_v38  ;;  %v3271_v38 = vadd.f32 %v3270_v32, %v13472_v58  ;;  %v17131_v32 = vld [vmem:[#allocation125_spill] sm:$0xff] }
 0x696   : > { %3830 = vmatpush.xpose.msrb.mxu2 %v3780_v23  ;;  %v17130_v23 = vld [vmem:[#allocation191_spill] sm:$0xff] }
 0x697   : > { %v3493_v35 = vpop.f32.mrf.mxu3  ;;  %v2944_v9 = vadd.f32 %v17130_v23, %v13113_v0  ;;  %v3384_v40 = vadd.f32 %v13075_v56, %v3271_v38  ;;  %v17135_v0 = vld [vmem:[#allocation21_spill] sm:$0xff]  ;;  %v9440_v56 = vld [vmem:[%s9835_s6 + $0x2e0] sm:$0xff] }
 0x698   : > { %v3166_v18 = vpop.f32.mrf.mxu2  ;;  %v13679_v41 = vadd.f32 %v3493_v35, %v3381_v39  ;;  %v978_v39 = vadd.f32 %v17131_v32, %v865_v50  ;;  %v17136_v38 = vld [vmem:[#allocation206_spill] sm:$0xff] }
 0x699   : > { %v13681_v45 = vadd.f32 %v3166_v18, %v3054_v5  ;;  %v3276_v47 = vpop.f32.mrf.mxu0  ;;  %v3057_v25 = vadd.f32 %v13102_v20, %v2944_v9  ;;  %v17132_v18 = vld [vmem:[#allocation117_spill] sm:$0xff]  ;;  %v17137_v20 = vld [vmem:[#allocation30_spill] sm:$0xff] }
 0x69a   : > { %17125 = vst [vmem:[#allocation251_spill] sm:$0xff] %v13679_v41  ;;  %3831 = vmatpush.xpose.msrb.mxu2 %v3778_v6  ;;  %v1424_v6 = vadd.f32 %v17133_v21, %v17132_v18  ;;  %v868_v13 = vadd.f32 %v17137_v20, %v13084_v15  ;;  %v3277_v21 = vadd.f32 %v3276_v47, %v13472_v58  ;;  %v17147_v20 = vld [vmem:[#allocation203_spill] sm:$0xff] }
 0x69b   : > { %17126 = vst [vmem:[#allocation274_spill] sm:$0xff] %v13681_v45  ;;  %3323 = vmatmul.f32.gmra.mxu0 %v9438_v54  ;;  %v3274_v54 = vadd.f32 %v3273_v59, %v13472_v58  ;;  %v17138_v59 = vld [vmem:[#allocation128_spill] sm:$0xff] }
 0x69c   : > { %8487 = vmatmul.msk.f32.gmra.mxu3 %vm744_vm0, %v9439_v49  ;;  %v981_v23 = vadd.f32 %v17138_v59, %v868_v13  ;;  %v8923_v13 = vunpack.i.h.bf16 %v17147_v20  ;;  %v17149_v59 = vld [vmem:[#allocation224_spill] sm:$0xff] }
 0x69d   : > { %3606 = vmatmul.f32.gmra.mxu2 %v1088_v61  ;;  %v1091_v61 = vadd.f32 %v17135_v0, %v978_v39  ;;  %v3387_v50 = vadd.f32 %v13105_v34, %v3274_v54  ;;  %v17140_v39 = vld [vmem:[#allocation199_spill] sm:$0xff]  ;;  %v17145_v34 = vld [vmem:[#allocation25_spill] sm:$0xff] }
 0x69e   : > { %v1094_v54 = vadd.f32 %v17145_v34, %v981_v23  ;;  %v9441_v0 = vld [vmem:[%s9835_s6 + $0x2f8] sm:$0xff]  ;;  %v17150_v23 = vld [vmem:[#allocation112_spill] sm:$0xff] }
 0x69f   : > { %v3496_v33 = vpop.f32.mrf.mxu3  ;;  %v17154_v34 = vld [vmem:[#allocation129_spill] sm:$0xff] }
 0x6a0   : > { %v3169_v5 = vpop.f32.mrf.mxu2  ;;  %v13699_v35 = vadd.f32 %v3496_v33, %v3384_v40  ;;  %v17142_v33 = vld [vmem:[#allocation167_spill] sm:$0xff] }
 0x6a1   : > { %v13703_v8 = vadd.f32 %v3169_v5, %v3057_v25  ;;  %v3279_v49 = vpop.f32.mrf.mxu0  ;;  %v17141_v25 = vld [vmem:[#allocation120_spill] sm:$0xff] }
 0x6a2   : > { %v1427_v5 = vadd.f32 %v17142_v33, %v17141_v25  ;;  %v17152_v25 = vld [vmem:[#allocation123_spill] sm:$0xff]  ;;  %v17153_v33 = vld [vmem:[#allocation170_spill] sm:$0xff] }
 0x6a3   : > { %17134 = vst [vmem:[#allocation242_spill] sm:$0xff] %v13703_v8  ;;  %3626 = vmatmul.f32.vlgmr.msrb.gmra.mxu0 %v1424_v6  ;;  %v17144_v6 = vld [vmem:[#allocation197_spill] sm:$0xff] }
 0x6a4   : > { %8488 = vmatmul.msk.f32.gmra.mxu3 %vm744_vm0, %v9440_v56  ;;  %3910 = vmatpush.xpose.msrb.mxu0 %v17136_v38 }
 0x6a5   : > { %3706 = vmatmul.f32.vlgmr.msra.gmra.mxu2 %v1091_v61  ;;  %v17146_v61 = vld [vmem:[#allocation153_spill] sm:$0xff] }
 0x6a6   : > { %8502 = vmatpush.xpose.msk.msra.mxu2 %vm744_vm0, %v12452_v31  ;;  %v3390_v56 = vadd.f32 %v17146_v61, %v3277_v21  ;;  %v3280_v21 = vadd.f32 %v3279_v49, %v13472_v58  ;;  %v17156_v61 = vld [vmem:[#allocation214_spill] sm:$0xff] }
 0x6a7   : > { %v3499_v9 = vpop.f32.mrf.mxu3 }
 0x6a8   : > { %v3172_v40 = vpop.f32.mrf.mxu2  ;;  %v13716_v32 = vadd.f32 %v3499_v9, %v3387_v50  ;;  %3911 = vmatpush.xpose.msrb.mxu0 %v17140_v39  ;;  %v8943_v9 = vunpack.i.h.bf16 %v17149_v59 }
 0x6a9   : > { %v13722_v18 = vadd.f32 %v3172_v40, %v13126_v12  ;;  %v3282_v31 = vpop.f32.mrf.mxu0  ;;  %v8922_v12 = vunpack.i.l.bf16 %v17147_v20  ;;  %v8942_v40 = vunpack.i.l.bf16 %v17149_v59  ;;  %v8933_v20 = vunpack.i.h.bf16 %v17156_v61 }
 0x6aa   : > { %17139 = vst [vmem:[#allocation84_spill] sm:$0xff] %v13716_v32  ;;  %8503 = vmatpush.xpose.msk.msra.mxu2 %vm744_vm0, %v17144_v6 }
 0x6ab   : > { %17143 = vst [vmem:[#allocation100_spill] sm:$0xff] %v13722_v18  ;;  %3629 = vmatmul.f32.gmra.mxu0 %v1427_v5  ;;  %v1430_v5 = vadd.f32 %v17153_v33, %v17152_v25  ;;  %v3985_v59 = vsel %vm744_vm0, %v8922_v12, %v8923_v13  ;;  %v4088_v33 = vsel %vm744_vm0, %v8942_v40, %v8943_v9  ;;  %v17161_v18 = vld [vmem:[#allocation258_spill] sm:$0xff] }
 0x6ac   : > { %8489 = vmatmul.msk.f32.gmra.mxu3 %vm744_vm0, %v9441_v0  ;;  %v17163_v40 = vld [vmem:[#allocation126_spill] sm:$0xff] }
 0x6ad   : > { %3709 = vmatmul.f32.gmra.mxu2 %v1094_v54  ;;  %v17155_v54 = vld [vmem:[#allocation176_spill] sm:$0xff] }
 0x6ae   : > { %v1436_v0 = vadd.f32 %v17155_v54, %v17154_v34  ;;  %v17160_v34 = vld [vmem:[#allocation38_spill] sm:$0xff] }
 0x6af   : > { %v3502_v38 = vpop.f32.mrf.mxu3  ;;  %v3393_v54 = vadd.f32 %v17160_v34, %v3280_v21  ;;  %v3283_v21 = vadd.f32 %v3282_v31, %v13472_v58  ;;  %v17166_v34 = vld [vmem:[#allocation132_spill] sm:$0xff] }
 0x6b0   : > { %v3175_v50 = vpop.f32.mrf.mxu2  ;;  %v13733_v47 = vadd.f32 %v3502_v38, %v3390_v56  ;;  %v17157_v56 = vld [vmem:[#allocation127_spill] sm:$0xff] }
 0x6b1   : > { %v13738_v39 = vadd.f32 %v3175_v50, %v17150_v23  ;;  %v3285_v6 = vpop.f32.mrf.mxu0  ;;  %v3986_v38 = vsel %vm744_vm0, %v8923_v13, %v17157_v56  ;;  %v8932_v50 = vunpack.i.l.bf16 %v17156_v61  ;;  %v17159_v23 = vld [vmem:[#allocation139_spill] sm:$0xff] }
 0x6b2   : > { %17148 = vst [vmem:[#allocation43_spill] sm:$0xff] %v13733_v47  ;;  %v8948_v49 = vunpack.i.h.bf16 %v17159_v23  ;;  %v8947_v25 = vunpack.i.l.bf16 %v17159_v23 }
 0x6b3   : > { %17151 = vst [vmem:[#allocation252_spill] sm:$0xff] %v13738_v39  ;;  %8496 = vmatmul.msk.f32.vlgmr.msra.gmra.mxu0 %vm744_vm0, %v17158_v62  ;;  %v3984_v62 = vsel %vm744_vm0, %v8933_v20, %v17161_v18  ;;  %v3983_v13 = vsel %vm744_vm0, %v8932_v50, %v8933_v20  ;;  %v17165_v18 = vld [vmem:[#allocation42_spill] sm:$0xff]  ;;  %v17168_v50 = vld [vmem:[#allocation148_spill] sm:$0xff] }
 0x6b4   : > { %3729 = vmatmul.f32.vlgmr.msrb.gmra.mxu3 %v1430_v5  ;;  %4036 = vmatpush.xpose.msra.mxu0 %v3986_v38  ;;  %v17164_v38 = vld [vmem:[#allocation173_spill] sm:$0xff] }
 0x6b5   : > { %3832 = vmatmul.f32.vlgmr.msrb.gmra.mxu2 %v1436_v0  ;;  %4013 = vmatpush.xpose.msrb.mxu3 %v3985_v59  ;;  %v4086_v0 = vsel %vm744_vm0, %v8947_v25, %v8948_v49  ;;  %v1433_v59 = vadd.f32 %v17164_v38, %v17163_v40  ;;  %v3396_v25 = vadd.f32 %v13186_v17, %v3283_v21  ;;  %v17174_v17 = vld [vmem:[#allocation253_spill] sm:$0xff]  ;;  %v17175_v21 = vld [vmem:[#allocation140_spill] sm:$0xff] }
 0x6b6   : > { %4116 = vmatpush.xpose.msrb.mxu2 %v4088_v33  ;;  %v877_v33 = vadd.f32 %v17165_v18, %v13084_v15  ;;  %v3286_v38 = vadd.f32 %v3285_v6, %v13472_v58 }
 0x6b7   : > { %v3505_v56 = vpop.f32.mrf.mxu3 }
 0x6b8   : > { %v3178_v61 = vpop.f32.mrf.mxu2  ;;  %v13758_v5 = vadd.f32 %v3505_v56, %v3393_v54  ;;  %4037 = vmatpush.xpose.msra.mxu0 %v3984_v62  ;;  %v17167_v54 = vld [vmem:[#allocation179_spill] sm:$0xff] }
 0x6b9   : > { %v13762_v12 = vadd.f32 %v3178_v61, %v13171_v44  ;;  %4014 = vmatpush.xpose.msrb.mxu3 %v3983_v13  ;;  %v3288_v23 = vpop.f32.mrf.mxu0  ;;  %v1439_v20 = vadd.f32 %v17167_v54, %v17166_v34  ;;  %v17169_v44 = vld [vmem:[#allocation137_spill] sm:$0xff]  ;;  %v17172_v34 = vld [vmem:[#allocation46_spill] sm:$0xff] }
 0x6ba   : > { %4117 = vmatpush.xpose.msrb.mxu2 %v4086_v0  ;;  %v990_v56 = vadd.f32 %v17169_v44, %v877_v33  ;;  %v17170_v13 = vld [vmem:[#allocation37_spill] sm:$0xff] }
 0x6bb   : > { %17162 = vst [vmem:[#allocation280_spill] sm:$0xff] %v13762_v12  ;;  %8497 = vmatmul.msk.f32.gmra.mxu0 %vm744_vm0, %v17168_v50  ;;  %v17173_v33 = vld [vmem:[#allocation205_spill] sm:$0xff]  ;;  %v17177_v50 = vld [vmem:[#allocation211_spill] sm:$0xff] }
 0x6bc   : > { %3732 = vmatmul.f32.gmra.mxu3 %v1433_v59  ;;  %v1103_v0 = vadd.f32 %v17170_v13, %v990_v56  ;;  %v880_v59 = vadd.f32 %v17172_v34, %v13084_v15  ;;  %v4089_v54 = vsel %vm744_vm0, %v8943_v9, %v17173_v33  ;;  %v17178_v44 = vunpack.i.l.bf16 %v17177_v50  ;;  %v17179_v56 = vld [vmem:[#allocation70_spill] sm:$0xff]  ;;  %v17181_v13 = vld [vmem:[#allocation227_spill] sm:$0xff]  ;;  %v17182_v34 = vld [vmem:[#allocation41_spill] sm:$0xff] }
 0x6bd   : > { %3835 = vmatmul.f32.gmra.mxu2 %v1439_v20  ;;  %v3399_v9 = vadd.f32 %v13213_v10, %v3286_v38  ;;  %v3289_v38 = vadd.f32 %v3288_v23, %v13472_v58  ;;  %v17192_v23 = vld [vmem:[#allocation150_spill] sm:$0xff] }
 0x6be   : > { %v993_v20 = vadd.f32 %v17175_v21, %v880_v59  ;;  %v17186_v21 = vunpack.i.h.bf16 %v17177_v50  ;;  %v17191_v50 = vld [vmem:[#allocation143_spill] sm:$0xff] }
 0x6bf   : > { %v3508_v62 = vpop.f32.mrf.mxu3 }
 0x6c0   : > { %v3181_v61 = vpop.f32.mrf.mxu2  ;;  %v13776_v31 = vadd.f32 %v3508_v62, %v3396_v25  ;;  %v1106_v59 = vadd.f32 %v17182_v34, %v993_v20  ;;  %v17189_v20 = vld [vmem:[#allocation57_spill] sm:$0xff] }
 0x6c1   : > { %v13780_v40 = vadd.f32 %v3181_v61, %v13188_v43  ;;  %v3291_v18 = vpop.f32.mrf.mxu0  ;;  %v17176_v43 = vld [vmem:[#allocation248_spill] sm:$0xff] }
 0x6c2   : > { %v4192_v6 = vsel %vm744_vm0, %v17178_v44, %v17176_v43 }
 0x6c3   : > { %17171 = vst [vmem:[#allocation267_spill] sm:$0xff] %v13780_v40  ;;  %3912 = vmatmul.f32.vlgmr.msrb.gmra.mxu0 %v1103_v0  ;;  %v4087_v0 = vsel %vm744_vm0, %v8948_v49, %v17181_v13  ;;  %v17187_v49 = vld [vmem:[#allocation50_spill] sm:$0xff] }
 0x6c4   : > { %8500 = vmatmul.msk.f32.vlgmr.msra.gmra.mxu3 %vm744_vm0, %v17174_v17  ;;  %8510 = vmatpush.xpose.msk.msrb.mxu0 %vm744_vm0, %v17173_v33  ;;  %v17183_v33 = vld [vmem:[#allocation193_spill] sm:$0xff] }
 0x6c5   : > { %8504 = vmatmul.msk.f32.vlgmr.msra.gmra.mxu2 %vm744_vm0, %v17179_v56  ;;  %4139 = vmatpush.xpose.msra.mxu3 %v4089_v54  ;;  %v17185_v54 = vld [vmem:[#allocation219_spill] sm:$0xff]  ;;  %v17188_v56 = vld [vmem:[#allocation152_spill] sm:$0xff] }
 0x6c6   : > { %4242 = vmatpush.xpose.msra.mxu2 %v4192_v6  ;;  %v4190_v10 = vsel %vm744_vm0, %v17186_v21, %v17185_v54  ;;  %v883_v6 = vadd.f32 %v17187_v49, %v13084_v15  ;;  %v17194_v21 = vld [vmem:[#allocation141_spill] sm:$0xff] }
 0x6c7   : > { %v3511_v25 = vpop.f32.mrf.mxu3 }
 0x6c8   : > { %v3184_v62 = vpop.f32.mrf.mxu2  ;;  %v13799_v61 = vadd.f32 %v3511_v25, %v3399_v9  ;;  %8511 = vmatpush.xpose.msk.msrb.mxu0 %vm744_vm0, %v17181_v13  ;;  %v889_v9 = vadd.f32 %v17189_v20, %v13084_v15  ;;  %v17190_v25 = vld [vmem:[#allocation156_spill] sm:$0xff]  ;;  %v3402_v13 = vadd.f32 %v13238_v28, %v3289_v38  ;;  %v17197_v20 = vld [vmem:[#allocation45_spill] sm:$0xff]  ;;  %v17199_v28 = vld [vmem:[#allocation54_spill] sm:$0xff] }
 0x6c9   : > { %v13807_v17 = vadd.f32 %v3184_v62, %v17183_v33  ;;  %4140 = vmatpush.xpose.msra.mxu3 %v4087_v0  ;;  %v3294_v44 = vpop.f32.mrf.mxu0  ;;  %v996_v62 = vadd.f32 %v17191_v50, %v883_v6  ;;  %v17198_v6 = vld [vmem:[#allocation53_spill] sm:$0xff]  ;;  %v886_v38 = vadd.f32 %v17199_v28, %v13084_v15  ;;  %v17209_v28 = vld [vmem:[#allocation135_spill] sm:$0xff] }
 0x6ca   : > { %17180 = vst [vmem:[#allocation292_spill] sm:$0xff] %v13799_v61  ;;  %4243 = vmatpush.xpose.msra.mxu2 %v4190_v10  ;;  %v1002_v0 = vadd.f32 %v17192_v23, %v889_v9  ;;  %v17195_v10 = vld [vmem:[#allocation187_spill] sm:$0xff]  ;;  %v17200_v9 = vld [vmem:[#allocation269_spill] sm:$0xff] }
 0x6cb   : > { %17184 = vst [vmem:[#allocation80_spill] sm:$0xff] %v13807_v17  ;;  %3915 = vmatmul.f32.gmra.mxu0 %v1106_v59  ;;  %v1448_v49 = vadd.f32 %v17195_v10, %v17194_v21  ;;  %v1109_v12 = vadd.f32 %v17197_v20, %v996_v62  ;;  %v17207_v20 = vld [vmem:[#allocation144_spill] sm:$0xff]  ;;  %v17359_v61 = vld [vmem:[#allocation289_spill] sm:$0xff] }
 0x6cc   : > { %8501 = vmatmul.msk.f32.gmra.mxu3 %vm744_vm0, %v17188_v56  ;;  %v1115_v50 = vadd.f32 %v17198_v6, %v1002_v0  ;;  %v17208_v6 = vld [vmem:[#allocation189_spill] sm:$0xff] }
 0x6cd   : > { %8505 = vmatmul.msk.f32.gmra.mxu2 %vm744_vm0, %v17190_v25  ;;  %v3292_v25 = vadd.f32 %v3291_v18, %v13472_v58  ;;  %v17203_v18 = vld [vmem:[#allocation264_spill] sm:$0xff] }
 0x6cf   : > { %v3514_v34 = vpop.f32.mrf.mxu3  ;;  %v3405_v0 = vadd.f32 %v13266_v52, %v3292_v25  ;;  %v3295_v52 = vadd.f32 %v3294_v44, %v13472_v58  ;;  %v17212_v25 = vld [vmem:[#allocation263_spill] sm:$0xff]  ;;  %v17216_v44 = vld [vmem:[#allocation272_spill] sm:$0xff] }
 0x6d0   : > { %v3187_v59 = vpop.f32.mrf.mxu2  ;;  %v13825_v33 = vadd.f32 %v3514_v34, %v3402_v13  ;;  %v17201_v13 = vld [vmem:[#allocation59_spill] sm:$0xff]  ;;  %v17204_v34 = vld [vmem:[#allocation154_spill] sm:$0xff] }
 0x6d1   : > { %v13830_v56 = vadd.f32 %v3187_v59, %v13233_v3  ;;  %v3297_v40 = vpop.f32.mrf.mxu0  ;;  %v892_v23 = vadd.f32 %v17201_v13, %v13084_v15  ;;  %v17202_v3 = vld [vmem:[#allocation146_spill] sm:$0xff] }
 0x6d2   : > { %17193 = vst [vmem:[#allocation87_spill] sm:$0xff] %v13825_v33  ;;  %v999_v62 = vadd.f32 %v17202_v3, %v886_v38  ;;  %v17211_v38 = vld [vmem:[#allocation49_spill] sm:$0xff] }
 0x6d3   : > { %17196 = vst [vmem:[#allocation47_spill] sm:$0xff] %v13830_v56  ;;  %4038 = vmatmul.f32.vlgmr.msra.gmra.mxu0 %v1448_v49  ;;  %v1005_v59 = vadd.f32 %v17204_v34, %v892_v23  ;;  %v17206_v49 = vld [vmem:[#allocation265_spill] sm:$0xff]  ;;  %v17213_v23 = vld [vmem:[#allocation56_spill] sm:$0xff]  ;;  %v17214_v34 = vld [vmem:[#allocation234_spill] sm:$0xff] }
 0x6d4   : > { %4015 = vmatmul.f32.vlgmr.msrb.gmra.mxu3 %v1109_v12  ;;  %4322 = vmatpush.xpose.msra.mxu0 %v17200_v9  ;;  %v1112_v9 = vadd.f32 %v17211_v38, %v999_v62 }
 0x6d5   : > { %4118 = vmatmul.f32.vlgmr.msrb.gmra.mxu2 %v1115_v50  ;;  %8514 = vmatpush.xpose.msk.msrb.mxu3 %vm744_vm0, %v17176_v43  ;;  %v1451_v50 = vadd.f32 %v17208_v6, %v17207_v20  ;;  %v1118_v3 = vadd.f32 %v17213_v23, %v1005_v59  ;;  %v8982_v20 = vunpack.i.l.bf16 %v17216_v44  ;;  %v17217_v6 = vld [vmem:[#allocation222_spill] sm:$0xff]  ;;  %v17219_v59 = vld [vmem:[#allocation147_spill] sm:$0xff] }
 0x6d6   : > { %8518 = vmatpush.xpose.msk.msrb.mxu2 %vm744_vm0, %v17203_v18  ;;  %v3408_v18 = vadd.f32 %v13298_v11, %v3295_v52  ;;  %v3298_v11 = vadd.f32 %v3297_v40, %v13472_v58  ;;  %v17221_v52 = vld [vmem:[#allocation155_spill] sm:$0xff] }
 0x6d7   : > { %v3517_v21 = vpop.f32.mrf.mxu3 }
 0x6d8   : > { %v3190_v12 = vpop.f32.mrf.mxu2  ;;  %v13847_v10 = vadd.f32 %v3517_v21, %v3405_v0  ;;  %4323 = vmatpush.xpose.msra.mxu0 %v17206_v49  ;;  %v8963_v21 = vunpack.i.h.bf16 %v17214_v34  ;;  %v8983_v49 = vunpack.i.h.bf16 %v17216_v44 }
 0x6d9   : > { %v13853_v43 = vadd.f32 %v3190_v12, %v17209_v28  ;;  %8515 = vmatpush.xpose.msk.msrb.mxu3 %vm744_vm0, %v17185_v54  ;;  %v3300_v13 = vpop.f32.mrf.mxu0  ;;  %v8962_v54 = vunpack.i.l.bf16 %v17214_v34  ;;  %v17225_v34 = vld [vmem:[#allocation247_spill] sm:$0xff] }
 0x6da   : > { %17205 = vst [vmem:[#allocation254_spill] sm:$0xff] %v13847_v10  ;;  %8519 = vmatpush.xpose.msk.msrb.mxu2 %vm744_vm0, %v17212_v25  ;;  %v17222_v25 = vld [vmem:[#allocation196_spill] sm:$0xff]  ;;  %v8973_v44 = vunpack.i.h.bf16 %v17225_v34 }
 0x6db   : > { %17210 = vst [vmem:[#allocation285_spill] sm:$0xff] %v13853_v43  ;;  %4041 = vmatmul.f32.gmra.mxu0 %v1451_v50  ;;  %v17220_v50 = vld [vmem:[#allocation192_spill] sm:$0xff]  ;;  %v1460_v23 = vadd.f32 %v17222_v25, %v17221_v52  ;;  %v4500_v52 = vsel %vm744_vm0, %v8982_v20, %v8983_v49  ;;  %v3411_v25 = vadd.f32 %v13324_v19, %v3298_v11  ;;  %v17231_v19 = vld [vmem:[#allocation151_spill] sm:$0xff]  ;;  %v17232_v11 = vld [vmem:[#allocation194_spill] sm:$0xff] }
 0x6dc   : > { %4018 = vmatmul.f32.gmra.mxu3 %v1112_v9  ;;  %v1454_v38 = vadd.f32 %v17220_v50, %v17219_v59  ;;  %v17226_v59 = vld [vmem:[#allocation257_spill] sm:$0xff] }
 0x6dd   : > { %4121 = vmatmul.f32.gmra.mxu2 %v1118_v3  ;;  %v17223_v3 = vld [vmem:[#allocation281_spill] sm:$0xff]  ;;  %v8988_v40 = vunpack.i.h.bf16 %v17226_v59  ;;  %v8987_v50 = vunpack.i.l.bf16 %v17226_v59  ;;  %v3301_v59 = vadd.f32 %v3300_v13, %v13472_v58 }
 0x6df   : > { %v3520_v0 = vpop.f32.mrf.mxu3  ;;  %v4498_v20 = vsel %vm744_vm0, %v8987_v50, %v8988_v40 }
 0x6e0   : > { %v3193_v12 = vpop.f32.mrf.mxu2  ;;  %v13865_v62 = vadd.f32 %v3520_v0, %v3408_v18  ;;  %v4398_v18 = vsel %vm744_vm0, %v8963_v21, %v17223_v3  ;;  %v17224_v0 = vld [vmem:[#allocation73_spill] sm:$0xff] }
 0x6e1   : > { %v13870_v28 = vadd.f32 %v3193_v12, %v17217_v6  ;;  %v3303_v9 = vpop.f32.mrf.mxu0  ;;  %v8972_v12 = vunpack.i.l.bf16 %v17225_v34  ;;  %v4397_v6 = vsel %vm744_vm0, %v8962_v54, %v8963_v21  ;;  %v17229_v54 = vld [vmem:[#allocation67_spill] sm:$0xff] }
 0x6e2   : > { %17215 = vst [vmem:[#allocation273_spill] sm:$0xff] %v13865_v62 }
 0x6e3   : > { %17218 = vst [vmem:[#allocation295_spill] sm:$0xff] %v13870_v28  ;;  %8512 = vmatmul.msk.f32.vlgmr.msrb.gmra.mxu0 %vm744_vm0, %v17224_v0  ;;  %v17227_v0 = vld [vmem:[#allocation218_spill] sm:$0xff]  ;;  %v4395_v21 = vsel %vm744_vm0, %v8972_v12, %v8973_v44  ;;  %v17236_v12 = vld [vmem:[#allocation19_spill] sm:$0xff] }
 0x6e4   : > { %4141 = vmatmul.f32.vlgmr.msra.gmra.mxu3 %v1454_v38  ;;  %4448 = vmatpush.xpose.msrb.mxu0 %v4398_v18  ;;  %v4396_v43 = vsel %vm744_vm0, %v8973_v44, %v17227_v0  ;;  %v901_v18 = vadd.f32 %v17229_v54, %v13084_v15  ;;  %v3414_v0 = vadd.f32 %v13358_v53, %v3301_v59  ;;  %v17238_v54 = vld [vmem:[#allocation64_spill] sm:$0xff]  ;;  %v17243_v53 = vld [vmem:[#allocation266_spill] sm:$0xff] }
 0x6e5   : > { %4244 = vmatmul.f32.vlgmr.msra.gmra.mxu2 %v1460_v23  ;;  %4425 = vmatpush.xpose.msra.mxu3 %v4397_v6  ;;  %v1457_v6 = vadd.f32 %v17232_v11, %v17231_v19  ;;  %v17240_v11 = vld [vmem:[#allocation256_spill] sm:$0xff]  ;;  %v4501_v59 = vsel %vm744_vm0, %v8983_v49, %v17243_v53 }
 0x6e6   : > { %4528 = vmatpush.xpose.msra.mxu2 %v4500_v52 }
 0x6e7   : > { %v3523_v3 = vpop.f32.mrf.mxu3 }
 0x6e8   : > { %v3196_v34 = vpop.f32.mrf.mxu2  ;;  %v13890_v38 = vadd.f32 %v3523_v3, %v3411_v25  ;;  %4449 = vmatpush.xpose.msrb.mxu0 %v4396_v43  ;;  %v17233_v25 = vld [vmem:[#allocation158_spill] sm:$0xff]  ;;  %v17235_v43 = vld [vmem:[#allocation76_spill] sm:$0xff] }
 0x6e9   : > { %v13896_v23 = vadd.f32 %v3196_v34, %v13305_v27  ;;  %4426 = vmatpush.xpose.msra.mxu3 %v4395_v21  ;;  %v3306_v52 = vpop.f32.mrf.mxu0  ;;  %v17234_v3 = vld [vmem:[#allocation198_spill] sm:$0xff]  ;;  %v1014_v27 = vadd.f32 %v17236_v12, %v901_v18  ;;  %v17245_v12 = vld [vmem:[#allocation91_spill] sm:$0xff] }
 0x6ea   : > { %17228 = vst [vmem:[#allocation83_spill] sm:$0xff] %v13890_v38  ;;  %4529 = vmatpush.xpose.msra.mxu2 %v4498_v20  ;;  %v1463_v44 = vadd.f32 %v17234_v3, %v17233_v25  ;;  %v17239_v20 = vld [vmem:[#allocation69_spill] sm:$0xff]  ;;  %v3304_v3 = vadd.f32 %v3303_v9, %v13472_v58  ;;  %v17242_v18 = vld [vmem:[#allocation166_spill] sm:$0xff] }
 0x6eb   : > { %17230 = vst [vmem:[#allocation255_spill] sm:$0xff] %v13896_v23  ;;  %8513 = vmatmul.msk.f32.gmra.mxu0 %vm744_vm0, %v17235_v43  ;;  %v1127_v13 = vadd.f32 %v17238_v54, %v1014_v27  ;;  %v904_v19 = vadd.f32 %v17239_v20, %v13084_v15  ;;  %v17246_v27 = vld [vmem:[#allocation277_spill] sm:$0xff]  ;;  %v17265_v23 = vld [vmem:[#allocation207_spill] sm:$0xff] }
 0x6ec   : > { %4144 = vmatmul.f32.gmra.mxu3 %v1457_v6 }
 0x6ed   : > { %4247 = vmatmul.f32.gmra.mxu2 %v1463_v44  ;;  %v17244_v44 = vld [vmem:[#allocation23_spill] sm:$0xff] }
 0x6ee   : > { %v1017_v43 = vadd.f32 %v17244_v44, %v904_v19  ;;  %v17252_v19 = vld [vmem:[#allocation260_spill] sm:$0xff] }
 0x6ef   : > { %v3526_v50 = vpop.f32.mrf.mxu3 }
 0x6f0   : > { %v3199_v34 = vpop.f32.mrf.mxu2  ;;  %v13908_v21 = vadd.f32 %v3526_v50, %v3414_v0  ;;  %v17247_v0 = vld [vmem:[#allocation288_spill] sm:$0xff] }
 0x6f1   : > { %v13914_v25 = vadd.f32 %v3199_v34, %v17240_v11  ;;  %v3309_v6 = vpop.f32.mrf.mxu0  ;;  %v17248_v9 = vunpack.i.l.bf16 %v17247_v0  ;;  %v17249_v34 = vld [vmem:[#allocation65_spill] sm:$0xff]  ;;  %v17251_v11 = vld [vmem:[#allocation270_spill] sm:$0xff]  ;;  %v17255_v44 = vunpack.i.h.bf16 %v17247_v0  ;;  %v17261_v0 = vld [vmem:[#allocation27_spill] sm:$0xff] }
 0x6f2   : > { %17237 = vst [vmem:[#allocation290_spill] sm:$0xff] %v13908_v21  ;;  %v3417_v54 = vadd.f32 %v17249_v34, %v3304_v3  ;;  %v17256_v3 = vld [vmem:[#allocation66_spill] sm:$0xff] }
 0x6f3   : > { %17241 = vst [vmem:[#allocation279_spill] sm:$0xff] %v13914_v25  ;;  %4324 = vmatmul.f32.vlgmr.msra.gmra.mxu0 %v1127_v13  ;;  %v4604_v50 = vsel %vm744_vm0, %v17248_v9, %v17246_v27  ;;  %v1130_v9 = vadd.f32 %v17256_v3, %v1017_v43  ;;  %v17351_v21 = vld [vmem:[#allocation130_spill] sm:$0xff] }
 0x6f4   : > { %8516 = vmatmul.msk.f32.vlgmr.msrb.gmra.mxu3 %vm744_vm0, %v17242_v18  ;;  %8526 = vmatpush.xpose.msk.msra.mxu0 %vm744_vm0, %v17243_v53  ;;  %v4499_v18 = vsel %vm744_vm0, %v8988_v40, %v17251_v11 }
 0x6f5   : > { %8520 = vmatmul.msk.f32.vlgmr.msrb.gmra.mxu2 %vm744_vm0, %v17245_v12  ;;  %4551 = vmatpush.xpose.msrb.mxu3 %v4501_v59  ;;  %v17254_v59 = vld [vmem:[#allocation138_spill] sm:$0xff] }
 0x6f6   : > { %4654 = vmatpush.xpose.msrb.mxu2 %v4604_v50  ;;  %v4602_v12 = vsel %vm744_vm0, %v17255_v44, %v17254_v59  ;;  %v17257_v50 = vld [vmem:[#allocation72_spill] sm:$0xff]  ;;  %v17262_v44 = vld [vmem:[#allocation35_spill] sm:$0xff] }
 0x6f7   : > { %v3529_v13 = vpop.f32.mrf.mxu3  ;;  %v907_v34 = vadd.f32 %v17257_v50, %v13084_v15 }
 0x6f8   : > { %v3202_v20 = vpop.f32.mrf.mxu2  ;;  %v13931_v49 = vadd.f32 %v3529_v13, %v3417_v54  ;;  %8527 = vmatpush.xpose.msk.msra.mxu0 %vm744_vm0, %v17251_v11  ;;  %v3307_v54 = vadd.f32 %v3306_v52, %v13472_v58  ;;  %v17258_v13 = vld [vmem:[#allocation78_spill] sm:$0xff] }
 0x6f9   : > { %v13938_v53 = vadd.f32 %v3202_v20, %v17252_v19  ;;  %4552 = vmatpush.xpose.msrb.mxu3 %v4499_v18  ;;  %v3312_v40 = vpop.f32.mrf.mxu0  ;;  %v913_v11 = vadd.f32 %v17258_v13, %v13084_v15  ;;  %v17259_v20 = vld [vmem:[#allocation85_spill] sm:$0xff]  ;;  %v17260_v18 = vld [vmem:[#allocation94_spill] sm:$0xff]  ;;  %v1020_v19 = vadd.f32 %v17261_v0, %v907_v34  ;;  %v3310_v34 = vadd.f32 %v3309_v6, %v13472_v58 }
 0x6fa   : > { %17250 = vst [vmem:[#allocation300_spill] sm:$0xff] %v13931_v49  ;;  %4655 = vmatpush.xpose.msrb.mxu2 %v4602_v12  ;;  %v3420_v43 = vadd.f32 %v13426_v46, %v3307_v54  ;;  %v17270_v54 = vld [vmem:[#allocation74_spill] sm:$0xff]  ;;  %v17271_v0 = vld [vmem:[#allocation81_spill] sm:$0xff] }
 0x6fb   : > { %17253 = vst [vmem:[#allocation186_spill] sm:$0xff] %v13938_v53  ;;  %4327 = vmatmul.f32.gmra.mxu0 %v1130_v9  ;;  %v1026_v3 = vadd.f32 %v17262_v44, %v913_v11  ;;  %v17264_v53 = vld [vmem:[#allocation168_spill] sm:$0xff]  ;;  %v17272_v44 = vld [vmem:[#allocation286_spill] sm:$0xff]  ;;  %v3423_v6 = vadd.f32 %v13456_v24, %v3310_v34 }
 0x6fc   : > { %8517 = vmatmul.msk.f32.gmra.mxu3 %vm744_vm0, %v17259_v20  ;;  %v1472_v13 = vadd.f32 %v17265_v23, %v17264_v53  ;;  %v17266_v9 = vld [vmem:[#allocation228_spill] sm:$0xff]  ;;  %v17273_v23 = vld [vmem:[#allocation31_spill] sm:$0xff] }
 0x6fd   : > { %8521 = vmatmul.msk.f32.gmra.mxu2 %vm744_vm0, %v17260_v18  ;;  %v17268_v20 = vld [vmem:[#allocation68_spill] sm:$0xff]  ;;  %v17269_v18 = vld [vmem:[#allocation75_spill] sm:$0xff]  ;;  %v1139_v11 = vadd.f32 %v17270_v54, %v1026_v3 }
 0x6fe   : > { %v1133_v38 = vadd.f32 %v17268_v20, %v1020_v19  ;;  %v910_v28 = vadd.f32 %v17269_v18, %v13084_v15  ;;  %v17274_v19 = vld [vmem:[#allocation208_spill] sm:$0xff]  ;;  %v17279_v18 = vld [vmem:[#allocation209_spill] sm:$0xff] }
 0x6ff   : > { %v3532_v50 = vpop.f32.mrf.mxu3  ;;  %v17282_v24 = vld [vmem:[#allocation296_spill] sm:$0xff] }
 0x700   : > { %v3205_v52 = vpop.f32.mrf.mxu2  ;;  %v13957_v12 = vadd.f32 %v3532_v50, %v3420_v43  ;;  %v916_v43 = vadd.f32 %v17271_v0, %v13084_v15  ;;  %v1023_v53 = vadd.f32 %v17273_v23, %v910_v28  ;;  %v17275_v50 = vld [vmem:[#allocation39_spill] sm:$0xff]  ;;  %v3313_v28 = vadd.f32 %v3312_v40, %v13472_v58 }
 0x701   : > { %v13962_v25 = vadd.f32 %v3205_v52, %v17266_v9  ;;  %v3315_v46 = vpop.f32.mrf.mxu0  ;;  %v17283_v0 = vld [vmem:[#allocation71_spill] sm:$0xff] }
 0x702   : > { %17263 = vst [vmem:[#allocation230_spill] sm:$0xff] %v13957_v12  ;;  %v1029_v3 = vadd.f32 %v17275_v50, %v916_v43  ;;  %v1136_v43 = vadd.f32 %v17283_v0, %v1023_v53  ;;  %v17289_v53 = vld [vmem:[#allocation61_spill] sm:$0xff] }
 0x703   : > { %17267 = vst [vmem:[#allocation250_spill] sm:$0xff] %v13962_v25  ;;  %4450 = vmatmul.f32.vlgmr.msrb.gmra.mxu0 %v1472_v13  ;;  %v17278_v13 = vld [vmem:[#allocation171_spill] sm:$0xff] }
 0x704   : > { %4427 = vmatmul.f32.vlgmr.msra.gmra.mxu3 %v1133_v38  ;;  %4734 = vmatpush.xpose.msrb.mxu0 %v17272_v44  ;;  %v17277_v38 = vld [vmem:[#allocation304_spill] sm:$0xff]  ;;  %v1475_v54 = vadd.f32 %v17279_v18, %v17278_v13  ;;  %v17284_v44 = vld [vmem:[#allocation77_spill] sm:$0xff]  ;;  %v17288_v13 = vld [vmem:[#allocation262_spill] sm:$0xff] }
 0x705   : > { %4530 = vmatmul.f32.vlgmr.msra.gmra.mxu2 %v1139_v11  ;;  %8530 = vmatpush.xpose.msk.msra.mxu3 %vm744_vm0, %v17246_v27  ;;  %v17280_v11 = vld [vmem:[#allocation161_spill] sm:$0xff]  ;;  %v1142_v23 = vadd.f32 %v17284_v44, %v1029_v3  ;;  %v9023_v18 = vunpack.i.h.bf16 %v17288_v13  ;;  %v17291_v3 = vld [vmem:[#allocation174_spill] sm:$0xff]  ;;  %v17294_v44 = vld [vmem:[#allocation180_spill] sm:$0xff] }
 0x706   : > { %8534 = vmatpush.xpose.msk.msra.mxu2 %vm744_vm0, %v17274_v19  ;;  %v17285_v19 = vld [vmem:[#allocation165_spill] sm:$0xff] }
 0x707   : > { %v3535_v52 = vpop.f32.mrf.mxu3 }
 0x708   : > { %v3208_v9 = vpop.f32.mrf.mxu2  ;;  %v13979_v20 = vadd.f32 %v3535_v52, %v3423_v6  ;;  %4735 = vmatpush.xpose.msrb.mxu0 %v17277_v38  ;;  %v3426_v6 = vadd.f32 %v17285_v19, %v3313_v28  ;;  %v17286_v52 = vld [vmem:[#allocation232_spill] sm:$0xff]  ;;  %v3316_v28 = vadd.f32 %v3315_v46, %v13472_v58  ;;  %v17299_v46 = vld [vmem:[#allocation310_spill] sm:$0xff] }
 0x709   : > { %v13985_v27 = vadd.f32 %v3208_v9, %v17280_v11  ;;  %8531 = vmatpush.xpose.msk.msra.mxu3 %vm744_vm0, %v17254_v59  ;;  %v3318_v34 = vpop.f32.mrf.mxu0  ;;  %v9003_v9 = vunpack.i.h.bf16 %v17286_v52  ;;  %v9002_v59 = vunpack.i.l.bf16 %v17286_v52  ;;  %v9022_v11 = vunpack.i.l.bf16 %v17288_v13  ;;  %v17296_v52 = vld [vmem:[#allocation136_spill] sm:$0xff]  ;;  %v17298_v13 = vld [vmem:[#allocation157_spill] sm:$0xff] }
 0x70a   : > { %17276 = vst [vmem:[#allocation294_spill] sm:$0xff] %v13979_v20  ;;  %8535 = vmatpush.xpose.msk.msra.mxu2 %vm744_vm0, %v17282_v24  ;;  %v17292_v24 = vld [vmem:[#allocation212_spill] sm:$0xff]  ;;  %v9013_v25 = vunpack.i.h.bf16 %v17298_v13 }
 0x70b   : > { %17281 = vst [vmem:[#allocation188_spill] sm:$0xff] %v13985_v27  ;;  %4453 = vmatmul.f32.gmra.mxu0 %v1475_v54  ;;  %v1478_v0 = vadd.f32 %v17292_v24, %v17291_v3  ;;  %v9028_v3 = vunpack.i.h.bf16 %v17299_v46  ;;  %v9027_v24 = vunpack.i.l.bf16 %v17299_v46 }
 0x70c   : > { %4430 = vmatmul.f32.gmra.mxu3 %v1136_v43 }
 0x70d   : > { %4533 = vmatmul.f32.gmra.mxu2 %v1142_v23  ;;  %v17295_v23 = vld [vmem:[#allocation220_spill] sm:$0xff] }
 0x70e   : > { %v1484_v19 = vadd.f32 %v17295_v23, %v17294_v44  ;;  %v4912_v44 = vsel %vm744_vm0, %v9022_v11, %v9023_v18  ;;  %v17300_v23 = vld [vmem:[#allocation282_spill] sm:$0xff]  ;;  %v17304_v11 = vld [vmem:[#allocation177_spill] sm:$0xff] }
 0x70f   : > { %v3538_v50 = vpop.f32.mrf.mxu3 }
 0x710   : > { %v3211_v38 = vpop.f32.mrf.mxu2  ;;  %v13997_v40 = vadd.f32 %v3538_v50, %v3426_v6  ;;  %v4810_v6 = vsel %vm744_vm0, %v9003_v9, %v17296_v52  ;;  %v17297_v50 = vld [vmem:[#allocation103_spill] sm:$0xff]  ;;  %v3429_v52 = vadd.f32 %v17300_v23, %v3316_v28  ;;  %v3319_v28 = vadd.f32 %v3318_v34, %v13472_v58  ;;  %v17308_v23 = vld [vmem:[#allocation225_spill] sm:$0xff]  ;;  %v17314_v58 = vld [vmem:[#allocation58_spill] sm:$0xff] }
 0x711   : > { %v14002_v54 = vadd.f32 %v3211_v38, %v17289_v53  ;;  %v14007_v43 = vpop.f32.mrf.mxu0  ;;  %v9012_v38 = vunpack.i.l.bf16 %v17298_v13  ;;  %v4809_v53 = vsel %vm744_vm0, %v9002_v59, %v9003_v9  ;;  %v17303_v59 = vld [vmem:[#allocation90_spill] sm:$0xff] }
 0x712   : > { %17287 = vst [vmem:[#allocation235_spill] sm:$0xff] %v13997_v40 }
 0x713   : > { %17290 = vst [vmem:[#allocation178_spill] sm:$0xff] %v14002_v54  ;;  %8528 = vmatmul.msk.f32.vlgmr.msra.gmra.mxu0 %vm744_vm0, %v17297_v50  ;;  %v4807_v9 = vsel %vm744_vm0, %v9012_v38, %v9013_v25 }
 0x714   : > { %17293 = vst [vmem:[#allocation299_spill] sm:$0xff] %v14007_v43  ;;  %4553 = vmatmul.f32.vlgmr.msrb.gmra.mxu3 %v1478_v0  ;;  %4860 = vmatpush.xpose.msra.mxu0 %v4810_v6  ;;  %v17301_v43 = vld [vmem:[#allocation315_spill] sm:$0xff]  ;;  %v925_v6 = vadd.f32 %v17303_v59, %v13084_v15 }
 0x715   : > { %4656 = vmatmul.f32.vlgmr.msrb.gmra.mxu2 %v1484_v19  ;;  %4837 = vmatpush.xpose.msrb.mxu3 %v4809_v53  ;;  %v4808_v20 = vsel %vm744_vm0, %v9013_v25, %v17301_v43  ;;  %v4910_v19 = vsel %vm744_vm0, %v9027_v24, %v9028_v3  ;;  %v17305_v53 = vld [vmem:[#allocation216_spill] sm:$0xff]  ;;  %v17307_v43 = vld [vmem:[#allocation183_spill] sm:$0xff]  ;;  %v17309_v25 = vld [vmem:[#allocation109_spill] sm:$0xff]  ;;  %v3432_v24 = vadd.f32 %v13547_v60, %v3319_v28 }
 0x716   : > { %4940 = vmatpush.xpose.msrb.mxu2 %v4912_v44  ;;  %v1481_v46 = vadd.f32 %v17305_v53, %v17304_v11  ;;  %v17313_v53 = vld [vmem:[#allocation93_spill] sm:$0xff]  ;;  %v17316_v60 = vld [vmem:[#allocation20_spill] sm:$0xff] }
 0x717   : > { %v3541_v50 = vpop.f32.mrf.mxu3  ;;  %v17317_v28 = vld [vmem:[#allocation133_spill] sm:$0xff] }
 0x718   : > { %v14024_v13 = vadd.f32 %v3541_v50, %v3429_v52  ;;  %v3604_v0 = vpop.f32.mrf.mxu2  ;;  %4861 = vmatpush.xpose.msra.mxu0 %v4808_v20  ;;  %v1487_v52 = vadd.f32 %v17308_v23, %v17307_v43  ;;  %v3650_v50 = vpop.f32.mrf.mxu1  ;;  %v17310_v20 = vld [vmem:[#allocation51_spill] sm:$0xff] }
 0x719   : > { %4838 = vmatpush.xpose.msrb.mxu3 %v4807_v9  ;;  %v14033_v44 = vpop.f32.mrf.mxu0  ;;  %v1038_v38 = vadd.f32 %v17310_v20, %v925_v6 }
 0x71a   : > { %17302 = vst [vmem:[#allocation261_spill] sm:$0xff] %v14024_v13  ;;  %4941 = vmatpush.xpose.msrb.mxu2 %v4910_v19  ;;  %v17312_v19 = vld [vmem:[#allocation86_spill] sm:$0xff]  ;;  %v17339_v13 = vld [vmem:[#allocation201_spill] sm:$0xff] }
 0x71b   : > { %17306 = vst [vmem:[#allocation175_spill] sm:$0xff] %v14033_v44  ;;  %8529 = vmatmul.msk.f32.gmra.mxu0 %vm744_vm0, %v17309_v25  ;;  %v1151_v11 = vadd.f32 %v17312_v19, %v1038_v38  ;;  %v928_v44 = vadd.f32 %v17313_v53, %v13084_v15  ;;  %v17315_v25 = vld [vmem:[#allocation200_spill] sm:$0xff]  ;;  %v17322_v19 = vld [vmem:[#allocation229_spill] sm:$0xff] }
 0x71c   : > { %4556 = vmatmul.f32.gmra.mxu3 %v1481_v46  ;;  %v4913_v46 = vsel %vm744_vm0, %v9023_v18, %v17314_v58  ;;  %v17323_v53 = vld [vmem:[#allocation320_spill] sm:$0xff] }
 0x71d   : > { %4659 = vmatmul.f32.gmra.mxu2 %v1487_v52  ;;  %v1041_v6 = vadd.f32 %v17316_v60, %v928_v44  ;;  %v17318_v52 = vld [vmem:[#allocation243_spill] sm:$0xff] }
 0x71e   : > { %v17319_v20 = vunpack.i.l.bf16 %v17318_v52 }
 0x71f   : > { %v3544_v9 = vpop.f32.mrf.mxu3 }
 0x720   : > { %v14041_v59 = vadd.f32 %v3544_v9, %v3432_v24  ;;  %v3607_v34 = vpop.f32.mrf.mxu2  ;;  %v5016_v38 = vsel %vm744_vm0, %v17319_v20, %v17317_v28  ;;  %v3653_v24 = vpop.f32.mrf.mxu1 }
 0x721   : > { %v3627_v43 = vpop.f32.mrf.mxu0 }
 0x722   : > { %17311 = vst [vmem:[#allocation303_spill] sm:$0xff] %v14041_v59  ;;  %v3628_v23 = vadd.f32 %v3627_v43, %v3604_v0  ;;  %v17320_v0 = vld [vmem:[#allocation118_spill] sm:$0xff]  ;;  %v9047_v59 = vunpack.i.l.bf16 %v17339_v13 }
 0x723   : > { %4736 = vmatmul.f32.vlgmr.msrb.gmra.mxu0 %v1151_v11  ;;  %v4911_v11 = vsel %vm744_vm0, %v9028_v3, %v17322_v19 }
 0x724   : > { %8532 = vmatmul.msk.f32.vlgmr.msra.gmra.mxu3 %vm744_vm0, %v17315_v25  ;;  %8542 = vmatpush.xpose.msk.msrb.mxu0 %vm744_vm0, %v17314_v58  ;;  %v14059_v18 = vadd.f32 %v3650_v50, %v3628_v23  ;;  %v17324_v50 = vunpack.i.h.bf16 %v17318_v52  ;;  %v17325_v23 = vld [vmem:[#allocation89_spill] sm:$0xff]  ;;  %v17326_v25 = vld [vmem:[#allocation96_spill] sm:$0xff] }
 0x725   : > { %8536 = vmatmul.msk.f32.vlgmr.msra.gmra.mxu2 %vm744_vm0, %v17320_v0  ;;  %4963 = vmatpush.xpose.msra.mxu3 %v4913_v46  ;;  %v1154_v46 = vadd.f32 %v17325_v23, %v1041_v6  ;;  %v931_v60 = vadd.f32 %v17326_v25, %v13084_v15 }
 0x726   : > { %5066 = vmatpush.xpose.msra.mxu2 %v5016_v38  ;;  %v5202_v58 = vsel %vm5201_vm1, %v14059_v18, -inf  ;;  %v5014_v43 = vsel %vm744_vm0, %v17324_v50, %v17323_v53  ;;  %v17327_v38 = vld [vmem:[#allocation102_spill] sm:$0xff]  ;;  %v17331_v50 = vld [vmem:[#allocation32_spill] sm:$0xff] }
 0x727   : > { %v14061_v9 = vpop.f32.mrf.mxu3  ;;  %5203 = vmax.xlane.f32.xlu0 %v5202_v58  ;;  %v937_v0 = vadd.f32 %v17327_v38, %v13084_v15  ;;  %v17328_v58 = vld [vmem:[#allocation115_spill] sm:$0xff] }
 0x728   : > { %17321 = vst [vmem:[#allocation297_spill] sm:$0xff] %v14061_v9  ;;  %v14065_v44 = vpop.f32.mrf.mxu2  ;;  %8543 = vmatpush.xpose.msk.msrb.mxu0 %vm744_vm0, %v17322_v19  ;;  %v17329_v19 = vld [vmem:[#allocation259_spill] sm:$0xff]  ;;  %v3810_v25 = vpop.f32.mrf.mxu1  ;;  %v17335_v9 = vld [vmem:[#allocation92_spill] sm:$0xff] }
 0x729   : > { %4964 = vmatpush.xpose.msra.mxu3 %v4911_v11  ;;  %v3630_v20 = vpop.f32.mrf.mxu0  ;;  %v17330_v11 = vld [vmem:[#allocation24_spill] sm:$0xff]  ;;  %v1050_v23 = vadd.f32 %v17331_v50, %v937_v0  ;;  %v17337_v0 = vld [vmem:[#allocation98_spill] sm:$0xff]  ;;  %v17338_v50 = vld [vmem:[#allocation105_spill] sm:$0xff] }
 0x72a   : > { %5067 = vmatpush.xpose.msra.mxu2 %v5014_v43  ;;  %v3631_v3 = vadd.f32 %v3630_v20, %v3607_v34  ;;  %v1044_v6 = vadd.f32 %v17330_v11, %v931_v60  ;;  %v17334_v20 = vld [vmem:[#allocation240_spill] sm:$0xff] }
 0x72b   : > { %4739 = vmatmul.f32.gmra.mxu0 %v1154_v46  ;;  %v17333_v46 = vld [vmem:[#allocation190_spill] sm:$0xff]  ;;  %v1163_v11 = vadd.f32 %v17337_v0, %v1050_v23  ;;  %v17344_v0 = vunpack.i.h.bf16 %v17339_v13 }
 0x72c   : > { %8533 = vmatmul.msk.f32.gmra.mxu3 %vm744_vm0, %v17328_v58  ;;  %v14084_v52 = vadd.f32 %v3653_v24, %v3631_v3  ;;  %v1496_v58 = vadd.f32 %v17334_v20, %v17333_v46  ;;  %v17336_v24 = vld [vmem:[#allocation99_spill] sm:$0xff]  ;;  %v17342_v46 = vld [vmem:[#allocation244_spill] sm:$0xff] }
 0x72d   : > { %8537 = vmatmul.msk.f32.gmra.mxu2 %vm744_vm0, %v17329_v19  ;;  %v1157_v19 = vadd.f32 %v17335_v9, %v1044_v6  ;;  %v934_v3 = vadd.f32 %v17336_v24, %v13084_v15  ;;  %v17341_v9 = vld [vmem:[#allocation28_spill] sm:$0xff] }
 0x72e   : > { %v5205_v38 = vsel %vm5201_vm1, %v14084_v52, -inf  ;;  %v17343_v20 = vld [vmem:[#allocation36_spill] sm:$0xff] }
 0x72f   : > { %v14088_v43 = vpop.f32.mrf.mxu3  ;;  %5206 = vmax.xlane.f32.xlu2 %v5205_v38  ;;  %v17340_v38 = vld [vmem:[#allocation327_spill] sm:$0xff]  ;;  %v1047_v6 = vadd.f32 %v17341_v9, %v934_v3  ;;  %v17348_v9 = vld [vmem:[#allocation101_spill] sm:$0xff] }
 0x730   : > { %17332 = vst [vmem:[#allocation108_spill] sm:$0xff] %v14088_v43  ;;  %v14092_v34 = vpop.f32.mrf.mxu2  ;;  %v940_v43 = vadd.f32 %v17338_v50, %v13084_v15  ;;  %v3813_v50 = vpop.f32.mrf.mxu1 }
 0x731   : > { %v14099_v60 = vpop.f32.mrf.mxu0 }
 0x732   : > { %v1053_v23 = vadd.f32 %v17343_v20, %v940_v43  ;;  %v17347_v43 = vld [vmem:[#allocation210_spill] sm:$0xff] }
 0x733   : > { %4862 = vmatmul.f32.vlgmr.msra.gmra.mxu0 %v1496_v58  ;;  %v5116_v58 = vsel %vm744_vm0, %v9047_v59, %v17344_v0  ;;  %v17349_v0 = vld [vmem:[#allocation241_spill] sm:$0xff] }
 0x734   : > { %4839 = vmatmul.f32.vlgmr.msrb.gmra.mxu3 %v1157_v19  ;;  %5146 = vmatpush.xpose.msra.mxu0 %v17340_v38 }
 0x735   : > { %4942 = vmatmul.f32.vlgmr.msrb.gmra.mxu2 %v1163_v11  ;;  %8546 = vmatpush.xpose.msk.msrb.mxu3 %vm744_vm0, %v17317_v28  ;;  %v17345_v28 = vld [vmem:[#allocation204_spill] sm:$0xff]  ;;  %v17346_v11 = vld [vmem:[#allocation95_spill] sm:$0xff] }
 0x736   : > { %8550 = vmatpush.xpose.msk.msrb.mxu2 %vm744_vm0, %v17342_v46  ;;  %v1160_v38 = vadd.f32 %v17346_v11, %v1047_v6  ;;  %v1166_v46 = vadd.f32 %v17348_v9, %v1053_v23  ;;  %v17353_v6 = vld [vmem:[#allocation124_spill] sm:$0xff]  ;;  %v17354_v11 = vld [vmem:[#allocation237_spill] sm:$0xff] }
 0x737   : > { %v14112_v24 = vpop.f32.mrf.mxu3  ;;  %v17357_v9 = vld [vmem:[#allocation276_spill] sm:$0xff] }
 0x738   : > { %v3833_v19 = vpop.f32.mrf.mxu2  ;;  %5147 = vmatpush.xpose.msra.mxu0 %v5116_v58  ;;  %v17350_v58 = vld [vmem:[#allocation278_spill] sm:$0xff]  ;;  %v3936_v40 = vpop.f32.mrf.mxu1 }
 0x739   : > { %8547 = vmatpush.xpose.msk.msrb.mxu3 %vm744_vm0, %v17323_v53  ;;  %v14121_v3 = vpop.f32.mrf.mxu0  ;;  %v2783_v53 = vadd.f32 %v17350_v58, %v17349_v0  ;;  %v3834_v62 = vadd.f32 %v3833_v19, %v3810_v25  ;;  %v17360_v0 = vld [vmem:[#allocation62_spill] sm:$0xff] }
 0x73a   : > { %8551 = vmatpush.xpose.msk.msrb.mxu2 %vm744_vm0, %v17345_v28  ;;  %v17352_v28 = vld [vmem:[#allocation213_spill] sm:$0xff] }
 0x73b   : > { %4865 = vmatmul.f32.gmra.mxu0 %v17347_v43  ;;  %v17355_v43 = vld [vmem:[#allocation271_spill] sm:$0xff] }
 0x73c   : > { %4842 = vmatmul.f32.gmra.mxu3 %v1160_v38  ;;  %v2780_v23 = vadd.f32 %v17355_v43, %v17354_v11  ;;  %v17356_v38 = vld [vmem:[#allocation221_spill] sm:$0xff]  ;;  %v17361_v11 = vld [vmem:[#allocation114_spill] sm:$0xff] }
 0x73d   : > { %4945 = vmatmul.f32.gmra.mxu2 %v1166_v46  ;;  %v17358_v46 = vld [vmem:[#allocation284_spill] sm:$0xff]  ;;  %v949_v43 = vadd.f32 %v17361_v11, %v13084_v15 }
 0x73e   : > { %v2786_v10 = vadd.f32 %v17358_v46, %v17357_v9 }
 0x73f   : > { %v14126_v13 = vpop.f32.mrf.mxu3 }
 0x740   : > { %v3836_v59 = vpop.f32.mrf.mxu2 }
 0x741   : > { %v3913_v20 = vpop.f32.mrf.mxu0  ;;  %v3837_v9 = vadd.f32 %v3836_v59, %v3813_v50  ;;  %v17369_v50 = vld [vmem:[#allocation52_spill] sm:$0xff] }
 0x742   : > { %v3937_v58 = vadd.f32 %v3936_v40, %v3913_v20  ;;  %v17362_v40 = vld [vmem:[#allocation223_spill] sm:$0xff]  ;;  %v3939_v20 = vpop.f32.mrf.mxu1 }
 0x743   : > { %8544 = vmatmul.msk.f32.vlgmr.msrb.gmra.mxu0 %vm744_vm0, %v17351_v21 }
 0x744   : > { %4965 = vmatmul.f32.vlgmr.msra.gmra.mxu3 %v17352_v28  ;;  %5597 = vmatpush.msrb.mxu0 %v17353_v6 }
 0x745   : > { %5068 = vmatmul.f32.vlgmr.msra.gmra.mxu2 %v17356_v38  ;;  %5574 = vmatpush.msra.mxu3 %v2783_v53 }
 0x746   : > { %5649 = vmatpush.msra.mxu2 %v17359_v61  ;;  %5598 = vmatpush.msrb.mxu0 %v17360_v0 }
 0x747   : > { %5575 = vmatpush.msra.mxu3 %v2780_v23  ;;  %v3856_v21 = vpop.f32.mrf.mxu3  ;;  %v17365_v23 = vld [vmem:[#allocation226_spill] sm:$0xff] }
 0x748   : > { %5650 = vmatpush.msra.mxu2 %v2786_v10  ;;  %v14141_v28 = vadd.f32 %v3856_v21, %v3834_v62  ;;  %v3959_v6 = vpop.f32.mrf.mxu2  ;;  %v17363_v10 = vld [vmem:[#allocation217_spill] sm:$0xff]  ;;  %v17364_v62 = vld [vmem:[#allocation48_spill] sm:$0xff] }
 0x749   : > { %v14145_v38 = vadd.f32 %v3959_v6, %v3937_v58  ;;  %v3916_v25 = vpop.f32.mrf.mxu0  ;;  %v1062_v19 = vadd.f32 %v17364_v62, %v949_v43  ;;  %v17366_v58 = vld [vmem:[#allocation110_spill] sm:$0xff]  ;;  %v17367_v6 = vld [vmem:[#allocation116_spill] sm:$0xff]  ;;  %v17368_v43 = vld [vmem:[#allocation239_spill] sm:$0xff] }
 0x74a   : > { %v5214_v53 = vsel %vm5201_vm1, %v14141_v28, -inf  ;;  %v952_v11 = vadd.f32 %v17367_v6, %v13084_v15  ;;  %v17370_v62 = vld [vmem:[#allocation238_spill] sm:$0xff] }
 0x74b   : > { %v5220_v61 = vsel %vm5201_vm1, %v14145_v38, -inf  ;;  %5215 = vmax.xlane.f32.xlu1 %v5214_v53  ;;  %8545 = vmatmul.msk.f32.gmra.mxu0 %vm744_vm0, %v17362_v40  ;;  %v1175_v21 = vadd.f32 %v17366_v58, %v1062_v19  ;;  %v3940_v40 = vadd.f32 %v3939_v20, %v3916_v25  ;;  %v17371_v19 = vld [vmem:[#allocation245_spill] sm:$0xff]  ;;  %v4062_v25 = vpop.f32.mrf.mxu1  ;;  %v17375_v58 = vld [vmem:[#allocation162_spill] sm:$0xff] }
 0x74c   : > { %5221 = vmax.xlane.f32.xlu0 %v5220_v61  ;;  %4968 = vmatmul.f32.gmra.mxu3 %v17363_v10  ;;  %v1065_v59 = vadd.f32 %v17369_v50, %v952_v11  ;;  %v17374_v20 = vld [vmem:[#allocation145_spill] sm:$0xff] }
 0x74d   : > { %5071 = vmatmul.f32.gmra.mxu2 %v17365_v23  ;;  %v17372_v23 = vld [vmem:[#allocation275_spill] sm:$0xff] }
 0x74f   : > { %v3859_v46 = vpop.f32.mrf.mxu3 }
 0x750   : > { %v14156_v0 = vadd.f32 %v3859_v46, %v3837_v9  ;;  %v3962_v61 = vpop.f32.mrf.mxu2  ;;  %v17373_v9 = vld [vmem:[#allocation268_spill] sm:$0xff] }
 0x751   : > { %v4039_v10 = vpop.f32.mrf.mxu0  ;;  %v14170_v15 = vadd.f32 %v3962_v61, %v3940_v40  ;;  %v17377_v61 = vld [vmem:[#allocation233_spill] sm:$0xff] }
 0x752   : > { %v5217_v53 = vsel %vm5201_vm1, %v14156_v0, -inf }
 0x753   : > { %5218 = vmax.xlane.f32.xlu2 %v5217_v53  ;;  %5148 = vmatmul.f32.vlgmr.msra.gmra.mxu0 %v1175_v21  ;;  %v17376_v21 = vld [vmem:[#allocation113_spill] sm:$0xff]  ;;  %v5223_v11 = vsel %vm5201_vm1, %v14170_v15, -inf }
 0x754   : > { %8548 = vmatmul.msk.f32.vlgmr.msrb.gmra.mxu3 %vm744_vm0, %v17368_v43  ;;  %5695 = vmatpush.msra.mxu0 %v13527_v36  ;;  %v1178_v6 = vadd.f32 %v17376_v21, %v1065_v59  ;;  %v17378_v43 = vld [vmem:[#allocation249_spill] sm:$0xff] }
 0x755   : > { %8552 = vmatmul.msk.f32.vlgmr.msrb.gmra.mxu2 %vm744_vm0, %v17370_v62  ;;  %5672 = vmatpush.msrb.mxu3 %v17371_v19  ;;  %v4065_v62 = vpop.f32.mrf.mxu1 }
 0x756   : > { %5747 = vmatpush.msrb.mxu2 %v17372_v23  ;;  %5696 = vmatpush.msra.mxu0 %v17373_v9 }
 0x757   : > { %5673 = vmatpush.msrb.mxu3 %v17374_v20  ;;  %v4016_v46 = vpop.f32.mrf.mxu3 }
 0x758   : > { %5748 = vmatpush.msrb.mxu2 %v17375_v58  ;;  %v4040_v36 = vadd.f32 %v4039_v10, %v4016_v46  ;;  %v14191_v9 = vpop.f32.mrf.mxu2 }
 0x759   : > { %v4042_v50 = vpop.f32.mrf.mxu0 }
 0x75a   : > { %v14179_v53 = vadd.f32 %v4062_v25, %v4040_v36 }
 0x75b   : > { %5224 = vmax.xlane.f32.xlu2 %v5223_v11  ;;  %5151 = vmatmul.f32.gmra.mxu0 %v1178_v6 }
 0x75c   : > { %8549 = vmatmul.msk.f32.gmra.mxu3 %vm744_vm0, %v17377_v61  ;;  %v5226_v40 = vsel %vm5201_vm1, %v14179_v53, -inf }
 0x75d   : > { %8553 = vmatmul.msk.f32.gmra.mxu2 %vm744_vm0, %v17378_v43  ;;  %5227 = vmax.xlane.f32.xlu0 %v5226_v40  ;;  %v4222_v61 = vpop.f32.mrf.mxu1 }
 0x75f   : > { %v4019_v10 = vpop.f32.mrf.mxu3 }
 0x760   : > { %v4043_v59 = vadd.f32 %v4042_v50, %v4019_v10  ;;  %v14195_v20 = vpop.f32.mrf.mxu2 }
 0x761   : > { %v14200_v11 = vpop.f32.mrf.mxu0 }
 0x762   : > { %v14187_v19 = vadd.f32 %v4065_v62, %v4043_v59 }
 0x764   : > { %v5229_v23 = vsel %vm5201_vm1, %v14187_v19, -inf }
 0x765   : > { %5230 = vmax.xlane.f32.xlu2 %v5229_v23 }
 0x767   : > { %v14193_v25 = vpop.f32.mrf.mxu3 }
 0x768   : > { %v4245_v6 = vpop.f32.mrf.mxu2 }
 0x769   : > { %v4246_v23 = vadd.f32 %v4245_v6, %v4222_v61 }
 0x76f   : > { %v14197_v46 = vpop.f32.mrf.mxu3 }
 0x777   : > { %v4268_v40 = vpop.f32.mrf.mxu3 }
 0x778   : > { %v14209_v33 = vadd.f32 %v4268_v40, %v4246_v23 }
 0x79a   : > { %v5204_v58 = vpop.xlane.xlu0 %5203 }
 0x79b   : > { %v5298_v36 = vsub.f32 %v14059_v18, %v5204_v58  ;;  %v4248_v18 = vpop.f32.mrf.mxu2  ;;  %v14207_v58 = vpop.f32.mrf.mxu0 }
 0x79d   : > { %v5330_v21 = vmul.f32 1.442695, %v5298_v36  ;;  %v4225_v36 = vpop.f32.mrf.mxu1 }
 0x79e   : > { %v4249_v6 = vadd.f32 %v4248_v18, %v4225_v36 }
 0x79f   : > { %9049 = vpow2.f32 %v5330_v21  ;;  %v4271_v21 = vpop.f32.mrf.mxu3 }
 0x7a2   : > { %v5207_v43 = vpop.xlane.xlu2 %5206 }
 0x7a3   : > { %v5299_v50 = vsub.f32 %v14084_v52, %v5207_v43  ;;  %v3731_v52 = vadd.f32 %v14112_v24, %v14065_v44  ;;  %v5238_v43 = vsel %vm5201_vm1, %v14209_v33, -inf  ;;  %v4371_v61 = vpop.f32.mrf.mxu2  ;;  %v3734_v44 = vadd.f32 %v14126_v13, %v14092_v34 }
 0x7a5   : > { %v14203_v10 = vpop.eup %9049  ;;  %v5332_v59 = vmul.f32 1.442695, %v5299_v50  ;;  %v14222_v40 = vadd.f32 %v14099_v60, %v3731_v52  ;;  %v4348_v23 = vpop.f32.mrf.mxu1  ;;  %v14233_v60 = vadd.f32 %v14121_v3, %v3734_v44 }
 0x7a6   : > { %v5394_v62 = vsel %vm5201_vm1, %v14203_v10, 0.0 }
 0x7a7   : > { %9051 = vpow2.f32 %v5332_v59  ;;  %5395 = vadd.xlane.f32.xlu1 %v5394_v62  ;;  %v14219_v59 = vadd.f32 %v4271_v21, %v4249_v6  ;;  %v4325_v62 = vpop.f32.mrf.mxu0  ;;  %v4428_v27 = vpop.f32.mrf.mxu3  ;;  %v5208_v24 = vsel %vm5201_vm1, %v14222_v40, -inf  ;;  %v5211_v13 = vsel %vm5201_vm1, %v14233_v60, -inf }
 0x7a8   : > { %v4349_v18 = vadd.f32 %v4348_v23, %v4325_v62 }
 0x7aa   : > { %v14230_v36 = vadd.f32 %v4371_v61, %v4349_v18 }
 0x7ab   : > { %v4374_v21 = vpop.f32.mrf.mxu2 }
 0x7ad   : > { %v14211_v39 = vpop.eup %9051  ;;  %v4351_v6 = vpop.f32.mrf.mxu1 }
 0x7ae   : > { %v5397_v50 = vsel %vm5201_vm1, %v14211_v39, 0.0 }
 0x7af   : > { %5239 = vmax.xlane.f32.xlu1 %v5238_v43  ;;  %5398 = vadd.xlane.f32.xlu0 %v5397_v50  ;;  %v5241_v43 = vsel %vm5201_vm1, %v14219_v59, -inf  ;;  %v4328_v52 = vpop.f32.mrf.mxu0  ;;  %v4431_v45 = vpop.f32.mrf.mxu3 }
 0x7b0   : > { %v4352_v61 = vadd.f32 %v4351_v6, %v4328_v52 }
 0x7b2   : > { %v14240_v23 = vadd.f32 %v4374_v21, %v4352_v61 }
 0x7b5   : > { %v4474_v54 = vpop.f32.mrf.mxu1 }
 0x7b7   : > { %5209 = vmax.xlane.f32.xlu1 %v5208_v24  ;;  %5242 = vmax.xlane.f32.xlu0 %v5241_v43  ;;  %v5244_v24 = vsel %vm5201_vm1, %v14230_v36, -inf  ;;  %v14242_v43 = vpop.f32.mrf.mxu2 }
 0x7be   : > { %v5216_v50 = vpop.xlane.xlu1 %5215 }
 0x7bf   : > { %v5302_v34 = vsub.f32 %v14141_v28, %v5216_v50  ;;  %5212 = vmax.xlane.f32.xlu1 %v5211_v13  ;;  %5245 = vmax.xlane.f32.xlu0 %v5244_v24  ;;  %v5222_v3 = vpop.xlane.xlu0 %5221  ;;  %v5247_v28 = vsel %vm5201_vm1, %v14240_v23, -inf  ;;  %v14249_v13 = vpop.f32.mrf.mxu3 }
 0x7c0   : > { %v5304_v52 = vsub.f32 %v14145_v38, %v5222_v3 }
 0x7c1   : > { %v5338_v62 = vmul.f32 1.442695, %v5302_v34 }
 0x7c2   : > { %v5342_v34 = vmul.f32 1.442695, %v5304_v52 }
 0x7c3   : > { %9053 = vpow2.f32 %v5338_v62 }
 0x7c6   : > { %v5219_v44 = vpop.xlane.xlu2 %5218 }
 0x7c7   : > { %v5303_v18 = vsub.f32 %v14156_v0, %v5219_v44  ;;  %5248 = vmax.xlane.f32.xlu0 %v5247_v28  ;;  %v4451_v0 = vpop.f32.mrf.mxu0  ;;  %v14257_v28 = vpop.f32.mrf.mxu2 }
 0x7c9   : > { %v14247_v50 = vpop.eup %9053  ;;  %v5340_v21 = vmul.f32 1.442695, %v5303_v18  ;;  %v4477_v18 = vpop.f32.mrf.mxu1 }
 0x7ca   : > { %v5406_v6 = vsel %vm5201_vm1, %v14247_v50, 0.0 }
 0x7cb   : > { %9055 = vpow2.f32 %v5340_v21  ;;  %5407 = vadd.xlane.f32.xlu2 %v5406_v6  ;;  %v14262_v21 = vpop.f32.mrf.mxu3 }
 0x7cc   : > { %9057 = vpow2.f32 %v5342_v34 }
 0x7ce   : > { %v5225_v24 = vpop.xlane.xlu2 %5224 }
 0x7cf   : > { %v5305_v61 = vsub.f32 %v14170_v15, %v5225_v24  ;;  %v4454_v8 = vpop.f32.mrf.mxu0 }
 0x7d0   : > { %v5228_v62 = vpop.xlane.xlu0 %5227 }
 0x7d1   : > { %v14255_v44 = vpop.eup %9055  ;;  %v5344_v32 = vmul.f32 1.442695, %v5305_v61  ;;  %v5306_v38 = vsub.f32 %v14179_v53, %v5228_v62  ;;  %v4452_v61 = vadd.f32 %v4451_v0, %v4428_v27  ;;  %v4455_v53 = vadd.f32 %v4454_v8, %v4431_v45 }
 0x7d2   : > { %v5409_v3 = vsel %vm5201_vm1, %v14255_v44, 0.0  ;;  %v14264_v15 = vpop.eup %9057 }
 0x7d3   : > { %9059 = vpow2.f32 %v5344_v32  ;;  %v5346_v52 = vmul.f32 1.442695, %v5306_v38  ;;  %5410 = vadd.xlane.f32.xlu2 %v5409_v3  ;;  %v5412_v62 = vsel %vm5201_vm1, %v14264_v15, 0.0  ;;  %v4657_v38 = vpop.f32.mrf.mxu2  ;;  %v4680_v49 = vpop.f32.mrf.mxu3  ;;  %v14277_v45 = vadd.f32 %v4474_v54, %v4452_v61 }
 0x7d4   : > { %v14279_v8 = vadd.f32 %v4477_v18, %v4455_v53 }
 0x7d5   : > { %9061 = vpow2.f32 %v5346_v52  ;;  %v4634_v52 = vpop.f32.mrf.mxu1  ;;  %v5250_v0 = vsel %vm5201_vm1, %v14277_v45, -inf }
 0x7d6   : > { %v4658_v27 = vadd.f32 %v4657_v38, %v4634_v52 }
 0x7d7   : > { %v14297_v38 = vpop.f32.mrf.mxu0 }
 0x7d8   : > { %v5231_v6 = vpop.xlane.xlu2 %5230 }
 0x7d9   : > { %v14266_v24 = vpop.eup %9059  ;;  %v5307_v34 = vsub.f32 %v14187_v19, %v5231_v6  ;;  %v14281_v19 = vadd.f32 %v4680_v49, %v4658_v27 }
 0x7da   : > { %v5415_v47 = vsel %vm5201_vm1, %v14266_v24, 0.0 }
 0x7db   : > { %v14273_v32 = vpop.eup %9061  ;;  %5413 = vadd.xlane.f32.xlu2 %v5412_v62  ;;  %5416 = vadd.xlane.f32.xlu1 %v5415_v47  ;;  %v5348_v12 = vmul.f32 1.442695, %v5307_v34  ;;  %v5253_v47 = vsel %vm5201_vm1, %v14279_v8, -inf  ;;  %v5262_v6 = vsel %vm5201_vm1, %v14281_v19, -inf  ;;  %v4660_v54 = vpop.f32.mrf.mxu2 }
 0x7dc   : > { %v5418_v3 = vsel %vm5201_vm1, %v14273_v32, 0.0 }
 0x7dd   : > { %5419 = vadd.xlane.f32.xlu0 %v5418_v3  ;;  %9063 = vpow2.f32 %v5348_v12  ;;  %v4637_v18 = vpop.f32.mrf.mxu1  ;;  %v4683_v12 = vpop.f32.mrf.mxu3 }
 0x7de   : > { %v4661_v61 = vadd.f32 %v4660_v54, %v4637_v18 }
 0x7df   : > { %v14299_v52 = vpop.f32.mrf.mxu0 }
 0x7e0   : > { %v14293_v53 = vadd.f32 %v4683_v12, %v4661_v61  ;;  %v17379_v12 = vld [vmem:[#allocation305_spill] sm:$0xff] }
 0x7e2   : > { %v5265_v62 = vsel %vm5201_vm1, %v14293_v53, -inf }
 0x7e3   : > { %5251 = vmax.xlane.f32.xlu2 %v5250_v0  ;;  %5254 = vmax.xlane.f32.xlu1 %v5253_v47  ;;  %v14289_v34 = vpop.eup %9063  ;;  %v4783_v61 = vpop.f32.mrf.mxu2 }
 0x7e4   : > { %v5421_v49 = vsel %vm5201_vm1, %v14289_v34, 0.0 }
 0x7e5   : > { %5263 = vmax.xlane.f32.xlu0 %v5262_v6 }
 0x7e7   : > { %v4737_v54 = vpop.f32.mrf.mxu0 }
 0x7eb   : > { %5422 = vadd.xlane.f32.xlu2 %v5421_v49 }
 0x7f3   : > { %5266 = vmax.xlane.f32.xlu2 %v5265_v62  ;;  %v17381_v62 = vld [vmem:[#allocation246_spill] sm:$0xff] }
 0x81a   : > { %v5396_v3 = vpop.xlane.xlu1 %5395 }
 0x81b   : > { %9065 = vrcp.f32 %v5396_v3 }
 0x821   : > { %v9066_v27 = vpop.eup %9065 }
 0x822   : > { %v5522_v0 = vmul.f32 %v9066_v27, %v14203_v10  ;;  %v5240_v47 = vpop.xlane.xlu1 %5239  ;;  %v5399_v6 = vpop.xlane.xlu0 %5398 }
 0x823   : > { %v5310_v49 = vsub.f32 %v14209_v33, %v5240_v47  ;;  %9067 = vrcp.f32 %v5399_v6  ;;  %v4760_v10 = vpop.f32.mrf.mxu1  ;;  %v17380_v33 = vld [vmem:[#allocation302_spill] sm:$0xff] }
 0x824   : > { %8554 = vmatmul.msk.f32.vlgmr.msra.gmra.mxu3 %vm5201_vm1, %v5522_v0  ;;  %8556 = vmatmul.msk.f32.vlgmr.msrb.gmra.mxu0 %vm5201_vm1, %v5522_v0 }
 0x825   : > { %v5354_v18 = vmul.f32 1.442695, %v5310_v49  ;;  %8558 = vmatmul.msk.f32.vlgmr.msra.gmra.mxu1 %vm5201_vm1, %v5522_v0  ;;  %5770 = vmatpush.msra.mxu3 %v13564_v7 }
 0x826   : > { %5799 = vmatpush.msrb.mxu0 %v17379_v12  ;;  %5822 = vmatpush.msra.mxu1 %v13532_v29  ;;  %v4740_v12 = vpop.f32.mrf.mxu0 }
 0x827   : > { %9069 = vpow2.f32 %v5354_v18  ;;  %5771 = vmatpush.msra.mxu3 %v13549_v55 }
 0x828   : > { %5800 = vmatpush.msrb.mxu0 %v17380_v33  ;;  %5823 = vmatpush.msra.mxu1 %v17381_v62  ;;  %v4786_v33 = vpop.f32.mrf.mxu2 }
 0x829   : > { %v9068_v3 = vpop.eup %9067 }
 0x82a   : > { %v5210_v27 = vpop.xlane.xlu1 %5209  ;;  %v5243_v47 = vpop.xlane.xlu0 %5242  ;;  %v5523_v0 = vmul.f32 %v9068_v3, %v14211_v39  ;;  %v4761_v39 = vadd.f32 %v4760_v10, %v4737_v54 }
 0x82b   : > { %v5300_v7 = vsub.f32 %v14222_v40, %v5210_v27  ;;  %v5311_v6 = vsub.f32 %v14219_v59, %v5243_v47  ;;  %v4840_v40 = vpop.f32.mrf.mxu3  ;;  %v4763_v59 = vpop.f32.mrf.mxu1 }
 0x82c   : > { %8555 = vmatmul.msk.f32.gmra.mxu3 %vm5201_vm1, %v5523_v0  ;;  %8557 = vmatmul.msk.f32.gmra.mxu0 %vm5201_vm1, %v5523_v0  ;;  %v14322_v62 = vadd.f32 %v4783_v61, %v4761_v39 }
 0x82d   : > { %v14317_v29 = vpop.eup %9069  ;;  %v5334_v55 = vmul.f32 1.442695, %v5300_v7  ;;  %v5356_v49 = vmul.f32 1.442695, %v5311_v6  ;;  %8559 = vmatmul.msk.f32.gmra.mxu1 %vm5201_vm1, %v5523_v0 }
 0x82e   : > { %v5430_v18 = vsel %vm5201_vm1, %v14317_v29, 0.0  ;;  %v5268_v54 = vsel %vm5201_vm1, %v14322_v62, -inf }
 0x82f   : > { %9071 = vpow2.f32 %v5334_v55  ;;  %5431 = vadd.xlane.f32.xlu1 %v5430_v18 }
 0x830   : > { %9073 = vpow2.f32 %v5356_v49 }
 0x832   : > { %v5213_v3 = vpop.xlane.xlu1 %5212  ;;  %v5246_v27 = vpop.xlane.xlu0 %5245 }
 0x833   : > { %v5301_v47 = vsub.f32 %v14233_v60, %v5213_v3  ;;  %v5312_v7 = vsub.f32 %v14230_v36, %v5246_v27  ;;  %v4764_v60 = vadd.f32 %v4763_v59, %v4740_v12  ;;  %v4863_v36 = vpop.f32.mrf.mxu0  ;;  %v4843_v49 = vpop.f32.mrf.mxu3 }
 0x834   : > { %v4886_v3 = vpop.f32.mrf.mxu1  ;;  %v14339_v27 = vpop.f32.mrf.mxu2 }
 0x835   : > { %v14326_v0 = vpop.eup %9071  ;;  %v5336_v6 = vmul.f32 1.442695, %v5301_v47  ;;  %v5358_v17 = vmul.f32 1.442695, %v5312_v7  ;;  %v14336_v55 = vadd.f32 %v4786_v33, %v4764_v60 }
 0x836   : > { %v14328_v56 = vpop.eup %9073  ;;  %v5400_v10 = vsel %vm5201_vm1, %v14326_v0, 0.0 }
 0x837   : > { %9075 = vpow2.f32 %v5336_v6  ;;  %v5433_v61 = vsel %vm5201_vm1, %v14328_v56, 0.0  ;;  %5269 = vmax.xlane.f32.xlu1 %v5268_v54  ;;  %5401 = vadd.xlane.f32.xlu2 %v5400_v10  ;;  %v4864_v54 = vadd.f32 %v4863_v36, %v4840_v40 }
 0x838   : > { %9077 = vpow2.f32 %v5358_v17  ;;  %5434 = vadd.xlane.f32.xlu0 %v5433_v61  ;;  %v5271_v17 = vsel %vm5201_vm1, %v14336_v55, -inf }
 0x839   : > { %v14353_v33 = vadd.f32 %v4886_v3, %v4864_v54 }
 0x83a   : > { %v5249_v18 = vpop.xlane.xlu0 %5248 }
 0x83b   : > { %v5313_v39 = vsub.f32 %v14240_v23, %v5249_v18  ;;  %v4143_v23 = vadd.f32 %v14193_v25, %v14191_v9  ;;  %v4866_v61 = vpop.f32.mrf.mxu0  ;;  %v14358_v60 = vpop.f32.mrf.mxu3 }
 0x83c   : > { %17382 = vst [vmem:[#allocation215_spill] sm:$0xff] %v14358_v60  ;;  %v4889_v18 = vpop.f32.mrf.mxu1 }
 0x83d   : > { %v14341_v47 = vpop.eup %9075  ;;  %v5360_v7 = vmul.f32 1.442695, %v5313_v39  ;;  %v14356_v40 = vadd.f32 %v14200_v11, %v4143_v23  ;;  %v4867_v39 = vadd.f32 %v4866_v61, %v4843_v49  ;;  %v5274_v11 = vsel %vm5201_vm1, %v14353_v33, -inf }
 0x83e   : > { %v5408_v6 = vpop.xlane.xlu2 %5407  ;;  %v14343_v41 = vpop.eup %9077  ;;  %v5403_v12 = vsel %vm5201_vm1, %v14341_v47, 0.0 }
 0x83f   : > { %9079 = vrcp.f32 %v5408_v6  ;;  %v5436_v59 = vsel %vm5201_vm1, %v14343_v41, 0.0  ;;  %5272 = vmax.xlane.f32.xlu1 %v5271_v17  ;;  %5404 = vadd.xlane.f32.xlu2 %v5403_v12  ;;  %v4146_v6 = vadd.f32 %v14197_v46, %v14195_v20  ;;  %v5232_v54 = vsel %vm5201_vm1, %v14356_v40, -inf }
 0x840   : > { %9081 = vpow2.f32 %v5360_v7  ;;  %5437 = vadd.xlane.f32.xlu0 %v5436_v59  ;;  %v14365_v7 = vpop.f32.mrf.mxu2 }
 0x841   : > { %17383 = vst [vmem:[#allocation40_spill] sm:$0xff] %v14365_v7  ;;  %v14382_v49 = vadd.f32 %v14207_v58, %v4146_v6 }
 0x843   : > { %v14387_v23 = vpop.f32.mrf.mxu0  ;;  %v14389_v59 = vpop.f32.mrf.mxu3 }
 0x844   : > { %17384 = vst [vmem:[#allocation169_spill] sm:$0xff] %v14387_v23 }
 0x845   : > { %v9080_v10 = vpop.eup %9079  ;;  %17385 = vst [vmem:[#allocation306_spill] sm:$0xff] %v14389_v59 }
 0x846   : > { %v14360_v36 = vpop.eup %9081  ;;  %v14363_v9 = vmul.f32 %v9080_v10, %v14247_v50  ;;  %v5411_v25 = vpop.xlane.xlu2 %5410  ;;  %v14378_v50 = vadd.f32 %v4889_v18, %v4867_v39 }
 0x847   : > { %9083 = vrcp.f32 %v5411_v25  ;;  %v5439_v3 = vsel %vm5201_vm1, %v14360_v36, 0.0  ;;  %5275 = vmax.xlane.f32.xlu2 %v5274_v11  ;;  %v5046_v10 = vpop.f32.mrf.mxu1 }
 0x848   : > { %5440 = vadd.xlane.f32.xlu1 %v5439_v3  ;;  %5233 = vmax.xlane.f32.xlu0 %v5232_v54  ;;  %v5069_v61 = vpop.f32.mrf.mxu2 }
 0x849   : > { %8566 = vmatmul.msk.f32.vlgmr.msrb.gmra.mxu1 %vm5201_vm1, %v14363_v9 }
 0x84a   : > { %5920 = vmatpush.msrb.mxu1 %v13628_v14  ;;  %v5277_v14 = vsel %vm5201_vm1, %v14378_v50, -inf }
 0x84b   : > { %v14402_v54 = vpop.f32.mrf.mxu0 }
 0x84c   : > { %5921 = vmatpush.msrb.mxu1 %v13614_v63  ;;  %v5235_v63 = vsel %vm5201_vm1, %v14382_v49, -inf  ;;  %17386 = vst [vmem:[#allocation301_spill] sm:$0xff] %v14402_v54 }
 0x84d   : > { %v9084_v17 = vpop.eup %9083 }
 0x84e   : > { %v5417_v20 = vpop.xlane.xlu1 %5416  ;;  %v5414_v46 = vpop.xlane.xlu2 %5413  ;;  %v14385_v12 = vmul.f32 %v9084_v17, %v14255_v44 }
 0x84f   : > { %9085 = vrcp.f32 %v5414_v46  ;;  %5278 = vmax.xlane.f32.xlu2 %v5277_v14  ;;  %v5092_v17 = vpop.f32.mrf.mxu3  ;;  %v5049_v59 = vpop.f32.mrf.mxu1 }
 0x850   : > { %v5420_v58 = vpop.xlane.xlu0 %5419  ;;  %5236 = vmax.xlane.f32.xlu0 %v5235_v63  ;;  %9087 = vrcp.f32 %v5417_v20  ;;  %v17387_v20 = vld [vmem:[#allocation328_spill] sm:$0xff] }
 0x851   : > { %8567 = vmatmul.msk.f32.gmra.mxu1 %vm5201_vm1, %v14385_v12 }
 0x855   : > { %v9086_v44 = vpop.eup %9085 }
 0x856   : > { %v5255_v25 = vpop.xlane.xlu1 %5254  ;;  %v5252_v18 = vpop.xlane.xlu2 %5251  ;;  %v14398_v39 = vmul.f32 %v9086_v44, %v14264_v15 }
 0x857   : > { %v5315_v3 = vsub.f32 %v14279_v8, %v5255_v25  ;;  %v5314_v11 = vsub.f32 %v14277_v45, %v5252_v18  ;;  %v5072_v15 = vpop.f32.mrf.mxu2  ;;  %v9088_v8 = vpop.eup %9087  ;;  %v17388_v45 = vld [vmem:[#allocation325_spill] sm:$0xff] }
 0x858   : > { %v5264_v6 = vpop.xlane.xlu0 %5263  ;;  %v14410_v18 = vmul.f32 %v9088_v8, %v14266_v24  ;;  %v5070_v8 = vadd.f32 %v5069_v61, %v5046_v10 }
 0x859   : > { %v5364_v46 = vmul.f32 1.442695, %v5315_v3  ;;  %v5362_v14 = vmul.f32 1.442695, %v5314_v11  ;;  %v5318_v63 = vsub.f32 %v14281_v19, %v5264_v6  ;;  %8574 = vmatmul.msk.f32.vlgmr.msra.gmra.mxu1 %vm5201_vm1, %v14398_v39 }
 0x85a   : > { %6024 = vmatpush.msra.mxu1 %v17387_v20  ;;  %v14428_v60 = vadd.f32 %v5092_v17, %v5070_v8 }
 0x85b   : > { %9089 = vpow2.f32 %v5364_v46  ;;  %v5370_v44 = vmul.f32 1.442695, %v5318_v63  ;;  %v5149_v46 = vpop.f32.mrf.mxu0  ;;  %v5073_v63 = vadd.f32 %v5072_v15, %v5049_v59 }
 0x85c   : > { %9091 = vpow2.f32 %v5362_v14  ;;  %6025 = vmatpush.msra.mxu1 %v17388_v45  ;;  %v5095_v14 = vpop.f32.mrf.mxu3  ;;  %v5286_v61 = vsel %vm5201_vm1, %v14428_v60, -inf }
 0x85d   : > { %9093 = vpow2.f32 %v5370_v44  ;;  %v5172_v44 = vpop.f32.mrf.mxu1  ;;  %v14426_v7 = vadd.f32 %v5095_v14, %v5073_v63 }
 0x85e   : > { %9095 = vrcp.f32 %v5420_v58  ;;  %v5423_v25 = vpop.xlane.xlu2 %5422  ;;  %v5173_v54 = vadd.f32 %v5172_v44, %v5149_v46 }
 0x85f   : > { %v5195_v45 = vpop.f32.mrf.mxu2  ;;  %9097 = vrcp.f32 %v5423_v25  ;;  %v5289_v10 = vsel %vm5201_vm1, %v14426_v7, -inf }
 0x860   : > { %v14434_v15 = vadd.f32 %v5195_v45, %v5173_v54 }
 0x861   : > { %v14412_v19 = vpop.eup %9089  ;;  %8575 = vmatmul.msk.f32.gmra.mxu1 %vm5201_vm1, %v14410_v18 }
 0x862   : > { %v14416_v3 = vpop.eup %9091  ;;  %v5445_v11 = vsel %vm5201_vm1, %v14412_v19, 0.0 }
 0x863   : > { %v14420_v6 = vpop.eup %9093  ;;  %5446 = vadd.xlane.f32.xlu0 %v5445_v11  ;;  %v5442_v58 = vsel %vm5201_vm1, %v14416_v3, 0.0  ;;  %v5152_v54 = vpop.f32.mrf.mxu0 }
 0x864   : > { %v9096_v24 = vpop.eup %9095  ;;  %5443 = vadd.xlane.f32.xlu1 %v5442_v58  ;;  %v5454_v20 = vsel %vm5201_vm1, %v14420_v6, 0.0 }
 0x865   : > { %5455 = vadd.xlane.f32.xlu2 %v5454_v20  ;;  %v14431_v11 = vmul.f32 %v9096_v24, %v14273_v32  ;;  %v9098_v32 = vpop.eup %9097  ;;  %v5175_v25 = vpop.f32.mrf.mxu1 }
 0x866   : > { %v5267_v23 = vpop.xlane.xlu2 %5266 }
 0x867   : > { %v5319_v59 = vsub.f32 %v14293_v53, %v5267_v23  ;;  %v5292_v53 = vsel %vm5201_vm1, %v14434_v15, -inf  ;;  %v14447_v23 = vmul.f32 %v9098_v32, %v14289_v34  ;;  %v5198_v46 = vpop.f32.mrf.mxu2 }
 0x869   : > { %v5372_v58 = vmul.f32 1.442695, %v5319_v59  ;;  %8582 = vmatmul.msk.f32.vlgmr.msrb.gmra.mxu1 %vm5201_vm1, %v14431_v11 }
 0x86a   : > { %6122 = vmatpush.msrb.mxu1 %v13661_v51 }
 0x86b   : > { %9099 = vpow2.f32 %v5372_v58  ;;  %5290 = vmax.xlane.f32.xlu0 %v5289_v10 }
 0x86c   : > { %6123 = vmatpush.msrb.mxu1 %v13644_v30  ;;  %5287 = vmax.xlane.f32.xlu1 %v5286_v61  ;;  %v5176_v30 = vadd.f32 %v5175_v25, %v5152_v54 }
 0x86d   : > { %5293 = vmax.xlane.f32.xlu2 %v5292_v53 }
 0x86e   : > { %v14455_v14 = vadd.f32 %v5198_v46, %v5176_v30 }
 0x870   : > { %v5295_v24 = vsel %vm5201_vm1, %v14455_v14, -inf }
 0x871   : > { %v14449_v51 = vpop.eup %9099  ;;  %8583 = vmatmul.msk.f32.gmra.mxu1 %vm5201_vm1, %v14447_v23 }
 0x872   : > { %v5457_v17 = vsel %vm5201_vm1, %v14449_v51, 0.0 }
 0x874   : > { %5458 = vadd.xlane.f32.xlu1 %v5457_v17 }
 0x87c   : > { %5296 = vmax.xlane.f32.xlu1 %v5295_v24 }
 0x8a2   : > { %v5432_v34 = vpop.xlane.xlu1 %5431 }
 0x8a3   : > { %9101 = vrcp.f32 %v5432_v34 }
 0x8a9   : > { %v9102_v63 = vpop.eup %9101 }
 0x8aa   : > { %v14460_v20 = vmul.f32 %v9102_v63, %v14317_v29  ;;  %v5270_v44 = vpop.xlane.xlu1 %5269  ;;  %v5402_v59 = vpop.xlane.xlu2 %5401 }
 0x8ab   : > { %v5435_v8 = vpop.xlane.xlu0 %5434  ;;  %v5320_v45 = vsub.f32 %v14322_v62, %v5270_v44 }
 0x8ac   : > { %9103 = vrcp.f32 %v5435_v8  ;;  %8590 = vmatmul.msk.f32.vlgmr.msra.gmra.mxu1 %vm5201_vm1, %v14460_v20 }
 0x8ad   : > { %v5374_v58 = vmul.f32 1.442695, %v5320_v45  ;;  %9105 = vrcp.f32 %v5402_v59  ;;  %6220 = vmatpush.msra.mxu1 %v13776_v31  ;;  %v17389_v31 = vld [vmem:[#allocation312_spill] sm:$0xff] }
 0x8af   : > { %9107 = vpow2.f32 %v5374_v58  ;;  %6221 = vmatpush.msra.mxu1 %v13758_v5 }
 0x8b2   : > { %v9104_v10 = vpop.eup %9103  ;;  %v5273_v61 = vpop.xlane.xlu1 %5272 }
 0x8b3   : > { %v9106_v29 = vpop.eup %9105  ;;  %v5438_v32 = vpop.xlane.xlu0 %5437  ;;  %v5321_v53 = vsub.f32 %v14336_v55, %v5273_v61  ;;  %v14469_v62 = vmul.f32 %v9104_v10, %v14328_v56 }
 0x8b4   : > { %v5405_v54 = vpop.xlane.xlu2 %5404  ;;  %v5524_v17 = vmul.f32 %v9106_v29, %v14326_v0  ;;  %9109 = vrcp.f32 %v5438_v32  ;;  %v17390_v0 = vld [vmem:[#allocation308_spill] sm:$0xff] }
 0x8b5   : > { %v14472_v25 = vpop.eup %9107  ;;  %v5376_v46 = vmul.f32 1.442695, %v5321_v53  ;;  %9111 = vrcp.f32 %v5405_v54  ;;  %8591 = vmatmul.msk.f32.gmra.mxu1 %vm5201_vm1, %v14469_v62  ;;  %v4555_v54 = vadd.f32 %v14249_v13, %v14242_v43 }
 0x8b6   : > { %8560 = vmatmul.msk.f32.vlgmr.msra.gmra.mxu2 %vm5201_vm1, %v5524_v17  ;;  %8562 = vmatmul.msk.f32.vlgmr.msrb.gmra.mxu3 %vm5201_vm1, %v5524_v17  ;;  %v5460_v5 = vsel %vm5201_vm1, %v14472_v25, 0.0 }
 0x8b7   : > { %9113 = vpow2.f32 %v5376_v46  ;;  %8564 = vmatmul.msk.f32.vlgmr.msra.gmra.mxu0 %vm5201_vm1, %v5524_v17  ;;  %5845 = vmatpush.msra.mxu2 %v13600_v57  ;;  %v17394_v17 = vld [vmem:[#allocation317_spill] sm:$0xff]  ;;  %v14534_v46 = vadd.f32 %v14297_v38, %v4555_v54 }
 0x8b8   : > { %5874 = vmatpush.msrb.mxu3 %v17389_v31  ;;  %5897 = vmatpush.msra.mxu0 %v13568_v26  ;;  %v17397_v31 = vld [vmem:[#allocation329_spill] sm:$0xff] }
 0x8b9   : > { %5846 = vmatpush.msra.mxu2 %v13583_v16  ;;  %5461 = vadd.xlane.f32.xlu0 %v5460_v5  ;;  %v17395_v5 = vld [vmem:[#allocation330_spill] sm:$0xff] }
 0x8ba   : > { %v9110_v56 = vpop.eup %9109  ;;  %5875 = vmatpush.msrb.mxu3 %v17390_v0  ;;  %5898 = vmatpush.msra.mxu0 %v13551_v2 }
 0x8bb   : > { %v5441_v55 = vpop.xlane.xlu1 %5440  ;;  %v9112_v30 = vpop.eup %9111  ;;  %v14488_v24 = vmul.f32 %v9110_v56, %v14343_v41 }
 0x8bc   : > { %v5234_v34 = vpop.xlane.xlu0 %5233  ;;  %9115 = vrcp.f32 %v5441_v55  ;;  %v5276_v57 = vpop.xlane.xlu2 %5275  ;;  %v5525_v16 = vmul.f32 %v9112_v30, %v14341_v47 }
 0x8bd   : > { %v5308_v63 = vsub.f32 %v14356_v40, %v5234_v34  ;;  %v5322_v26 = vsub.f32 %v14353_v33, %v5276_v57  ;;  %v14493_v44 = vpop.eup %9113  ;;  %8598 = vmatmul.msk.f32.vlgmr.msrb.gmra.mxu1 %vm5201_vm1, %v14488_v24  ;;  %v17391_v40 = vld [vmem:[#allocation131_spill] sm:$0xff]  ;;  %v17392_v33 = vld [vmem:[#allocation34_spill] sm:$0xff] }
 0x8be   : > { %8561 = vmatmul.msk.f32.gmra.mxu2 %vm5201_vm1, %v5525_v16  ;;  %8563 = vmatmul.msk.f32.gmra.mxu3 %vm5201_vm1, %v5525_v16  ;;  %v5463_v41 = vsel %vm5201_vm1, %v14493_v44, 0.0 }
 0x8bf   : > { %v5350_v2 = vmul.f32 1.442695, %v5308_v63  ;;  %v5378_v8 = vmul.f32 1.442695, %v5322_v26  ;;  %8565 = vmatmul.msk.f32.gmra.mxu0 %vm5201_vm1, %v5525_v16  ;;  %6324 = vmatpush.msrb.mxu1 %v17391_v40 }
 0x8c0   : > { %5464 = vadd.xlane.f32.xlu2 %v5463_v41 }
 0x8c1   : > { %9117 = vpow2.f32 %v5350_v2  ;;  %6325 = vmatpush.msrb.mxu1 %v17392_v33 }
 0x8c2   : > { %v9116_v47 = vpop.eup %9115  ;;  %9119 = vpow2.f32 %v5378_v8 }
 0x8c3   : > { %v14505_v45 = vmul.f32 %v9116_v47, %v14360_v36 }
 0x8c4   : > { %v5237_v59 = vpop.xlane.xlu0 %5236  ;;  %v5279_v58 = vpop.xlane.xlu2 %5278 }
 0x8c5   : > { %v5309_v10 = vsub.f32 %v14382_v49, %v5237_v59  ;;  %v5323_v61 = vsub.f32 %v14378_v50, %v5279_v58  ;;  %8599 = vmatmul.msk.f32.gmra.mxu1 %vm5201_vm1, %v14505_v45  ;;  %v17393_v49 = vld [vmem:[#allocation322_spill] sm:$0xff] }
 0x8c6   : > { %8568 = vmatmul.msk.f32.vlgmr.msrb.gmra.mxu2 %vm5201_vm1, %v14363_v9  ;;  %8570 = vmatmul.msk.f32.vlgmr.msra.gmra.mxu3 %vm5201_vm1, %v14363_v9  ;;  %v17400_v58 = vld [vmem:[#allocation230_spill] sm:$0xff] }
 0x8c7   : > { %v14511_v29 = vpop.eup %9117  ;;  %v5352_v32 = vmul.f32 1.442695, %v5309_v10  ;;  %v5380_v53 = vmul.f32 1.442695, %v5323_v61  ;;  %8572 = vmatmul.msk.f32.vlgmr.msrb.gmra.mxu0 %vm5201_vm1, %v14398_v39  ;;  %5949 = vmatpush.msrb.mxu2 %v17393_v49  ;;  %v17401_v61 = vld [vmem:[#allocation300_spill] sm:$0xff] }
 0x8c8   : > { %v14517_v36 = vpop.eup %9119  ;;  %v5424_v50 = vsel %vm5201_vm1, %v14511_v29, 0.0  ;;  %5972 = vmatpush.msra.mxu3 %v13602_v42  ;;  %5995 = vmatpush.msrb.mxu0 %v13659_v48  ;;  %v5256_v48 = vsel %vm5201_vm1, %v14534_v46, -inf }
 0x8c9   : > { %9121 = vpow2.f32 %v5352_v32  ;;  %v5466_v9 = vsel %vm5201_vm1, %v14517_v36, 0.0  ;;  %5950 = vmatpush.msrb.mxu2 %v17394_v17  ;;  %5425 = vadd.xlane.f32.xlu0 %v5424_v50  ;;  %v17403_v50 = vld [vmem:[#allocation169_spill] sm:$0xff] }
 0x8ca   : > { %9123 = vpow2.f32 %v5380_v53  ;;  %5973 = vmatpush.msra.mxu3 %v13585_v37  ;;  %5996 = vmatpush.msrb.mxu0 %v13642_v1  ;;  %v4558_v1 = vadd.f32 %v14262_v21, %v14257_v28 }
 0x8cb   : > { %5467 = vadd.xlane.f32.xlu1 %v5466_v9 }
 0x8cc   : > { %v14555_v38 = vadd.f32 %v14299_v52, %v4558_v1 }
 0x8ce   : > { %8569 = vmatmul.msk.f32.gmra.mxu2 %vm5201_vm1, %v14385_v12  ;;  %8571 = vmatmul.msk.f32.gmra.mxu3 %vm5201_vm1, %v14385_v12  ;;  %v5259_v52 = vsel %vm5201_vm1, %v14555_v38, -inf }
 0x8cf   : > { %v14536_v43 = vpop.eup %9121  ;;  %8573 = vmatmul.msk.f32.gmra.mxu0 %vm5201_vm1, %v14410_v18 }
 0x8d0   : > { %v14542_v42 = vpop.eup %9123  ;;  %v5427_v37 = vsel %vm5201_vm1, %v14536_v43, 0.0 }
 0x8d1   : > { %5428 = vadd.xlane.f32.xlu2 %v5427_v37  ;;  %v5469_v13 = vsel %vm5201_vm1, %v14542_v42, 0.0  ;;  %5257 = vmax.xlane.f32.xlu0 %v5256_v48  ;;  %v17405_v48 = vld [vmem:[#allocation202_spill] sm:$0xff] }
 0x8d3   : > { %5470 = vadd.xlane.f32.xlu1 %v5469_v13 }
 0x8d6   : > { %v5447_v12 = vpop.xlane.xlu0 %5446  ;;  %8576 = vmatmul.msk.f32.vlgmr.msra.gmra.mxu2 %vm5201_vm1, %v14398_v39  ;;  %8578 = vmatmul.msk.f32.vlgmr.msrb.gmra.mxu3 %vm5201_vm1, %v14431_v11  ;;  %v17396_v39 = vld [vmem:[#allocation251_spill] sm:$0xff] }
 0x8d7   : > { %v5444_v28 = vpop.xlane.xlu1 %5443  ;;  %8580 = vmatmul.msk.f32.vlgmr.msra.gmra.mxu0 %vm5201_vm1, %v14431_v11  ;;  %6047 = vmatpush.msra.mxu2 %v13630_v4 }
 0x8d8   : > { %9125 = vrcp.f32 %v5444_v28  ;;  %v5456_v21 = vpop.xlane.xlu2 %5455  ;;  %6070 = vmatpush.msrb.mxu3 %v13699_v35  ;;  %6099 = vmatpush.msra.mxu0 %v17395_v5 }
 0x8d9   : > { %6048 = vmatpush.msra.mxu2 %v13616_v22  ;;  %5260 = vmax.xlane.f32.xlu2 %v5259_v52  ;;  %9127 = vrcp.f32 %v5447_v12 }
 0x8da   : > { %6071 = vmatpush.msrb.mxu3 %v17396_v39  ;;  %6100 = vmatpush.msra.mxu0 %v17397_v31 }
 0x8de   : > { %v9126_v56 = vpop.eup %9125  ;;  %v5291_v11 = vpop.xlane.xlu0 %5290  ;;  %8577 = vmatmul.msk.f32.gmra.mxu2 %vm5201_vm1, %v14410_v18  ;;  %8579 = vmatmul.msk.f32.gmra.mxu3 %vm5201_vm1, %v14447_v23  ;;  %v17398_v18 = vld [vmem:[#allocation47_spill] sm:$0xff] }
 0x8df   : > { %v14572_v4 = vmul.f32 %v9126_v56, %v14416_v3  ;;  %v5327_v35 = vsub.f32 %v14426_v7, %v5291_v11  ;;  %v5288_v22 = vpop.xlane.xlu1 %5287  ;;  %8581 = vmatmul.msk.f32.gmra.mxu0 %vm5201_vm1, %v14447_v23  ;;  %v9128_v63 = vpop.eup %9127  ;;  %v17399_v7 = vld [vmem:[#allocation80_spill] sm:$0xff] }
 0x8e0   : > { %v5326_v0 = vsub.f32 %v14428_v60, %v5288_v22  ;;  %v5294_v55 = vpop.xlane.xlu2 %5293  ;;  %v14588_v60 = vmul.f32 %v9128_v63, %v14412_v19  ;;  %v17406_v22 = vld [vmem:[#allocation43_spill] sm:$0xff] }
 0x8e1   : > { %v5388_v30 = vmul.f32 1.442695, %v5327_v35  ;;  %8606 = vmatmul.msk.f32.vlgmr.msra.gmra.mxu1 %vm5201_vm1, %v14572_v4  ;;  %v5328_v3 = vsub.f32 %v14434_v15, %v5294_v55  ;;  %v17410_v55 = vld [vmem:[#allocation178_spill] sm:$0xff] }
 0x8e2   : > { %v5386_v34 = vmul.f32 1.442695, %v5326_v0  ;;  %6422 = vmatpush.msra.mxu1 %v17398_v18  ;;  %v17408_v0 = vld [vmem:[#allocation242_spill] sm:$0xff]  ;;  %v17413_v18 = vld [vmem:[#allocation188_spill] sm:$0xff] }
 0x8e3   : > { %9129 = vpow2.f32 %v5388_v30  ;;  %v5390_v57 = vmul.f32 1.442695, %v5328_v3  ;;  %v17411_v30 = vld [vmem:[#allocation331_spill] sm:$0xff]  ;;  %v17412_v3 = vld [vmem:[#allocation274_spill] sm:$0xff] }
 0x8e4   : > { %9131 = vpow2.f32 %v5386_v34  ;;  %6423 = vmatpush.msra.mxu1 %v17399_v7 }
 0x8e5   : > { %9133 = vpow2.f32 %v5390_v57 }
 0x8e6   : > { %9135 = vrcp.f32 %v5456_v21 }
 0x8e7   : > { %v5459_v23 = vpop.xlane.xlu1 %5458 }
 0x8e8   : > { %9137 = vrcp.f32 %v5459_v23 }
 0x8e9   : > { %v14590_v26 = vpop.eup %9129  ;;  %8607 = vmatmul.msk.f32.gmra.mxu1 %vm5201_vm1, %v14588_v60 }
 0x8ea   : > { %v14594_v15 = vpop.eup %9131  ;;  %v5481_v16 = vsel %vm5201_vm1, %v14590_v26, 0.0 }
 0x8eb   : > { %v14598_v2 = vpop.eup %9133  ;;  %v5478_v8 = vsel %vm5201_vm1, %v14594_v15, 0.0  ;;  %5482 = vadd.xlane.f32.xlu1 %v5481_v16 }
 0x8ec   : > { %v9136_v41 = vpop.eup %9135  ;;  %5479 = vadd.xlane.f32.xlu0 %v5478_v8  ;;  %v5484_v19 = vsel %vm5201_vm1, %v14598_v2, 0.0 }
 0x8ed   : > { %5485 = vadd.xlane.f32.xlu2 %v5484_v19  ;;  %v14605_v40 = vmul.f32 %v9136_v41, %v14420_v6  ;;  %v17414_v41 = vld [vmem:[#allocation40_spill] sm:$0xff] }
 0x8ee   : > { %v9138_v10 = vpop.eup %9137 }
 0x8ef   : > { %v5297_v47 = vpop.xlane.xlu1 %5296  ;;  %v14613_v32 = vmul.f32 %v9138_v10, %v14449_v51  ;;  %v17419_v10 = vld [vmem:[#allocation87_spill] sm:$0xff] }
 0x8f0   : > { %v5329_v33 = vsub.f32 %v14455_v14, %v5297_v47  ;;  %v17402_v14 = vld [vmem:[#allocation215_spill] sm:$0xff] }
 0x8f1   : > { %8614 = vmatmul.msk.f32.vlgmr.msrb.gmra.mxu1 %vm5201_vm1, %v14605_v40  ;;  %v4967_v53 = vadd.f32 %v17402_v14, %v14339_v27  ;;  %v17404_v27 = vld [vmem:[#allocation185_spill] sm:$0xff] }
 0x8f2   : > { %v5392_v59 = vmul.f32 1.442695, %v5329_v33  ;;  %6520 = vmatpush.msrb.mxu1 %v17400_v58  ;;  %v17418_v58 = vld [vmem:[#allocation252_spill] sm:$0xff] }
 0x8f3   : > { %v14624_v54 = vadd.f32 %v17403_v50, %v4967_v53  ;;  %v17420_v53 = vld [vmem:[#allocation333_spill] sm:$0xff] }
 0x8f4   : > { %9139 = vpow2.f32 %v5392_v59  ;;  %6521 = vmatpush.msrb.mxu1 %v17401_v61  ;;  %v17417_v59 = vld [vmem:[#allocation55_spill] sm:$0xff] }
 0x8f5   : > { %v5280_v9 = vsel %vm5201_vm1, %v14624_v54, -inf }
 0x8f9   : > { %8615 = vmatmul.msk.f32.gmra.mxu1 %vm5201_vm1, %v14613_v32 }
 0x8fa   : > { %v14617_v6 = vpop.eup %9139 }
 0x8fb   : > { %v5487_v49 = vsel %vm5201_vm1, %v14617_v6, 0.0 }
 0x8fc   : > { %5488 = vadd.xlane.f32.xlu0 %v5487_v49  ;;  %v17422_v49 = vld [vmem:[#allocation292_spill] sm:$0xff] }
 0x904   : > { %5281 = vmax.xlane.f32.xlu0 %v5280_v9 }
 0x92c   : > { %v5462_v51 = vpop.xlane.xlu0 %5461 }
 0x92d   : > { %9141 = vrcp.f32 %v5462_v51 }
 0x933   : > { %v9142_v17 = vpop.eup %9141  ;;  %v5465_v37 = vpop.xlane.xlu2 %5464 }
 0x934   : > { %v14629_v1 = vmul.f32 %v9142_v17, %v14472_v25  ;;  %9143 = vrcp.f32 %v5465_v37  ;;  %v17424_v37 = vld [vmem:[#allocation273_spill] sm:$0xff] }
 0x936   : > { %8622 = vmatmul.msk.f32.vlgmr.msra.gmra.mxu1 %vm5201_vm1, %v14629_v1 }
 0x937   : > { %6624 = vmatpush.msra.mxu1 %v17404_v27  ;;  %v17425_v27 = vld [vmem:[#allocation134_spill] sm:$0xff] }
 0x939   : > { %6625 = vmatpush.msra.mxu1 %v17405_v48  ;;  %v6871_v48 = vld [vmem:[#allocation8 + $0x3a8] sm:$0xff] }
 0x93a   : > { %v9144_v13 = vpop.eup %9143 }
 0x93b   : > { %v14636_v12 = vmul.f32 %v9144_v13, %v14493_v44  ;;  %v17426_v13 = vld [vmem:[#allocation280_spill] sm:$0xff] }
 0x93c   : > { %v5426_v28 = vpop.xlane.xlu0 %5425 }
 0x93d   : > { %9145 = vrcp.f32 %v5426_v28  ;;  %v17429_v28 = vld [vmem:[#allocation29_spill] sm:$0xff] }
 0x93e   : > { %v5468_v21 = vpop.xlane.xlu1 %5467  ;;  %8623 = vmatmul.msk.f32.gmra.mxu1 %vm5201_vm1, %v14636_v12 }
 0x93f   : > { %9147 = vrcp.f32 %v5468_v21  ;;  %v6868_v21 = vld [vmem:[#allocation8 + $0x390] sm:$0xff] }
 0x943   : > { %v9146_v25 = vpop.eup %9145 }
 0x944   : > { %v5429_v5 = vpop.xlane.xlu2 %5428  ;;  %v5532_v52 = vmul.f32 %v9146_v25, %v14511_v29  ;;  %v5258_v39 = vpop.xlane.xlu0 %5257  ;;  %v17407_v29 = vld [vmem:[#allocation332_spill] sm:$0xff] }
 0x945   : > { %9149 = vrcp.f32 %v5429_v5  ;;  %v9148_v31 = vpop.eup %9147  ;;  %v5316_v56 = vsub.f32 %v14534_v46, %v5258_v39  ;;  %v6865_v5 = vld [vmem:[#allocation8 + $0x378] sm:$0xff] }
 0x946   : > { %v14643_v11 = vmul.f32 %v9148_v31, %v14517_v36  ;;  %v5471_v44 = vpop.xlane.xlu1 %5470  ;;  %8584 = vmatmul.msk.f32.vlgmr.msrb.gmra.mxu2 %vm5201_vm1, %v5532_v52  ;;  %8586 = vmatmul.msk.f32.vlgmr.msra.gmra.mxu3 %vm5201_vm1, %v5532_v52  ;;  %v17409_v36 = vld [vmem:[#allocation84_spill] sm:$0xff] }
 0x947   : > { %v5366_v35 = vmul.f32 1.442695, %v5316_v56  ;;  %9151 = vrcp.f32 %v5471_v44  ;;  %8588 = vmatmul.msk.f32.vlgmr.msrb.gmra.mxu0 %vm5201_vm1, %v5532_v52  ;;  %6145 = vmatpush.msrb.mxu2 %v17406_v22  ;;  %v6862_v31 = vld [vmem:[#allocation8 + $0x360] sm:$0xff]  ;;  %v6859_v56 = vld [vmem:[#allocation8 + $0x348] sm:$0xff]  ;;  %v6856_v44 = vld [vmem:[#allocation8 + $0x330] sm:$0xff] }
 0x948   : > { %6174 = vmatpush.msra.mxu3 %v17407_v29  ;;  %6197 = vmatpush.msrb.mxu0 %v17408_v0  ;;  %v6853_v22 = vld [vmem:[#allocation8 + $0x318] sm:$0xff]  ;;  %v6850_v0 = vld [vmem:[#allocation8 + $0x300] sm:$0xff] }
 0x949   : > { %9153 = vpow2.f32 %v5366_v35  ;;  %8630 = vmatmul.msk.f32.vlgmr.msrb.gmra.mxu1 %vm5201_vm1, %v14643_v11  ;;  %6146 = vmatpush.msrb.mxu2 %v17409_v36 }
 0x94a   : > { %6722 = vmatpush.msrb.mxu1 %v17410_v55  ;;  %6175 = vmatpush.msra.mxu3 %v17411_v30 }
 0x94b   : > { %v9150_v46 = vpop.eup %9149  ;;  %6198 = vmatpush.msrb.mxu0 %v17412_v3  ;;  %v14744_v3 = vpop.f32.mrf.mxu3 }
 0x94c   : > { %v5533_v34 = vmul.f32 %v9150_v46, %v14536_v43  ;;  %6723 = vmatpush.msrb.mxu1 %v17413_v18  ;;  %v5261_v57 = vpop.xlane.xlu2 %5260  ;;  %v17415_v43 = vld [vmem:[#allocation306_spill] sm:$0xff]  ;;  %17432 = vst [vmem:[#allocation111_spill] sm:$0xff] %v14744_v3 }
 0x94d   : > { %v9152_v63 = vpop.eup %9151  ;;  %v5317_v7 = vsub.f32 %v14555_v38, %v5261_v57  ;;  %v4970_v19 = vadd.f32 %v17415_v43, %v17414_v41  ;;  %v17416_v38 = vld [vmem:[#allocation301_spill] sm:$0xff] }
 0x94e   : > { %8585 = vmatmul.msk.f32.gmra.mxu2 %vm5201_vm1, %v5533_v34  ;;  %8587 = vmatmul.msk.f32.gmra.mxu3 %vm5201_vm1, %v5533_v34  ;;  %v14663_v23 = vmul.f32 %v9152_v63, %v14542_v42  ;;  %v14762_v63 = vpop.f32.mrf.mxu2 }
 0x94f   : > { %v14665_v16 = vpop.eup %9153  ;;  %v5368_v8 = vmul.f32 1.442695, %v5317_v7  ;;  %8589 = vmatmul.msk.f32.gmra.mxu0 %vm5201_vm1, %v5533_v34  ;;  %v14675_v33 = vadd.f32 %v17416_v38, %v4970_v19  ;;  %v14752_v34 = vpop.f32.mrf.mxu0  ;;  %17435 = vst [vmem:[#allocation160_spill] sm:$0xff] %v14762_v63 }
 0x950   : > { %v5448_v47 = vsel %vm5201_vm1, %v14665_v16, 0.0 }
 0x951   : > { %9155 = vpow2.f32 %v5368_v8  ;;  %8631 = vmatmul.msk.f32.gmra.mxu1 %vm5201_vm1, %v14663_v23  ;;  %5449 = vadd.xlane.f32.xlu1 %v5448_v47  ;;  %v5283_v61 = vsel %vm5201_vm1, %v14675_v33, -inf }
 0x956   : > { %8592 = vmatmul.msk.f32.vlgmr.msra.gmra.mxu2 %vm5201_vm1, %v14460_v20  ;;  %8594 = vmatmul.msk.f32.vlgmr.msrb.gmra.mxu3 %vm5201_vm1, %v14460_v20  ;;  %v17421_v20 = vld [vmem:[#allocation100_spill] sm:$0xff]  ;;  %v14772_v43 = vpop.f32.mrf.mxu2 }
 0x957   : > { %v14681_v42 = vpop.eup %9155  ;;  %8596 = vmatmul.msk.f32.vlgmr.msra.gmra.mxu0 %vm5201_vm1, %v14488_v24  ;;  %6249 = vmatpush.msra.mxu2 %v17417_v59  ;;  %v14760_v57 = vpop.f32.mrf.mxu0  ;;  %17437 = vst [vmem:[#allocation307_spill] sm:$0xff] %v14772_v43 }
 0x958   : > { %6272 = vmatpush.msrb.mxu3 %v17418_v58  ;;  %6295 = vmatpush.msra.mxu0 %v17419_v10  ;;  %v5451_v14 = vsel %vm5201_vm1, %v14681_v42, 0.0 }
 0x959   : > { %6250 = vmatpush.msra.mxu2 %v17420_v53  ;;  %5284 = vmax.xlane.f32.xlu1 %v5283_v61 }
 0x95a   : > { %6273 = vmatpush.msrb.mxu3 %v17421_v20  ;;  %6296 = vmatpush.msra.mxu0 %v17422_v49 }
 0x95b   : > { %5452 = vadd.xlane.f32.xlu2 %v5451_v14 }
 0x95e   : > { %8593 = vmatmul.msk.f32.gmra.mxu2 %vm5201_vm1, %v14469_v62  ;;  %8595 = vmatmul.msk.f32.gmra.mxu3 %vm5201_vm1, %v14469_v62  ;;  %v5483_v9 = vpop.xlane.xlu1 %5482  ;;  %v17423_v62 = vld [vmem:[#allocation267_spill] sm:$0xff]  ;;  %v14784_v59 = vpop.f32.mrf.mxu2 }
 0x95f   : > { %v5480_v50 = vpop.xlane.xlu0 %5479  ;;  %8597 = vmatmul.msk.f32.gmra.mxu0 %vm5201_vm1, %v14505_v45  ;;  %v14770_v41 = vpop.f32.mrf.mxu0 }
 0x960   : > { %9157 = vrcp.f32 %v5480_v50  ;;  %17436 = vst [vmem:[#allocation309_spill] sm:$0xff] %v14770_v41 }
 0x961   : > { %9159 = vrcp.f32 %v5483_v9 }
 0x966   : > { %v9158_v51 = vpop.eup %9157  ;;  %8600 = vmatmul.msk.f32.vlgmr.msrb.gmra.mxu2 %vm5201_vm1, %v14488_v24  ;;  %8602 = vmatmul.msk.f32.vlgmr.msra.gmra.mxu3 %vm5201_vm1, %v14572_v4  ;;  %v17428_v24 = vld [vmem:[#allocation254_spill] sm:$0xff]  ;;  %v14792_v61 = vpop.f32.mrf.mxu2 }
 0x967   : > { %v14702_v17 = vmul.f32 %v9158_v51, %v14594_v15  ;;  %8604 = vmatmul.msk.f32.vlgmr.msrb.gmra.mxu0 %vm5201_vm1, %v14572_v4  ;;  %6347 = vmatpush.msrb.mxu2 %v17423_v62  ;;  %v14716_v15 = vpop.f32.mrf.mxu1  ;;  %v5486_v4 = vpop.xlane.xlu2 %5485 }
 0x968   : > { %6370 = vmatpush.msra.mxu3 %v17424_v37  ;;  %6399 = vmatpush.msrb.mxu0 %v17425_v27  ;;  %17427 = vst [vmem:[#allocation314_spill] sm:$0xff] %v14716_v15  ;;  %v9160_v25 = vpop.eup %9159  ;;  %9161 = vrcp.f32 %v5486_v4  ;;  %v14780_v38 = vpop.f32.mrf.mxu0 }
 0x969   : > { %6348 = vmatpush.msrb.mxu2 %v17426_v13  ;;  %8638 = vmatmul.msk.f32.vlgmr.msra.gmra.mxu1 %vm5201_vm1, %v14702_v17  ;;  %v14727_v39 = vmul.f32 %v9160_v25, %v14590_v26  ;;  %17438 = vst [vmem:[#allocation319_spill] sm:$0xff] %v14780_v38 }
 0x96a   : > { %6371 = vmatpush.msra.mxu3 %v17428_v24  ;;  %6400 = vmatpush.msrb.mxu0 %v17429_v28 }
 0x96b   : > { %7212 = vmatpush.msra.mxu1 %v6871_v48 }
 0x96d   : > { %7213 = vmatpush.msra.mxu1 %v6868_v21 }
 0x96e   : > { %8601 = vmatmul.msk.f32.gmra.mxu2 %vm5201_vm1, %v14505_v45  ;;  %8603 = vmatmul.msk.f32.gmra.mxu3 %vm5201_vm1, %v14588_v60  ;;  %v9162_v35 = vpop.eup %9161  ;;  %v14804_v50 = vpop.f32.mrf.mxu2 }
 0x96f   : > { %v5489_v52 = vpop.xlane.xlu0 %5488  ;;  %8605 = vmatmul.msk.f32.gmra.mxu0 %vm5201_vm1, %v14588_v60  ;;  %7214 = vmatpush.msra.mxu1 %v6865_v5  ;;  %v14731_v45 = vpop.f32.mrf.mxu1  ;;  %v14734_v60 = vmul.f32 %v9162_v35, %v14598_v2  ;;  %17445 = vst [vmem:[#allocation298_spill] sm:$0xff] %v14804_v50  ;;  %v17454_v35 = vld [vmem:[#allocation33_spill] sm:$0xff] }
 0x970   : > { %17430 = vst [vmem:[#allocation291_spill] sm:$0xff] %v14731_v45  ;;  %9163 = vrcp.f32 %v5489_v52  ;;  %v14800_v20 = vpop.f32.mrf.mxu0 }
 0x971   : > { %8639 = vmatmul.msk.f32.gmra.mxu1 %vm5201_vm1, %v14727_v39  ;;  %17443 = vst [vmem:[#allocation324_spill] sm:$0xff] %v14800_v20 }
 0x972   : > { %7215 = vmatpush.msra.mxu1 %v6862_v31  ;;  %v17452_v31 = vld [vmem:[#allocation290_spill] sm:$0xff] }
 0x974   : > { %7216 = vmatpush.msra.mxu1 %v6859_v56 }
 0x976   : > { %7217 = vmatpush.msra.mxu1 %v6856_v44  ;;  %v9164_v46 = vpop.eup %9163  ;;  %v14812_v62 = vpop.f32.mrf.mxu2 }
 0x977   : > { %v5282_v29 = vpop.xlane.xlu0 %5281  ;;  %v14739_v55 = vpop.f32.mrf.mxu1  ;;  %v14742_v30 = vmul.f32 %v9164_v46, %v14617_v6  ;;  %17448 = vst [vmem:[#allocation293_spill] sm:$0xff] %v14812_v62 }
 0x978   : > { %v5324_v26 = vsub.f32 %v14624_v54, %v5282_v29  ;;  %7218 = vmatpush.msra.mxu1 %v6853_v22  ;;  %17431 = vst [vmem:[#allocation104_spill] sm:$0xff] %v14739_v55  ;;  %v14758_v6 = vpop.f32.mrf.mxu3  ;;  %v14808_v9 = vpop.f32.mrf.mxu0  ;;  %v17457_v22 = vld [vmem:[#allocation121_spill] sm:$0xff] }
 0x979   : > { %8646 = vmatmul.msk.f32.vlgmr.msrb.gmra.mxu1 %vm5201_vm1, %v14734_v60  ;;  %17434 = vst [vmem:[#allocation44_spill] sm:$0xff] %v14758_v6  ;;  %v17458_v29 = vld [vmem:[#allocation285_spill] sm:$0xff] }
 0x97a   : > { %v5382_v36 = vmul.f32 1.442695, %v5324_v26  ;;  %7219 = vmatpush.msra.mxu1 %v6850_v0  ;;  %17446 = vst [vmem:[#allocation181_spill] sm:$0xff] %v14808_v9 }
 0x97c   : > { %9165 = vpow2.f32 %v5382_v36 }
 0x97f   : > { %v14754_v18 = vpop.f32.mrf.mxu1 }
 0x980   : > { %17433 = vst [vmem:[#allocation287_spill] sm:$0xff] %v14754_v18  ;;  %v14768_v8 = vpop.f32.mrf.mxu3  ;;  %v14818_v48 = vpop.f32.mrf.mxu0 }
 0x981   : > { %8647 = vmatmul.msk.f32.gmra.mxu1 %vm5201_vm1, %v14742_v30 }
 0x982   : > { %v14746_v2 = vpop.eup %9165 }
 0x983   : > { %v5472_v54 = vsel %vm5201_vm1, %v14746_v2, 0.0 }
 0x984   : > { %5473 = vadd.xlane.f32.xlu2 %v5472_v54 }
 0x987   : > { %v14764_v7 = vpop.f32.mrf.mxu1 }
 0x988   : > { %v14778_v47 = vpop.f32.mrf.mxu3  ;;  %v14832_v56 = vpop.f32.mrf.mxu0 }
 0x989   : > { %8650 = vmatmul.msk.f32.vlgmr.msra.gmra.mxu1 %vm744_vm0, %v14716_v15  ;;  %v6788_v15 = vld [vmem:[#allocation8 + $0x110] sm:$0xff] }
 0x98f   : > { %v14776_v19 = vpop.f32.mrf.mxu1 }
 0x990   : > { %v14788_v10 = vpop.f32.mrf.mxu3 }
 0x991   : > { %8651 = vmatmul.msk.f32.gmra.mxu1 %vm744_vm0, %v14731_v45  ;;  %17440 = vst [vmem:[#allocation172_spill] sm:$0xff] %v14788_v10  ;;  %v6802_v45 = vld [vmem:[#allocation8 + $0x180] sm:$0xff] }
 0x997   : > { %v14786_v58 = vpop.f32.mrf.mxu1 }
 0x998   : > { %17439 = vst [vmem:[#allocation107_spill] sm:$0xff] %v14786_v58  ;;  %v14796_v53 = vpop.f32.mrf.mxu3 }
 0x999   : > { %8652 = vmatmul.msk.f32.gmra.mxu1 %vm744_vm0, %v14770_v41  ;;  %17442 = vst [vmem:[#allocation311_spill] sm:$0xff] %v14796_v53 }
 0x99f   : > { %v14794_v14 = vpop.f32.mrf.mxu1 }
 0x9a0   : > { %17441 = vst [vmem:[#allocation313_spill] sm:$0xff] %v14794_v14  ;;  %v14816_v37 = vpop.f32.mrf.mxu3 }
 0x9a1   : > { %8653 = vmatmul.msk.f32.gmra.mxu1 %vm744_vm0, %v14780_v38  ;;  %17449 = vst [vmem:[#allocation316_spill] sm:$0xff] %v14816_v37  ;;  %v6814_v38 = vld [vmem:[#allocation8 + $0x1e0] sm:$0xff] }
 0x9a7   : > { %v14802_v49 = vpop.f32.mrf.mxu1 }
 0x9a8   : > { %17444 = vst [vmem:[#allocation231_spill] sm:$0xff] %v14802_v49  ;;  %v14824_v28 = vpop.f32.mrf.mxu3 }
 0x9a9   : > { %8654 = vmatmul.msk.f32.gmra.mxu1 %vm744_vm0, %v14788_v10  ;;  %17451 = vst [vmem:[#allocation159_spill] sm:$0xff] %v14824_v28  ;;  %v6769_v10 = vld [vmem:[#allocation8 + $0x78] sm:$0xff] }
 0x9af   : > { %v14810_v51 = vpop.f32.mrf.mxu1 }
 0x9b0   : > { %17447 = vst [vmem:[#allocation318_spill] sm:$0xff] %v14810_v51 }
 0x9b1   : > { %8655 = vmatmul.msk.f32.gmra.mxu1 %vm744_vm0, %v14796_v53 }
 0x9b7   : > { %v14822_v13 = vpop.f32.mrf.mxu1 }
 0x9b8   : > { %17450 = vst [vmem:[#allocation236_spill] sm:$0xff] %v14822_v13 }
 0x9b9   : > { %8656 = vmatmul.msk.f32.gmra.mxu1 %vm744_vm0, %v14804_v50 }
 0x9bf   : > { %v14843_v26 = vpop.f32.mrf.mxu1 }
 0x9c0   : > { %17459 = vst [vmem:[#allocation321_spill] sm:$0xff] %v14843_v26 }
 0x9c1   : > { %8657 = vmatmul.msk.f32.gmra.mxu1 %vm744_vm0, %v14812_v62 }
 0x9c4   : > { %v5450_v27 = vpop.xlane.xlu1 %5449 }
 0x9c5   : > { %9167 = vrcp.f32 %v5450_v27  ;;  %v14850_v27 = vpop.f32.mrf.mxu0 }
 0x9c6   : > { %17460 = vst [vmem:[#allocation163_spill] sm:$0xff] %v14850_v27 }
 0x9c9   : > { %8658 = vmatmul.msk.f32.gmra.mxu1 %vm744_vm0, %v14786_v58  ;;  %v14834_v44 = vpop.f32.mrf.mxu2  ;;  %v14845_v0 = vpop.f32.mrf.mxu3  ;;  %v6835_v58 = vld [vmem:[#allocation8 + $0x288] sm:$0xff] }
 0x9ca   : > { %17453 = vst [vmem:[#allocation323_spill] sm:$0xff] %v14834_v44 }
 0x9cb   : > { %v9168_v24 = vpop.eup %9167 }
 0x9cc   : > { %v5540_v21 = vmul.f32 %v9168_v24, %v14665_v16  ;;  %v5285_v4 = vpop.xlane.xlu1 %5284  ;;  %v17455_v16 = vld [vmem:[#allocation295_spill] sm:$0xff] }
 0x9cd   : > { %v5325_v25 = vsub.f32 %v14675_v33, %v5285_v4  ;;  %v17456_v33 = vld [vmem:[#allocation83_spill] sm:$0xff] }
 0x9ce   : > { %v5453_v5 = vpop.xlane.xlu2 %5452  ;;  %8608 = vmatmul.msk.f32.vlgmr.msra.gmra.mxu2 %vm5201_vm1, %v5540_v21  ;;  %8610 = vmatmul.msk.f32.vlgmr.msrb.gmra.mxu3 %vm5201_vm1, %v5540_v21 }
 0x9cf   : > { %v5384_v52 = vmul.f32 1.442695, %v5325_v25  ;;  %9169 = vrcp.f32 %v5453_v5  ;;  %8612 = vmatmul.msk.f32.vlgmr.msra.gmra.mxu0 %vm5201_vm1, %v5540_v21  ;;  %6445 = vmatpush.msra.mxu2 %v17452_v31  ;;  %v17463_v25 = vld [vmem:[#allocation182_spill] sm:$0xff]  ;;  %v14872_v5 = vpop.f32.mrf.mxu0  ;;  %v17466_v31 = vld [vmem:[#allocation235_spill] sm:$0xff] }
 0x9d0   : > { %6474 = vmatpush.msrb.mxu3 %v17454_v35  ;;  %6497 = vmatpush.msra.mxu0 %v17455_v16  ;;  %17464 = vst [vmem:[#allocation82_spill] sm:$0xff] %v14872_v5  ;;  %v17467_v35 = vld [vmem:[#allocation106_spill] sm:$0xff] }
 0x9d1   : > { %9171 = vpow2.f32 %v5384_v52  ;;  %6446 = vmatpush.msra.mxu2 %v17456_v33  ;;  %8659 = vmatmul.msk.f32.gmra.mxu1 %vm744_vm0, %v14794_v14  ;;  %v14857_v21 = vpop.f32.mrf.mxu2  ;;  %v14863_v4 = vpop.f32.mrf.mxu3  ;;  %v17465_v52 = vld [vmem:[#allocation279_spill] sm:$0xff]  ;;  %v6848_v16 = vld [vmem:[#allocation8 + $0x2f0] sm:$0xff] }
 0x9d2   : > { %6475 = vmatpush.msrb.mxu3 %v17457_v22  ;;  %6498 = vmatpush.msra.mxu0 %v17458_v29  ;;  %17461 = vst [vmem:[#allocation326_spill] sm:$0xff] %v14857_v21  ;;  %v17470_v22 = vld [vmem:[#allocation294_spill] sm:$0xff] }
 0x9d3   : > { %7430 = vmatpush.msrb.mxu1 %v6848_v16  ;;  %v17480_v16 = vld [vmem:[#allocation261_spill] sm:$0xff] }
 0x9d5   : > { %v9170_v36 = vpop.eup %9169 }
 0x9d6   : > { %v5541_v46 = vmul.f32 %v9170_v36, %v14681_v42  ;;  %v14861_v42 = vpop.f32.mrf.mxu1 }
 0x9d7   : > { %v14848_v54 = vpop.eup %9171  ;;  %17462 = vst [vmem:[#allocation184_spill] sm:$0xff] %v14861_v42 }
 0x9d8   : > { %8609 = vmatmul.msk.f32.gmra.mxu2 %vm5201_vm1, %v5541_v46  ;;  %8611 = vmatmul.msk.f32.gmra.mxu3 %vm5201_vm1, %v5541_v46  ;;  %v5475_v24 = vsel %vm5201_vm1, %v14848_v54, 0.0 }
 0x9d9   : > { %8613 = vmatmul.msk.f32.gmra.mxu0 %vm5201_vm1, %v5541_v46  ;;  %5476 = vadd.xlane.f32.xlu0 %v5475_v24  ;;  %v14879_v33 = vpop.f32.mrf.mxu2  ;;  %v14885_v36 = vpop.f32.mrf.mxu3 }
 0x9da   : > { %8660 = vmatmul.msk.f32.gmra.mxu1 %vm744_vm0, %v14850_v27  ;;  %17468 = vst [vmem:[#allocation18_spill] sm:$0xff] %v14879_v33 }
 0x9db   : > { %17472 = vst [vmem:[#allocation119_spill] sm:$0xff] %v14885_v36 }
 0x9de   : > { %v14883_v29 = vpop.f32.mrf.mxu1 }
 0x9df   : > { %17471 = vst [vmem:[#allocation88_spill] sm:$0xff] %v14883_v29 }
 0x9e0   : > { %8616 = vmatmul.msk.f32.vlgmr.msrb.gmra.mxu2 %vm5201_vm1, %v14605_v40  ;;  %8618 = vmatmul.msk.f32.vlgmr.msra.gmra.mxu3 %vm5201_vm1, %v14605_v40  ;;  %v17469_v40 = vld [vmem:[#allocation255_spill] sm:$0xff] }
 0x9e1   : > { %8620 = vmatmul.msk.f32.vlgmr.msrb.gmra.mxu0 %vm5201_vm1, %v14629_v1  ;;  %6549 = vmatpush.msrb.mxu2 %v17463_v25  ;;  %v14895_v46 = vpop.f32.mrf.mxu2  ;;  %v14906_v25 = vpop.f32.mrf.mxu3 }
 0x9e2   : > { %6572 = vmatpush.msra.mxu3 %v17465_v52  ;;  %6595 = vmatpush.msrb.mxu0 %v17466_v31  ;;  %17473 = vst [vmem:[#allocation16_spill] sm:$0xff] %v14895_v46  ;;  %v17477_v52 = vld [vmem:[#allocation303_spill] sm:$0xff] }
 0x9e3   : > { %6550 = vmatpush.msrb.mxu2 %v17467_v35  ;;  %8661 = vmatmul.msk.f32.gmra.mxu1 %vm744_vm0, %v14872_v5  ;;  %17476 = vst [vmem:[#allocation195_spill] sm:$0xff] %v14906_v25  ;;  %v17478_v31 = vld [vmem:[#allocation63_spill] sm:$0xff]  ;;  %v17479_v35 = vld [vmem:[#allocation186_spill] sm:$0xff] }
 0x9e4   : > { %6573 = vmatpush.msra.mxu3 %v17469_v40  ;;  %6596 = vmatpush.msrb.mxu0 %v17470_v22  ;;  %v17481_v40 = vld [vmem:[#allocation149_spill] sm:$0xff]  ;;  %v17488_v5 = vld [vmem:[#allocation283_spill] sm:$0xff] }
 0x9e6   : > { %v14897_v24 = vpop.f32.mrf.mxu1 }
 0x9e7   : > { %17474 = vst [vmem:[#allocation22_spill] sm:$0xff] %v14897_v24 }
 0x9e8   : > { %8617 = vmatmul.msk.f32.gmra.mxu2 %vm5201_vm1, %v14613_v32  ;;  %8619 = vmatmul.msk.f32.gmra.mxu3 %vm5201_vm1, %v14613_v32  ;;  %v17475_v32 = vld [vmem:[#allocation250_spill] sm:$0xff] }
 0x9e9   : > { %8621 = vmatmul.msk.f32.gmra.mxu0 %vm5201_vm1, %v14636_v12  ;;  %v14915_v22 = vpop.f32.mrf.mxu2 }
 0x9ea   : > { %17482 = vst [vmem:[#allocation79_spill] sm:$0xff] %v14915_v22 }
 0x9eb   : > { %8662 = vmatmul.msk.f32.gmra.mxu1 %vm744_vm0, %v14885_v36  ;;  %v6842_v36 = vld [vmem:[#allocation8 + $0x2c0] sm:$0xff] }
 0x9f0   : > { %8624 = vmatmul.msk.f32.vlgmr.msra.gmra.mxu2 %vm5201_vm1, %v14629_v1  ;;  %8626 = vmatmul.msk.f32.vlgmr.msrb.gmra.mxu3 %vm5201_vm1, %v14643_v11  ;;  %v6845_v1 = vld [vmem:[#allocation8 + $0x2d8] sm:$0xff] }
 0x9f1   : > { %8628 = vmatmul.msk.f32.vlgmr.msra.gmra.mxu0 %vm5201_vm1, %v14643_v11  ;;  %6647 = vmatpush.msra.mxu2 %v17475_v32  ;;  %v17483_v32 = vld [vmem:[#allocation142_spill] sm:$0xff] }
 0x9f2   : > { %6670 = vmatpush.msrb.mxu3 %v17477_v52  ;;  %6699 = vmatpush.msra.mxu0 %v17478_v31  ;;  %v17484_v52 = vld [vmem:[#allocation175_spill] sm:$0xff] }
 0x9f3   : > { %6648 = vmatpush.msra.mxu2 %v17479_v35  ;;  %8663 = vmatmul.msk.f32.gmra.mxu1 %vm744_vm0, %v14906_v25  ;;  %v3325_v31 = vadd.f32 %v17484_v52, %v17483_v32  ;;  %v14925_v35 = vpop.f32.mrf.mxu1  ;;  %v17489_v52 = vld [vmem:[#allocation108_spill] sm:$0xff] }
 0x9f4   : > { %6671 = vmatpush.msrb.mxu3 %v17480_v16  ;;  %6700 = vmatpush.msra.mxu0 %v17481_v40  ;;  %17485 = vst [vmem:[#allocation122_spill] sm:$0xff] %v14925_v35 }
 0x9f5   : > { %7431 = vmatpush.msrb.mxu1 %v6845_v1  ;;  %v17486_v1 = vld [vmem:[#allocation299_spill] sm:$0xff] }
 0x9f6   : > { %v3322_v16 = vadd.f32 %v17486_v1, %v17483_v32 }
 0x9f7   : > { %v5474_v11 = vpop.xlane.xlu2 %5473  ;;  %7432 = vmatpush.msrb.mxu1 %v6842_v36 }
 0x9f8   : > { %9173 = vrcp.f32 %v5474_v11  ;;  %8625 = vmatmul.msk.f32.gmra.mxu2 %vm5201_vm1, %v14636_v12  ;;  %8627 = vmatmul.msk.f32.gmra.mxu3 %vm5201_vm1, %v14663_v23  ;;  %v17487_v11 = vld [vmem:[#allocation97_spill] sm:$0xff]  ;;  %v3435_v27 = vadd.f32 %v17488_v5, %v3322_v16 }
 0x9f9   : > { %8629 = vmatmul.msk.f32.gmra.mxu0 %vm5201_vm1, %v14663_v23  ;;  %v3438_v12 = vadd.f32 %v17487_v11, %v3325_v31  ;;  %v17490_v23 = vld [vmem:[#allocation297_spill] sm:$0xff]  ;;  %v14941_v31 = vpop.f32.mrf.mxu2 }
 0x9fa   : > { %v3548_v32 = vadd.f32 %v17490_v23, %v3435_v27  ;;  %17491 = vst [vmem:[#allocation17_spill] sm:$0xff] %v14941_v31  ;;  %v6839_v5 = vld [vmem:[#allocation8 + $0x2a8] sm:$0xff]  ;;  %v6796_v23 = vld [vmem:[#allocation8 + $0x150] sm:$0xff] }
 0x9fb   : > { %8664 = vmatmul.msk.f32.gmra.mxu1 %vm744_vm0, %v14915_v22  ;;  %v3551_v14 = vadd.f32 %v17489_v52, %v3438_v12  ;;  %v14939_v1 = vpop.f32.mrf.mxu1  ;;  %v6799_v12 = vld [vmem:[#allocation8 + $0x168] sm:$0xff] }
 0x9fc   : > { %7433 = vmatpush.msrb.mxu1 %v6839_v5  ;;  %v6847_v52 = vld [vmem:[#allocation8 + $0x2e8] sm:$0xff]  ;;  %v6833_v5 = vld [vmem:[#allocation8 + $0x278] sm:$0xff] }
 0x9fd   : > { %v6787_v22 = vld [vmem:[#allocation8 + $0x108] sm:$0xff] }
 0x9fe   : > { %v9174_v40 = vpop.eup %9173 }
 0x9ff   : > { %v5548_v25 = vmul.f32 %v9174_v40, %v14746_v2 }
 0xa01   : > { %8632 = vmatmul.msk.f32.vlgmr.msrb.gmra.mxu2 %vm5201_vm1, %v5548_v25  ;;  %8634 = vmatmul.msk.f32.vlgmr.msra.gmra.mxu3 %vm5201_vm1, %v5548_v25 }
 0xa02   : > { %8636 = vmatmul.msk.f32.vlgmr.msrb.gmra.mxu0 %vm5201_vm1, %v5548_v25  ;;  %6745 = vmatpush.msrb.mxu2 %v3551_v14  ;;  %v6836_v14 = vld [vmem:[#allocation8 + $0x290] sm:$0xff]  ;;  %v14955_v25 = vpop.f32.mrf.mxu0 }
 0xa03   : > { %8665 = vmatmul.msk.f32.gmra.mxu1 %vm744_vm0, %v14941_v31  ;;  %v14947_v2 = vpop.f32.mrf.mxu1  ;;  %17494 = vst [vmem:[#allocation125_spill] sm:$0xff] %v14955_v25  ;;  %6978 = vmatpush.msra.mxu3 %v6799_v12  ;;  %v6838_v31 = vld [vmem:[#allocation8 + $0x2a0] sm:$0xff]  ;;  %v6784_v12 = vld [vmem:[#allocation8 + $0xf0] sm:$0xff] }
 0xa04   : > { %6746 = vmatpush.msrb.mxu2 %v3548_v32  ;;  %7434 = vmatpush.msrb.mxu1 %v6836_v14  ;;  %v6844_v32 = vld [vmem:[#allocation8 + $0x2d0] sm:$0xff]  ;;  %v6793_v14 = vld [vmem:[#allocation8 + $0x138] sm:$0xff] }
 0xa05   : > { %7091 = vmatpush.msrb.mxu0 %v6847_v52  ;;  %6979 = vmatpush.msra.mxu3 %v6796_v23  ;;  %v6832_v52 = vld [vmem:[#allocation8 + $0x270] sm:$0xff]  ;;  %v6781_v23 = vld [vmem:[#allocation8 + $0xd8] sm:$0xff] }
 0xa06   : > { %7435 = vmatpush.msrb.mxu1 %v6833_v5  ;;  %v6778_v5 = vld [vmem:[#allocation8 + $0xc0] sm:$0xff] }
 0xa07   : > { %7092 = vmatpush.msrb.mxu0 %v6844_v32  ;;  %6980 = vmatpush.msra.mxu3 %v6793_v14  ;;  %v6829_v32 = vld [vmem:[#allocation8 + $0x258] sm:$0xff]  ;;  %v6826_v14 = vld [vmem:[#allocation8 + $0x240] sm:$0xff] }
 0xa0a   : > { %v14959_v40 = vpop.f32.mrf.mxu0 }
 0xa0b   : > { %8666 = vmatmul.msk.f32.gmra.mxu1 %vm744_vm0, %v14861_v42  ;;  %v14951_v27 = vpop.f32.mrf.mxu1  ;;  %17496 = vst [vmem:[#allocation164_spill] sm:$0xff] %v14959_v40  ;;  %v6790_v42 = vld [vmem:[#allocation8 + $0x120] sm:$0xff] }
 0xa0c   : > { %17492 = vst [vmem:[#allocation26_spill] sm:$0xff] %v14951_v27  ;;  %6981 = vmatpush.msra.mxu3 %v6790_v42  ;;  %v6775_v42 = vld [vmem:[#allocation8 + $0xa8] sm:$0xff] }
 0xa0e   : > { %6982 = vmatpush.msra.mxu3 %v6787_v22  ;;  %v6820_v22 = vld [vmem:[#allocation8 + $0x210] sm:$0xff] }
 0xa10   : > { %6983 = vmatpush.msra.mxu3 %v6784_v12  ;;  %v6830_v12 = vld [vmem:[#allocation8 + $0x260] sm:$0xff] }
 0xa11   : > { %7436 = vmatpush.msrb.mxu1 %v6830_v12  ;;  %v6805_v12 = vld [vmem:[#allocation8 + $0x198] sm:$0xff] }
 0xa12   : > { %v14963_v62 = vpop.f32.mrf.mxu0  ;;  %6984 = vmatpush.msra.mxu3 %v6781_v23  ;;  %v6817_v23 = vld [vmem:[#allocation8 + $0x1f8] sm:$0xff] }
 0xa13   : > { %8667 = vmatmul.msk.f32.gmra.mxu1 %vm744_vm0, %v14883_v29  ;;  %v14953_v36 = vpop.f32.mrf.mxu1  ;;  %v6841_v29 = vld [vmem:[#allocation8 + $0x2b8] sm:$0xff]  ;;  %17498 = vst [vmem:[#allocation206_spill] sm:$0xff] %v14963_v62 }
 0xa14   : > { %17493 = vst [vmem:[#allocation191_spill] sm:$0xff] %v14953_v36  ;;  %7093 = vmatpush.msrb.mxu0 %v6841_v29  ;;  %v14967_v29 = vpop.f32.mrf.mxu3  ;;  %6985 = vmatpush.msra.mxu3 %v6778_v5  ;;  %v6763_v5 = vld [vmem:[#allocation8 + $0x48] sm:$0xff] }
 0xa16   : > { %7094 = vmatpush.msrb.mxu0 %v6838_v31  ;;  %v6823_v31 = vld [vmem:[#allocation8 + $0x228] sm:$0xff]  ;;  %6986 = vmatpush.msra.mxu3 %v6775_v42 }
 0xa18   : > { %7095 = vmatpush.msrb.mxu0 %v6835_v58  ;;  %v6772_v58 = vld [vmem:[#allocation8 + $0x90] sm:$0xff] }
 0xa19   : > { %6987 = vmatpush.msra.mxu3 %v6772_v58  ;;  %v6808_v58 = vld [vmem:[#allocation8 + $0x1b0] sm:$0xff] }
 0xa1a   : > { %7096 = vmatpush.msrb.mxu0 %v6832_v52  ;;  %v14969_v53 = vpop.f32.mrf.mxu0 }
 0xa1b   : > { %v14957_v16 = vpop.f32.mrf.mxu1  ;;  %17500 = vst [vmem:[#allocation128_spill] sm:$0xff] %v14969_v53  ;;  %6988 = vmatpush.msra.mxu3 %v6769_v10  ;;  %v6757_v10 = vld [vmem:[#allocation8 + $0x18] sm:$0xff] }
 0xa1c   : > { %17495 = vst [vmem:[#allocation117_spill] sm:$0xff] %v14957_v16  ;;  %7097 = vmatpush.msrb.mxu0 %v6829_v32  ;;  %v6766_v32 = vld [vmem:[#allocation8 + $0x60] sm:$0xff]  ;;  %v14973_v42 = vpop.f32.mrf.mxu3 }
 0xa1d   : > { %17502 = vst [vmem:[#allocation120_spill] sm:$0xff] %v14973_v42  ;;  %6989 = vmatpush.msra.mxu3 %v6766_v32 }
 0xa1e   : > { %7098 = vmatpush.msrb.mxu0 %v6826_v14  ;;  %v6811_v14 = vld [vmem:[#allocation8 + $0x1c8] sm:$0xff] }
 0xa1f   : > { %6990 = vmatpush.msra.mxu3 %v6763_v5 }
 0xa20   : > { %7099 = vmatpush.msrb.mxu0 %v6823_v31  ;;  %v6760_v31 = vld [vmem:[#allocation8 + $0x30] sm:$0xff] }
 0xa21   : > { %6991 = vmatpush.msra.mxu3 %v6760_v31 }
 0xa22   : > { %7100 = vmatpush.msrb.mxu0 %v6820_v22 }
 0xa23   : > { %v14961_v11 = vpop.f32.mrf.mxu1  ;;  %6992 = vmatpush.msra.mxu3 %v6757_v10 }
 0xa24   : > { %17497 = vst [vmem:[#allocation21_spill] sm:$0xff] %v14961_v11  ;;  %7101 = vmatpush.msrb.mxu0 %v6817_v23  ;;  %v6754_v23 = vld [vmem:[#allocation8] sm:$0xff] }
 0xa25   : > { %6993 = vmatpush.msra.mxu3 %v6754_v23  ;;  %v6791_v23 = vld [vmem:[#allocation8 + $0x128] sm:$0xff] }
 0xa26   : > { %7102 = vmatpush.msrb.mxu0 %v6814_v38 }
 0xa28   : > { %7103 = vmatpush.msrb.mxu0 %v6811_v14 }
 0xa2a   : > { %7104 = vmatpush.msrb.mxu0 %v6808_v58 }
 0xa2b   : > { %v14965_v50 = vpop.f32.mrf.mxu1 }
 0xa2c   : > { %17499 = vst [vmem:[#allocation30_spill] sm:$0xff] %v14965_v50  ;;  %7105 = vmatpush.msrb.mxu0 %v6805_v12  ;;  %v6794_v12 = vld [vmem:[#allocation8 + $0x140] sm:$0xff] }
 0xa2e   : > { %7106 = vmatpush.msrb.mxu0 %v6802_v45 }
 0xa33   : > { %v14971_v52 = vpop.f32.mrf.mxu1 }
 0xa34   : > { %17501 = vst [vmem:[#allocation199_spill] sm:$0xff] %v14971_v52 }
 0xa3b   : > { %v14979_v32 = vpop.f32.mrf.mxu1 }
 0xa43   : > { %v14993_v58 = vpop.f32.mrf.mxu1 }
 0xa4c   : > { %v14975_v22 = vpop.f32.mrf.mxu0  ;;  %v5477_v41 = vpop.xlane.xlu0 %5476 }
 0xa4d   : > { %17503 = vst [vmem:[#allocation167_spill] sm:$0xff] %v14975_v22  ;;  %9175 = vrcp.f32 %v5477_v41  ;;  %8668 = vmatmul.msk.f32.gmra.mxu1 %vm744_vm0, %v14975_v22  ;;  %v6827_v22 = vld [vmem:[#allocation8 + $0x248] sm:$0xff] }
 0xa4e   : > { %7437 = vmatpush.msrb.mxu1 %v6827_v22  ;;  %v6797_v22 = vld [vmem:[#allocation8 + $0x158] sm:$0xff] }
 0xa51   : > { %v14981_v38 = vpop.f32.mrf.mxu2  ;;  %v14983_v5 = vpop.f32.mrf.mxu3 }
 0xa52   : > { %17504 = vst [vmem:[#allocation197_spill] sm:$0xff] %v14981_v38 }
 0xa53   : > { %v9176_v41 = vpop.eup %9175 }
 0xa54   : > { %v5549_v14 = vmul.f32 %v9176_v41, %v14848_v54  ;;  %v6800_v54 = vld [vmem:[#allocation8 + $0x170] sm:$0xff] }
 0xa56   : > { %v14986_v31 = vpop.f32.mrf.mxu0  ;;  %8633 = vmatmul.msk.f32.gmra.mxu2 %vm5201_vm1, %v5549_v14  ;;  %8635 = vmatmul.msk.f32.gmra.mxu3 %vm5201_vm1, %v5549_v14 }
 0xa57   : > { %17505 = vst [vmem:[#allocation25_spill] sm:$0xff] %v14986_v31  ;;  %8669 = vmatmul.msk.f32.gmra.mxu1 %vm744_vm0, %v14986_v31  ;;  %8637 = vmatmul.msk.f32.gmra.mxu0 %vm5201_vm1, %v5549_v14  ;;  %v15009_v31 = vpop.f32.mrf.mxu1 }
 0xa5b   : > { %v14995_v10 = vpop.f32.mrf.mxu2  ;;  %v14997_v45 = vpop.f32.mrf.mxu3 }
 0xa5c   : > { %17506 = vst [vmem:[#allocation153_spill] sm:$0xff] %v14995_v10 }
 0xa5e   : > { %8640 = vmatmul.msk.f32.vlgmr.msra.gmra.mxu2 %vm5201_vm1, %v14702_v17  ;;  %8642 = vmatmul.msk.f32.vlgmr.msrb.gmra.mxu3 %vm5201_vm1, %v14702_v17  ;;  %v6824_v17 = vld [vmem:[#allocation8 + $0x230] sm:$0xff] }
 0xa5f   : > { %8644 = vmatmul.msk.f32.vlgmr.msra.gmra.mxu0 %vm5201_vm1, %v14734_v60  ;;  %7317 = vmatpush.msra.mxu2 %v6800_v54  ;;  %v6785_v54 = vld [vmem:[#allocation8 + $0xf8] sm:$0xff] }
 0xa60   : > { %7438 = vmatpush.msrb.mxu1 %v6824_v17  ;;  %v15025_v17 = vpop.f32.mrf.mxu0 }
 0xa61   : > { %7318 = vmatpush.msra.mxu2 %v6797_v22  ;;  %v6782_v22 = vld [vmem:[#allocation8 + $0xe0] sm:$0xff]  ;;  %17509 = vst [vmem:[#allocation112_spill] sm:$0xff] %v15025_v17 }
 0xa63   : > { %v15005_v41 = vpop.f32.mrf.mxu2  ;;  %v15007_v14 = vpop.f32.mrf.mxu3  ;;  %7319 = vmatpush.msra.mxu2 %v6794_v12  ;;  %v6779_v12 = vld [vmem:[#allocation8 + $0xc8] sm:$0xff] }
 0xa64   : > { %17507 = vst [vmem:[#allocation203_spill] sm:$0xff] %v15007_v14  ;;  %8670 = vmatmul.msk.f32.gmra.mxu1 %vm744_vm0, %v15007_v14 }
 0xa65   : > { %7320 = vmatpush.msra.mxu2 %v6791_v23  ;;  %v6776_v23 = vld [vmem:[#allocation8 + $0xb0] sm:$0xff] }
 0xa66   : > { %8641 = vmatmul.msk.f32.gmra.mxu2 %vm5201_vm1, %v14727_v39  ;;  %8643 = vmatmul.msk.f32.gmra.mxu3 %vm5201_vm1, %v14727_v39  ;;  %v15027_v39 = vpop.f32.mrf.mxu1 }
 0xa67   : > { %8645 = vmatmul.msk.f32.gmra.mxu0 %vm5201_vm1, %v14742_v30  ;;  %7321 = vmatpush.msra.mxu2 %v6788_v15  ;;  %v6773_v15 = vld [vmem:[#allocation8 + $0x98] sm:$0xff] }
 0xa69   : > { %7322 = vmatpush.msra.mxu2 %v6785_v54  ;;  %v6770_v54 = vld [vmem:[#allocation8 + $0x80] sm:$0xff] }
 0xa6b   : > { %v15019_v52 = vpop.f32.mrf.mxu2  ;;  %v15021_v14 = vpop.f32.mrf.mxu3  ;;  %7323 = vmatpush.msra.mxu2 %v6782_v22  ;;  %v6767_v22 = vld [vmem:[#allocation8 + $0x68] sm:$0xff] }
 0xa6c   : > { %17508 = vst [vmem:[#allocation224_spill] sm:$0xff] %v15021_v14  ;;  %8671 = vmatmul.msk.f32.gmra.mxu1 %vm744_vm0, %v15021_v14  ;;  %v6821_v14 = vld [vmem:[#allocation8 + $0x218] sm:$0xff] }
 0xa6d   : > { %7324 = vmatpush.msra.mxu2 %v6779_v12  ;;  %v6764_v12 = vld [vmem:[#allocation8 + $0x50] sm:$0xff]  ;;  %7439 = vmatpush.msrb.mxu1 %v6821_v14 }
 0xa6e   : > { %8648 = vmatmul.msk.f32.vlgmr.msrb.gmra.mxu2 %vm5201_vm1, %v14734_v60  ;;  %6994 = vmatmul.f32.vlgmr.msra.gmra.mxu3 %v14744_v3  ;;  %v6761_v60 = vld [vmem:[#allocation8 + $0x38] sm:$0xff] }
 0xa6f   : > { %7107 = vmatmul.f32.vlgmr.msrb.gmra.mxu0 %v14752_v34  ;;  %7325 = vmatpush.msra.mxu2 %v6776_v23  ;;  %v15040_v23 = vpop.f32.mrf.mxu0 }
 0xa70   : > { %17511 = vst [vmem:[#allocation170_spill] sm:$0xff] %v15040_v23 }
 0xa71   : > { %7326 = vmatpush.msra.mxu2 %v6773_v15  ;;  %v15043_v15 = vpop.f32.mrf.mxu1 }
 0xa73   : > { %v15033_v50 = vpop.f32.mrf.mxu2  ;;  %7327 = vmatpush.msra.mxu2 %v6770_v54  ;;  %v6758_v54 = vld [vmem:[#allocation8 + $0x20] sm:$0xff] }
 0xa74   : > { %17510 = vst [vmem:[#allocation123_spill] sm:$0xff] %v15033_v50  ;;  %8672 = vmatmul.msk.f32.gmra.mxu1 %vm744_vm0, %v15033_v50  ;;  %v6755_v50 = vld [vmem:[#allocation8 + $0x8] sm:$0xff] }
 0xa75   : > { %7328 = vmatpush.msra.mxu2 %v6767_v22 }
 0xa76   : > { %8649 = vmatmul.msk.f32.gmra.mxu2 %vm5201_vm1, %v14742_v30  ;;  %6997 = vmatmul.f32.gmra.mxu3 %v14758_v6  ;;  %v6818_v30 = vld [vmem:[#allocation8 + $0x200] sm:$0xff] }
 0xa77   : > { %7110 = vmatmul.f32.gmra.mxu0 %v14760_v57  ;;  %7329 = vmatpush.msra.mxu2 %v6764_v12  ;;  %v15052_v14 = vpop.f32.mrf.mxu0 }
 0xa78   : > { %7440 = vmatpush.msrb.mxu1 %v6818_v30 }
 0xa79   : > { %7330 = vmatpush.msra.mxu2 %v6761_v60  ;;  %v15054_v22 = vpop.f32.mrf.mxu1  ;;  %v6815_v60 = vld [vmem:[#allocation8 + $0x1e8] sm:$0xff] }
 0xa7a   : > { %7441 = vmatpush.msrb.mxu1 %v6815_v60  ;;  %v6812_v60 = vld [vmem:[#allocation8 + $0x1d0] sm:$0xff] }
 0xa7b   : > { %v15045_v11 = vpop.f32.mrf.mxu2  ;;  %7331 = vmatpush.msra.mxu2 %v6758_v54 }
 0xa7c   : > { %17512 = vst [vmem:[#allocation129_spill] sm:$0xff] %v15045_v11  ;;  %8673 = vmatmul.msk.f32.gmra.mxu1 %vm744_vm0, %v15045_v11  ;;  %v6809_v11 = vld [vmem:[#allocation8 + $0x1b8] sm:$0xff] }
 0xa7d   : > { %7332 = vmatpush.msra.mxu2 %v6755_v50  ;;  %7442 = vmatpush.msrb.mxu1 %v6812_v60 }
 0xa7e   : > { %7000 = vmatmul.f32.gmra.mxu3 %v14762_v63  ;;  %7333 = vmatmul.f32.vlgmr.msra.gmra.mxu2 %v14744_v3 }
 0xa7f   : > { %7113 = vmatmul.f32.gmra.mxu0 %v14768_v8  ;;  %v15061_v50 = vpop.f32.mrf.mxu0  ;;  %7443 = vmatpush.msrb.mxu1 %v6809_v11 }
 0xa81   : > { %v15063_v12 = vpop.f32.mrf.mxu1 }
 0xa84   : > { %8674 = vmatmul.msk.f32.gmra.mxu1 %vm744_vm0, %v14951_v27 }
 0xa86   : > { %7003 = vmatmul.f32.gmra.mxu3 %v14772_v43  ;;  %7336 = vmatmul.f32.gmra.mxu2 %v14758_v6 }
 0xa87   : > { %7116 = vmatmul.f32.gmra.mxu0 %v14778_v47  ;;  %v15070_v54 = vpop.f32.mrf.mxu0 }
 0xa88   : > { %17513 = vst [vmem:[#allocation176_spill] sm:$0xff] %v15070_v54 }
 0xa89   : > { %v15074_v30 = vpop.f32.mrf.mxu1 }
 0xa8c   : > { %8675 = vmatmul.msk.f32.gmra.mxu1 %vm744_vm0, %v14953_v36 }
 0xa8e   : > { %7006 = vmatmul.f32.gmra.mxu3 %v14739_v55  ;;  %7339 = vmatmul.f32.gmra.mxu2 %v14762_v63  ;;  %v6803_v63 = vld [vmem:[#allocation8 + $0x188] sm:$0xff] }
 0xa8f   : > { %7119 = vmatmul.f32.gmra.mxu0 %v14784_v59 }
 0xa91   : > { %v15082_v36 = vpop.f32.mrf.mxu1 }
 0xa94   : > { %8676 = vmatmul.msk.f32.gmra.mxu1 %vm744_vm0, %v15070_v54 }
 0xa96   : > { %7009 = vmatmul.f32.gmra.mxu3 %v14754_v18  ;;  %7342 = vmatmul.f32.gmra.mxu2 %v14772_v43 }
 0xa97   : > { %7122 = vmatmul.f32.gmra.mxu0 %v14792_v61 }
 0xa99   : > { %v15087_v54 = vpop.f32.mrf.mxu1 }
 0xa9e   : > { %7012 = vmatmul.f32.gmra.mxu3 %v14800_v20  ;;  %7345 = vmatmul.f32.gmra.mxu2 %v14739_v55 }
 0xa9f   : > { %7125 = vmatmul.f32.gmra.mxu0 %v14764_v7 }
 0xaa1   : > { %v15092_v27 = vpop.f32.mrf.mxu1 }
 0xaa6   : > { %7015 = vmatmul.f32.gmra.mxu3 %v14808_v9  ;;  %7348 = vmatmul.f32.gmra.mxu2 %v14754_v18  ;;  %v15101_v18 = vpop.f32.mrf.mxu3 }
 0xaa7   : > { %7128 = vmatmul.f32.gmra.mxu0 %v14776_v19  ;;  %17514 = vst [vmem:[#allocation214_spill] sm:$0xff] %v15101_v18 }
 0xaa9   : > { %v15097_v60 = vpop.f32.mrf.mxu1 }
 0xaae   : > { %7018 = vmatmul.f32.gmra.mxu3 %v14816_v37  ;;  %7351 = vmatmul.f32.gmra.mxu2 %v14800_v20  ;;  %v6806_v20 = vld [vmem:[#allocation8 + $0x1a0] sm:$0xff] }
 0xaaf   : > { %7131 = vmatmul.f32.gmra.mxu0 %v14818_v48  ;;  %7444 = vmatpush.msrb.mxu1 %v6806_v20 }
 0xab1   : > { %v15107_v11 = vpop.f32.mrf.mxu1  ;;  %7445 = vmatpush.msrb.mxu1 %v6803_v63 }
 0xab6   : > { %7021 = vmatmul.f32.gmra.mxu3 %v14824_v28  ;;  %7354 = vmatmul.f32.gmra.mxu2 %v14808_v9  ;;  %v15109_v9 = vpop.f32.mrf.mxu3 }
 0xab7   : > { %7134 = vmatmul.f32.gmra.mxu0 %v14832_v56  ;;  %17515 = vst [vmem:[#allocation127_spill] sm:$0xff] %v15109_v9 }
 0xab9   : > { %v15118_v20 = vpop.f32.mrf.mxu1 }
 0xaba   : > { %17517 = vst [vmem:[#allocation139_spill] sm:$0xff] %v15118_v20 }
 0xabe   : > { %7024 = vmatmul.f32.gmra.mxu3 %v14834_v44  ;;  %7357 = vmatmul.f32.gmra.mxu2 %v14816_v37  ;;  %v15114_v37 = vpop.f32.mrf.mxu2  ;;  %v15116_v55 = vpop.f32.mrf.mxu3 }
 0xabf   : > { %7137 = vmatmul.f32.gmra.mxu0 %v14845_v0  ;;  %17516 = vst [vmem:[#allocation60_spill] sm:$0xff] %v15114_v37 }
 0xac1   : > { %v15131_v6 = vpop.f32.mrf.mxu1 }
 0xac2   : > { %17520 = vst [vmem:[#allocation126_spill] sm:$0xff] %v15131_v6 }
 0xac6   : > { %7027 = vmatmul.f32.gmra.mxu3 %v14857_v21  ;;  %7360 = vmatmul.f32.gmra.mxu2 %v14824_v28 }
 0xac7   : > { %7140 = vmatmul.f32.gmra.mxu0 %v14863_v4 }
 0xac9   : > { %v15146_v6 = vpop.f32.mrf.mxu1 }
 0xaca   : > { %17524 = vst [vmem:[#allocation179_spill] sm:$0xff] %v15146_v6 }
 0xace   : > { %7030 = vmatmul.f32.gmra.mxu3 %v14802_v49  ;;  %7363 = vmatmul.f32.gmra.mxu2 %v14834_v44 }
 0xacf   : > { %7143 = vmatmul.f32.gmra.mxu0 %v14879_v33  ;;  %v6801_v33 = vld [vmem:[#allocation8 + $0x178] sm:$0xff] }
 0xad0   : > { %7656 = vmatpush.msra.mxu0 %v6801_v33  ;;  %v15157_v33 = vld [vmem:[#allocation10] sm:$0x7] }
 0xad1   : > { %17526 = vst [vmem:[#allocation137_spill] sm:$0xff] %v15157_v33 }
 0xad4   : > { %v15120_v43 = vpop.f32.mrf.mxu0 }
 0xad5   : > { %17518 = vst [vmem:[#allocation38_spill] sm:$0xff] %v15120_v43  ;;  %8677 = vmatmul.msk.f32.gmra.mxu1 %vm744_vm0, %v15120_v43 }
 0xad6   : > { %7033 = vmatmul.f32.gmra.mxu3 %v14810_v51  ;;  %7366 = vmatmul.f32.gmra.mxu2 %v14857_v21  ;;  %v6849_v21 = vld [vmem:[#allocation8 + $0x2f8] sm:$0xff] }
 0xad7   : > { %7146 = vmatmul.f32.gmra.mxu0 %v14895_v46  ;;  %v6872_v46 = vld [vmem:[#allocation8 + $0x3b0] sm:$0xff]  ;;  %7769 = vmatpush.msrb.mxu2 %v6849_v21 }
 0xad8   : > { %7551 = vmatpush.msrb.mxu3 %v6872_v46  ;;  %v15163_v46 = vperm.slane %v15157_v33, 0 }
 0xad9   : > { %v15127_v44 = vpop.f32.mrf.mxu2  ;;  %v15129_v28 = vpop.f32.mrf.mxu3 }
 0xada   : > { %17519 = vst [vmem:[#allocation258_spill] sm:$0xff] %v15127_v44 }
 0xadc   : > { %v15133_v3 = vpop.f32.mrf.mxu0 }
 0xadd   : > { %17521 = vst [vmem:[#allocation173_spill] sm:$0xff] %v15133_v3 }
 0xade   : > { %7036 = vmatmul.f32.gmra.mxu3 %v14955_v25  ;;  %7369 = vmatmul.f32.gmra.mxu2 %v14802_v49 }
 0xadf   : > { %7149 = vmatmul.f32.gmra.mxu0 %v14822_v13  ;;  %v6873_v13 = vld [vmem:[#allocation8 + $0x3b8] sm:$0xff] }
 0xae0   : > { %7890 = vmatpush.msra.mxu1 %v6873_v13  ;;  %v6846_v13 = vld [vmem:[#allocation8 + $0x2e0] sm:$0xff] }
 0xae1   : > { %v15138_v43 = vpop.f32.mrf.mxu2  ;;  %v15140_v20 = vpop.f32.mrf.mxu3  ;;  %7770 = vmatpush.msrb.mxu2 %v6846_v13 }
 0xae2   : > { %17522 = vst [vmem:[#allocation42_spill] sm:$0xff] %v15140_v20  ;;  %8678 = vmatmul.msk.f32.gmra.mxu1 %vm744_vm0, %v15140_v20  ;;  %v15165_v20 = vpop.f32.mrf.mxu1 }
 0xae4   : > { %v15144_v63 = vpop.f32.mrf.mxu0 }
 0xae5   : > { %17523 = vst [vmem:[#allocation132_spill] sm:$0xff] %v15144_v63 }
 0xae6   : > { %7039 = vmatmul.f32.gmra.mxu3 %v14959_v40  ;;  %7372 = vmatmul.f32.gmra.mxu2 %v14810_v51 }
 0xae7   : > { %7152 = vmatmul.f32.gmra.mxu0 %v14843_v26  ;;  %v6798_v26 = vld [vmem:[#allocation8 + $0x160] sm:$0xff] }
 0xae8   : > { %7657 = vmatpush.msra.mxu0 %v6798_v26 }
 0xae9   : > { %v15151_v49 = vpop.f32.mrf.mxu2  ;;  %v15153_v3 = vpop.f32.mrf.mxu3 }
 0xaea   : > { %17525 = vst [vmem:[#allocation148_spill] sm:$0xff] %v15153_v3  ;;  %8679 = vmatmul.msk.f32.gmra.mxu1 %vm744_vm0, %v15153_v3  ;;  %v15183_v26 = vpop.f32.mrf.mxu1 }
 0xaec   : > { %v7108_v21 = vpop.f32.mrf.mxu0 }
 0xaee   : > { %7042 = vmatmul.f32.gmra.mxu3 %v14967_v29  ;;  %7375 = vmatmul.f32.gmra.mxu2 %v14955_v25 }
 0xaef   : > { %7155 = vmatmul.f32.gmra.mxu0 %v14963_v62 }
 0xaf1   : > { %v15167_v51 = vpop.f32.mrf.mxu2  ;;  %v6995_v3 = vpop.f32.mrf.mxu3 }
 0xaf2   : > { %17527 = vst [vmem:[#allocation37_spill] sm:$0xff] %v15167_v51  ;;  %v6996_v6 = vadd.f32 %v6995_v3, %v15163_v46  ;;  %8680 = vmatmul.msk.f32.gmra.mxu1 %vm744_vm0, %v15167_v51  ;;  %v6843_v51 = vld [vmem:[#allocation8 + $0x2c8] sm:$0xff] }
 0xaf3   : > { %7771 = vmatpush.msrb.mxu2 %v6843_v51  ;;  %v6870_v51 = vld [vmem:[#allocation8 + $0x3a0] sm:$0xff] }
 0xaf4   : > { %v7111_v25 = vpop.f32.mrf.mxu0  ;;  %v7109_v62 = vadd.f32 %v7108_v21, %v6996_v6  ;;  %7891 = vmatpush.msra.mxu1 %v6870_v51  ;;  %v6792_v51 = vld [vmem:[#allocation8 + $0x130] sm:$0xff] }
 0xaf6   : > { %7045 = vmatmul.f32.gmra.mxu3 %v14973_v42  ;;  %7378 = vmatmul.f32.gmra.mxu2 %v14959_v40  ;;  %v7222_v33 = vadd.f32 %v14979_v32, %v7109_v62  ;;  %v6869_v40 = vld [vmem:[#allocation8 + $0x398] sm:$0xff] }
 0xaf7   : > { %7158 = vmatmul.f32.gmra.mxu0 %v14969_v53  ;;  %v15195_v53 = vpop.f32.mrf.mxu1  ;;  %7552 = vmatpush.msrb.mxu3 %v6869_v40 }
 0xaf8   : > { %7995 = vst [vmem:[%s15178_s29] sm:$0xff] %v7222_v33 }
 0xaf9   : > { %v15181_v3 = vpop.f32.mrf.mxu2  ;;  %v6998_v13 = vpop.f32.mrf.mxu3 }
 0xafa   : > { %17528 = vst [vmem:[#allocation46_spill] sm:$0xff] %v15181_v3  ;;  %v6999_v6 = vadd.f32 %v6998_v13, %v15163_v46  ;;  %8681 = vmatmul.msk.f32.gmra.mxu1 %vm744_vm0, %v15181_v3  ;;  %v6795_v13 = vld [vmem:[#allocation8 + $0x148] sm:$0xff] }
 0xafb   : > { %7658 = vmatpush.msra.mxu0 %v6795_v13 }
 0xafc   : > { %v7114_v21 = vpop.f32.mrf.mxu0  ;;  %v7112_v62 = vadd.f32 %v7111_v25, %v6999_v6 }
 0xafd   : > { %7659 = vmatpush.msra.mxu0 %v6792_v51 }
 0xafe   : > { %7048 = vmatmul.f32.gmra.mxu3 %v14981_v38  ;;  %7381 = vmatmul.f32.gmra.mxu2 %v14967_v29  ;;  %v7225_v32 = vadd.f32 %v14993_v58, %v7112_v62 }
 0xaff   : > { %7161 = vmatmul.f32.gmra.mxu0 %v14983_v5 }
 0xb00   : > { %7998 = vst [vmem:[%s15178_s29 + $0x18] sm:$0xff] %v7225_v32 }
 0xb01   : > { %v15193_v33 = vpop.f32.mrf.mxu2  ;;  %v7001_v3 = vpop.f32.mrf.mxu3 }
 0xb02   : > { %v7002_v25 = vadd.f32 %v7001_v3, %v15163_v46  ;;  %7446 = vmatmul.f32.vlgmr.msrb.gmra.mxu1 %v14752_v34 }
 0xb04   : > { %v7117_v58 = vpop.f32.mrf.mxu0  ;;  %v7115_v6 = vadd.f32 %v7114_v21, %v7002_v25  ;;  %v15208_v21 = vpop.f32.mrf.mxu1 }
 0xb06   : > { %7051 = vmatmul.f32.gmra.mxu3 %v14995_v10  ;;  %7384 = vmatmul.f32.gmra.mxu2 %v14973_v42  ;;  %v7228_v62 = vadd.f32 %v15009_v31, %v7115_v6 }
 0xb07   : > { %7164 = vmatmul.f32.gmra.mxu0 %v14997_v45 }
 0xb08   : > { %8001 = vst [vmem:[%s15178_s29 + $0x30] sm:$0xff] %v7228_v62  ;;  %v6840_v62 = vld [vmem:[#allocation8 + $0x2b0] sm:$0xff] }
 0xb09   : > { %v15204_v32 = vpop.f32.mrf.mxu2  ;;  %v7004_v40 = vpop.f32.mrf.mxu3  ;;  %7772 = vmatpush.msrb.mxu2 %v6840_v62 }
 0xb0a   : > { %v7005_v3 = vadd.f32 %v7004_v40, %v15163_v46  ;;  %7449 = vmatmul.f32.gmra.mxu1 %v14760_v57 }
 0xb0c   : > { %v7120_v13 = vpop.f32.mrf.mxu0  ;;  %v7118_v25 = vadd.f32 %v7117_v58, %v7005_v3  ;;  %v15219_v58 = vpop.f32.mrf.mxu1 }
 0xb0e   : > { %7054 = vmatmul.f32.gmra.mxu3 %v14897_v24  ;;  %7387 = vmatmul.f32.gmra.mxu2 %v14981_v38  ;;  %v7231_v31 = vadd.f32 %v15027_v39, %v7118_v25 }
 0xb0f   : > { %7167 = vmatmul.f32.gmra.mxu0 %v15005_v41 }
 0xb10   : > { %8004 = vst [vmem:[%s15178_s29 + $0x48] sm:$0xff] %v7231_v31 }
 0xb11   : > { %v15215_v6 = vpop.f32.mrf.mxu2  ;;  %v7007_v40 = vpop.f32.mrf.mxu3 }
 0xb12   : > { %v7008_v42 = vadd.f32 %v7007_v40, %v15163_v46  ;;  %7452 = vmatmul.f32.gmra.mxu1 %v14768_v8 }
 0xb14   : > { %v7123_v3 = vpop.f32.mrf.mxu0  ;;  %v7121_v38 = vadd.f32 %v7120_v13, %v7008_v42  ;;  %v15230_v42 = vpop.f32.mrf.mxu1  ;;  %v6837_v13 = vld [vmem:[#allocation8 + $0x298] sm:$0xff] }
 0xb15   : > { %7773 = vmatpush.msrb.mxu2 %v6837_v13 }
 0xb16   : > { %7057 = vmatmul.f32.gmra.mxu3 %v14925_v35  ;;  %7390 = vmatmul.f32.gmra.mxu2 %v14995_v10  ;;  %v7234_v39 = vadd.f32 %v15043_v15, %v7121_v38 }
 0xb17   : > { %7170 = vmatmul.f32.gmra.mxu0 %v15019_v52 }
 0xb18   : > { %8007 = vst [vmem:[%s15178_s29 + $0x60] sm:$0xff] %v7234_v39  ;;  %v6866_v39 = vld [vmem:[#allocation8 + $0x380] sm:$0xff] }
 0xb19   : > { %v15226_v25 = vpop.f32.mrf.mxu2  ;;  %v7010_v31 = vpop.f32.mrf.mxu3  ;;  %7553 = vmatpush.msrb.mxu3 %v6866_v39 }
 0xb1a   : > { %v7011_v62 = vadd.f32 %v7010_v31, %v15163_v46  ;;  %7455 = vmatmul.f32.gmra.mxu1 %v14778_v47  ;;  %v6789_v31 = vld [vmem:[#allocation8 + $0x118] sm:$0xff] }
 0xb1b   : > { %7660 = vmatpush.msra.mxu0 %v6789_v31 }
 0xb1c   : > { %v7126_v51 = vpop.f32.mrf.mxu0  ;;  %v7124_v40 = vadd.f32 %v7123_v3, %v7011_v62 }
 0xb1e   : > { %7060 = vmatmul.f32.gmra.mxu3 %v15025_v17  ;;  %7393 = vmatmul.f32.gmra.mxu2 %v14897_v24  ;;  %v7237_v38 = vadd.f32 %v15054_v22, %v7124_v40  ;;  %v15245_v40 = vpop.f32.mrf.mxu1 }
 0xb1f   : > { %7173 = vmatmul.f32.gmra.mxu0 %v14939_v1 }
 0xb20   : > { %8010 = vst [vmem:[%s15178_s29 + $0x78] sm:$0xff] %v7237_v38 }
 0xb21   : > { %v15237_v15 = vpop.f32.mrf.mxu2  ;;  %v7013_v10 = vpop.f32.mrf.mxu3 }
 0xb22   : > { %17529 = vst [vmem:[#allocation205_spill] sm:$0xff] %v15237_v15  ;;  %v7014_v3 = vadd.f32 %v7013_v10, %v15163_v46  ;;  %7458 = vmatmul.f32.gmra.mxu1 %v14784_v59  ;;  %v6867_v10 = vld [vmem:[#allocation8 + $0x388] sm:$0xff] }
 0xb23   : > { %7892 = vmatpush.msra.mxu1 %v6867_v10 }
 0xb24   : > { %v7129_v62 = vpop.f32.mrf.mxu0  ;;  %v7127_v24 = vadd.f32 %v7126_v51, %v7014_v3  ;;  %v6834_v3 = vld [vmem:[#allocation8 + $0x280] sm:$0xff] }
 0xb25   : > { %7774 = vmatpush.msrb.mxu2 %v6834_v3 }
 0xb26   : > { %7063 = vmatmul.f32.gmra.mxu3 %v15040_v23  ;;  %7396 = vmatmul.f32.gmra.mxu2 %v14925_v35  ;;  %v7240_v22 = vadd.f32 %v15063_v12, %v7127_v24  ;;  %v15259_v10 = vpop.f32.mrf.mxu1 }
 0xb27   : > { %7176 = vmatmul.f32.gmra.mxu0 %v14947_v2 }
 0xb28   : > { %8013 = vst [vmem:[%s15178_s29 + $0x90] sm:$0xff] %v7240_v22  ;;  %v6786_v22 = vld [vmem:[#allocation8 + $0x100] sm:$0xff] }
 0xb29   : > { %v15248_v38 = vpop.f32.mrf.mxu2  ;;  %v7016_v13 = vpop.f32.mrf.mxu3  ;;  %7661 = vmatpush.msra.mxu0 %v6786_v22 }
 0xb2a   : > { %17530 = vst [vmem:[#allocation253_spill] sm:$0xff] %v15248_v38  ;;  %v7017_v39 = vadd.f32 %v7016_v13, %v15163_v46  ;;  %7461 = vmatmul.f32.gmra.mxu1 %v14792_v61  ;;  %v17550_v38 = vld [vmem:[#allocation236_spill] sm:$0xff] }
 0xb2c   : > { %v7132_v51 = vpop.f32.mrf.mxu0  ;;  %v7130_v31 = vadd.f32 %v7129_v62, %v7017_v39 }
 0xb2e   : > { %7066 = vmatmul.f32.gmra.mxu3 %v15101_v18  ;;  %7399 = vmatmul.f32.gmra.mxu2 %v15025_v17  ;;  %v7243_v24 = vadd.f32 %v15074_v30, %v7130_v31  ;;  %v15272_v22 = vpop.f32.mrf.mxu1 }
 0xb2f   : > { %7179 = vmatmul.f32.gmra.mxu0 %v15052_v14 }
 0xb30   : > { %8016 = vst [vmem:[%s15178_s29 + $0xa8] sm:$0xff] %v7243_v24 }
 0xb31   : > { %v15257_v12 = vpop.f32.mrf.mxu2  ;;  %v7019_v13 = vpop.f32.mrf.mxu3 }
 0xb32   : > { %17531 = vst [vmem:[#allocation140_spill] sm:$0xff] %v15257_v12  ;;  %v7020_v62 = vadd.f32 %v7019_v13, %v15163_v46  ;;  %7464 = vmatmul.f32.gmra.mxu1 %v14764_v7 }
 0xb34   : > { %v7135_v39 = vpop.f32.mrf.mxu0  ;;  %v7133_v17 = vadd.f32 %v7132_v51, %v7020_v62  ;;  %v6780_v62 = vld [vmem:[#allocation8 + $0xd0] sm:$0xff] }
 0xb36   : > { %7069 = vmatmul.f32.gmra.mxu3 %v15109_v9  ;;  %7402 = vmatmul.f32.gmra.mxu2 %v15040_v23  ;;  %v7246_v30 = vadd.f32 %v15082_v36, %v7133_v17  ;;  %v6783_v36 = vld [vmem:[#allocation8 + $0xe8] sm:$0xff] }
 0xb37   : > { %7182 = vmatmul.f32.gmra.mxu0 %v15061_v50  ;;  %v6863_v23 = vld [vmem:[#allocation8 + $0x368] sm:$0xff] }
 0xb38   : > { %8019 = vst [vmem:[%s15178_s29 + $0xc0] sm:$0xff] %v7246_v30  ;;  %7662 = vmatpush.msra.mxu0 %v6783_v36  ;;  %7554 = vmatpush.msrb.mxu3 %v6863_v23  ;;  %v6774_v36 = vld [vmem:[#allocation8 + $0xa0] sm:$0xff]  ;;  %v6771_v23 = vld [vmem:[#allocation8 + $0x88] sm:$0xff] }
 0xb39   : > { %v15268_v31 = vpop.f32.mrf.mxu2  ;;  %v7022_v24 = vpop.f32.mrf.mxu3 }
 0xb3a   : > { %17532 = vst [vmem:[#allocation248_spill] sm:$0xff] %v15268_v31  ;;  %v7023_v3 = vadd.f32 %v7022_v24, %v15163_v46  ;;  %7467 = vmatmul.f32.gmra.mxu1 %v14776_v19  ;;  %v6831_v24 = vld [vmem:[#allocation8 + $0x268] sm:$0xff]  ;;  %7663 = vmatpush.msra.mxu0 %v6780_v62  ;;  %v6860_v62 = vld [vmem:[#allocation8 + $0x350] sm:$0xff] }
 0xb3b   : > { %7775 = vmatpush.msrb.mxu2 %v6831_v24  ;;  %v6768_v24 = vld [vmem:[#allocation8 + $0x70] sm:$0xff]  ;;  %7555 = vmatpush.msrb.mxu3 %v6860_v62  ;;  %v6851_v62 = vld [vmem:[#allocation8 + $0x308] sm:$0xff] }
 0xb3c   : > { %v7138_v51 = vpop.f32.mrf.mxu0  ;;  %v7136_v13 = vadd.f32 %v7135_v39, %v7023_v3  ;;  %v6777_v39 = vld [vmem:[#allocation8 + $0xb8] sm:$0xff] }
 0xb3d   : > { %7664 = vmatpush.msra.mxu0 %v6777_v39 }
 0xb3e   : > { %7072 = vmatmul.f32.gmra.mxu3 %v15114_v37  ;;  %7405 = vmatmul.f32.gmra.mxu2 %v15101_v18  ;;  %v7249_v17 = vadd.f32 %v15087_v54, %v7136_v13  ;;  %v15283_v18 = vpop.f32.mrf.mxu1 }
 0xb3f   : > { %7185 = vmatmul.f32.gmra.mxu0 %v15116_v55 }
 0xb40   : > { %8022 = vst [vmem:[%s15178_s29 + $0xd8] sm:$0xff] %v7249_v17  ;;  %7665 = vmatpush.msra.mxu0 %v6774_v36  ;;  %v6765_v36 = vld [vmem:[#allocation8 + $0x58] sm:$0xff] }
 0xb41   : > { %v15279_v30 = vpop.f32.mrf.mxu2  ;;  %v7025_v31 = vpop.f32.mrf.mxu3 }
 0xb42   : > { %17533 = vst [vmem:[#allocation211_spill] sm:$0xff] %v15279_v30  ;;  %v7026_v3 = vadd.f32 %v7025_v31, %v15163_v46  ;;  %7470 = vmatmul.f32.gmra.mxu1 %v14818_v48  ;;  %v6864_v31 = vld [vmem:[#allocation8 + $0x370] sm:$0xff]  ;;  %7666 = vmatpush.msra.mxu0 %v6771_v23 }
 0xb43   : > { %7893 = vmatpush.msra.mxu1 %v6864_v31 }
 0xb44   : > { %v7141_v54 = vpop.f32.mrf.mxu0  ;;  %v7139_v13 = vadd.f32 %v7138_v51, %v7026_v3  ;;  %7667 = vmatpush.msra.mxu0 %v6768_v24  ;;  %v6828_v24 = vld [vmem:[#allocation8 + $0x250] sm:$0xff] }
 0xb45   : > { %7776 = vmatpush.msrb.mxu2 %v6828_v24  ;;  %v6819_v24 = vld [vmem:[#allocation8 + $0x208] sm:$0xff] }
 0xb46   : > { %7075 = vmatmul.f32.gmra.mxu3 %v15127_v44  ;;  %7408 = vmatmul.f32.gmra.mxu2 %v15109_v9  ;;  %v7252_v17 = vadd.f32 %v15092_v27, %v7139_v13  ;;  %v6857_v27 = vld [vmem:[#allocation8 + $0x338] sm:$0xff]  ;;  %v15298_v23 = vpop.f32.mrf.mxu1  ;;  %v6756_v9 = vld [vmem:[#allocation8 + $0x10] sm:$0xff] }
 0xb47   : > { %7188 = vmatmul.f32.gmra.mxu0 %v15129_v28  ;;  %7556 = vmatpush.msrb.mxu3 %v6857_v27 }
 0xb48   : > { %8025 = vst [vmem:[%s15178_s29 + $0xf0] sm:$0xff] %v7252_v17  ;;  %v6854_v17 = vld [vmem:[#allocation8 + $0x320] sm:$0xff]  ;;  %7668 = vmatpush.msra.mxu0 %v6765_v36 }
 0xb49   : > { %v7028_v30 = vpop.f32.mrf.mxu3  ;;  %v15290_v51 = vpop.f32.mrf.mxu2  ;;  %7557 = vmatpush.msrb.mxu3 %v6854_v17  ;;  %v6822_v36 = vld [vmem:[#allocation8 + $0x220] sm:$0xff] }
 0xb4a   : > { %17534 = vst [vmem:[#allocation70_spill] sm:$0xff] %v15290_v51  ;;  %v7029_v39 = vadd.f32 %v7028_v30, %v15163_v46  ;;  %7473 = vmatmul.f32.gmra.mxu1 %v14832_v56  ;;  %v6762_v30 = vld [vmem:[#allocation8 + $0x40] sm:$0xff] }
 0xb4b   : > { %7558 = vmatpush.msrb.mxu3 %v6851_v62  ;;  %7669 = vmatpush.msra.mxu0 %v6762_v30 }
 0xb4c   : > { %v7144_v3 = vpop.f32.mrf.mxu0  ;;  %v7142_v13 = vadd.f32 %v7141_v54, %v7029_v39  ;;  %v6759_v54 = vld [vmem:[#allocation8 + $0x28] sm:$0xff]  ;;  %v6825_v39 = vld [vmem:[#allocation8 + $0x238] sm:$0xff] }
 0xb4d   : > { %7777 = vmatpush.msrb.mxu2 %v6825_v39  ;;  %7670 = vmatpush.msra.mxu0 %v6759_v54  ;;  %v6816_v39 = vld [vmem:[#allocation8 + $0x1f0] sm:$0xff]  ;;  %v6813_v54 = vld [vmem:[#allocation8 + $0x1d8] sm:$0xff] }
 0xb4e   : > { %7078 = vmatmul.f32.gmra.mxu3 %v14957_v16  ;;  %7411 = vmatmul.f32.gmra.mxu2 %v15114_v37  ;;  %v7255_v31 = vadd.f32 %v15097_v60, %v7142_v13 }
 0xb4f   : > { %7191 = vmatmul.f32.gmra.mxu0 %v15138_v43  ;;  %7778 = vmatpush.msrb.mxu2 %v6822_v36  ;;  %v6810_v36 = vld [vmem:[#allocation8 + $0x1c0] sm:$0xff] }
 0xb50   : > { %8028 = vst [vmem:[%s15178_s29 + $0x108] sm:$0xff] %v7255_v31  ;;  %v17536_v31 = vld [vmem:[#allocation21_spill] sm:$0xff]  ;;  %7671 = vmatpush.msra.mxu0 %v6756_v9 }
 0xb51   : > { %v7031_v27 = vpop.f32.mrf.mxu3  ;;  %v15303_v60 = vpop.f32.mrf.mxu2  ;;  %7779 = vmatpush.msrb.mxu2 %v6819_v24  ;;  %v17538_v24 = vld [vmem:[#allocation173_spill] sm:$0xff] }
 0xb52   : > { %v7032_v37 = vadd.f32 %v7031_v27, %v15163_v46  ;;  %7476 = vmatmul.f32.gmra.mxu1 %v14845_v0  ;;  %17535 = vst [vmem:[#allocation227_spill] sm:$0xff] %v15303_v60  ;;  %v15309_v62 = vpop.f32.mrf.mxu1  ;;  %v6807_v9 = vld [vmem:[#allocation8 + $0x1a8] sm:$0xff] }
 0xb53   : > { %7780 = vmatpush.msrb.mxu2 %v6816_v39 }
 0xb54   : > { %v7147_v13 = vpop.f32.mrf.mxu0  ;;  %v7145_v17 = vadd.f32 %v7144_v3, %v7032_v37 }
 0xb55   : > { %7781 = vmatpush.msrb.mxu2 %v6813_v54  ;;  %v6804_v54 = vld [vmem:[#allocation8 + $0x190] sm:$0xff] }
 0xb56   : > { %7081 = vmatmul.f32.gmra.mxu3 %v17536_v31  ;;  %7414 = vmatmul.f32.gmra.mxu2 %v15127_v44  ;;  %v7258_v30 = vadd.f32 %v15107_v11, %v7145_v17  ;;  %v17540_v44 = vld [vmem:[#allocation30_spill] sm:$0xff] }
 0xb57   : > { %7194 = vmatmul.f32.gmra.mxu0 %v15151_v49  ;;  %7782 = vmatpush.msrb.mxu2 %v6810_v36  ;;  %v17541_v36 = vld [vmem:[#allocation18_spill] sm:$0xff] }
 0xb58   : > { %8031 = vst [vmem:[%s15178_s29 + $0x120] sm:$0xff] %v7258_v30  ;;  %v17539_v30 = vld [vmem:[#allocation139_spill] sm:$0xff] }
 0xb59   : > { %v7034_v37 = vpop.f32.mrf.mxu3  ;;  %v15314_v17 = vpop.f32.mrf.mxu2  ;;  %7783 = vmatpush.msrb.mxu2 %v6807_v9  ;;  %v17543_v9 = vld [vmem:[#allocation199_spill] sm:$0xff] }
 0xb5a   : > { %v7035_v3 = vadd.f32 %v7034_v37, %v15163_v46  ;;  %7479 = vmatmul.f32.gmra.mxu1 %v14863_v4  ;;  %17537 = vst [vmem:[#allocation41_spill] sm:$0xff] %v15314_v17 }
 0xb5b   : > { %7784 = vmatpush.msrb.mxu2 %v6804_v54  ;;  %v6861_v54 = vld [vmem:[#allocation8 + $0x358] sm:$0xff] }
 0xb5c   : > { %v7150_v27 = vpop.f32.mrf.mxu0  ;;  %v7148_v11 = vadd.f32 %v7147_v13, %v7035_v3  ;;  %7894 = vmatpush.msra.mxu1 %v6861_v54 }
 0xb5e   : > { %7084 = vmatmul.f32.gmra.mxu3 %v17538_v24  ;;  %7417 = vmatmul.f32.gmra.mxu2 %v14957_v16  ;;  %v7261_v39 = vadd.f32 %v17539_v30, %v7148_v11  ;;  %v17542_v11 = vld [vmem:[#allocation126_spill] sm:$0xff] }
 0xb5f   : > { %7197 = vmatmul.f32.gmra.mxu0 %v17540_v44  ;;  %v15320_v37 = vpop.f32.mrf.mxu1 }
 0xb60   : > { %8034 = vst [vmem:[%s15178_s29 + $0x138] sm:$0xff] %v7261_v39 }
 0xb61   : > { %v7037_v13 = vpop.f32.mrf.mxu3  ;;  %v15329_v16 = vpop.f32.mrf.mxu2 }
 0xb62   : > { %v7038_v3 = vadd.f32 %v7037_v13, %v15163_v46  ;;  %7482 = vmatmul.f32.gmra.mxu1 %v17541_v36  ;;  %17544 = vst [vmem:[#allocation193_spill] sm:$0xff] %v15329_v16  ;;  %v17548_v16 = vld [vmem:[#allocation111_spill] sm:$0xff] }
 0xb64   : > { %v7153_v17 = vpop.f32.mrf.mxu0  ;;  %v7151_v60 = vadd.f32 %v7150_v27, %v7038_v3  ;;  %v17545_v27 = vld [vmem:[#allocation16_spill] sm:$0xff] }
 0xb66   : > { %7087 = vmatmul.f32.gmra.mxu3 %v15144_v63  ;;  %7420 = vmatmul.f32.gmra.mxu2 %v17536_v31  ;;  %v7264_v30 = vadd.f32 %v17542_v11, %v7151_v60  ;;  %v17546_v60 = vld [vmem:[#allocation314_spill] sm:$0xff]  ;;  %v17547_v11 = vld [vmem:[#allocation179_spill] sm:$0xff] }
 0xb67   : > { %7200 = vmatmul.f32.gmra.mxu0 %v17543_v9  ;;  %v15331_v39 = vpop.f32.mrf.mxu1 }
 0xb68   : > { %8037 = vst [vmem:[%s15178_s29 + $0x150] sm:$0xff] %v7264_v30 }
 0xb69   : > { %v7040_v13 = vpop.f32.mrf.mxu3  ;;  %v15344_v54 = vpop.f32.mrf.mxu2 }
 0xb6a   : > { %v7041_v51 = vadd.f32 %v7040_v13, %v15163_v46  ;;  %7485 = vmatmul.f32.gmra.mxu1 %v17545_v27  ;;  %17549 = vst [vmem:[#allocation219_spill] sm:$0xff] %v15344_v54  ;;  %v17553_v54 = vld [vmem:[#allocation321_spill] sm:$0xff] }
 0xb6c   : > { %v7156_v3 = vpop.f32.mrf.mxu0  ;;  %v7154_v12 = vadd.f32 %v7153_v17, %v7041_v51 }
 0xb6e   : > { %7423 = vmatmul.f32.gmra.mxu2 %v17538_v24  ;;  %8682 = vmatmul.msk.f32.vlgmr.msrb.gmra.mxu3 %vm744_vm0, %v17546_v60  ;;  %v7267_v31 = vadd.f32 %v17547_v11, %v7154_v12  ;;  %v17551_v24 = vld [vmem:[#allocation291_spill] sm:$0xff]  ;;  %v17552_v12 = vld [vmem:[#allocation44_spill] sm:$0xff] }
 0xb6f   : > { %7672 = vmatmul.f32.vlgmr.msra.gmra.mxu0 %v17548_v16  ;;  %v15341_v30 = vpop.f32.mrf.mxu1 }
 0xb70   : > { %8040 = vst [vmem:[%s15178_s29 + $0x168] sm:$0xff] %v7267_v31 }
 0xb71   : > { %v7043_v13 = vpop.f32.mrf.mxu3  ;;  %v15358_v15 = vpop.f32.mrf.mxu2 }
 0xb72   : > { %v7044_v35 = vadd.f32 %v7043_v13, %v15163_v46  ;;  %7488 = vmatmul.f32.gmra.mxu1 %v17550_v38  ;;  %17554 = vst [vmem:[#allocation50_spill] sm:$0xff] %v15358_v15 }
 0xb74   : > { %v7159_v51 = vpop.f32.mrf.mxu0  ;;  %v7157_v17 = vadd.f32 %v7156_v3, %v7044_v35 }
 0xb76   : > { %7426 = vmatmul.f32.gmra.mxu2 %v15144_v63  ;;  %8683 = vmatmul.msk.f32.gmra.mxu3 %vm744_vm0, %v17551_v24  ;;  %v7270_v16 = vadd.f32 %v15165_v20, %v7157_v17  ;;  %v17555_v63 = vld [vmem:[#allocation309_spill] sm:$0xff]  ;;  %v17556_v17 = vld [vmem:[#allocation160_spill] sm:$0xff]  ;;  %v17557_v24 = vld [vmem:[#allocation206_spill] sm:$0xff] }
 0xb77   : > { %7675 = vmatmul.f32.gmra.mxu0 %v17552_v12  ;;  %v15353_v31 = vpop.f32.mrf.mxu1 }
 0xb78   : > { %8043 = vst [vmem:[%s15178_s29 + $0x180] sm:$0xff] %v7270_v16 }
 0xb79   : > { %v7046_v11 = vpop.f32.mrf.mxu3 }
 0xb7a   : > { %v7047_v13 = vadd.f32 %v7046_v11, %v15163_v46  ;;  %7491 = vmatmul.f32.gmra.mxu1 %v17553_v54 }
 0xb7c   : > { %v7162_v35 = vpop.f32.mrf.mxu0  ;;  %v7160_v3 = vadd.f32 %v7159_v51, %v7047_v13  ;;  %v15370_v13 = vpop.f32.mrf.mxu2 }
 0xb7d   : > { %17558 = vst [vmem:[#allocation152_spill] sm:$0xff] %v15370_v13 }
 0xb7e   : > { %8684 = vmatmul.msk.f32.gmra.mxu3 %vm744_vm0, %v17555_v63  ;;  %7785 = vmatmul.f32.vlgmr.msrb.gmra.mxu2 %v14752_v34  ;;  %v7273_v20 = vadd.f32 %v15183_v26, %v7160_v3  ;;  %v17559_v63 = vld [vmem:[#allocation319_spill] sm:$0xff] }
 0xb7f   : > { %7678 = vmatmul.f32.gmra.mxu0 %v17556_v17  ;;  %v15365_v16 = vpop.f32.mrf.mxu1  ;;  %v17560_v26 = vld [vmem:[#allocation307_spill] sm:$0xff] }
 0xb80   : > { %8046 = vst [vmem:[%s15178_s29 + $0x198] sm:$0xff] %v7273_v20  ;;  %v6858_v20 = vld [vmem:[#allocation8 + $0x340] sm:$0xff] }
 0xb81   : > { %v7049_v12 = vpop.f32.mrf.mxu3  ;;  %7895 = vmatpush.msra.mxu1 %v6858_v20 }
 0xb82   : > { %v7050_v11 = vadd.f32 %v7049_v12, %v15163_v46  ;;  %7494 = vmatmul.f32.gmra.mxu1 %v17557_v24  ;;  %v17561_v12 = vld [vmem:[#allocation128_spill] sm:$0xff] }
 0xb84   : > { %v7165_v15 = vpop.f32.mrf.mxu0  ;;  %v7163_v51 = vadd.f32 %v7162_v35, %v7050_v11 }
 0xb86   : > { %8685 = vmatmul.msk.f32.gmra.mxu3 %vm744_vm0, %v17559_v63  ;;  %7788 = vmatmul.f32.gmra.mxu2 %v14760_v57  ;;  %v7276_v34 = vadd.f32 %v15195_v53, %v7163_v51  ;;  %v17562_v63 = vld [vmem:[#allocation172_spill] sm:$0xff]  ;;  %v15387_v51 = vpop.f32.mrf.mxu2 }
 0xb87   : > { %7681 = vmatmul.f32.gmra.mxu0 %v17560_v26  ;;  %v15377_v3 = vpop.f32.mrf.mxu1  ;;  %v17563_v53 = vld [vmem:[#allocation104_spill] sm:$0xff]  ;;  %17564 = vst [vmem:[#allocation57_spill] sm:$0xff] %v15387_v51  ;;  %v17568_v51 = vld [vmem:[#allocation298_spill] sm:$0xff] }
 0xb88   : > { %8049 = vst [vmem:[%s15178_s29 + $0x1b0] sm:$0xff] %v7276_v34 }
 0xb89   : > { %v7052_v17 = vpop.f32.mrf.mxu3 }
 0xb8a   : > { %v7053_v35 = vadd.f32 %v7052_v17, %v15163_v46  ;;  %7497 = vmatmul.f32.gmra.mxu1 %v17561_v12 }
 0xb8c   : > { %v7168_v11 = vpop.f32.mrf.mxu0  ;;  %v7166_v13 = vadd.f32 %v7165_v15, %v7053_v35  ;;  %v17565_v35 = vld [vmem:[#allocation311_spill] sm:$0xff] }
 0xb8e   : > { %8686 = vmatmul.msk.f32.gmra.mxu3 %vm744_vm0, %v17562_v63  ;;  %7791 = vmatmul.f32.gmra.mxu2 %v14768_v8  ;;  %v7279_v57 = vadd.f32 %v15208_v21, %v7166_v13  ;;  %v17566_v21 = vld [vmem:[#allocation287_spill] sm:$0xff] }
 0xb8f   : > { %7684 = vmatmul.f32.gmra.mxu0 %v17563_v53  ;;  %v15389_v34 = vpop.f32.mrf.mxu1 }
 0xb90   : > { %8052 = vst [vmem:[%s15178_s29 + $0x1c8] sm:$0xff] %v7279_v57  ;;  %v15402_v57 = vpop.f32.mrf.mxu2 }
 0xb91   : > { %v7055_v26 = vpop.f32.mrf.mxu3  ;;  %17567 = vst [vmem:[#allocation156_spill] sm:$0xff] %v15402_v57  ;;  %v17571_v57 = vld [vmem:[#allocation293_spill] sm:$0xff] }
 0xb92   : > { %v7056_v20 = vadd.f32 %v7055_v26, %v15163_v46  ;;  %7500 = vmatmul.f32.gmra.mxu1 %v14983_v5 }
 0xb94   : > { %v7171_v15 = vpop.f32.mrf.mxu0  ;;  %v7169_v17 = vadd.f32 %v7168_v11, %v7056_v20 }
 0xb96   : > { %8687 = vmatmul.msk.f32.gmra.mxu3 %vm744_vm0, %v17565_v35  ;;  %7794 = vmatmul.f32.gmra.mxu2 %v14778_v47  ;;  %v7282_v8 = vadd.f32 %v15219_v58, %v7169_v17  ;;  %v17569_v58 = vld [vmem:[#allocation324_spill] sm:$0xff] }
 0xb97   : > { %7687 = vmatmul.f32.gmra.mxu0 %v17566_v21  ;;  %v15399_v13 = vpop.f32.mrf.mxu1 }
 0xb98   : > { %8055 = vst [vmem:[%s15178_s29 + $0x1e0] sm:$0xff] %v7282_v8 }
 0xb99   : > { %v7058_v53 = vpop.f32.mrf.mxu3 }
 0xb9a   : > { %v7059_v26 = vadd.f32 %v7058_v53, %v15163_v46  ;;  %7503 = vmatmul.f32.gmra.mxu1 %v14997_v45  ;;  %v15416_v53 = vpop.f32.mrf.mxu2 }
 0xb9b   : > { %17570 = vst [vmem:[#allocation143_spill] sm:$0xff] %v15416_v53 }
 0xb9c   : > { %v7174_v11 = vpop.f32.mrf.mxu0  ;;  %v7172_v20 = vadd.f32 %v7171_v15, %v7059_v26 }
 0xb9e   : > { %8688 = vmatmul.msk.f32.gmra.mxu3 %vm744_vm0, %v17568_v51  ;;  %7797 = vmatmul.f32.gmra.mxu2 %v14784_v59  ;;  %v7285_v47 = vadd.f32 %v15230_v42, %v7172_v20  ;;  %v17572_v42 = vld [vmem:[#allocation181_spill] sm:$0xff] }
 0xb9f   : > { %7690 = vmatmul.f32.gmra.mxu0 %v17569_v58  ;;  %v15411_v17 = vpop.f32.mrf.mxu1 }
 0xba0   : > { %8058 = vst [vmem:[%s15178_s29 + $0x1f8] sm:$0xff] %v7285_v47  ;;  %v6855_v47 = vld [vmem:[#allocation8 + $0x328] sm:$0xff] }
 0xba1   : > { %v7061_v8 = vpop.f32.mrf.mxu3  ;;  %7896 = vmatpush.msra.mxu1 %v6855_v47 }
 0xba2   : > { %v7062_v21 = vadd.f32 %v7061_v8, %v15163_v46  ;;  %7506 = vmatmul.f32.gmra.mxu1 %v15005_v41  ;;  %v15428_v53 = vpop.f32.mrf.mxu2 }
 0xba3   : > { %17573 = vst [vmem:[#allocation150_spill] sm:$0xff] %v15428_v53  ;;  %v17579_v53 = vld [vmem:[#allocation163_spill] sm:$0xff] }
 0xba4   : > { %v7177_v15 = vpop.f32.mrf.mxu0  ;;  %v7175_v26 = vadd.f32 %v7174_v11, %v7062_v21 }
 0xba6   : > { %8689 = vmatmul.msk.f32.gmra.mxu3 %vm744_vm0, %v17571_v57  ;;  %7800 = vmatmul.f32.gmra.mxu2 %v14792_v61  ;;  %v7288_v59 = vadd.f32 %v15245_v40, %v7175_v26  ;;  %v17574_v61 = vld [vmem:[#allocation107_spill] sm:$0xff]  ;;  %v17575_v26 = vld [vmem:[#allocation316_spill] sm:$0xff] }
 0xba7   : > { %7693 = vmatmul.f32.gmra.mxu0 %v17572_v42  ;;  %v15423_v20 = vpop.f32.mrf.mxu1 }
 0xba8   : > { %8061 = vst [vmem:[%s15178_s29 + $0x210] sm:$0xff] %v7288_v59 }
 0xba9   : > { %v7064_v58 = vpop.f32.mrf.mxu3 }
 0xbaa   : > { %v7065_v8 = vadd.f32 %v7064_v58, %v15163_v46  ;;  %7509 = vmatmul.f32.gmra.mxu1 %v15019_v52 }
 0xbac   : > { %v7180_v11 = vpop.f32.mrf.mxu0  ;;  %v7178_v21 = vadd.f32 %v7177_v15, %v7065_v8  ;;  %v17576_v8 = vld [vmem:[#allocation313_spill] sm:$0xff] }
 0xbae   : > { %8690 = vmatmul.msk.f32.gmra.mxu3 %vm744_vm0, %v17574_v61  ;;  %7803 = vmatmul.f32.gmra.mxu2 %v14764_v7  ;;  %v7291_v40 = vadd.f32 %v15259_v10, %v7178_v21  ;;  %v17577_v10 = vld [vmem:[#allocation159_spill] sm:$0xff]  ;;  %v15445_v21 = vpop.f32.mrf.mxu2 }
 0xbaf   : > { %7696 = vmatmul.f32.gmra.mxu0 %v17575_v26  ;;  %v15435_v59 = vpop.f32.mrf.mxu1  ;;  %17578 = vst [vmem:[#allocation141_spill] sm:$0xff] %v15445_v21  ;;  %v17582_v21 = vld [vmem:[#allocation82_spill] sm:$0xff] }
 0xbb0   : > { %8064 = vst [vmem:[%s15178_s29 + $0x228] sm:$0xff] %v7291_v40 }
 0xbb1   : > { %v7067_v42 = vpop.f32.mrf.mxu3 }
 0xbb2   : > { %v7068_v47 = vadd.f32 %v7067_v42, %v15163_v46  ;;  %7512 = vmatmul.f32.gmra.mxu1 %v14939_v1 }
 0xbb4   : > { %v7183_v15 = vpop.f32.mrf.mxu0  ;;  %v7181_v58 = vadd.f32 %v7180_v11, %v7068_v47 }
 0xbb6   : > { %8691 = vmatmul.msk.f32.gmra.mxu3 %vm744_vm0, %v17576_v8  ;;  %7806 = vmatmul.f32.gmra.mxu2 %v14776_v19  ;;  %v7294_v7 = vadd.f32 %v15272_v22, %v7181_v58  ;;  %v17580_v22 = vld [vmem:[#allocation323_spill] sm:$0xff] }
 0xbb7   : > { %7699 = vmatmul.f32.gmra.mxu0 %v17577_v10  ;;  %v15447_v40 = vpop.f32.mrf.mxu1 }
 0xbb8   : > { %8067 = vst [vmem:[%s15178_s29 + $0x240] sm:$0xff] %v7294_v7  ;;  %v15460_v7 = vpop.f32.mrf.mxu2 }
 0xbb9   : > { %v7070_v26 = vpop.f32.mrf.mxu3  ;;  %17581 = vst [vmem:[#allocation187_spill] sm:$0xff] %v15460_v7 }
 0xbba   : > { %v7071_v42 = vadd.f32 %v7070_v26, %v15163_v46  ;;  %7515 = vmatmul.f32.gmra.mxu1 %v14947_v2 }
 0xbbc   : > { %v7186_v11 = vpop.f32.mrf.mxu0  ;;  %v7184_v47 = vadd.f32 %v7183_v15, %v7071_v42 }
 0xbbe   : > { %8692 = vmatmul.msk.f32.gmra.mxu3 %vm744_vm0, %v17579_v53  ;;  %7809 = vmatmul.f32.gmra.mxu2 %v14818_v48  ;;  %v7297_v19 = vadd.f32 %v15283_v18, %v7184_v47  ;;  %v17583_v48 = vld [vmem:[#allocation326_spill] sm:$0xff] }
 0xbbf   : > { %7702 = vmatmul.f32.gmra.mxu0 %v17580_v22  ;;  %v15457_v58 = vpop.f32.mrf.mxu1 }
 0xbc0   : > { %8070 = vst [vmem:[%s15178_s29 + $0x258] sm:$0xff] %v7297_v19  ;;  %v6852_v19 = vld [vmem:[#allocation8 + $0x310] sm:$0xff] }
 0xbc1   : > { %v7073_v10 = vpop.f32.mrf.mxu3  ;;  %7897 = vmatpush.msra.mxu1 %v6852_v19 }
 0xbc2   : > { %v7074_v26 = vadd.f32 %v7073_v10, %v15163_v46  ;;  %7518 = vmatmul.f32.gmra.mxu1 %v15052_v14 }
 0xbc4   : > { %v7189_v15 = vpop.f32.mrf.mxu0  ;;  %v7187_v42 = vadd.f32 %v7186_v11, %v7074_v26  ;;  %v15474_v11 = vpop.f32.mrf.mxu2 }
 0xbc6   : > { %8693 = vmatmul.msk.f32.gmra.mxu3 %vm744_vm0, %v17582_v21  ;;  %7812 = vmatmul.f32.gmra.mxu2 %v14832_v56  ;;  %v7300_v18 = vadd.f32 %v15298_v23, %v7187_v42  ;;  %v17584_v56 = vld [vmem:[#allocation119_spill] sm:$0xff] }
 0xbc7   : > { %7705 = vmatmul.f32.gmra.mxu0 %v17583_v48  ;;  %v15469_v47 = vpop.f32.mrf.mxu1  ;;  %v17585_v42 = vld [vmem:[#allocation231_spill] sm:$0xff] }
 0xbc8   : > { %8073 = vst [vmem:[%s15178_s29 + $0x270] sm:$0xff] %v7300_v18 }
 0xbc9   : > { %v7076_v22 = vpop.f32.mrf.mxu3 }
 0xbca   : > { %v7077_v10 = vadd.f32 %v7076_v22, %v15163_v46  ;;  %7521 = vmatmul.f32.gmra.mxu1 %v15061_v50 }
 0xbcc   : > { %v7190_v26 = vadd.f32 %v7189_v15, %v7077_v10  ;;  %v7192_v7 = vpop.f32.mrf.mxu0  ;;  %v15486_v22 = vpop.f32.mrf.mxu2  ;;  %v17587_v10 = vld [vmem:[#allocation195_spill] sm:$0xff] }
 0xbcd   : > { %17586 = vst [vmem:[#allocation45_spill] sm:$0xff] %v15486_v22 }
 0xbce   : > { %8694 = vmatmul.msk.f32.gmra.mxu3 %vm744_vm0, %v17584_v56  ;;  %7815 = vmatmul.f32.gmra.mxu2 %v14845_v0  ;;  %v7303_v23 = vadd.f32 %v15309_v62, %v7190_v26  ;;  %v17588_v62 = vld [vmem:[#allocation318_spill] sm:$0xff] }
 0xbcf   : > { %7708 = vmatmul.f32.gmra.mxu0 %v17585_v42  ;;  %v15481_v18 = vpop.f32.mrf.mxu1 }
 0xbd0   : > { %8076 = vst [vmem:[%s15178_s29 + $0x288] sm:$0xff] %v7303_v23 }
 0xbd1   : > { %v7079_v48 = vpop.f32.mrf.mxu3 }
 0xbd2   : > { %v7080_v19 = vadd.f32 %v7079_v48, %v15163_v46  ;;  %7524 = vmatmul.f32.gmra.mxu1 %v15116_v55 }
 0xbd4   : > { %v7193_v15 = vadd.f32 %v7192_v7, %v7080_v19  ;;  %v7195_v26 = vpop.f32.mrf.mxu0  ;;  %v17589_v19 = vld [vmem:[#allocation79_spill] sm:$0xff] }
 0xbd6   : > { %8695 = vmatmul.msk.f32.gmra.mxu3 %vm744_vm0, %v17587_v10  ;;  %7818 = vmatmul.f32.gmra.mxu2 %v14863_v4  ;;  %v7306_v0 = vadd.f32 %v15320_v37, %v7193_v15  ;;  %v17590_v37 = vld [vmem:[#allocation125_spill] sm:$0xff]  ;;  %v15503_v15 = vpop.f32.mrf.mxu2 }
 0xbd7   : > { %7711 = vmatmul.f32.gmra.mxu0 %v17588_v62  ;;  %v15493_v23 = vpop.f32.mrf.mxu1  ;;  %17591 = vst [vmem:[#allocation53_spill] sm:$0xff] %v15503_v15 }
 0xbd8   : > { %8079 = vst [vmem:[%s15178_s29 + $0x2a0] sm:$0xff] %v7306_v0 }
 0xbd9   : > { %v7082_v42 = vpop.f32.mrf.mxu3 }
 0xbda   : > { %v7083_v48 = vadd.f32 %v7082_v42, %v15163_v46  ;;  %7527 = vmatmul.f32.gmra.mxu1 %v15129_v28 }
 0xbdc   : > { %v7196_v7 = vadd.f32 %v7195_v26, %v7083_v48  ;;  %v7198_v0 = vpop.f32.mrf.mxu0  ;;  %v17592_v48 = vld [vmem:[#allocation17_spill] sm:$0xff] }
 0xbde   : > { %8696 = vmatmul.msk.f32.gmra.mxu3 %vm744_vm0, %v17589_v19  ;;  %7821 = vmatmul.f32.gmra.mxu2 %v17541_v36  ;;  %v7309_v4 = vadd.f32 %v15331_v39, %v7196_v7  ;;  %v17593_v39 = vld [vmem:[#allocation164_spill] sm:$0xff] }
 0xbdf   : > { %7714 = vmatmul.f32.gmra.mxu0 %v17590_v37  ;;  %v15505_v62 = vpop.f32.mrf.mxu1 }
 0xbe0   : > { %8082 = vst [vmem:[%s15178_s29 + $0x2b8] sm:$0xff] %v7309_v4  ;;  %v15518_v4 = vpop.f32.mrf.mxu2 }
 0xbe1   : > { %v7085_v42 = vpop.f32.mrf.mxu3 }
 0xbe2   : > { %v7086_v22 = vadd.f32 %v7085_v42, %v15163_v46  ;;  %7530 = vmatmul.f32.gmra.mxu1 %v15138_v43  ;;  %v17594_v42 = vld [vmem:[#allocation137_spill] sm:$0xff] }
 0xbe3   : > { %v15521_v15 = vperm.slane %v17594_v42, 1 }
 0xbe4   : > { %v7199_v26 = vadd.f32 %v7198_v0, %v7086_v22 }
 0xbe6   : > { %8697 = vmatmul.msk.f32.gmra.mxu3 %vm744_vm0, %v17592_v48  ;;  %7824 = vmatmul.f32.gmra.mxu2 %v17545_v27  ;;  %v7312_v36 = vadd.f32 %v15341_v30, %v7199_v26  ;;  %v7201_v27 = vpop.f32.mrf.mxu0  ;;  %v17595_v30 = vld [vmem:[#allocation184_spill] sm:$0xff]  ;;  %v7335_v26 = vadd.f32 %v15193_v33, %v15521_v15 }
 0xbe7   : > { %7717 = vmatmul.f32.gmra.mxu0 %v17593_v39  ;;  %v15515_v7 = vpop.f32.mrf.mxu1  ;;  %v17597_v33 = vld [vmem:[#allocation120_spill] sm:$0xff] }
 0xbe8   : > { %8085 = vst [vmem:[%s15178_s29 + $0x2d0] sm:$0xff] %v7312_v36 }
 0xbe9   : > { %v7088_v37 = vpop.f32.mrf.mxu3 }
 0xbea   : > { %v7089_v22 = vadd.f32 %v7088_v37, %v15163_v46  ;;  %7533 = vmatmul.f32.gmra.mxu1 %v15151_v49  ;;  %v7448_v46 = vadd.f32 %v15365_v16, %v7335_v26 }
 0xbec   : > { %v7202_v0 = vadd.f32 %v7201_v27, %v7089_v22  ;;  %v15537_v22 = vpop.f32.mrf.mxu2 }
 0xbee   : > { %8698 = vmatmul.msk.f32.gmra.mxu3 %vm744_vm0, %v17595_v30  ;;  %7827 = vmatmul.f32.gmra.mxu2 %v17550_v38  ;;  %v7315_v36 = vadd.f32 %v15353_v31, %v7202_v0  ;;  %v17596_v38 = vld [vmem:[#allocation88_spill] sm:$0xff] }
 0xbef   : > { %7720 = vmatmul.f32.gmra.mxu0 %v14967_v29  ;;  %v15532_v39 = vpop.f32.mrf.mxu1  ;;  %v7338_v29 = vadd.f32 %v15204_v32, %v15521_v15  ;;  %v7341_v32 = vadd.f32 %v15215_v6, %v15521_v15  ;;  %v7344_v6 = vadd.f32 %v15226_v25, %v15521_v15  ;;  %v17604_v25 = vld [vmem:[#allocation205_spill] sm:$0xff] }
 0xbf0   : > { %8088 = vst [vmem:[%s15178_s29 + $0x2e8] sm:$0xff] %v7315_v36  ;;  %v17598_v36 = vld [vmem:[#allocation167_spill] sm:$0xff] }
 0xbf1   : > { %v7560_v37 = vpop.f32.mrf.mxu3  ;;  %v7451_v16 = vadd.f32 %v15377_v3, %v7338_v29  ;;  %v7454_v3 = vadd.f32 %v15389_v34, %v7341_v32  ;;  %v17600_v29 = vld [vmem:[#allocation25_spill] sm:$0xff]  ;;  %v7457_v34 = vadd.f32 %v15399_v13, %v7344_v6  ;;  %v17603_v32 = vld [vmem:[#allocation203_spill] sm:$0xff] }
 0xbf2   : > { %v7561_v42 = vadd.f32 %v7560_v37, %v7448_v46  ;;  %7536 = vmatmul.f32.gmra.mxu1 %v17540_v44 }
 0xbf4   : > { %7996 = vst [vmem:[%s15178_s29 + $0x8] sm:$0xff] %v7561_v42  ;;  %v15551_v26 = vpop.f32.mrf.mxu2 }
 0xbf6   : > { %8699 = vmatmul.msk.f32.gmra.mxu3 %vm744_vm0, %v17596_v38  ;;  %7830 = vmatmul.f32.gmra.mxu2 %v17553_v54  ;;  %v17599_v54 = vld [vmem:[#allocation197_spill] sm:$0xff] }
 0xbf7   : > { %7723 = vmatmul.f32.gmra.mxu0 %v17597_v33  ;;  %v15546_v31 = vpop.f32.mrf.mxu1 }
 0xbf9   : > { %v7563_v27 = vpop.f32.mrf.mxu3 }
 0xbfa   : > { %v7564_v0 = vadd.f32 %v7563_v27, %v7451_v16  ;;  %7539 = vmatmul.f32.gmra.mxu1 %v17543_v9 }
 0xbfc   : > { %7999 = vst [vmem:[%s15178_s29 + $0x20] sm:$0xff] %v7564_v0  ;;  %v15571_v33 = vpop.f32.mrf.mxu2  ;;  %v17602_v0 = vld [vmem:[#allocation291_spill] sm:$0xff] }
 0xbfe   : > { %8700 = vmatmul.msk.f32.gmra.mxu3 %vm744_vm0, %v17598_v36  ;;  %7833 = vmatmul.f32.gmra.mxu2 %v17557_v24  ;;  %v17601_v24 = vld [vmem:[#allocation153_spill] sm:$0xff] }
 0xbff   : > { %7726 = vmatmul.f32.gmra.mxu0 %v17599_v54  ;;  %v15559_v46 = vpop.f32.mrf.mxu1  ;;  %v17605_v54 = vld [vmem:[#allocation22_spill] sm:$0xff] }
 0xc01   : > { %v7566_v37 = vpop.f32.mrf.mxu3 }
 0xc02   : > { %v7567_v42 = vadd.f32 %v7566_v37, %v7454_v3  ;;  %8714 = vmatmul.msk.f32.vlgmr.msra.gmra.mxu1 %vm744_vm0, %v17546_v60 }
 0xc04   : > { %8002 = vst [vmem:[%s15178_s29 + $0x38] sm:$0xff] %v7567_v42  ;;  %v15588_v37 = vpop.f32.mrf.mxu2 }
 0xc06   : > { %8701 = vmatmul.msk.f32.gmra.mxu3 %vm744_vm0, %v17600_v29  ;;  %7836 = vmatmul.f32.gmra.mxu2 %v17561_v12  ;;  %v7347_v12 = vadd.f32 %v17604_v25, %v15521_v15 }
 0xc07   : > { %7729 = vmatmul.f32.gmra.mxu0 %v17601_v24  ;;  %v15573_v16 = vpop.f32.mrf.mxu1  ;;  %v17606_v24 = vld [vmem:[#allocation309_spill] sm:$0xff] }
 0xc08   : > { %v7460_v13 = vadd.f32 %v15411_v17, %v7347_v12 }
 0xc09   : > { %v7569_v27 = vpop.f32.mrf.mxu3 }
 0xc0a   : > { %v7570_v60 = vadd.f32 %v7569_v27, %v7457_v34  ;;  %8715 = vmatmul.msk.f32.gmra.mxu1 %vm744_vm0, %v17602_v0  ;;  %v17607_v34 = vld [vmem:[#allocation224_spill] sm:$0xff] }
 0xc0c   : > { %8005 = vst [vmem:[%s15178_s29 + $0x50] sm:$0xff] %v7570_v60  ;;  %v17609_v60 = vld [vmem:[#allocation122_spill] sm:$0xff] }
 0xc0e   : > { %8702 = vmatmul.msk.f32.gmra.mxu3 %vm744_vm0, %v17603_v32  ;;  %7839 = vmatmul.f32.gmra.mxu2 %v14983_v5  ;;  %v17608_v5 = vld [vmem:[#allocation253_spill] sm:$0xff] }
 0xc0f   : > { %7732 = vmatmul.f32.gmra.mxu0 %v17605_v54  ;;  %v15585_v3 = vpop.f32.mrf.mxu1  ;;  %v7350_v27 = vadd.f32 %v17608_v5, %v15521_v15  ;;  %v17610_v54 = vld [vmem:[#allocation319_spill] sm:$0xff] }
 0xc11   : > { %v7572_v42 = vpop.f32.mrf.mxu3  ;;  %v7463_v0 = vadd.f32 %v15423_v20, %v7350_v27  ;;  %v15616_v27 = vpop.f32.mrf.mxu0 }
 0xc12   : > { %v7573_v6 = vadd.f32 %v7572_v42, %v7460_v13  ;;  %8716 = vmatmul.msk.f32.gmra.mxu1 %vm744_vm0, %v17606_v24  ;;  %v15604_v13 = vpop.f32.mrf.mxu2  ;;  %v17611_v42 = vld [vmem:[#allocation123_spill] sm:$0xff]  ;;  %v17613_v24 = vld [vmem:[#allocation112_spill] sm:$0xff] }
 0xc14   : > { %8008 = vst [vmem:[%s15178_s29 + $0x68] sm:$0xff] %v7573_v6 }
 0xc16   : > { %8703 = vmatmul.msk.f32.gmra.mxu3 %vm744_vm0, %v17607_v34  ;;  %7842 = vmatmul.f32.gmra.mxu2 %v14997_v45  ;;  %v17612_v45 = vld [vmem:[#allocation140_spill] sm:$0xff] }
 0xc17   : > { %7735 = vmatmul.f32.gmra.mxu0 %v17609_v60  ;;  %v15599_v17 = vpop.f32.mrf.mxu1  ;;  %v7353_v6 = vadd.f32 %v17612_v45, %v15521_v15 }
 0xc19   : > { %v7575_v25 = vpop.f32.mrf.mxu3  ;;  %v7466_v5 = vadd.f32 %v15435_v59, %v7353_v6  ;;  %v17617_v59 = vld [vmem:[#allocation170_spill] sm:$0xff] }
 0xc1a   : > { %v7576_v12 = vadd.f32 %v7575_v25, %v7463_v0  ;;  %8717 = vmatmul.msk.f32.gmra.mxu1 %vm744_vm0, %v17610_v54  ;;  %v15621_v25 = vpop.f32.mrf.mxu2 }
 0xc1b   : > { %17614 = vst [vmem:[#allocation54_spill] sm:$0xff] %v15621_v25  ;;  %v17629_v25 = vld [vmem:[#allocation258_spill] sm:$0xff] }
 0xc1c   : > { %8011 = vst [vmem:[%s15178_s29 + $0x80] sm:$0xff] %v7576_v12  ;;  %v17616_v12 = vld [vmem:[#allocation248_spill] sm:$0xff] }
 0xc1d   : > { %v7356_v54 = vadd.f32 %v17616_v12, %v15521_v15  ;;  %v17620_v12 = vld [vmem:[#allocation214_spill] sm:$0xff] }
 0xc1e   : > { %8704 = vmatmul.msk.f32.gmra.mxu3 %vm744_vm0, %v17611_v42  ;;  %7845 = vmatmul.f32.gmra.mxu2 %v15005_v41  ;;  %v17615_v41 = vld [vmem:[#allocation129_spill] sm:$0xff] }
 0xc1f   : > { %7738 = vmatmul.f32.gmra.mxu0 %v17613_v24  ;;  %v15613_v20 = vpop.f32.mrf.mxu1  ;;  %v7469_v6 = vadd.f32 %v15447_v40, %v7356_v54 }
 0xc21   : > { %v7578_v60 = vpop.f32.mrf.mxu3 }
 0xc22   : > { %v7579_v0 = vadd.f32 %v7578_v60, %v7466_v5  ;;  %8718 = vmatmul.msk.f32.gmra.mxu1 %vm744_vm0, %v17562_v63  ;;  %v15632_v63 = vpop.f32.mrf.mxu0  ;;  %v17618_v60 = vld [vmem:[#allocation26_spill] sm:$0xff]  ;;  %v15643_v40 = vpop.f32.mrf.mxu2 }
 0xc24   : > { %8014 = vst [vmem:[%s15178_s29 + $0x98] sm:$0xff] %v7579_v0 }
 0xc26   : > { %8705 = vmatmul.msk.f32.gmra.mxu3 %vm744_vm0, %v17615_v41  ;;  %7848 = vmatmul.f32.gmra.mxu2 %v15019_v52  ;;  %v17619_v52 = vld [vmem:[#allocation211_spill] sm:$0xff] }
 0xc27   : > { %7741 = vmatmul.f32.gmra.mxu0 %v17617_v59  ;;  %v15629_v45 = vpop.f32.mrf.mxu1  ;;  %v7359_v0 = vadd.f32 %v17619_v52, %v15521_v15 }
 0xc29   : > { %v7581_v24 = vpop.f32.mrf.mxu3  ;;  %v7472_v59 = vadd.f32 %v15457_v58, %v7359_v0 }
 0xc2a   : > { %v7582_v5 = vadd.f32 %v7581_v24, %v7469_v6  ;;  %8719 = vmatmul.msk.f32.gmra.mxu1 %vm744_vm0, %v17565_v35  ;;  %v15650_v24 = vpop.f32.mrf.mxu0 }
 0xc2c   : > { %8017 = vst [vmem:[%s15178_s29 + $0xb0] sm:$0xff] %v7582_v5  ;;  %v17622_v5 = vld [vmem:[#allocation70_spill] sm:$0xff] }
 0xc2d   : > { %v7362_v52 = vadd.f32 %v17622_v5, %v15521_v15 }
 0xc2e   : > { %8706 = vmatmul.msk.f32.gmra.mxu3 %vm744_vm0, %v17618_v60  ;;  %7851 = vmatmul.f32.gmra.mxu2 %v14939_v1  ;;  %v17621_v1 = vld [vmem:[#allocation191_spill] sm:$0xff] }
 0xc2f   : > { %7744 = vmatmul.f32.gmra.mxu0 %v17620_v12  ;;  %v15645_v54 = vpop.f32.mrf.mxu1  ;;  %v17623_v12 = vld [vmem:[#allocation127_spill] sm:$0xff]  ;;  %v7475_v0 = vadd.f32 %v15469_v47, %v7362_v52  ;;  %v17626_v47 = vld [vmem:[#allocation60_spill] sm:$0xff] }
 0xc31   : > { %v7584_v6 = vpop.f32.mrf.mxu3 }
 0xc32   : > { %v7585_v35 = vadd.f32 %v7584_v6, %v7472_v59  ;;  %8720 = vmatmul.msk.f32.gmra.mxu1 %vm744_vm0, %v17568_v51  ;;  %v15662_v59 = vpop.f32.mrf.mxu2 }
 0xc34   : > { %8020 = vst [vmem:[%s15178_s29 + $0xc8] sm:$0xff] %v7585_v35  ;;  %v17624_v35 = vld [vmem:[#allocation176_spill] sm:$0xff] }
 0xc36   : > { %8707 = vmatmul.msk.f32.gmra.mxu3 %vm744_vm0, %v17621_v1  ;;  %7854 = vmatmul.f32.gmra.mxu2 %v14947_v2  ;;  %v17625_v2 = vld [vmem:[#allocation227_spill] sm:$0xff] }
 0xc37   : > { %7747 = vmatmul.f32.gmra.mxu0 %v17623_v12  ;;  %v15659_v58 = vpop.f32.mrf.mxu1  ;;  %v7365_v5 = vadd.f32 %v17625_v2, %v15521_v15  ;;  %v15672_v12 = vpop.f32.mrf.mxu0  ;;  %v17628_v2 = vld [vmem:[#allocation41_spill] sm:$0xff] }
 0xc39   : > { %v7587_v51 = vpop.f32.mrf.mxu3 }
 0xc3a   : > { %v7588_v6 = vadd.f32 %v7587_v51, %v7475_v0  ;;  %8721 = vmatmul.msk.f32.gmra.mxu1 %vm744_vm0, %v17571_v57  ;;  %v7478_v0 = vadd.f32 %v15481_v18, %v7365_v5 }
 0xc3c   : > { %8023 = vst [vmem:[%s15178_s29 + $0xe0] sm:$0xff] %v7588_v6  ;;  %v15680_v6 = vpop.f32.mrf.mxu2 }
 0xc3e   : > { %8708 = vmatmul.msk.f32.gmra.mxu3 %vm744_vm0, %v17624_v35  ;;  %7857 = vmatmul.f32.gmra.mxu2 %v15052_v14  ;;  %v17627_v14 = vld [vmem:[#allocation38_spill] sm:$0xff] }
 0xc3f   : > { %7750 = vmatmul.f32.gmra.mxu0 %v17626_v47  ;;  %v15675_v52 = vpop.f32.mrf.mxu1  ;;  %v7368_v47 = vadd.f32 %v17628_v2, %v15521_v15 }
 0xc41   : > { %v7590_v51 = vpop.f32.mrf.mxu3  ;;  %v7481_v5 = vadd.f32 %v15493_v23, %v7368_v47  ;;  %v17632_v23 = vld [vmem:[#allocation117_spill] sm:$0xff] }
 0xc42   : > { %v7591_v57 = vadd.f32 %v7590_v51, %v7478_v0  ;;  %8722 = vmatmul.msk.f32.gmra.mxu1 %vm744_vm0, %v17574_v61  ;;  %v15692_v0 = vpop.f32.mrf.mxu0 }
 0xc44   : > { %8026 = vst [vmem:[%s15178_s29 + $0xf8] sm:$0xff] %v7591_v57  ;;  %v15697_v57 = vpop.f32.mrf.mxu2 }
 0xc46   : > { %8709 = vmatmul.msk.f32.gmra.mxu3 %vm744_vm0, %v17627_v14  ;;  %7860 = vmatmul.f32.gmra.mxu2 %v15061_v50  ;;  %v17630_v50 = vld [vmem:[#allocation42_spill] sm:$0xff] }
 0xc47   : > { %7753 = vmatmul.f32.gmra.mxu0 %v17629_v25  ;;  %v15689_v18 = vpop.f32.mrf.mxu1  ;;  %v17631_v25 = vld [vmem:[#allocation193_spill] sm:$0xff] }
 0xc48   : > { %v7371_v2 = vadd.f32 %v17631_v25, %v15521_v15 }
 0xc49   : > { %v7593_v61 = vpop.f32.mrf.mxu3 }
 0xc4a   : > { %v7594_v51 = vadd.f32 %v7593_v61, %v7481_v5  ;;  %8723 = vmatmul.msk.f32.gmra.mxu1 %vm744_vm0, %v17576_v8  ;;  %v7484_v5 = vadd.f32 %v15505_v62, %v7371_v2  ;;  %v15708_v8 = vpop.f32.mrf.mxu0 }
 0xc4c   : > { %8029 = vst [vmem:[%s15178_s29 + $0x110] sm:$0xff] %v7594_v51  ;;  %v15719_v62 = vpop.f32.mrf.mxu2 }
 0xc4e   : > { %8710 = vmatmul.msk.f32.gmra.mxu3 %vm744_vm0, %v17630_v50  ;;  %7863 = vmatmul.f32.gmra.mxu2 %v15116_v55  ;;  %v17633_v50 = vld [vmem:[#allocation148_spill] sm:$0xff]  ;;  %v17634_v55 = vld [vmem:[#allocation219_spill] sm:$0xff] }
 0xc4f   : > { %7756 = vmatmul.f32.gmra.mxu0 %v17632_v23  ;;  %v15705_v47 = vpop.f32.mrf.mxu1  ;;  %v7374_v25 = vadd.f32 %v17634_v55, %v15521_v15  ;;  %v17635_v23 = vld [vmem:[#allocation21_spill] sm:$0xff]  ;;  %v17637_v55 = vld [vmem:[#allocation50_spill] sm:$0xff] }
 0xc51   : > { %v7596_v61 = vpop.f32.mrf.mxu3 }
 0xc52   : > { %v7597_v51 = vadd.f32 %v7596_v61, %v7484_v5  ;;  %8724 = vmatmul.msk.f32.gmra.mxu1 %vm744_vm0, %v17579_v53  ;;  %v7487_v5 = vadd.f32 %v15515_v7, %v7374_v25 }
 0xc54   : > { %8032 = vst [vmem:[%s15178_s29 + $0x128] sm:$0xff] %v7597_v51  ;;  %v15726_v51 = vpop.f32.mrf.mxu0 }
 0xc56   : > { %8711 = vmatmul.msk.f32.gmra.mxu3 %vm744_vm0, %v17633_v50  ;;  %7866 = vmatmul.f32.gmra.mxu2 %v15129_v28  ;;  %v17636_v28 = vld [vmem:[#allocation37_spill] sm:$0xff] }
 0xc57   : > { %7759 = vmatmul.f32.gmra.mxu0 %v17635_v23  ;;  %v15721_v2 = vpop.f32.mrf.mxu1  ;;  %v7377_v23 = vadd.f32 %v17637_v55, %v15521_v15  ;;  %v17638_v50 = vld [vmem:[#allocation173_spill] sm:$0xff] }
 0xc59   : > { %v7599_v61 = vpop.f32.mrf.mxu3  ;;  %v7490_v25 = vadd.f32 %v15532_v39, %v7377_v23  ;;  %v17641_v39 = vld [vmem:[#allocation132_spill] sm:$0xff] }
 0xc5a   : > { %v7600_v53 = vadd.f32 %v7599_v61, %v7487_v5  ;;  %8725 = vmatmul.msk.f32.gmra.mxu1 %vm744_vm0, %v17582_v21  ;;  %v15738_v5 = vpop.f32.mrf.mxu2 }
 0xc5c   : > { %8035 = vst [vmem:[%s15178_s29 + $0x140] sm:$0xff] %v7600_v53  ;;  %v17639_v53 = vld [vmem:[#allocation46_spill] sm:$0xff]  ;;  %v15748_v55 = vpop.f32.mrf.mxu0 }
 0xc5e   : > { %8712 = vmatmul.msk.f32.gmra.mxu3 %vm744_vm0, %v17636_v28  ;;  %7869 = vmatmul.f32.gmra.mxu2 %v15138_v43  ;;  %v17640_v43 = vld [vmem:[#allocation152_spill] sm:$0xff] }
 0xc5f   : > { %7762 = vmatmul.f32.gmra.mxu0 %v17638_v50  ;;  %v15735_v7 = vpop.f32.mrf.mxu1  ;;  %v7380_v50 = vadd.f32 %v17640_v43, %v15521_v15 }
 0xc61   : > { %v7602_v21 = vpop.f32.mrf.mxu3 }
 0xc62   : > { %v7603_v61 = vadd.f32 %v7602_v21, %v7490_v25  ;;  %8726 = vmatmul.msk.f32.gmra.mxu1 %vm744_vm0, %v17584_v56  ;;  %v7493_v25 = vadd.f32 %v15546_v31, %v7380_v50 }
 0xc64   : > { %8038 = vst [vmem:[%s15178_s29 + $0x158] sm:$0xff] %v7603_v61  ;;  %v15756_v61 = vpop.f32.mrf.mxu2 }
 0xc66   : > { %8713 = vmatmul.msk.f32.gmra.mxu3 %vm744_vm0, %v17639_v53  ;;  %7872 = vmatmul.f32.gmra.mxu2 %v15151_v49  ;;  %v17642_v49 = vld [vmem:[#allocation57_spill] sm:$0xff] }
 0xc67   : > { %7765 = vmatmul.f32.gmra.mxu0 %v17641_v39  ;;  %v15751_v23 = vpop.f32.mrf.mxu1  ;;  %v7383_v43 = vadd.f32 %v17642_v49, %v15521_v15 }
 0xc69   : > { %v7605_v21 = vpop.f32.mrf.mxu3  ;;  %v7496_v39 = vadd.f32 %v15559_v46, %v7383_v43 }
 0xc6a   : > { %v7606_v56 = vadd.f32 %v7605_v21, %v7493_v25  ;;  %8727 = vmatmul.msk.f32.gmra.mxu1 %vm744_vm0, %v17587_v10  ;;  %v9442_v21 = vld [vmem:[#allocation10] sm:$0x7] }
 0xc6c   : > { %8041 = vst [vmem:[%s15178_s29 + $0x170] sm:$0xff] %v7606_v56  ;;  %v15768_v10 = vpop.f32.mrf.mxu2  ;;  %v15775_v56 = vperm.slane %v9442_v21, 2 }
 0xc6e   : > { %7875 = vmatmul.f32.gmra.mxu2 %v17540_v44  ;;  %v17643_v44 = vld [vmem:[#allocation156_spill] sm:$0xff] }
 0xc6f   : > { %v15762_v53 = vpop.f32.mrf.mxu1  ;;  %v7386_v50 = vadd.f32 %v17643_v44, %v15521_v15 }
 0xc71   : > { %v7608_v28 = vpop.f32.mrf.mxu3  ;;  %v7499_v46 = vadd.f32 %v15573_v16, %v7386_v50 }
 0xc72   : > { %v7609_v31 = vadd.f32 %v7608_v28, %v7496_v39  ;;  %8728 = vmatmul.msk.f32.gmra.mxu1 %vm744_vm0, %v17589_v19  ;;  %v17644_v19 = vld [vmem:[#allocation143_spill] sm:$0xff] }
 0xc73   : > { %v7389_v43 = vadd.f32 %v17644_v19, %v15521_v15 }
 0xc74   : > { %8044 = vst [vmem:[%s15178_s29 + $0x188] sm:$0xff] %v7609_v31 }
 0xc75   : > { %v7502_v44 = vadd.f32 %v15585_v3, %v7389_v43 }
 0xc76   : > { %7878 = vmatmul.f32.gmra.mxu2 %v17543_v9  ;;  %v7674_v9 = vadd.f32 %v15616_v27, %v15775_v56  ;;  %v17645_v27 = vld [vmem:[#allocation150_spill] sm:$0xff] }
 0xc77   : > { %v15773_v25 = vpop.f32.mrf.mxu1 }
 0xc78   : > { %v7787_v39 = vadd.f32 %v15643_v40, %v7674_v9  ;;  %v7392_v40 = vadd.f32 %v17645_v27, %v15521_v15 }
 0xc79   : > { %v7611_v28 = vpop.f32.mrf.mxu3 }
 0xc7a   : > { %v7612_v49 = vadd.f32 %v7611_v28, %v7499_v46  ;;  %8729 = vmatmul.msk.f32.gmra.mxu1 %vm744_vm0, %v17592_v48  ;;  %v7677_v48 = vadd.f32 %v15632_v63, %v15775_v56  ;;  %v7505_v3 = vadd.f32 %v15599_v17, %v7392_v40  ;;  %v7680_v63 = vadd.f32 %v15650_v24, %v15775_v56  ;;  %v17646_v17 = vld [vmem:[#allocation141_spill] sm:$0xff] }
 0xc7b   : > { %v7395_v43 = vadd.f32 %v17646_v17, %v15521_v15  ;;  %v7683_v24 = vadd.f32 %v15672_v12, %v15775_v56  ;;  %v7686_v12 = vadd.f32 %v15692_v0, %v15775_v56  ;;  %v17648_v0 = vld [vmem:[#allocation45_spill] sm:$0xff] }
 0xc7c   : > { %8047 = vst [vmem:[%s15178_s29 + $0x1a0] sm:$0xff] %v7612_v49  ;;  %v7790_v46 = vadd.f32 %v15662_v59, %v7677_v48  ;;  %v15807_v59 = vpop.f32.mrf.mxu2 }
 0xc7f   : > { %v7899_v31 = vpop.f32.mrf.mxu1 }
 0xc80   : > { %v7900_v16 = vadd.f32 %v7899_v31, %v7787_v39  ;;  %v7793_v39 = vadd.f32 %v15680_v6, %v7680_v63  ;;  %v17647_v6 = vld [vmem:[#allocation187_spill] sm:$0xff] }
 0xc81   : > { %v7614_v50 = vpop.f32.mrf.mxu3  ;;  %v7398_v48 = vadd.f32 %v17647_v6, %v15521_v15 }
 0xc82   : > { %7997 = vst.msk [vmem:[%s15178_s29 + $0x10] sm:$0xff] %vm744_vm0, %v7900_v16  ;;  %v7615_v21 = vadd.f32 %v7614_v50, %v7502_v44  ;;  %8730 = vmatmul.msk.f32.gmra.mxu1 %vm744_vm0, %v17595_v30  ;;  %v15802_v30 = vpop.f32.mrf.mxu0  ;;  %v7508_v44 = vadd.f32 %v15613_v20, %v7395_v43  ;;  %v7796_v20 = vadd.f32 %v15697_v57, %v7683_v24 }
 0xc83   : > { %v7401_v57 = vadd.f32 %v15474_v11, %v15521_v15  ;;  %v7689_v11 = vadd.f32 %v15708_v8, %v15775_v56 }
 0xc84   : > { %8050 = vst [vmem:[%s15178_s29 + $0x1b8] sm:$0xff] %v7615_v21  ;;  %v15825_v27 = vpop.f32.mrf.mxu2 }
 0xc87   : > { %v7902_v28 = vpop.f32.mrf.mxu1 }
 0xc88   : > { %v7903_v49 = vadd.f32 %v7902_v28, %v7790_v46  ;;  %v7511_v46 = vadd.f32 %v15629_v45, %v7398_v48 }
 0xc89   : > { %v7617_v9 = vpop.f32.mrf.mxu3 }
 0xc8a   : > { %8000 = vst.msk [vmem:[%s15178_s29 + $0x28] sm:$0xff] %vm744_vm0, %v7903_v49  ;;  %v7618_v19 = vadd.f32 %v7617_v9, %v7505_v3  ;;  %8731 = vmatmul.msk.f32.gmra.mxu1 %vm744_vm0, %v17596_v38  ;;  %v15820_v21 = vpop.f32.mrf.mxu0  ;;  %v7799_v49 = vadd.f32 %v15719_v62, %v7686_v12  ;;  %v7404_v62 = vadd.f32 %v17648_v0, %v15521_v15 }
 0xc8c   : > { %8053 = vst [vmem:[%s15178_s29 + $0x1d0] sm:$0xff] %v7618_v19  ;;  %v7514_v19 = vadd.f32 %v15645_v54, %v7401_v57  ;;  %v15841_v17 = vpop.f32.mrf.mxu2  ;;  %v7802_v54 = vadd.f32 %v15738_v5, %v7689_v11  ;;  %v7692_v5 = vadd.f32 %v15726_v51, %v15775_v56 }
 0xc8e   : > { %v7805_v24 = vadd.f32 %v15756_v61, %v7692_v5 }
 0xc8f   : > { %v7905_v31 = vpop.f32.mrf.mxu1 }
 0xc90   : > { %v7906_v16 = vadd.f32 %v7905_v31, %v7793_v39  ;;  %v7517_v31 = vadd.f32 %v15659_v58, %v7404_v62  ;;  %v17649_v58 = vld [vmem:[#allocation53_spill] sm:$0xff] }
 0xc91   : > { %v7620_v50 = vpop.f32.mrf.mxu3 }
 0xc92   : > { %8003 = vst.msk [vmem:[%s15178_s29 + $0x40] sm:$0xff] %vm744_vm0, %v7906_v16  ;;  %v7621_v38 = vadd.f32 %v7620_v50, %v7508_v44  ;;  %8732 = vmatmul.msk.f32.gmra.mxu1 %vm744_vm0, %v17598_v36  ;;  %v15838_v45 = vpop.f32.mrf.mxu0 }
 0xc94   : > { %8056 = vst [vmem:[%s15178_s29 + $0x1e8] sm:$0xff] %v7621_v38  ;;  %v15860_v8 = vpop.f32.mrf.mxu2  ;;  %v7407_v38 = vadd.f32 %v17649_v58, %v15521_v15 }
 0xc96   : > { %v7520_v48 = vadd.f32 %v15675_v52, %v7407_v38  ;;  %v7410_v52 = vadd.f32 %v15518_v4, %v15521_v15 }
 0xc97   : > { %v7908_v40 = vpop.f32.mrf.mxu1 }
 0xc98   : > { %v7909_v28 = vadd.f32 %v7908_v40, %v7796_v20 }
 0xc99   : > { %v7623_v3 = vpop.f32.mrf.mxu3 }
 0xc9a   : > { %8006 = vst.msk [vmem:[%s15178_s29 + $0x58] sm:$0xff] %vm744_vm0, %v7909_v28  ;;  %v7624_v36 = vadd.f32 %v7623_v3, %v7511_v46  ;;  %8733 = vmatmul.msk.f32.gmra.mxu1 %vm744_vm0, %v17600_v29  ;;  %v15854_v16 = vpop.f32.mrf.mxu0  ;;  %v7695_v46 = vadd.f32 %v15748_v55, %v15775_v56  ;;  %v7698_v55 = vadd.f32 %v15802_v30, %v15775_v56 }
 0xc9b   : > { %v7701_v30 = vadd.f32 %v15820_v21, %v15775_v56  ;;  %v7419_v21 = vadd.f32 %v15571_v33, %v15521_v15  ;;  %v7707_v33 = vadd.f32 %v15854_v16, %v15775_v56 }
 0xc9c   : > { %8059 = vst [vmem:[%s15178_s29 + $0x200] sm:$0xff] %v7624_v36  ;;  %v15878_v61 = vpop.f32.mrf.mxu2  ;;  %v7808_v28 = vadd.f32 %v15768_v10, %v7695_v46  ;;  %v7523_v36 = vadd.f32 %v15689_v18, %v7410_v52  ;;  %v7413_v10 = vadd.f32 %v15537_v22, %v15521_v15  ;;  %v7811_v18 = vadd.f32 %v15807_v59, %v7698_v55 }
 0xc9d   : > { %v7416_v22 = vadd.f32 %v15551_v26, %v15521_v15  ;;  %v7814_v59 = vadd.f32 %v15825_v27, %v7701_v30  ;;  %v7704_v26 = vadd.f32 %v15838_v45, %v15775_v56  ;;  %v7422_v45 = vadd.f32 %v15588_v37, %v15521_v15  ;;  %v17654_v30 = vld [vmem:[#allocation46_spill] sm:$0xff] }
 0xc9f   : > { %v7911_v9 = vpop.f32.mrf.mxu1  ;;  %v7529_v11 = vadd.f32 %v15721_v2, %v7416_v22  ;;  %v7817_v2 = vadd.f32 %v15841_v17, %v7704_v26  ;;  %v7535_v5 = vadd.f32 %v15751_v23, %v7422_v45 }
 0xca0   : > { %v7912_v63 = vadd.f32 %v7911_v9, %v7799_v49 }
 0xca1   : > { %v7626_v43 = vpop.f32.mrf.mxu3 }
 0xca2   : > { %8009 = vst.msk [vmem:[%s15178_s29 + $0x70] sm:$0xff] %vm744_vm0, %v7912_v63  ;;  %v7627_v29 = vadd.f32 %v7626_v43, %v7514_v19  ;;  %8734 = vmatmul.msk.f32.gmra.mxu1 %vm744_vm0, %v17603_v32  ;;  %v15873_v51 = vpop.f32.mrf.mxu0  ;;  %v7526_v19 = vadd.f32 %v15705_v47, %v7413_v10 }
 0xca3   : > { %v7710_v16 = vadd.f32 %v15873_v51, %v15775_v56 }
 0xca4   : > { %8062 = vst [vmem:[%s15178_s29 + $0x218] sm:$0xff] %v7627_v29  ;;  %v7825_v49 = vpop.f32.mrf.mxu2 }
 0xca5   : > { %v7823_v23 = vadd.f32 %v15878_v61, %v7710_v16 }
 0xca7   : > { %v7914_v39 = vpop.f32.mrf.mxu1 }
 0xca8   : > { %v7915_v44 = vadd.f32 %v7914_v39, %v7802_v54  ;;  %v7532_v39 = vadd.f32 %v15735_v7, %v7419_v21  ;;  %v7820_v7 = vadd.f32 %v15860_v8, %v7707_v33  ;;  %v7425_v8 = vadd.f32 %v15604_v13, %v15521_v15  ;;  %v17651_v13 = vld [vmem:[#allocation54_spill] sm:$0xff] }
 0xca9   : > { %v7629_v50 = vpop.f32.mrf.mxu3  ;;  %v7428_v61 = vadd.f32 %v17651_v13, %v15521_v15 }
 0xcaa   : > { %8012 = vst.msk [vmem:[%s15178_s29 + $0x88] sm:$0xff] %vm744_vm0, %v7915_v44  ;;  %v7630_v32 = vadd.f32 %v7629_v50, %v7517_v31  ;;  %8735 = vmatmul.msk.f32.gmra.mxu1 %vm744_vm0, %v17607_v34  ;;  %v7712_v4 = vpop.f32.mrf.mxu0 }
 0xcab   : > { %v7713_v51 = vadd.f32 %v7712_v4, %v15775_v56 }
 0xcac   : > { %8065 = vst [vmem:[%s15178_s29 + $0x230] sm:$0xff] %v7630_v32  ;;  %v7828_v62 = vpop.f32.mrf.mxu2 }
 0xcad   : > { %v7826_v52 = vadd.f32 %v7825_v49, %v7713_v51 }
 0xcaf   : > { %v7917_v6 = vpop.f32.mrf.mxu1 }
 0xcb0   : > { %v7918_v20 = vadd.f32 %v7917_v6, %v7805_v24 }
 0xcb1   : > { %v7632_v40 = vpop.f32.mrf.mxu3 }
 0xcb2   : > { %8015 = vst.msk [vmem:[%s15178_s29 + $0xa0] sm:$0xff] %vm744_vm0, %v7918_v20  ;;  %v7633_v34 = vadd.f32 %v7632_v40, %v7520_v48  ;;  %8736 = vmatmul.msk.f32.gmra.mxu1 %vm744_vm0, %v17611_v42  ;;  %v7715_v47 = vpop.f32.mrf.mxu0  ;;  %v7538_v48 = vadd.f32 %v15762_v53, %v7425_v8 }
 0xcb3   : > { %v7716_v55 = vadd.f32 %v7715_v47, %v15775_v56 }
 0xcb4   : > { %8068 = vst [vmem:[%s15178_s29 + $0x248] sm:$0xff] %v7633_v34  ;;  %v17650_v34 = vld [vmem:[#allocation42_spill] sm:$0xff] }
 0xcb5   : > { %v7829_v4 = vadd.f32 %v7828_v62, %v7716_v55 }
 0xcb7   : > { %v7920_v3 = vpop.f32.mrf.mxu1 }
 0xcb8   : > { %v7921_v12 = vadd.f32 %v7920_v3, %v7808_v28  ;;  %v7541_v3 = vadd.f32 %v15773_v25, %v7428_v61  ;;  %v17653_v25 = vld [vmem:[#allocation37_spill] sm:$0xff] }
 0xcb9   : > { %v7635_v57 = vpop.f32.mrf.mxu3 }
 0xcba   : > { %8018 = vst.msk [vmem:[%s15178_s29 + $0xb8] sm:$0xff] %vm744_vm0, %v7921_v12  ;;  %v7636_v42 = vadd.f32 %v7635_v57, %v7523_v36  ;;  %8737 = vmatmul.msk.f32.gmra.mxu1 %vm744_vm0, %v17615_v41  ;;  %v7718_v44 = vpop.f32.mrf.mxu0 }
 0xcbc   : > { %8071 = vst [vmem:[%s15178_s29 + $0x260] sm:$0xff] %v7636_v42  ;;  %v17652_v42 = vld [vmem:[#allocation148_spill] sm:$0xff] }
 0xcbf   : > { %v7923_v9 = vpop.f32.mrf.mxu1 }
 0xcc0   : > { %v7924_v63 = vadd.f32 %v7923_v9, %v7811_v18  ;;  %v7719_v9 = vadd.f32 %v7718_v44, %v15775_v56 }
 0xcc1   : > { %v7638_v43 = vpop.f32.mrf.mxu3 }
 0xcc2   : > { %8021 = vst.msk [vmem:[%s15178_s29 + $0xd0] sm:$0xff] %vm744_vm0, %v7924_v63  ;;  %v7639_v41 = vadd.f32 %v7638_v43, %v7526_v19  ;;  %8738 = vmatmul.msk.f32.gmra.mxu1 %vm744_vm0, %v17618_v60 }
 0xcc4   : > { %8074 = vst [vmem:[%s15178_s29 + $0x278] sm:$0xff] %v7639_v41 }
 0xcc7   : > { %v7926_v29 = vpop.f32.mrf.mxu1 }
 0xcc8   : > { %v7927_v0 = vadd.f32 %v7926_v29, %v7814_v59 }
 0xcc9   : > { %v7641_v54 = vpop.f32.mrf.mxu3 }
 0xcca   : > { %8024 = vst.msk [vmem:[%s15178_s29 + $0xe8] sm:$0xff] %vm744_vm0, %v7927_v0  ;;  %v7642_v60 = vadd.f32 %v7641_v54, %v7529_v11  ;;  %8739 = vmatmul.msk.f32.gmra.mxu1 %vm744_vm0, %v17621_v1  ;;  %v7831_v1 = vpop.f32.mrf.mxu2 }
 0xccb   : > { %v7832_v19 = vadd.f32 %v7831_v1, %v7719_v9 }
 0xccc   : > { %8077 = vst [vmem:[%s15178_s29 + $0x290] sm:$0xff] %v7642_v60 }
 0xccf   : > { %v7929_v27 = vpop.f32.mrf.mxu1 }
 0xcd0   : > { %v7930_v31 = vadd.f32 %v7929_v27, %v7817_v2 }
 0xcd1   : > { %v7644_v50 = vpop.f32.mrf.mxu3 }
 0xcd2   : > { %8027 = vst.msk [vmem:[%s15178_s29 + $0x100] sm:$0xff] %vm744_vm0, %v7930_v31  ;;  %v7645_v32 = vadd.f32 %v7644_v50, %v7532_v39  ;;  %8740 = vmatmul.msk.f32.gmra.mxu1 %vm744_vm0, %v17624_v35  ;;  %v7721_v35 = vpop.f32.mrf.mxu0  ;;  %v7834_v37 = vpop.f32.mrf.mxu2 }
 0xcd3   : > { %v7722_v59 = vadd.f32 %v7721_v35, %v15775_v56 }
 0xcd4   : > { %8080 = vst [vmem:[%s15178_s29 + $0x2a8] sm:$0xff] %v7645_v32 }
 0xcd5   : > { %v7835_v47 = vadd.f32 %v7834_v37, %v7722_v59 }
 0xcd7   : > { %v7932_v17 = vpop.f32.mrf.mxu1 }
 0xcd8   : > { %v7933_v58 = vadd.f32 %v7932_v17, %v7820_v7 }
 0xcd9   : > { %v7647_v38 = vpop.f32.mrf.mxu3 }
 0xcda   : > { %8030 = vst.msk [vmem:[%s15178_s29 + $0x118] sm:$0xff] %vm744_vm0, %v7933_v58  ;;  %v7648_v24 = vadd.f32 %v7647_v38, %v7535_v5  ;;  %8741 = vmatmul.msk.f32.gmra.mxu1 %vm744_vm0, %v17627_v14  ;;  %v7724_v46 = vpop.f32.mrf.mxu0  ;;  %v7837_v53 = vpop.f32.mrf.mxu2 }
 0xcdb   : > { %v7725_v62 = vadd.f32 %v7724_v46, %v15775_v56 }
 0xcdc   : > { %8083 = vst [vmem:[%s15178_s29 + $0x2c0] sm:$0xff] %v7648_v24 }
 0xcdd   : > { %v7838_v60 = vadd.f32 %v7837_v53, %v7725_v62 }
 0xcdf   : > { %v7935_v6 = vpop.f32.mrf.mxu1 }
 0xce0   : > { %v7936_v20 = vadd.f32 %v7935_v6, %v7823_v23 }
 0xce1   : > { %v7650_v40 = vpop.f32.mrf.mxu3 }
 0xce2   : > { %8033 = vst.msk [vmem:[%s15178_s29 + $0x130] sm:$0xff] %vm744_vm0, %v7936_v20  ;;  %v7651_v14 = vadd.f32 %v7650_v40, %v7538_v48  ;;  %8742 = vmatmul.msk.f32.gmra.mxu1 %vm744_vm0, %v17650_v34  ;;  %v7727_v15 = vpop.f32.mrf.mxu0  ;;  %v7840_v49 = vpop.f32.mrf.mxu2 }
 0xce3   : > { %v7728_v2 = vadd.f32 %v7727_v15, %v15775_v56 }
 0xce4   : > { %8086 = vst [vmem:[%s15178_s29 + $0x2d8] sm:$0xff] %v7651_v14 }
 0xce5   : > { %v7841_v39 = vadd.f32 %v7840_v49, %v7728_v2 }
 0xce7   : > { %v7938_v28 = vpop.f32.mrf.mxu1 }
 0xce8   : > { %v7939_v36 = vadd.f32 %v7938_v28, %v7826_v52 }
 0xce9   : > { %v7653_v12 = vpop.f32.mrf.mxu3 }
 0xcea   : > { %8036 = vst.msk [vmem:[%s15178_s29 + $0x148] sm:$0xff] %vm744_vm0, %v7939_v36  ;;  %v7654_v57 = vadd.f32 %v7653_v12, %v7541_v3  ;;  %8743 = vmatmul.msk.f32.gmra.mxu1 %vm744_vm0, %v17652_v42  ;;  %v7730_v41 = vpop.f32.mrf.mxu0  ;;  %v7843_v22 = vpop.f32.mrf.mxu2 }
 0xceb   : > { %v7731_v32 = vadd.f32 %v7730_v41, %v15775_v56 }
 0xcec   : > { %8089 = vst [vmem:[%s15178_s29 + $0x2f0] sm:$0xff] %v7654_v57 }
 0xced   : > { %v7844_v1 = vadd.f32 %v7843_v22, %v7731_v32 }
 0xcef   : > { %v7941_v10 = vpop.f32.mrf.mxu1 }
 0xcf0   : > { %v7942_v18 = vadd.f32 %v7941_v10, %v7829_v4 }
 0xcf2   : > { %8039 = vst.msk [vmem:[%s15178_s29 + $0x160] sm:$0xff] %vm744_vm0, %v7942_v18  ;;  %8744 = vmatmul.msk.f32.gmra.mxu1 %vm744_vm0, %v17653_v25  ;;  %v7733_v0 = vpop.f32.mrf.mxu0  ;;  %v7846_v54 = vpop.f32.mrf.mxu2 }
 0xcf3   : > { %v7734_v5 = vadd.f32 %v7733_v0, %v15775_v56 }
 0xcf5   : > { %v7847_v58 = vadd.f32 %v7846_v54, %v7734_v5 }
 0xcf7   : > { %v7944_v63 = vpop.f32.mrf.mxu1 }
 0xcf8   : > { %v7945_v43 = vadd.f32 %v7944_v63, %v7832_v19 }
 0xcfa   : > { %8042 = vst.msk [vmem:[%s15178_s29 + $0x178] sm:$0xff] %vm744_vm0, %v7945_v43  ;;  %8745 = vmatmul.msk.f32.gmra.mxu1 %vm744_vm0, %v17654_v30  ;;  %v7736_v27 = vpop.f32.mrf.mxu0  ;;  %v7849_v31 = vpop.f32.mrf.mxu2 }
 0xcfb   : > { %v7737_v37 = vadd.f32 %v7736_v27, %v15775_v56 }
 0xcfd   : > { %v7850_v8 = vadd.f32 %v7849_v31, %v7737_v37 }
 0xcff   : > { %v7947_v29 = vpop.f32.mrf.mxu1 }
 0xd00   : > { %v7948_v11 = vadd.f32 %v7947_v29, %v7835_v47 }
 0xd02   : > { %8045 = vst.msk [vmem:[%s15178_s29 + $0x190] sm:$0xff] %vm744_vm0, %v7948_v11  ;;  %v7739_v33 = vpop.f32.mrf.mxu0  ;;  %v7852_v17 = vpop.f32.mrf.mxu2 }
 0xd03   : > { %v7740_v20 = vadd.f32 %v7739_v33, %v15775_v56 }
 0xd05   : > { %v7853_v14 = vadd.f32 %v7852_v17, %v7740_v20 }
 0xd07   : > { %v7950_v26 = vpop.f32.mrf.mxu1 }
 0xd08   : > { %v7951_v21 = vadd.f32 %v7950_v26, %v7838_v60 }
 0xd0a   : > { %8048 = vst.msk [vmem:[%s15178_s29 + $0x1a8] sm:$0xff] %vm744_vm0, %v7951_v21  ;;  %v7742_v35 = vpop.f32.mrf.mxu0  ;;  %v7855_v16 = vpop.f32.mrf.mxu2 }
 0xd0b   : > { %v7743_v46 = vadd.f32 %v7742_v35, %v15775_v56 }
 0xd0d   : > { %v7856_v61 = vadd.f32 %v7855_v16, %v7743_v46 }
 0xd0f   : > { %v7953_v44 = vpop.f32.mrf.mxu1 }
 0xd10   : > { %v7954_v50 = vadd.f32 %v7953_v44, %v7841_v39 }
 0xd12   : > { %8051 = vst.msk [vmem:[%s15178_s29 + $0x1c0] sm:$0xff] %vm744_vm0, %v7954_v50  ;;  %v7745_v48 = vpop.f32.mrf.mxu0  ;;  %v7858_v40 = vpop.f32.mrf.mxu2 }
 0xd13   : > { %v7746_v3 = vadd.f32 %v7745_v48, %v15775_v56 }
 0xd15   : > { %v7859_v36 = vadd.f32 %v7858_v40, %v7746_v3 }
 0xd17   : > { %v7956_v45 = vpop.f32.mrf.mxu1 }
 0xd18   : > { %v7957_v7 = vadd.f32 %v7956_v45, %v7844_v1 }
 0xd1a   : > { %8054 = vst.msk [vmem:[%s15178_s29 + $0x1d8] sm:$0xff] %vm744_vm0, %v7957_v7  ;;  %v7748_v13 = vpop.f32.mrf.mxu0  ;;  %v7861_v52 = vpop.f32.mrf.mxu2 }
 0xd1b   : > { %v7749_v4 = vadd.f32 %v7748_v13, %v15775_v56 }
 0xd1d   : > { %v7862_v15 = vadd.f32 %v7861_v52, %v7749_v4 }
 0xd1f   : > { %v7959_v38 = vpop.f32.mrf.mxu1 }
 0xd20   : > { %v7960_v24 = vadd.f32 %v7959_v38, %v7847_v58 }
 0xd22   : > { %8057 = vst.msk [vmem:[%s15178_s29 + $0x1f0] sm:$0xff] %vm744_vm0, %v7960_v24  ;;  %v7751_v12 = vpop.f32.mrf.mxu0  ;;  %v7864_v55 = vpop.f32.mrf.mxu2 }
 0xd23   : > { %v7752_v9 = vadd.f32 %v7751_v12, %v15775_v56 }
 0xd25   : > { %v7865_v19 = vadd.f32 %v7864_v55, %v7752_v9 }
 0xd27   : > { %v7962_v23 = vpop.f32.mrf.mxu1 }
 0xd28   : > { %v7963_v6 = vadd.f32 %v7962_v23, %v7850_v8 }
 0xd2a   : > { %8060 = vst.msk [vmem:[%s15178_s29 + $0x208] sm:$0xff] %vm744_vm0, %v7963_v6  ;;  %v7754_v49 = vpop.f32.mrf.mxu0  ;;  %v7867_v25 = vpop.f32.mrf.mxu2 }
 0xd2b   : > { %v7755_v30 = vadd.f32 %v7754_v49, %v15775_v56 }
 0xd2d   : > { %v7868_v59 = vadd.f32 %v7867_v25, %v7755_v30 }
 0xd2f   : > { %v7965_v34 = vpop.f32.mrf.mxu1 }
 0xd30   : > { %v7966_v51 = vadd.f32 %v7965_v34, %v7853_v14 }
 0xd32   : > { %8063 = vst.msk [vmem:[%s15178_s29 + $0x220] sm:$0xff] %vm744_vm0, %v7966_v51  ;;  %v7757_v41 = vpop.f32.mrf.mxu0  ;;  %v7870_v22 = vpop.f32.mrf.mxu2 }
 0xd33   : > { %v7758_v11 = vadd.f32 %v7757_v41, %v15775_v56 }
 0xd35   : > { %v7871_v62 = vadd.f32 %v7870_v22, %v7758_v11 }
 0xd37   : > { %v7968_v53 = vpop.f32.mrf.mxu1 }
 0xd38   : > { %v7969_v28 = vadd.f32 %v7968_v53, %v7856_v61 }
 0xd3a   : > { %8066 = vst.msk [vmem:[%s15178_s29 + $0x238] sm:$0xff] %vm744_vm0, %v7969_v28  ;;  %v7760_v0 = vpop.f32.mrf.mxu0  ;;  %v7873_v54 = vpop.f32.mrf.mxu2 }
 0xd3b   : > { %v7761_v21 = vadd.f32 %v7760_v0, %v15775_v56 }
 0xd3d   : > { %v7874_v2 = vadd.f32 %v7873_v54, %v7761_v21 }
 0xd3f   : > { %v7971_v57 = vpop.f32.mrf.mxu1 }
 0xd40   : > { %v7972_v42 = vadd.f32 %v7971_v57, %v7859_v36 }
 0xd42   : > { %8069 = vst.msk [vmem:[%s15178_s29 + $0x250] sm:$0xff] %vm744_vm0, %v7972_v42  ;;  %v7763_v27 = vpop.f32.mrf.mxu0  ;;  %v7876_v44 = vpop.f32.mrf.mxu2 }
 0xd43   : > { %v7764_v50 = vadd.f32 %v7763_v27, %v15775_v56 }
 0xd45   : > { %v7877_v32 = vadd.f32 %v7876_v44, %v7764_v50 }
 0xd47   : > { %v7974_v10 = vpop.f32.mrf.mxu1 }
 0xd48   : > { %v7975_v18 = vadd.f32 %v7974_v10, %v7862_v15 }
 0xd4a   : > { %8072 = vst.msk [vmem:[%s15178_s29 + $0x268] sm:$0xff] %vm744_vm0, %v7975_v18  ;;  %v7766_v45 = vpop.f32.mrf.mxu0  ;;  %v7879_v7 = vpop.f32.mrf.mxu2 }
 0xd4b   : > { %v7767_v17 = vadd.f32 %v7766_v45, %v15775_v56 }
 0xd4d   : > { %v7880_v5 = vadd.f32 %v7879_v7, %v7767_v17 }
 0xd4f   : > { %v7977_v63 = vpop.f32.mrf.mxu1 }
 0xd50   : > { %v7978_v43 = vadd.f32 %v7977_v63, %v7865_v19 }
 0xd52   : > { %8075 = vst.msk [vmem:[%s15178_s29 + $0x280] sm:$0xff] %vm744_vm0, %v7978_v43 }
 0xd57   : > { %v7980_v47 = vpop.f32.mrf.mxu1 }
 0xd58   : > { %v7981_v29 = vadd.f32 %v7980_v47, %v7868_v59 }
 0xd5a   : > { %8078 = vst.msk [vmem:[%s15178_s29 + $0x298] sm:$0xff] %vm744_vm0, %v7981_v29 }
 0xd5f   : > { %v7983_v60 = vpop.f32.mrf.mxu1 }
 0xd60   : > { %v7984_v26 = vadd.f32 %v7983_v60, %v7871_v62 }
 0xd62   : > { %8081 = vst.msk [vmem:[%s15178_s29 + $0x2b0] sm:$0xff] %vm744_vm0, %v7984_v26 }
 0xd67   : > { %v7986_v39 = vpop.f32.mrf.mxu1 }
 0xd68   : > { %v7987_v31 = vadd.f32 %v7986_v39, %v7874_v2 }
 0xd6a   : > { %8084 = vst.msk [vmem:[%s15178_s29 + $0x2c8] sm:$0xff] %vm744_vm0, %v7987_v31 }
 0xd6f   : > { %v7989_v1 = vpop.f32.mrf.mxu1 }
 0xd70   : > { %v7990_v33 = vadd.f32 %v7989_v1, %v7877_v32 }
 0xd72   : > { %8087 = vst.msk [vmem:[%s15178_s29 + $0x2e0] sm:$0xff] %vm744_vm0, %v7990_v33 }
 0xd77   : > { %v7992_v58 = vpop.f32.mrf.mxu1 }
 0xd78   : > { %v7993_v38 = vadd.f32 %v7992_v58, %v7880_v5 }
 0xd7a   : > { %8090 = vst.msk [vmem:[%s15178_s29 + $0x2f8] sm:$0xff] %vm744_vm0, %v7993_v38 }
 0xd7b   : > { %9620 = shalt.err (!%p9617_p10)
}
 0xd7c   : > { %s9678_s1 = smov 384   ;;  %s9679_s6 = smov 24  }
 0xd7d   : > { %8813 = dma.vmem_to_hbm [thread:$0]  (%p9796_p0), %s8106_s12, 12288, %s8108_s13, %s8092_s22, %s9678_s1, %s9678_s1, %s9679_s6  }
 0xd7e PF: > { %p8845_p11 = scmp.ge.s32.totalorder %s9667_s21, 2  ;;  %s8122_s24 = sand.u32 1, %s9655_s18  }
 0xd7f   : > { %s8123_s29 = scalar_lea.sflag [#allocation4], %s8122_s24 }
 0xd80   : > { %p8833_p12 = pnand %p8845_p11, %p9745_p6 }
 0xd82   : > { %p8834_p13 = pneg %p8833_p12 }
 0xd84   : > { %9650 = dma.done.wait (%p8834_p13), %s8123_s29, 12288  }
 0xd85   : > { %9652 = vsyncadd (%p8834_p13), %s8123_s29, 4294955008  ;;  %p20_p3 = scmp.ge.s32.totalorder %s9786_s11, 6   ;;  %s17655_s18 = smov %s9659_s19 }
 0xd86   : > { %s17656_s19 = smov %s9663_s20  ;;  %s17657_s20 = smov %s9802_s17 }
 0xd87   : > { %s17658_s21 = smov %s9786_s11  ;;  %22 = sbr.rel (!%p20_p3) target bundleno = 9 (0x9), region = 101 }
 0xd8c   :  { %8129 = vsyncpa [#allocation3], 1 }
 0xd8d   :  { %8131 = vsyncpa [#allocation3 + $0x1], 1 }
 0xd8e   :  { %8132 = vsyncpa [#allocation6], 1 }
 0xd8f   :  { %8133 = vsyncpa [#allocation9], 1 }
 0xd90   :  { %8134 = vsyncpa [#allocation4], 1 }
 0xd91   :  { %8136 = vsyncpa [#allocation4 + $0x1], 1 }

</bundles_post_ra>
